<compile_context>
chip_gen: v6e
topology: v6e:2x2x1
jax: 0.10.0
libtpu: 0.0.40
codegen_flags: <defaults>
</compile_context>

<pallas_src>
import functools

import jax
import jax.numpy as jnp
from jax.experimental import pallas as pl
from jax.experimental.pallas import tpu as pltpu

HIDDEN_SIZE = 128
INPUT_SIZE = 28
NUM_CLASSES = 10
NUM_LAYERS = 2  # hard-coded as two stacked cells below (matches the module)


def _rnn_kernel(xflat_ref, wih0_ref, b0_ref, whh0_hbm, wl1_hbm, b1_ref,
                wfc_ref, bfc_ref, out_ref,
                proj_ref, xh_ref, whh0_ref, wl1_ref, dma_sem,
                *, seq_len, batch, hidden):
    T, Bp, H = seq_len, batch, hidden

    # ---- (5) Start recurrent-weight DMAs; they overlap the projection below.
    cp_whh0 = pltpu.make_async_copy(whh0_hbm, whh0_ref, dma_sem.at[0])
    cp_wl1 = pltpu.make_async_copy(wl1_hbm, wl1_ref, dma_sem.at[1])
    cp_whh0.start()
    cp_wl1.start()

    # ---- (7) Hoisted layer-0 input projection: one big MXU pass -------------
    # xflat: (T*Bp, Din) time-major, batch padded to Bp.  Bias b0 folded in.
    proj_ref[...] = (
        jnp.dot(xflat_ref[...], wih0_ref[...],
                preferred_element_type=jnp.float32)
        + b0_ref[...]
    )  # (T*Bp, 4H)

    # Loop-invariant bias broadcast, built once.
    b1 = jnp.broadcast_to(b1_ref[...], (Bp, 4 * H))

    h0 = jnp.zeros((Bp, H), jnp.float32)
    c0 = jnp.zeros((Bp, H), jnp.float32)
    h1 = jnp.zeros((Bp, H), jnp.float32)
    c1 = jnp.zeros((Bp, H), jnp.float32)

    def gate_act(gates):
        # (2)+(3) gates are in permuted [i, f, o, g] column order:
        # one tanh-based sigmoid over the first 3H lanes, one tanh over the
        # last H lanes -> 2 EUP pushes per layer per step.
        sfo = 0.5 * jnp.tanh(0.5 * gates[:, :3 * H]) + 0.5
        g = jnp.tanh(gates[:, 3 * H:])
        i = sfo[:, :H]
        f = sfo[:, H:2 * H]
        o = sfo[:, 2 * H:3 * H]
        return i, f, o, g

    # Recurrent weight must be resident before the first layer-0 step.
    cp_whh0.wait()

    # ---- Fully unrolled recurrence (T static & small) ------------------------
    for t in range(T):
        # Layer 0: input part precomputed; only the recurrent K=128 matmul
        # remains on the serial dependency chain.  Bp=8 -> slice starts are
        # sublane-aligned.
        gates0 = proj_ref[t * Bp:(t + 1) * Bp, :] + jnp.dot(
            h0, whh0_ref[...], preferred_element_type=jnp.float32)   # (Bp, 4H)
        i0, f0, o0, g0 = gate_act(gates0)
        c0 = f0 * c0 + i0 * g0
        h0 = o0 * jnp.tanh(c0)

        # Layer 1: fused ih/hh contraction, K = 2H = 256.  (4) h0/h1 written
        # into a persistent VMEM scratch instead of a per-step concatenate.
        if t == 0:
            cp_wl1.wait()
        xh_ref[:, :H] = h0
        xh_ref[:, H:] = h1
        gates1 = jnp.dot(xh_ref[...], wl1_ref[...],
                         preferred_element_type=jnp.float32) + b1     # (Bp, 4H)
        i1, f1, o1, g1 = gate_act(gates1)
        c1 = f1 * c1 + i1 * g1
        h1 = o1 * jnp.tanh(c1)

    # Final fully-connected layer on the last timestep of the top layer.
    out_ref[...] = (
        jnp.dot(h1, wfc_ref[...], preferred_element_type=jnp.float32)
        + bfc_ref[...]
    )


def rnn_forward(x, params):
    """x: (B, T, INPUT_SIZE) float32 (batch_first, like the PyTorch module)."""
    B, T, Din = x.shape
    H = HIDDEN_SIZE

    # (1) Pad batch to a multiple of 8 (f32 sublane count).  Padded rows are
    # zeros; their outputs are discarded below.
    Bp = max(8, ((B + 7) // 8) * 8)
    if Bp != B:
        x = jnp.zeros((Bp, T, Din), x.dtype).at[:B].set(x)

    # Time-major, row-flattened input so the kernel does ONE (T*Bp, Din)@(Din,4H)
    # projection before the recurrence.
    x_flat = jnp.transpose(x, (1, 0, 2)).reshape(T * Bp, Din)

    kernel = functools.partial(_rnn_kernel, seq_len=T, batch=Bp, hidden=H)
    vmem = pl.BlockSpec(memory_space=pltpu.MemorySpace.VMEM)
    anyspace = pl.BlockSpec(memory_space=pl.ANY)   # stays in HBM, DMA'd in-kernel

    out = pl.pallas_call(
        kernel,
        out_shape=jax.ShapeDtypeStruct((Bp, NUM_CLASSES), jnp.float32),
        in_specs=[vmem, vmem, vmem, anyspace, anyspace, vmem, vmem, vmem],
        out_specs=vmem,
        scratch_shapes=[
            pltpu.VMEM((T * Bp, 4 * H), jnp.float32),   # proj
            pltpu.VMEM((Bp, 2 * H), jnp.float32),        # persistent [h0|h1]
            pltpu.VMEM((H, 4 * H), jnp.float32),         # whh0 (manual DMA dst)
            pltpu.VMEM((2 * H, 4 * H), jnp.float32),     # wl1  (manual DMA dst)
            pltpu.SemaphoreType.DMA((2,)),
        ],
    )(
        x_flat,
        params["k_wih0"], params["k_b0"],
        params["k_whh0"], params["k_wl1"], params["k_b1"],
        params["w_fc"], params["b_fc"],
    )
    return out[:B]


def _to_ifog(w):
    """Permute last-axis gate blocks from PyTorch [i, f, g, o] to [i, f, o, g]."""
    H = HIDDEN_SIZE
    return jnp.concatenate(
        [w[..., :2 * H], w[..., 3 * H:4 * H], w[..., 2 * H:3 * H]], axis=-1)


def init_params(key):
    """Deterministic init matching PyTorch LSTM/Linear shapes (uniform(-k, k))."""
    H, D, C = HIDDEN_SIZE, INPUT_SIZE, NUM_CLASSES
    k_lstm = 1.0 / jnp.sqrt(H)
    k_fc = 1.0 / jnp.sqrt(H)
    keys = jax.random.split(key, 10)

    def u(k, shape, scale):
        return jax.random.uniform(k, shape, jnp.float32, -scale, scale)

    # PyTorch stores weight_ih_l* as (4H, in); we pre-transpose to (in, 4H).
    w_ih0 = u(keys[0], (D, 4 * H), k_lstm)
    w_hh0 = u(keys[1], (H, 4 * H), k_lstm)
    b_ih0 = u(keys[2], (4 * H,), k_lstm)
    b_hh0 = u(keys[3], (4 * H,), k_lstm)
    w_ih1 = u(keys[4], (H, 4 * H), k_lstm)
    w_hh1 = u(keys[5], (H, 4 * H), k_lstm)
    b_ih1 = u(keys[6], (4 * H,), k_lstm)
    b_hh1 = u(keys[7], (4 * H,), k_lstm)
    w_fc = u(keys[8], (H, C), k_fc)   # pre-transposed Linear weight
    b_fc = u(keys[9], (C,), k_fc)

    b0 = (b_ih0 + b_hh0).reshape(1, 4 * H)
    b1 = (b_ih1 + b_hh1).reshape(1, 4 * H)
    w_l1 = jnp.concatenate([w_ih1, w_hh1], axis=0)   # (2H, 4H), rows [ih; hh]

    return {
        # Reference weights: original PyTorch [i, f, g, o] gate order.
        "w_ih0": w_ih0, "w_hh0": w_hh0, "b0": b0,
        "w_ih1": w_ih1, "w_hh1": w_hh1, "b1": b1,
        "w_fc": w_fc, "b_fc": b_fc.reshape(1, C),
        # Kernel weights: gate columns permuted once to [i, f, o, g].
        "k_wih0": _to_ifog(w_ih0),
        "k_whh0": _to_ifog(w_hh0),
        "k_b0": _to_ifog(b0),
        "k_wl1": _to_ifog(w_l1),
        "k_b1": _to_ifog(b1),
    }


def _lstm_cell_ref(x_t, h, c, w_ih, w_hh, b, hidden):
    gates = jnp.dot(x_t, w_ih) + jnp.dot(h, w_hh) + b
    i = jax.nn.sigmoid(gates[:, 0 * hidden:1 * hidden])
    f = jax.nn.sigmoid(gates[:, 1 * hidden:2 * hidden])
    g = jnp.tanh(gates[:, 2 * hidden:3 * hidden])
    o = jax.nn.sigmoid(gates[:, 3 * hidden:4 * hidden])
    c_new = f * c + i * g
    h_new = o * jnp.tanh(c_new)
    return h_new, c_new


def rnn_forward_ref(x, params):
    """Pure-JAX reference (unfused math, original gate order) for correctness."""
    B, T, _ = x.shape
    H = HIDDEN_SIZE
    h0 = c0 = h1 = c1 = jnp.zeros((B, H), jnp.float32)
    for t in range(T):
        x_t = x[:, t, :]
        h0, c0 = _lstm_cell_ref(x_t, h0, c0, params["w_ih0"], params["w_hh0"],
                                params["b0"], H)
        h1, c1 = _lstm_cell_ref(h0, h1, c1, params["w_ih1"], params["w_hh1"],
                                params["b1"], H)
    return jnp.dot(h1, params["w_fc"]) + params["b_fc"]


if __name__ == "__main__":
    key = jax.random.PRNGKey(0)
    k_x, k_p = jax.random.split(key)

    batch, seq = 2, 8
    x = jax.random.normal(k_x, (batch, seq, INPUT_SIZE), jnp.float32)
    params = init_params(k_p)

    out = jax.block_until_ready(rnn_forward(x, params))
    ref = jax.block_until_ready(rnn_forward_ref(x, params))

    assert out.shape == (batch, NUM_CLASSES)
    assert jnp.allclose(out, ref, rtol=1e-4, atol=1e-4), "mismatch vs JAX reference"
    print("KERNEL_OK")
</pallas_src>

<mosaic_0001>
module attributes {stable_mosaic.version = 11 : i64} {
  func.func @_rnn_kernel(%arg0: memref<64x28xf32, #tpu.memory_space<vmem>>, %arg1: memref<28x512xf32, #tpu.memory_space<vmem>>, %arg2: memref<1x512xf32, #tpu.memory_space<vmem>>, %arg3: memref<128x512xf32, #tpu.memory_space<any>>, %arg4: memref<256x512xf32, #tpu.memory_space<any>>, %arg5: memref<1x512xf32, #tpu.memory_space<vmem>>, %arg6: memref<128x10xf32, #tpu.memory_space<vmem>>, %arg7: memref<1x10xf32, #tpu.memory_space<vmem>>, %arg8: memref<8x10xf32, #tpu.memory_space<vmem>>, %arg9: memref<64x512xf32, #tpu.memory_space<vmem>>, %arg10: memref<8x256xf32, #tpu.memory_space<vmem>>, %arg11: memref<128x512xf32, #tpu.memory_space<vmem>>, %arg12: memref<256x512xf32, #tpu.memory_space<vmem>>, %arg13: memref<2x!tpu.dma_semaphore, #tpu.memory_space<semaphore_mem>>) attributes {dimension_semantics = [], scalar_prefetch = 0 : i64, scratch_operands = 5 : i64, tpu.core_type = #tpu.core_type<tc>} {
    %c0_i32 = arith.constant 0 : i32
    %0 = tpu.memref_slice %arg13[%c0_i32] : memref<2x!tpu.dma_semaphore, #tpu.memory_space<semaphore_mem>> -> memref<1x!tpu.dma_semaphore, #tpu.memory_space<semaphore_mem>>
    %1 = tpu.memref_squeeze %0 : memref<1x!tpu.dma_semaphore, #tpu.memory_space<semaphore_mem>> -> memref<!tpu.dma_semaphore, #tpu.memory_space<semaphore_mem>>
    tpu.enqueue_dma source(%arg3 : memref<128x512xf32, #tpu.memory_space<any>>) target(%arg11 : memref<128x512xf32, #tpu.memory_space<vmem>>) target_semaphore(%1 : memref<!tpu.dma_semaphore, #tpu.memory_space<semaphore_mem>>)
    %c1_i32 = arith.constant 1 : i32
    %2 = tpu.memref_slice %arg13[%c1_i32] : memref<2x!tpu.dma_semaphore, #tpu.memory_space<semaphore_mem>> -> memref<1x!tpu.dma_semaphore, #tpu.memory_space<semaphore_mem>>
    %3 = tpu.memref_squeeze %2 : memref<1x!tpu.dma_semaphore, #tpu.memory_space<semaphore_mem>> -> memref<!tpu.dma_semaphore, #tpu.memory_space<semaphore_mem>>
    tpu.enqueue_dma source(%arg4 : memref<256x512xf32, #tpu.memory_space<any>>) target(%arg12 : memref<256x512xf32, #tpu.memory_space<vmem>>) target_semaphore(%3 : memref<!tpu.dma_semaphore, #tpu.memory_space<semaphore_mem>>)
    %c0 = arith.constant 0 : index
    %c0_0 = arith.constant 0 : index
    %4 = vector.load %arg0[%c0, %c0_0] : memref<64x28xf32, #tpu.memory_space<vmem>>, vector<64x28xf32>
    %c0_1 = arith.constant 0 : index
    %c0_2 = arith.constant 0 : index
    %5 = vector.load %arg1[%c0_1, %c0_2] : memref<28x512xf32, #tpu.memory_space<vmem>>, vector<28x512xf32>
    %cst = arith.constant dense<0.000000e+00> : vector<64x512xf32>
    %6 = tpu.matmul %4, %5, %cst {dimension_numbers = #tpu.dot_dimension_numbers<[1], [0], [0], [1], [0, 0, 1, 1], [], []>} : vector<64x28xf32>, vector<28x512xf32>, vector<64x512xf32> -> vector<64x512xf32>
    %c0_3 = arith.constant 0 : index
    %c0_4 = arith.constant 0 : index
    %7 = vector.load %arg2[%c0_3, %c0_4] : memref<1x512xf32, #tpu.memory_space<vmem>>, vector<1x512xf32>
    %8 = vector.broadcast %7 : vector<1x512xf32> to vector<64x512xf32>
    %9 = arith.addf %6, %8 : vector<64x512xf32>
    %c0_5 = arith.constant 0 : index
    %c0_6 = arith.constant 0 : index
    %10 = vector.load %arg9[%c0_5, %c0_6] : memref<64x512xf32, #tpu.memory_space<vmem>>, vector<64x512xf32>
    tpu.vector_store %arg9[%c0_5, %c0_6], %9 {strides = array<i32>} : memref<64x512xf32, #tpu.memory_space<vmem>>, vector<64x512xf32>,
    %c0_7 = arith.constant 0 : index
    %c0_8 = arith.constant 0 : index
    %11 = vector.load %arg5[%c0_7, %c0_8] : memref<1x512xf32, #tpu.memory_space<vmem>>, vector<1x512xf32>
    %12 = vector.shape_cast %11 : vector<1x512xf32> to vector<1x512xf32>
    %13 = vector.broadcast %12 : vector<1x512xf32> to vector<8x512xf32>
    %cst_9 = arith.constant 0.000000e+00 : f32
    %14 = vector.broadcast %cst_9 : f32 to vector<8x128xf32>
    %cst_10 = arith.constant 0.000000e+00 : f32
    %15 = vector.broadcast %cst_10 : f32 to vector<8x128xf32>
    %cst_11 = arith.constant 0.000000e+00 : f32
    %16 = vector.broadcast %cst_11 : f32 to vector<8x128xf32>
    %cst_12 = arith.constant 0.000000e+00 : f32
    %17 = vector.broadcast %cst_12 : f32 to vector<8x128xf32>
    %c0_i32_13 = arith.constant 0 : i32
    %18 = tpu.memref_slice %arg13[%c0_i32_13] : memref<2x!tpu.dma_semaphore, #tpu.memory_space<semaphore_mem>> -> memref<1x!tpu.dma_semaphore, #tpu.memory_space<semaphore_mem>>
    %19 = tpu.memref_squeeze %18 : memref<1x!tpu.dma_semaphore, #tpu.memory_space<semaphore_mem>> -> memref<!tpu.dma_semaphore, #tpu.memory_space<semaphore_mem>>
    tpu.wait_dma2 semaphore(%19 : memref<!tpu.dma_semaphore, #tpu.memory_space<semaphore_mem>>) src(%arg3 : memref<128x512xf32, #tpu.memory_space<any>>) dst(%arg11 : memref<128x512xf32, #tpu.memory_space<vmem>>)
    %c0_14 = arith.constant 0 : index
    %c0_15 = arith.constant 0 : index
    %20 = vector.load %arg9[%c0_14, %c0_15] : memref<64x512xf32, #tpu.memory_space<vmem>>, vector<8x512xf32>
    %c0_16 = arith.constant 0 : index
    %c0_17 = arith.constant 0 : index
    %21 = vector.load %arg11[%c0_16, %c0_17] : memref<128x512xf32, #tpu.memory_space<vmem>>, vector<128x512xf32>
    %cst_18 = arith.constant dense<0.000000e+00> : vector<8x512xf32>
    %22 = tpu.matmul %14, %21, %cst_18 {dimension_numbers = #tpu.dot_dimension_numbers<[1], [0], [0], [1], [0, 0, 1, 1], [], []>} : vector<8x128xf32>, vector<128x512xf32>, vector<8x512xf32> -> vector<8x512xf32>
    %23 = arith.addf %20, %22 : vector<8x512xf32>
    %24 = vector.extract_strided_slice %23 {offsets = [0, 0], sizes = [8, 384], strides = [1, 1]} : vector<8x512xf32> to vector<8x384xf32>
    %cst_19 = arith.constant 5.000000e-01 : f32
    %25 = vector.broadcast %cst_19 : f32 to vector<8x384xf32>
    %26 = arith.mulf %25, %24 : vector<8x384xf32>
    %27 = math.tanh %26 : vector<8x384xf32>
    %cst_20 = arith.constant 5.000000e-01 : f32
    %28 = vector.broadcast %cst_20 : f32 to vector<8x384xf32>
    %29 = arith.mulf %28, %27 : vector<8x384xf32>
    %cst_21 = arith.constant 5.000000e-01 : f32
    %30 = vector.broadcast %cst_21 : f32 to vector<8x384xf32>
    %31 = arith.addf %29, %30 : vector<8x384xf32>
    %32 = vector.extract_strided_slice %23 {offsets = [0, 384], sizes = [8, 128], strides = [1, 1]} : vector<8x512xf32> to vector<8x128xf32>
    %33 = math.tanh %32 : vector<8x128xf32>
    %34 = vector.extract_strided_slice %31 {offsets = [0, 0], sizes = [8, 128], strides = [1, 1]} : vector<8x384xf32> to vector<8x128xf32>
    %35 = vector.extract_strided_slice %31 {offsets = [0, 128], sizes = [8, 128], strides = [1, 1]} : vector<8x384xf32> to vector<8x128xf32>
    %36 = vector.extract_strided_slice %31 {offsets = [0, 256], sizes = [8, 128], strides = [1, 1]} : vector<8x384xf32> to vector<8x128xf32>
    %37 = arith.mulf %35, %15 : vector<8x128xf32>
    %38 = arith.mulf %34, %33 : vector<8x128xf32>
    %39 = arith.addf %37, %38 : vector<8x128xf32>
    %40 = math.tanh %39 : vector<8x128xf32>
    %41 = arith.mulf %36, %40 : vector<8x128xf32>
    %c1_i32_22 = arith.constant 1 : i32
    %42 = tpu.memref_slice %arg13[%c1_i32_22] : memref<2x!tpu.dma_semaphore, #tpu.memory_space<semaphore_mem>> -> memref<1x!tpu.dma_semaphore, #tpu.memory_space<semaphore_mem>>
    %43 = tpu.memref_squeeze %42 : memref<1x!tpu.dma_semaphore, #tpu.memory_space<semaphore_mem>> -> memref<!tpu.dma_semaphore, #tpu.memory_space<semaphore_mem>>
    tpu.wait_dma2 semaphore(%43 : memref<!tpu.dma_semaphore, #tpu.memory_space<semaphore_mem>>) src(%arg4 : memref<256x512xf32, #tpu.memory_space<any>>) dst(%arg12 : memref<256x512xf32, #tpu.memory_space<vmem>>)
    %c0_23 = arith.constant 0 : index
    %c0_24 = arith.constant 0 : index
    %44 = vector.load %arg10[%c0_23, %c0_24] : memref<8x256xf32, #tpu.memory_space<vmem>>, vector<8x128xf32>
    tpu.vector_store %arg10[%c0_23, %c0_24], %41 {strides = array<i32>} : memref<8x256xf32, #tpu.memory_space<vmem>>, vector<8x128xf32>,
    %c0_25 = arith.constant 0 : index
    %c128 = arith.constant 128 : index
    %45 = vector.load %arg10[%c0_25, %c128] : memref<8x256xf32, #tpu.memory_space<vmem>>, vector<8x128xf32>
    tpu.vector_store %arg10[%c0_25, %c128], %16 {strides = array<i32>} : memref<8x256xf32, #tpu.memory_space<vmem>>, vector<8x128xf32>,
    %c0_26 = arith.constant 0 : index
    %c0_27 = arith.constant 0 : index
    %46 = vector.load %arg10[%c0_26, %c0_27] : memref<8x256xf32, #tpu.memory_space<vmem>>, vector<8x256xf32>
    %c0_28 = arith.constant 0 : index
    %c0_29 = arith.constant 0 : index
    %47 = vector.load %arg12[%c0_28, %c0_29] : memref<256x512xf32, #tpu.memory_space<vmem>>, vector<256x512xf32>
    %cst_30 = arith.constant dense<0.000000e+00> : vector<8x512xf32>
    %48 = tpu.matmul %46, %47, %cst_30 {dimension_numbers = #tpu.dot_dimension_numbers<[1], [0], [0], [1], [0, 0, 1, 1], [], []>} : vector<8x256xf32>, vector<256x512xf32>, vector<8x512xf32> -> vector<8x512xf32>
    %49 = arith.addf %48, %13 : vector<8x512xf32>
    %50 = vector.extract_strided_slice %49 {offsets = [0, 0], sizes = [8, 384], strides = [1, 1]} : vector<8x512xf32> to vector<8x384xf32>
    %cst_31 = arith.constant 5.000000e-01 : f32
    %51 = vector.broadcast %cst_31 : f32 to vector<8x384xf32>
    %52 = arith.mulf %51, %50 : vector<8x384xf32>
    %53 = math.tanh %52 : vector<8x384xf32>
    %cst_32 = arith.constant 5.000000e-01 : f32
    %54 = vector.broadcast %cst_32 : f32 to vector<8x384xf32>
    %55 = arith.mulf %54, %53 : vector<8x384xf32>
    %cst_33 = arith.constant 5.000000e-01 : f32
    %56 = vector.broadcast %cst_33 : f32 to vector<8x384xf32>
    %57 = arith.addf %55, %56 : vector<8x384xf32>
    %58 = vector.extract_strided_slice %49 {offsets = [0, 384], sizes = [8, 128], strides = [1, 1]} : vector<8x512xf32> to vector<8x128xf32>
    %59 = math.tanh %58 : vector<8x128xf32>
    %60 = vector.extract_strided_slice %57 {offsets = [0, 0], sizes = [8, 128], strides = [1, 1]} : vector<8x384xf32> to vector<8x128xf32>
    %61 = vector.extract_strided_slice %57 {offsets = [0, 128], sizes = [8, 128], strides = [1, 1]} : vector<8x384xf32> to vector<8x128xf32>
    %62 = vector.extract_strided_slice %57 {offsets = [0, 256], sizes = [8, 128], strides = [1, 1]} : vector<8x384xf32> to vector<8x128xf32>
    %63 = arith.mulf %61, %17 : vector<8x128xf32>
    %64 = arith.mulf %60, %59 : vector<8x128xf32>
    %65 = arith.addf %63, %64 : vector<8x128xf32>
    %66 = math.tanh %65 : vector<8x128xf32>
    %67 = arith.mulf %62, %66 : vector<8x128xf32>
    %c8 = arith.constant 8 : index
    %c0_34 = arith.constant 0 : index
    %68 = vector.load %arg9[%c8, %c0_34] : memref<64x512xf32, #tpu.memory_space<vmem>>, vector<8x512xf32>
    %c0_35 = arith.constant 0 : index
    %c0_36 = arith.constant 0 : index
    %69 = vector.load %arg11[%c0_35, %c0_36] : memref<128x512xf32, #tpu.memory_space<vmem>>, vector<128x512xf32>
    %cst_37 = arith.constant dense<0.000000e+00> : vector<8x512xf32>
    %70 = tpu.matmul %41, %69, %cst_37 {dimension_numbers = #tpu.dot_dimension_numbers<[1], [0], [0], [1], [0, 0, 1, 1], [], []>} : vector<8x128xf32>, vector<128x512xf32>, vector<8x512xf32> -> vector<8x512xf32>
    %71 = arith.addf %68, %70 : vector<8x512xf32>
    %72 = vector.extract_strided_slice %71 {offsets = [0, 0], sizes = [8, 384], strides = [1, 1]} : vector<8x512xf32> to vector<8x384xf32>
    %cst_38 = arith.constant 5.000000e-01 : f32
    %73 = vector.broadcast %cst_38 : f32 to vector<8x384xf32>
    %74 = arith.mulf %73, %72 : vector<8x384xf32>
    %75 = math.tanh %74 : vector<8x384xf32>
    %cst_39 = arith.constant 5.000000e-01 : f32
    %76 = vector.broadcast %cst_39 : f32 to vector<8x384xf32>
    %77 = arith.mulf %76, %75 : vector<8x384xf32>
    %cst_40 = arith.constant 5.000000e-01 : f32
    %78 = vector.broadcast %cst_40 : f32 to vector<8x384xf32>
    %79 = arith.addf %77, %78 : vector<8x384xf32>
    %80 = vector.extract_strided_slice %71 {offsets = [0, 384], sizes = [8, 128], strides = [1, 1]} : vector<8x512xf32> to vector<8x128xf32>
    %81 = math.tanh %80 : vector<8x128xf32>
    %82 = vector.extract_strided_slice %79 {offsets = [0, 0], sizes = [8, 128], strides = [1, 1]} : vector<8x384xf32> to vector<8x128xf32>
    %83 = vector.extract_strided_slice %79 {offsets = [0, 128], sizes = [8, 128], strides = [1, 1]} : vector<8x384xf32> to vector<8x128xf32>
    %84 = vector.extract_strided_slice %79 {offsets = [0, 256], sizes = [8, 128], strides = [1, 1]} : vector<8x384xf32> to vector<8x128xf32>
    %85 = arith.mulf %83, %39 : vector<8x128xf32>
    %86 = arith.mulf %82, %81 : vector<8x128xf32>
    %87 = arith.addf %85, %86 : vector<8x128xf32>
    %88 = math.tanh %87 : vector<8x128xf32>
    %89 = arith.mulf %84, %88 : vector<8x128xf32>
    %c0_41 = arith.constant 0 : index
    %c0_42 = arith.constant 0 : index
    %90 = vector.load %arg10[%c0_41, %c0_42] : memref<8x256xf32, #tpu.memory_space<vmem>>, vector<8x128xf32>
    tpu.vector_store %arg10[%c0_41, %c0_42], %89 {strides = array<i32>} : memref<8x256xf32, #tpu.memory_space<vmem>>, vector<8x128xf32>,
    %c0_43 = arith.constant 0 : index
    %c128_44 = arith.constant 128 : index
    %91 = vector.load %arg10[%c0_43, %c128_44] : memref<8x256xf32, #tpu.memory_space<vmem>>, vector<8x128xf32>
    tpu.vector_store %arg10[%c0_43, %c128_44], %67 {strides = array<i32>} : memref<8x256xf32, #tpu.memory_space<vmem>>, vector<8x128xf32>,
    %c0_45 = arith.constant 0 : index
    %c0_46 = arith.constant 0 : index
    %92 = vector.load %arg10[%c0_45, %c0_46] : memref<8x256xf32, #tpu.memory_space<vmem>>, vector<8x256xf32>
    %c0_47 = arith.constant 0 : index
    %c0_48 = arith.constant 0 : index
    %93 = vector.load %arg12[%c0_47, %c0_48] : memref<256x512xf32, #tpu.memory_space<vmem>>, vector<256x512xf32>
    %cst_49 = arith.constant dense<0.000000e+00> : vector<8x512xf32>
    %94 = tpu.matmul %92, %93, %cst_49 {dimension_numbers = #tpu.dot_dimension_numbers<[1], [0], [0], [1], [0, 0, 1, 1], [], []>} : vector<8x256xf32>, vector<256x512xf32>, vector<8x512xf32> -> vector<8x512xf32>
    %95 = arith.addf %94, %13 : vector<8x512xf32>
    %96 = vector.extract_strided_slice %95 {offsets = [0, 0], sizes = [8, 384], strides = [1, 1]} : vector<8x512xf32> to vector<8x384xf32>
    %cst_50 = arith.constant 5.000000e-01 : f32
    %97 = vector.broadcast %cst_50 : f32 to vector<8x384xf32>
    %98 = arith.mulf %97, %96 : vector<8x384xf32>
    %99 = math.tanh %98 : vector<8x384xf32>
    %cst_51 = arith.constant 5.000000e-01 : f32
    %100 = vector.broadcast %cst_51 : f32 to vector<8x384xf32>
    %101 = arith.mulf %100, %99 : vector<8x384xf32>
    %cst_52 = arith.constant 5.000000e-01 : f32
    %102 = vector.broadcast %cst_52 : f32 to vector<8x384xf32>
    %103 = arith.addf %101, %102 : vector<8x384xf32>
    %104 = vector.extract_strided_slice %95 {offsets = [0, 384], sizes = [8, 128], strides = [1, 1]} : vector<8x512xf32> to vector<8x128xf32>
    %105 = math.tanh %104 : vector<8x128xf32>
    %106 = vector.extract_strided_slice %103 {offsets = [0, 0], sizes = [8, 128], strides = [1, 1]} : vector<8x384xf32> to vector<8x128xf32>
    %107 = vector.extract_strided_slice %103 {offsets = [0, 128], sizes = [8, 128], strides = [1, 1]} : vector<8x384xf32> to vector<8x128xf32>
    %108 = vector.extract_strided_slice %103 {offsets = [0, 256], sizes = [8, 128], strides = [1, 1]} : vector<8x384xf32> to vector<8x128xf32>
    %109 = arith.mulf %107, %65 : vector<8x128xf32>
    %110 = arith.mulf %106, %105 : vector<8x128xf32>
    %111 = arith.addf %109, %110 : vector<8x128xf32>
    %112 = math.tanh %111 : vector<8x128xf32>
    %113 = arith.mulf %108, %112 : vector<8x128xf32>
    %c16 = arith.constant 16 : index
    %c0_53 = arith.constant 0 : index
    %114 = vector.load %arg9[%c16, %c0_53] : memref<64x512xf32, #tpu.memory_space<vmem>>, vector<8x512xf32>
    %c0_54 = arith.constant 0 : index
    %c0_55 = arith.constant 0 : index
    %115 = vector.load %arg11[%c0_54, %c0_55] : memref<128x512xf32, #tpu.memory_space<vmem>>, vector<128x512xf32>
    %cst_56 = arith.constant dense<0.000000e+00> : vector<8x512xf32>
    %116 = tpu.matmul %89, %115, %cst_56 {dimension_numbers = #tpu.dot_dimension_numbers<[1], [0], [0], [1], [0, 0, 1, 1], [], []>} : vector<8x128xf32>, vector<128x512xf32>, vector<8x512xf32> -> vector<8x512xf32>
    %117 = arith.addf %114, %116 : vector<8x512xf32>
    %118 = vector.extract_strided_slice %117 {offsets = [0, 0], sizes = [8, 384], strides = [1, 1]} : vector<8x512xf32> to vector<8x384xf32>
    %cst_57 = arith.constant 5.000000e-01 : f32
    %119 = vector.broadcast %cst_57 : f32 to vector<8x384xf32>
    %120 = arith.mulf %119, %118 : vector<8x384xf32>
    %121 = math.tanh %120 : vector<8x384xf32>
    %cst_58 = arith.constant 5.000000e-01 : f32
    %122 = vector.broadcast %cst_58 : f32 to vector<8x384xf32>
    %123 = arith.mulf %122, %121 : vector<8x384xf32>
    %cst_59 = arith.constant 5.000000e-01 : f32
    %124 = vector.broadcast %cst_59 : f32 to vector<8x384xf32>
    %125 = arith.addf %123, %124 : vector<8x384xf32>
    %126 = vector.extract_strided_slice %117 {offsets = [0, 384], sizes = [8, 128], strides = [1, 1]} : vector<8x512xf32> to vector<8x128xf32>
    %127 = math.tanh %126 : vector<8x128xf32>
    %128 = vector.extract_strided_slice %125 {offsets = [0, 0], sizes = [8, 128], strides = [1, 1]} : vector<8x384xf32> to vector<8x128xf32>
    %129 = vector.extract_strided_slice %125 {offsets = [0, 128], sizes = [8, 128], strides = [1, 1]} : vector<8x384xf32> to vector<8x128xf32>
    %130 = vector.extract_strided_slice %125 {offsets = [0, 256], sizes = [8, 128], strides = [1, 1]} : vector<8x384xf32> to vector<8x128xf32>
    %131 = arith.mulf %129, %87 : vector<8x128xf32>
    %132 = arith.mulf %128, %127 : vector<8x128xf32>
    %133 = arith.addf %131, %132 : vector<8x128xf32>
    %134 = math.tanh %133 : vector<8x128xf32>
    %135 = arith.mulf %130, %134 : vector<8x128xf32>
    %c0_60 = arith.constant 0 : index
    %c0_61 = arith.constant 0 : index
    %136 = vector.load %arg10[%c0_60, %c0_61] : memref<8x256xf32, #tpu.memory_space<vmem>>, vector<8x128xf32>
    tpu.vector_store %arg10[%c0_60, %c0_61], %135 {strides = array<i32>} : memref<8x256xf32, #tpu.memory_space<vmem>>, vector<8x128xf32>,
    %c0_62 = arith.constant 0 : index
    %c128_63 = arith.constant 128 : index
    %137 = vector.load %arg10[%c0_62, %c128_63] : memref<8x256xf32, #tpu.memory_space<vmem>>, vector<8x128xf32>
    tpu.vector_store %arg10[%c0_62, %c128_63], %113 {strides = array<i32>} : memref<8x256xf32, #tpu.memory_space<vmem>>, vector<8x128xf32>,
    %c0_64 = arith.constant 0 : index
    %c0_65 = arith.constant 0 : index
    %138 = vector.load %arg10[%c0_64, %c0_65] : memref<8x256xf32, #tpu.memory_space<vmem>>, vector<8x256xf32>
    %c0_66 = arith.constant 0 : index
    %c0_67 = arith.constant 0 : index
    %139 = vector.load %arg12[%c0_66, %c0_67] : memref<256x512xf32, #tpu.memory_space<vmem>>, vector<256x512xf32>
    %cst_68 = arith.constant dense<0.000000e+00> : vector<8x512xf32>
    %140 = tpu.matmul %138, %139, %cst_68 {dimension_numbers = #tpu.dot_dimension_numbers<[1], [0], [0], [1], [0, 0, 1, 1], [], []>} : vector<8x256xf32>, vector<256x512xf32>, vector<8x512xf32> -> vector<8x512xf32>
    %141 = arith.addf %140, %13 : vector<8x512xf32>
    %142 = vector.extract_strided_slice %141 {offsets = [0, 0], sizes = [8, 384], strides = [1, 1]} : vector<8x512xf32> to vector<8x384xf32>
    %cst_69 = arith.constant 5.000000e-01 : f32
    %143 = vector.broadcast %cst_69 : f32 to vector<8x384xf32>
    %144 = arith.mulf %143, %142 : vector<8x384xf32>
    %145 = math.tanh %144 : vector<8x384xf32>
    %cst_70 = arith.constant 5.000000e-01 : f32
    %146 = vector.broadcast %cst_70 : f32 to vector<8x384xf32>
    %147 = arith.mulf %146, %145 : vector<8x384xf32>
    %cst_71 = arith.constant 5.000000e-01 : f32
    %148 = vector.broadcast %cst_71 : f32 to vector<8x384xf32>
    %149 = arith.addf %147, %148 : vector<8x384xf32>
    %150 = vector.extract_strided_slice %141 {offsets = [0, 384], sizes = [8, 128], strides = [1, 1]} : vector<8x512xf32> to vector<8x128xf32>
    %151 = math.tanh %150 : vector<8x128xf32>
    %152 = vector.extract_strided_slice %149 {offsets = [0, 0], sizes = [8, 128], strides = [1, 1]} : vector<8x384xf32> to vector<8x128xf32>
    %153 = vector.extract_strided_slice %149 {offsets = [0, 128], sizes = [8, 128], strides = [1, 1]} : vector<8x384xf32> to vector<8x128xf32>
    %154 = vector.extract_strided_slice %149 {offsets = [0, 256], sizes = [8, 128], strides = [1, 1]} : vector<8x384xf32> to vector<8x128xf32>
    %155 = arith.mulf %153, %111 : vector<8x128xf32>
    %156 = arith.mulf %152, %151 : vector<8x128xf32>
    %157 = arith.addf %155, %156 : vector<8x128xf32>
    %158 = math.tanh %157 : vector<8x128xf32>
    %159 = arith.mulf %154, %158 : vector<8x128xf32>
    %c24 = arith.constant 24 : index
    %c0_72 = arith.constant 0 : index
    %160 = vector.load %arg9[%c24, %c0_72] : memref<64x512xf32, #tpu.memory_space<vmem>>, vector<8x512xf32>
    %c0_73 = arith.constant 0 : index
    %c0_74 = arith.constant 0 : index
    %161 = vector.load %arg11[%c0_73, %c0_74] : memref<128x512xf32, #tpu.memory_space<vmem>>, vector<128x512xf32>
    %cst_75 = arith.constant dense<0.000000e+00> : vector<8x512xf32>
    %162 = tpu.matmul %135, %161, %cst_75 {dimension_numbers = #tpu.dot_dimension_numbers<[1], [0], [0], [1], [0, 0, 1, 1], [], []>} : vector<8x128xf32>, vector<128x512xf32>, vector<8x512xf32> -> vector<8x512xf32>
    %163 = arith.addf %160, %162 : vector<8x512xf32>
    %164 = vector.extract_strided_slice %163 {offsets = [0, 0], sizes = [8, 384], strides = [1, 1]} : vector<8x512xf32> to vector<8x384xf32>
    %cst_76 = arith.constant 5.000000e-01 : f32
    %165 = vector.broadcast %cst_76 : f32 to vector<8x384xf32>
    %166 = arith.mulf %165, %164 : vector<8x384xf32>
    %167 = math.tanh %166 : vector<8x384xf32>
    %cst_77 = arith.constant 5.000000e-01 : f32
    %168 = vector.broadcast %cst_77 : f32 to vector<8x384xf32>
    %169 = arith.mulf %168, %167 : vector<8x384xf32>
    %cst_78 = arith.constant 5.000000e-01 : f32
    %170 = vector.broadcast %cst_78 : f32 to vector<8x384xf32>
    %171 = arith.addf %169, %170 : vector<8x384xf32>
    %172 = vector.extract_strided_slice %163 {offsets = [0, 384], sizes = [8, 128], strides = [1, 1]} : vector<8x512xf32> to vector<8x128xf32>
    %173 = math.tanh %172 : vector<8x128xf32>
    %174 = vector.extract_strided_slice %171 {offsets = [0, 0], sizes = [8, 128], strides = [1, 1]} : vector<8x384xf32> to vector<8x128xf32>
    %175 = vector.extract_strided_slice %171 {offsets = [0, 128], sizes = [8, 128], strides = [1, 1]} : vector<8x384xf32> to vector<8x128xf32>
    %176 = vector.extract_strided_slice %171 {offsets = [0, 256], sizes = [8, 128], strides = [1, 1]} : vector<8x384xf32> to vector<8x128xf32>
    %177 = arith.mulf %175, %133 : vector<8x128xf32>
    %178 = arith.mulf %174, %173 : vector<8x128xf32>
    %179 = arith.addf %177, %178 : vector<8x128xf32>
    %180 = math.tanh %179 : vector<8x128xf32>
    %181 = arith.mulf %176, %180 : vector<8x128xf32>
    %c0_79 = arith.constant 0 : index
    %c0_80 = arith.constant 0 : index
    %182 = vector.load %arg10[%c0_79, %c0_80] : memref<8x256xf32, #tpu.memory_space<vmem>>, vector<8x128xf32>
    tpu.vector_store %arg10[%c0_79, %c0_80], %181 {strides = array<i32>} : memref<8x256xf32, #tpu.memory_space<vmem>>, vector<8x128xf32>,
    %c0_81 = arith.constant 0 : index
    %c128_82 = arith.constant 128 : index
    %183 = vector.load %arg10[%c0_81, %c128_82] : memref<8x256xf32, #tpu.memory_space<vmem>>, vector<8x128xf32>
    tpu.vector_store %arg10[%c0_81, %c128_82], %159 {strides = array<i32>} : memref<8x256xf32, #tpu.memory_space<vmem>>, vector<8x128xf32>,
    %c0_83 = arith.constant 0 : index
    %c0_84 = arith.constant 0 : index
    %184 = vector.load %arg10[%c0_83, %c0_84] : memref<8x256xf32, #tpu.memory_space<vmem>>, vector<8x256xf32>
    %c0_85 = arith.constant 0 : index
    %c0_86 = arith.constant 0 : index
    %185 = vector.load %arg12[%c0_85, %c0_86] : memref<256x512xf32, #tpu.memory_space<vmem>>, vector<256x512xf32>
    %cst_87 = arith.constant dense<0.000000e+00> : vector<8x512xf32>
    %186 = tpu.matmul %184, %185, %cst_87 {dimension_numbers = #tpu.dot_dimension_numbers<[1], [0], [0], [1], [0, 0, 1, 1], [], []>} : vector<8x256xf32>, vector<256x512xf32>, vector<8x512xf32> -> vector<8x512xf32>
    %187 = arith.addf %186, %13 : vector<8x512xf32>
    %188 = vector.extract_strided_slice %187 {offsets = [0, 0], sizes = [8, 384], strides = [1, 1]} : vector<8x512xf32> to vector<8x384xf32>
    %cst_88 = arith.constant 5.000000e-01 : f32
    %189 = vector.broadcast %cst_88 : f32 to vector<8x384xf32>
    %190 = arith.mulf %189, %188 : vector<8x384xf32>
    %191 = math.tanh %190 : vector<8x384xf32>
    %cst_89 = arith.constant 5.000000e-01 : f32
    %192 = vector.broadcast %cst_89 : f32 to vector<8x384xf32>
    %193 = arith.mulf %192, %191 : vector<8x384xf32>
    %cst_90 = arith.constant 5.000000e-01 : f32
    %194 = vector.broadcast %cst_90 : f32 to vector<8x384xf32>
    %195 = arith.addf %193, %194 : vector<8x384xf32>
    %196 = vector.extract_strided_slice %187 {offsets = [0, 384], sizes = [8, 128], strides = [1, 1]} : vector<8x512xf32> to vector<8x128xf32>
    %197 = math.tanh %196 : vector<8x128xf32>
    %198 = vector.extract_strided_slice %195 {offsets = [0, 0], sizes = [8, 128], strides = [1, 1]} : vector<8x384xf32> to vector<8x128xf32>
    %199 = vector.extract_strided_slice %195 {offsets = [0, 128], sizes = [8, 128], strides = [1, 1]} : vector<8x384xf32> to vector<8x128xf32>
    %200 = vector.extract_strided_slice %195 {offsets = [0, 256], sizes = [8, 128], strides = [1, 1]} : vector<8x384xf32> to vector<8x128xf32>
    %201 = arith.mulf %199, %157 : vector<8x128xf32>
    %202 = arith.mulf %198, %197 : vector<8x128xf32>
    %203 = arith.addf %201, %202 : vector<8x128xf32>
    %204 = math.tanh %203 : vector<8x128xf32>
    %205 = arith.mulf %200, %204 : vector<8x128xf32>
    %c32 = arith.constant 32 : index
    %c0_91 = arith.constant 0 : index
    %206 = vector.load %arg9[%c32, %c0_91] : memref<64x512xf32, #tpu.memory_space<vmem>>, vector<8x512xf32>
    %c0_92 = arith.constant 0 : index
    %c0_93 = arith.constant 0 : index
    %207 = vector.load %arg11[%c0_92, %c0_93] : memref<128x512xf32, #tpu.memory_space<vmem>>, vector<128x512xf32>
    %cst_94 = arith.constant dense<0.000000e+00> : vector<8x512xf32>
    %208 = tpu.matmul %181, %207, %cst_94 {dimension_numbers = #tpu.dot_dimension_numbers<[1], [0], [0], [1], [0, 0, 1, 1], [], []>} : vector<8x128xf32>, vector<128x512xf32>, vector<8x512xf32> -> vector<8x512xf32>
    %209 = arith.addf %206, %208 : vector<8x512xf32>
    %210 = vector.extract_strided_slice %209 {offsets = [0, 0], sizes = [8, 384], strides = [1, 1]} : vector<8x512xf32> to vector<8x384xf32>
    %cst_95 = arith.constant 5.000000e-01 : f32
    %211 = vector.broadcast %cst_95 : f32 to vector<8x384xf32>
    %212 = arith.mulf %211, %210 : vector<8x384xf32>
    %213 = math.tanh %212 : vector<8x384xf32>
    %cst_96 = arith.constant 5.000000e-01 : f32
    %214 = vector.broadcast %cst_96 : f32 to vector<8x384xf32>
    %215 = arith.mulf %214, %213 : vector<8x384xf32>
    %cst_97 = arith.constant 5.000000e-01 : f32
    %216 = vector.broadcast %cst_97 : f32 to vector<8x384xf32>
    %217 = arith.addf %215, %216 : vector<8x384xf32>
    %218 = vector.extract_strided_slice %209 {offsets = [0, 384], sizes = [8, 128], strides = [1, 1]} : vector<8x512xf32> to vector<8x128xf32>
    %219 = math.tanh %218 : vector<8x128xf32>
    %220 = vector.extract_strided_slice %217 {offsets = [0, 0], sizes = [8, 128], strides = [1, 1]} : vector<8x384xf32> to vector<8x128xf32>
    %221 = vector.extract_strided_slice %217 {offsets = [0, 128], sizes = [8, 128], strides = [1, 1]} : vector<8x384xf32> to vector<8x128xf32>
    %222 = vector.extract_strided_slice %217 {offsets = [0, 256], sizes = [8, 128], strides = [1, 1]} : vector<8x384xf32> to vector<8x128xf32>
    %223 = arith.mulf %221, %179 : vector<8x128xf32>
    %224 = arith.mulf %220, %219 : vector<8x128xf32>
    %225 = arith.addf %223, %224 : vector<8x128xf32>
    %226 = math.tanh %225 : vector<8x128xf32>
    %227 = arith.mulf %222, %226 : vector<8x128xf32>
    %c0_98 = arith.constant 0 : index
    %c0_99 = arith.constant 0 : index
    %228 = vector.load %arg10[%c0_98, %c0_99] : memref<8x256xf32, #tpu.memory_space<vmem>>, vector<8x128xf32>
    tpu.vector_store %arg10[%c0_98, %c0_99], %227 {strides = array<i32>} : memref<8x256xf32, #tpu.memory_space<vmem>>, vector<8x128xf32>,
    %c0_100 = arith.constant 0 : index
    %c128_101 = arith.constant 128 : index
    %229 = vector.load %arg10[%c0_100, %c128_101] : memref<8x256xf32, #tpu.memory_space<vmem>>, vector<8x128xf32>
    tpu.vector_store %arg10[%c0_100, %c128_101], %205 {strides = array<i32>} : memref<8x256xf32, #tpu.memory_space<vmem>>, vector<8x128xf32>,
    %c0_102 = arith.constant 0 : index
    %c0_103 = arith.constant 0 : index
    %230 = vector.load %arg10[%c0_102, %c0_103] : memref<8x256xf32, #tpu.memory_space<vmem>>, vector<8x256xf32>
    %c0_104 = arith.constant 0 : index
    %c0_105 = arith.constant 0 : index
    %231 = vector.load %arg12[%c0_104, %c0_105] : memref<256x512xf32, #tpu.memory_space<vmem>>, vector<256x512xf32>
    %cst_106 = arith.constant dense<0.000000e+00> : vector<8x512xf32>
    %232 = tpu.matmul %230, %231, %cst_106 {dimension_numbers = #tpu.dot_dimension_numbers<[1], [0], [0], [1], [0, 0, 1, 1], [], []>} : vector<8x256xf32>, vector<256x512xf32>, vector<8x512xf32> -> vector<8x512xf32>
    %233 = arith.addf %232, %13 : vector<8x512xf32>
    %234 = vector.extract_strided_slice %233 {offsets = [0, 0], sizes = [8, 384], strides = [1, 1]} : vector<8x512xf32> to vector<8x384xf32>
    %cst_107 = arith.constant 5.000000e-01 : f32
    %235 = vector.broadcast %cst_107 : f32 to vector<8x384xf32>
    %236 = arith.mulf %235, %234 : vector<8x384xf32>
    %237 = math.tanh %236 : vector<8x384xf32>
    %cst_108 = arith.constant 5.000000e-01 : f32
    %238 = vector.broadcast %cst_108 : f32 to vector<8x384xf32>
    %239 = arith.mulf %238, %237 : vector<8x384xf32>
    %cst_109 = arith.constant 5.000000e-01 : f32
    %240 = vector.broadcast %cst_109 : f32 to vector<8x384xf32>
    %241 = arith.addf %239, %240 : vector<8x384xf32>
    %242 = vector.extract_strided_slice %233 {offsets = [0, 384], sizes = [8, 128], strides = [1, 1]} : vector<8x512xf32> to vector<8x128xf32>
    %243 = math.tanh %242 : vector<8x128xf32>
    %244 = vector.extract_strided_slice %241 {offsets = [0, 0], sizes = [8, 128], strides = [1, 1]} : vector<8x384xf32> to vector<8x128xf32>
    %245 = vector.extract_strided_slice %241 {offsets = [0, 128], sizes = [8, 128], strides = [1, 1]} : vector<8x384xf32> to vector<8x128xf32>
    %246 = vector.extract_strided_slice %241 {offsets = [0, 256], sizes = [8, 128], strides = [1, 1]} : vector<8x384xf32> to vector<8x128xf32>
    %247 = arith.mulf %245, %203 : vector<8x128xf32>
    %248 = arith.mulf %244, %243 : vector<8x128xf32>
    %249 = arith.addf %247, %248 : vector<8x128xf32>
    %250 = math.tanh %249 : vector<8x128xf32>
    %251 = arith.mulf %246, %250 : vector<8x128xf32>
    %c40 = arith.constant 40 : index
    %c0_110 = arith.constant 0 : index
    %252 = vector.load %arg9[%c40, %c0_110] : memref<64x512xf32, #tpu.memory_space<vmem>>, vector<8x512xf32>
    %c0_111 = arith.constant 0 : index
    %c0_112 = arith.constant 0 : index
    %253 = vector.load %arg11[%c0_111, %c0_112] : memref<128x512xf32, #tpu.memory_space<vmem>>, vector<128x512xf32>
    %cst_113 = arith.constant dense<0.000000e+00> : vector<8x512xf32>
    %254 = tpu.matmul %227, %253, %cst_113 {dimension_numbers = #tpu.dot_dimension_numbers<[1], [0], [0], [1], [0, 0, 1, 1], [], []>} : vector<8x128xf32>, vector<128x512xf32>, vector<8x512xf32> -> vector<8x512xf32>
    %255 = arith.addf %252, %254 : vector<8x512xf32>
    %256 = vector.extract_strided_slice %255 {offsets = [0, 0], sizes = [8, 384], strides = [1, 1]} : vector<8x512xf32> to vector<8x384xf32>
    %cst_114 = arith.constant 5.000000e-01 : f32
    %257 = vector.broadcast %cst_114 : f32 to vector<8x384xf32>
    %258 = arith.mulf %257, %256 : vector<8x384xf32>
    %259 = math.tanh %258 : vector<8x384xf32>
    %cst_115 = arith.constant 5.000000e-01 : f32
    %260 = vector.broadcast %cst_115 : f32 to vector<8x384xf32>
    %261 = arith.mulf %260, %259 : vector<8x384xf32>
    %cst_116 = arith.constant 5.000000e-01 : f32
    %262 = vector.broadcast %cst_116 : f32 to vector<8x384xf32>
    %263 = arith.addf %261, %262 : vector<8x384xf32>
    %264 = vector.extract_strided_slice %255 {offsets = [0, 384], sizes = [8, 128], strides = [1, 1]} : vector<8x512xf32> to vector<8x128xf32>
    %265 = math.tanh %264 : vector<8x128xf32>
    %266 = vector.extract_strided_slice %263 {offsets = [0, 0], sizes = [8, 128], strides = [1, 1]} : vector<8x384xf32> to vector<8x128xf32>
    %267 = vector.extract_strided_slice %263 {offsets = [0, 128], sizes = [8, 128], strides = [1, 1]} : vector<8x384xf32> to vector<8x128xf32>
    %268 = vector.extract_strided_slice %263 {offsets = [0, 256], sizes = [8, 128], strides = [1, 1]} : vector<8x384xf32> to vector<8x128xf32>
    %269 = arith.mulf %267, %225 : vector<8x128xf32>
    %270 = arith.mulf %266, %265 : vector<8x128xf32>
    %271 = arith.addf %269, %270 : vector<8x128xf32>
    %272 = math.tanh %271 : vector<8x128xf32>
    %273 = arith.mulf %268, %272 : vector<8x128xf32>
    %c0_117 = arith.constant 0 : index
    %c0_118 = arith.constant 0 : index
    %274 = vector.load %arg10[%c0_117, %c0_118] : memref<8x256xf32, #tpu.memory_space<vmem>>, vector<8x128xf32>
    tpu.vector_store %arg10[%c0_117, %c0_118], %273 {strides = array<i32>} : memref<8x256xf32, #tpu.memory_space<vmem>>, vector<8x128xf32>,
    %c0_119 = arith.constant 0 : index
    %c128_120 = arith.constant 128 : index
    %275 = vector.load %arg10[%c0_119, %c128_120] : memref<8x256xf32, #tpu.memory_space<vmem>>, vector<8x128xf32>
    tpu.vector_store %arg10[%c0_119, %c128_120], %251 {strides = array<i32>} : memref<8x256xf32, #tpu.memory_space<vmem>>, vector<8x128xf32>,
    %c0_121 = arith.constant 0 : index
    %c0_122 = arith.constant 0 : index
    %276 = vector.load %arg10[%c0_121, %c0_122] : memref<8x256xf32, #tpu.memory_space<vmem>>, vector<8x256xf32>
    %c0_123 = arith.constant 0 : index
    %c0_124 = arith.constant 0 : index
    %277 = vector.load %arg12[%c0_123, %c0_124] : memref<256x512xf32, #tpu.memory_space<vmem>>, vector<256x512xf32>
    %cst_125 = arith.constant dense<0.000000e+00> : vector<8x512xf32>
    %278 = tpu.matmul %276, %277, %cst_125 {dimension_numbers = #tpu.dot_dimension_numbers<[1], [0], [0], [1], [0, 0, 1, 1], [], []>} : vector<8x256xf32>, vector<256x512xf32>, vector<8x512xf32> -> vector<8x512xf32>
    %279 = arith.addf %278, %13 : vector<8x512xf32>
    %280 = vector.extract_strided_slice %279 {offsets = [0, 0], sizes = [8, 384], strides = [1, 1]} : vector<8x512xf32> to vector<8x384xf32>
    %cst_126 = arith.constant 5.000000e-01 : f32
    %281 = vector.broadcast %cst_126 : f32 to vector<8x384xf32>
    %282 = arith.mulf %281, %280 : vector<8x384xf32>
    %283 = math.tanh %282 : vector<8x384xf32>
    %cst_127 = arith.constant 5.000000e-01 : f32
    %284 = vector.broadcast %cst_127 : f32 to vector<8x384xf32>
    %285 = arith.mulf %284, %283 : vector<8x384xf32>
    %cst_128 = arith.constant 5.000000e-01 : f32
    %286 = vector.broadcast %cst_128 : f32 to vector<8x384xf32>
    %287 = arith.addf %285, %286 : vector<8x384xf32>
    %288 = vector.extract_strided_slice %279 {offsets = [0, 384], sizes = [8, 128], strides = [1, 1]} : vector<8x512xf32> to vector<8x128xf32>
    %289 = math.tanh %288 : vector<8x128xf32>
    %290 = vector.extract_strided_slice %287 {offsets = [0, 0], sizes = [8, 128], strides = [1, 1]} : vector<8x384xf32> to vector<8x128xf32>
    %291 = vector.extract_strided_slice %287 {offsets = [0, 128], sizes = [8, 128], strides = [1, 1]} : vector<8x384xf32> to vector<8x128xf32>
    %292 = vector.extract_strided_slice %287 {offsets = [0, 256], sizes = [8, 128], strides = [1, 1]} : vector<8x384xf32> to vector<8x128xf32>
    %293 = arith.mulf %291, %249 : vector<8x128xf32>
    %294 = arith.mulf %290, %289 : vector<8x128xf32>
    %295 = arith.addf %293, %294 : vector<8x128xf32>
    %296 = math.tanh %295 : vector<8x128xf32>
    %297 = arith.mulf %292, %296 : vector<8x128xf32>
    %c48 = arith.constant 48 : index
    %c0_129 = arith.constant 0 : index
    %298 = vector.load %arg9[%c48, %c0_129] : memref<64x512xf32, #tpu.memory_space<vmem>>, vector<8x512xf32>
    %c0_130 = arith.constant 0 : index
    %c0_131 = arith.constant 0 : index
    %299 = vector.load %arg11[%c0_130, %c0_131] : memref<128x512xf32, #tpu.memory_space<vmem>>, vector<128x512xf32>
    %cst_132 = arith.constant dense<0.000000e+00> : vector<8x512xf32>
    %300 = tpu.matmul %273, %299, %cst_132 {dimension_numbers = #tpu.dot_dimension_numbers<[1], [0], [0], [1], [0, 0, 1, 1], [], []>} : vector<8x128xf32>, vector<128x512xf32>, vector<8x512xf32> -> vector<8x512xf32>
    %301 = arith.addf %298, %300 : vector<8x512xf32>
    %302 = vector.extract_strided_slice %301 {offsets = [0, 0], sizes = [8, 384], strides = [1, 1]} : vector<8x512xf32> to vector<8x384xf32>
    %cst_133 = arith.constant 5.000000e-01 : f32
    %303 = vector.broadcast %cst_133 : f32 to vector<8x384xf32>
    %304 = arith.mulf %303, %302 : vector<8x384xf32>
    %305 = math.tanh %304 : vector<8x384xf32>
    %cst_134 = arith.constant 5.000000e-01 : f32
    %306 = vector.broadcast %cst_134 : f32 to vector<8x384xf32>
    %307 = arith.mulf %306, %305 : vector<8x384xf32>
    %cst_135 = arith.constant 5.000000e-01 : f32
    %308 = vector.broadcast %cst_135 : f32 to vector<8x384xf32>
    %309 = arith.addf %307, %308 : vector<8x384xf32>
    %310 = vector.extract_strided_slice %301 {offsets = [0, 384], sizes = [8, 128], strides = [1, 1]} : vector<8x512xf32> to vector<8x128xf32>
    %311 = math.tanh %310 : vector<8x128xf32>
    %312 = vector.extract_strided_slice %309 {offsets = [0, 0], sizes = [8, 128], strides = [1, 1]} : vector<8x384xf32> to vector<8x128xf32>
    %313 = vector.extract_strided_slice %309 {offsets = [0, 128], sizes = [8, 128], strides = [1, 1]} : vector<8x384xf32> to vector<8x128xf32>
    %314 = vector.extract_strided_slice %309 {offsets = [0, 256], sizes = [8, 128], strides = [1, 1]} : vector<8x384xf32> to vector<8x128xf32>
    %315 = arith.mulf %313, %271 : vector<8x128xf32>
    %316 = arith.mulf %312, %311 : vector<8x128xf32>
    %317 = arith.addf %315, %316 : vector<8x128xf32>
    %318 = math.tanh %317 : vector<8x128xf32>
    %319 = arith.mulf %314, %318 : vector<8x128xf32>
    %c0_136 = arith.constant 0 : index
    %c0_137 = arith.constant 0 : index
    %320 = vector.load %arg10[%c0_136, %c0_137] : memref<8x256xf32, #tpu.memory_space<vmem>>, vector<8x128xf32>
    tpu.vector_store %arg10[%c0_136, %c0_137], %319 {strides = array<i32>} : memref<8x256xf32, #tpu.memory_space<vmem>>, vector<8x128xf32>,
    %c0_138 = arith.constant 0 : index
    %c128_139 = arith.constant 128 : index
    %321 = vector.load %arg10[%c0_138, %c128_139] : memref<8x256xf32, #tpu.memory_space<vmem>>, vector<8x128xf32>
    tpu.vector_store %arg10[%c0_138, %c128_139], %297 {strides = array<i32>} : memref<8x256xf32, #tpu.memory_space<vmem>>, vector<8x128xf32>,
    %c0_140 = arith.constant 0 : index
    %c0_141 = arith.constant 0 : index
    %322 = vector.load %arg10[%c0_140, %c0_141] : memref<8x256xf32, #tpu.memory_space<vmem>>, vector<8x256xf32>
    %c0_142 = arith.constant 0 : index
    %c0_143 = arith.constant 0 : index
    %323 = vector.load %arg12[%c0_142, %c0_143] : memref<256x512xf32, #tpu.memory_space<vmem>>, vector<256x512xf32>
    %cst_144 = arith.constant dense<0.000000e+00> : vector<8x512xf32>
    %324 = tpu.matmul %322, %323, %cst_144 {dimension_numbers = #tpu.dot_dimension_numbers<[1], [0], [0], [1], [0, 0, 1, 1], [], []>} : vector<8x256xf32>, vector<256x512xf32>, vector<8x512xf32> -> vector<8x512xf32>
    %325 = arith.addf %324, %13 : vector<8x512xf32>
    %326 = vector.extract_strided_slice %325 {offsets = [0, 0], sizes = [8, 384], strides = [1, 1]} : vector<8x512xf32> to vector<8x384xf32>
    %cst_145 = arith.constant 5.000000e-01 : f32
    %327 = vector.broadcast %cst_145 : f32 to vector<8x384xf32>
    %328 = arith.mulf %327, %326 : vector<8x384xf32>
    %329 = math.tanh %328 : vector<8x384xf32>
    %cst_146 = arith.constant 5.000000e-01 : f32
    %330 = vector.broadcast %cst_146 : f32 to vector<8x384xf32>
    %331 = arith.mulf %330, %329 : vector<8x384xf32>
    %cst_147 = arith.constant 5.000000e-01 : f32
    %332 = vector.broadcast %cst_147 : f32 to vector<8x384xf32>
    %333 = arith.addf %331, %332 : vector<8x384xf32>
    %334 = vector.extract_strided_slice %325 {offsets = [0, 384], sizes = [8, 128], strides = [1, 1]} : vector<8x512xf32> to vector<8x128xf32>
    %335 = math.tanh %334 : vector<8x128xf32>
    %336 = vector.extract_strided_slice %333 {offsets = [0, 0], sizes = [8, 128], strides = [1, 1]} : vector<8x384xf32> to vector<8x128xf32>
    %337 = vector.extract_strided_slice %333 {offsets = [0, 128], sizes = [8, 128], strides = [1, 1]} : vector<8x384xf32> to vector<8x128xf32>
    %338 = vector.extract_strided_slice %333 {offsets = [0, 256], sizes = [8, 128], strides = [1, 1]} : vector<8x384xf32> to vector<8x128xf32>
    %339 = arith.mulf %337, %295 : vector<8x128xf32>
    %340 = arith.mulf %336, %335 : vector<8x128xf32>
    %341 = arith.addf %339, %340 : vector<8x128xf32>
    %342 = math.tanh %341 : vector<8x128xf32>
    %343 = arith.mulf %338, %342 : vector<8x128xf32>
    %c56 = arith.constant 56 : index
    %c0_148 = arith.constant 0 : index
    %344 = vector.load %arg9[%c56, %c0_148] : memref<64x512xf32, #tpu.memory_space<vmem>>, vector<8x512xf32>
    %c0_149 = arith.constant 0 : index
    %c0_150 = arith.constant 0 : index
    %345 = vector.load %arg11[%c0_149, %c0_150] : memref<128x512xf32, #tpu.memory_space<vmem>>, vector<128x512xf32>
    %cst_151 = arith.constant dense<0.000000e+00> : vector<8x512xf32>
    %346 = tpu.matmul %319, %345, %cst_151 {dimension_numbers = #tpu.dot_dimension_numbers<[1], [0], [0], [1], [0, 0, 1, 1], [], []>} : vector<8x128xf32>, vector<128x512xf32>, vector<8x512xf32> -> vector<8x512xf32>
    %347 = arith.addf %344, %346 : vector<8x512xf32>
    %348 = vector.extract_strided_slice %347 {offsets = [0, 0], sizes = [8, 384], strides = [1, 1]} : vector<8x512xf32> to vector<8x384xf32>
    %cst_152 = arith.constant 5.000000e-01 : f32
    %349 = vector.broadcast %cst_152 : f32 to vector<8x384xf32>
    %350 = arith.mulf %349, %348 : vector<8x384xf32>
    %351 = math.tanh %350 : vector<8x384xf32>
    %cst_153 = arith.constant 5.000000e-01 : f32
    %352 = vector.broadcast %cst_153 : f32 to vector<8x384xf32>
    %353 = arith.mulf %352, %351 : vector<8x384xf32>
    %cst_154 = arith.constant 5.000000e-01 : f32
    %354 = vector.broadcast %cst_154 : f32 to vector<8x384xf32>
    %355 = arith.addf %353, %354 : vector<8x384xf32>
    %356 = vector.extract_strided_slice %347 {offsets = [0, 384], sizes = [8, 128], strides = [1, 1]} : vector<8x512xf32> to vector<8x128xf32>
    %357 = math.tanh %356 : vector<8x128xf32>
    %358 = vector.extract_strided_slice %355 {offsets = [0, 0], sizes = [8, 128], strides = [1, 1]} : vector<8x384xf32> to vector<8x128xf32>
    %359 = vector.extract_strided_slice %355 {offsets = [0, 128], sizes = [8, 128], strides = [1, 1]} : vector<8x384xf32> to vector<8x128xf32>
    %360 = vector.extract_strided_slice %355 {offsets = [0, 256], sizes = [8, 128], strides = [1, 1]} : vector<8x384xf32> to vector<8x128xf32>
    %361 = arith.mulf %359, %317 : vector<8x128xf32>
    %362 = arith.mulf %358, %357 : vector<8x128xf32>
    %363 = arith.addf %361, %362 : vector<8x128xf32>
    %364 = math.tanh %363 : vector<8x128xf32>
    %365 = arith.mulf %360, %364 : vector<8x128xf32>
    %c0_155 = arith.constant 0 : index
    %c0_156 = arith.constant 0 : index
    %366 = vector.load %arg10[%c0_155, %c0_156] : memref<8x256xf32, #tpu.memory_space<vmem>>, vector<8x128xf32>
    tpu.vector_store %arg10[%c0_155, %c0_156], %365 {strides = array<i32>} : memref<8x256xf32, #tpu.memory_space<vmem>>, vector<8x128xf32>,
    %c0_157 = arith.constant 0 : index
    %c128_158 = arith.constant 128 : index
    %367 = vector.load %arg10[%c0_157, %c128_158] : memref<8x256xf32, #tpu.memory_space<vmem>>, vector<8x128xf32>
    tpu.vector_store %arg10[%c0_157, %c128_158], %343 {strides = array<i32>} : memref<8x256xf32, #tpu.memory_space<vmem>>, vector<8x128xf32>,
    %c0_159 = arith.constant 0 : index
    %c0_160 = arith.constant 0 : index
    %368 = vector.load %arg10[%c0_159, %c0_160] : memref<8x256xf32, #tpu.memory_space<vmem>>, vector<8x256xf32>
    %c0_161 = arith.constant 0 : index
    %c0_162 = arith.constant 0 : index
    %369 = vector.load %arg12[%c0_161, %c0_162] : memref<256x512xf32, #tpu.memory_space<vmem>>, vector<256x512xf32>
    %cst_163 = arith.constant dense<0.000000e+00> : vector<8x512xf32>
    %370 = tpu.matmul %368, %369, %cst_163 {dimension_numbers = #tpu.dot_dimension_numbers<[1], [0], [0], [1], [0, 0, 1, 1], [], []>} : vector<8x256xf32>, vector<256x512xf32>, vector<8x512xf32> -> vector<8x512xf32>
    %371 = arith.addf %370, %13 : vector<8x512xf32>
    %372 = vector.extract_strided_slice %371 {offsets = [0, 0], sizes = [8, 384], strides = [1, 1]} : vector<8x512xf32> to vector<8x384xf32>
    %cst_164 = arith.constant 5.000000e-01 : f32
    %373 = vector.broadcast %cst_164 : f32 to vector<8x384xf32>
    %374 = arith.mulf %373, %372 : vector<8x384xf32>
    %375 = math.tanh %374 : vector<8x384xf32>
    %cst_165 = arith.constant 5.000000e-01 : f32
    %376 = vector.broadcast %cst_165 : f32 to vector<8x384xf32>
    %377 = arith.mulf %376, %375 : vector<8x384xf32>
    %cst_166 = arith.constant 5.000000e-01 : f32
    %378 = vector.broadcast %cst_166 : f32 to vector<8x384xf32>
    %379 = arith.addf %377, %378 : vector<8x384xf32>
    %380 = vector.extract_strided_slice %371 {offsets = [0, 384], sizes = [8, 128], strides = [1, 1]} : vector<8x512xf32> to vector<8x128xf32>
    %381 = math.tanh %380 : vector<8x128xf32>
    %382 = vector.extract_strided_slice %379 {offsets = [0, 0], sizes = [8, 128], strides = [1, 1]} : vector<8x384xf32> to vector<8x128xf32>
    %383 = vector.extract_strided_slice %379 {offsets = [0, 128], sizes = [8, 128], strides = [1, 1]} : vector<8x384xf32> to vector<8x128xf32>
    %384 = vector.extract_strided_slice %379 {offsets = [0, 256], sizes = [8, 128], strides = [1, 1]} : vector<8x384xf32> to vector<8x128xf32>
    %385 = arith.mulf %383, %341 : vector<8x128xf32>
    %386 = arith.mulf %382, %381 : vector<8x128xf32>
    %387 = arith.addf %385, %386 : vector<8x128xf32>
    %388 = math.tanh %387 : vector<8x128xf32>
    %389 = arith.mulf %384, %388 : vector<8x128xf32>
    %c0_167 = arith.constant 0 : index
    %c0_168 = arith.constant 0 : index
    %390 = vector.load %arg6[%c0_167, %c0_168] : memref<128x10xf32, #tpu.memory_space<vmem>>, vector<128x10xf32>
    %cst_169 = arith.constant dense<0.000000e+00> : vector<8x10xf32>
    %391 = tpu.matmul %389, %390, %cst_169 {dimension_numbers = #tpu.dot_dimension_numbers<[1], [0], [0], [1], [0, 0, 1, 1], [], []>} : vector<8x128xf32>, vector<128x10xf32>, vector<8x10xf32> -> vector<8x10xf32>
    %c0_170 = arith.constant 0 : index
    %c0_171 = arith.constant 0 : index
    %392 = vector.load %arg7[%c0_170, %c0_171] : memref<1x10xf32, #tpu.memory_space<vmem>>, vector<1x10xf32>
    %393 = vector.broadcast %392 : vector<1x10xf32> to vector<8x10xf32>
    %394 = arith.addf %391, %393 : vector<8x10xf32>
    %c0_172 = arith.constant 0 : index
    %c0_173 = arith.constant 0 : index
    %395 = vector.load %arg8[%c0_172, %c0_173] : memref<8x10xf32, #tpu.memory_space<vmem>>, vector<8x10xf32>
    tpu.vector_store %arg8[%c0_172, %c0_173], %394 {strides = array<i32>} : memref<8x10xf32, #tpu.memory_space<vmem>>, vector<8x10xf32>,
    return
  }
}

</mosaic_0001>

<bundles_post_ra>
// kernel: tpu_custom_call.1
= control target key start
LH: loop header
LB: loop body
LE: loop exit
PB: predicated region body
PF: predicated region fallthrough
CT: control target
= control target key end

     0   :  { %vm120_vm0 = vcmask 1043456   ;;  %vm95_vm1 = vcmask 228352   ;;  %v8377_v17 = vmov 0.0   ;;  %s8368_s0 = inlined_call_operand.vmem [shape: f32[64,28], index: 0, kind: input, shape index: {}]   ;;  %s8369_s1 = inlined_call_operand.vmem [shape: f32[28,512], index: 1, kind: input, shape index: {}]   ;;  %s8370_s2 = inlined_call_operand.vmem [shape: f32[1,512], index: 2, kind: input, shape index: {}]   ;;  %s8371_s3 = inlined_call_operand.hbm [shape: f32[128,512], index: 3, kind: input, shape index: {}]   ;;  %s8372_s4 = inlined_call_operand.hbm [shape: f32[256,512], index: 4, kind: input, shape index: {}]   ;;  %s8373_s5 = inlined_call_operand.vmem [shape: f32[1,512], index: 5, kind: input, shape index: {}]   ;;  %s8374_s6 = inlined_call_operand.vmem [shape: f32[128,10], index: 6, kind: input, shape index: {}]   ;;  %s8375_s7 = inlined_call_operand.vmem [shape: f32[1,10], index: 7, kind: input, shape index: {}]   ;;  %s8376_s8 = inlined_call_operand.hbm [shape: f32[8,10], index: 8, kind: output, shape index: {}]  }
   0x1   :  { %v70_v0 = vld [vmem:[%s8369_s1 + $0x68] sm:$0xf]  ;;  %v72_v1 = vld [vmem:[%s8369_s1 + $0x78] sm:$0xf]  ;;  %v69_v3 = vld [vmem:[%s8369_s1 + $0x60] sm:$0xf]  ;;  %197 = vmatprep.mubr.f32.mxu0 %v8377_v17 }
   0x2   :  { %v66_v2 = vld [vmem:[%s8369_s1 + $0x48] sm:$0xff]  ;;  %4735 = vmatprep.subr.msk.mxu0 %vm120_vm0, %v70_v0  ;;  %4745 = vmatprep.subr.msk.mxu1 %vm120_vm0, %v72_v1  ;;  %v71_v4 = vld [vmem:[%s8369_s1 + $0x70] sm:$0xf]  ;;  %v68_v5 = vld [vmem:[%s8369_s1 + $0x58] sm:$0xff] }
   0x3   :  { %4736 = vmatpush1.msk.msra.mxu0 %vm120_vm0, %v69_v3  ;;  %4746 = vmatpush1.msk.msra.mxu1 %vm120_vm0, %v71_v4  ;;  %v65_v6 = vld [vmem:[%s8369_s1 + $0x40] sm:$0xff]  ;;  %v67_v7 = vld [vmem:[%s8369_s1 + $0x50] sm:$0xff]  ;;  %v62_v8 = vld [vmem:[%s8369_s1 + $0x28] sm:$0xff] }
   0x4   :  { %159 = vmatprep.subr.mxu0 %v66_v2  ;;  %272 = vmatprep.subr.mxu1 %v68_v5  ;;  %v64_v9 = vld [vmem:[%s8369_s1 + $0x38] sm:$0xff]  ;;  %v61_v10 = vld [vmem:[%s8369_s1 + $0x20] sm:$0xff]  ;;  %v63_v11 = vld [vmem:[%s8369_s1 + $0x30] sm:$0xff] }
   0x5   :  { %160 = vmatpush1.msra.mxu0 %v65_v6  ;;  %273 = vmatpush1.msra.mxu1 %v67_v7  ;;  %v58_v12 = vld [vmem:[%s8369_s1 + $0x8] sm:$0xff]  ;;  %v60_v13 = vld [vmem:[%s8369_s1 + $0x18] sm:$0xff]  ;;  %v57_v14 = vld [vmem:[%s8369_s1] sm:$0xff] }
   0x6   :  { %161 = vmatprep.subr.mxu0 %v62_v8  ;;  %274 = vmatprep.subr.mxu1 %v64_v9  ;;  %v59_v15 = vld [vmem:[%s8369_s1 + $0x10] sm:$0xff]  ;;  %v49_v16 = vld [vmem:[%s8368_s0] sm:$0xff] }
   0x7   :  { %162 = vmatpush1.msra.mxu0 %v61_v10  ;;  %275 = vmatpush1.msra.mxu1 %v63_v11 }
   0x8   :  { %163 = vmatprep.subr.mxu0 %v58_v12  ;;  %276 = vmatprep.subr.mxu1 %v60_v13 }
   0x9   :  { %164 = vmatpush1.msra.mxu0 %v57_v14 }
   0xa   :  { %13 = vsyncpa [#allocation8], 0  ;;  %277 = vmatpush1.msra.mxu1 %v59_v15  ;;  %310 = vmatprep.mubr.f32.mxu1 %v8377_v17  ;;  %v50_v18 = vld [vmem:[%s8368_s0 + $0x8] sm:$0xff]  ;;  %v51_v19 = vld [vmem:[%s8368_s0 + $0x10] sm:$0xff]  ;;  %v75_v25 = vlaneseq  ;;  %s5043_s11 = smov [#allocation5]  }
   0xb   :  { %4737 = vmatmul.mubr.msk.f32.vlgmr.msra.gmra.mxu0 %vm95_vm1, %v49_v16  ;;  %4747 = vmatmul.mubr.msk.f32.vlgmr.msra.gmra.mxu1 %vm95_vm1, %v49_v16  ;;  %v52_v20 = vld [vmem:[%s8368_s0 + $0x18] sm:$0xff]  ;;  %v53_v21 = vld [vmem:[%s8368_s0 + $0x20] sm:$0xff]  ;;  %v54_v22 = vld [vmem:[%s8368_s0 + $0x28] sm:$0xff]  ;;  %s45_s12 = sshll.u32 %s5043_s11, 4  ;;  %s46_s12 = int_to_ptr.vmem [resolvable:$true] %s45_s12 }
   0xc   :  { %203 = vmatprep.mubr.f32.mxu0 %v8377_v17  ;;  %316 = vmatprep.mubr.f32.mxu1 %v8377_v17  ;;  %v55_v23 = vld [vmem:[%s8368_s0 + $0x30] sm:$0xff]  ;;  %v56_v24 = vld [vmem:[%s8368_s0 + $0x38] sm:$0xff]  ;;  %v76_v26 = vshrl.u32 %v75_v25, 7  ;;  %v391_v29 = vld [vmem:[%s8373_s5] sm:$0xf]  ;;  %s5042_s0 = smov [#allocation4]  }
   0xd   :  { %s33_s10 = sshll.u32 %s5042_s0, 4  ;;  %s34_s10 = int_to_ptr.vmem [resolvable:$true] %s33_s10 }
   0xe   :  { %v77_v27 = vsub.s32 0, %v76_v26  ;;  %v85_v28 = vsub.s32 2, %v76_v26  ;;  %v81_v30 = vsub.s32 1, %v76_v26  ;;  %v89_v31 = vsub.s32 3, %v76_v26  ;;  %s4983_s13 = scalar_lea.vmem %s34_s10, 8192  ;;  %p4988_p1 = scmp.lt.s32.totalorder %s34_s10, %s34_s10 }
   0xf   :  { %4738 = vmatmul.mubr.msk.f32.gmra.mxu0 %vm95_vm1, %v50_v18  ;;  %4748 = vmatmul.mubr.msk.f32.gmra.mxu1 %vm95_vm1, %v50_v18  ;;  %p4984_p0 = scmp.ne.s32.totalorder %s34_s10, %s4983_s13  ;;  %p4989_p2 = scmp.lt.s32.totalorder %s4983_s13, %s4983_s13 }
  0x10   :  { %209 = vmatprep.mubr.f32.mxu0 %v8377_v17  ;;  %322 = vmatprep.mubr.f32.mxu1 %v8377_v17  ;;  %v5198_v32 = vrot.slane %v391_v29, %v77_v27  ;;  %v5200_v33 = vrot.slane %v391_v29, %v85_v28  ;;  %v5202_v34 = vrot.slane %v391_v29, %v81_v30 }
  0x11   :  { %v5204_v35 = vrot.slane %v391_v29, %v89_v31  ;;  %p4990_p3 = por %p4989_p2, %p4988_p1 }
  0x12   :  { %8877 = vst [vmem:[#allocation18_spill] sm:$0xff] %v5198_v32  ;;  %8878 = vst [vmem:[#allocation19_spill] sm:$0xff] %v5200_v33 }
  0x13   :  { %4739 = vmatmul.mubr.msk.f32.gmra.mxu0 %vm95_vm1, %v51_v19  ;;  %4749 = vmatmul.mubr.msk.f32.gmra.mxu1 %vm95_vm1, %v51_v19  ;;  %8879 = vst [vmem:[#allocation20_spill] sm:$0xff] %v5202_v34  ;;  %8880 = vst [vmem:[#allocation21_spill] sm:$0xff] %v5204_v35  ;;  %p4991_p4 = pnand %p4990_p3, %p4984_p0 }
  0x14   :  { %215 = vmatprep.mubr.f32.mxu0 %v8377_v17  ;;  %328 = vmatprep.mubr.f32.mxu1 %v8377_v17 }
  0x17   :  { %4740 = vmatmul.mubr.msk.f32.gmra.mxu0 %vm95_vm1, %v52_v20  ;;  %4750 = vmatmul.mubr.msk.f32.gmra.mxu1 %vm95_vm1, %v52_v20 }
  0x18   :  { %221 = vmatprep.mubr.f32.mxu0 %v8377_v17  ;;  %334 = vmatprep.mubr.f32.mxu1 %v8377_v17 }
  0x1b   :  { %4741 = vmatmul.mubr.msk.f32.gmra.mxu0 %vm95_vm1, %v53_v21  ;;  %4751 = vmatmul.mubr.msk.f32.gmra.mxu1 %vm95_vm1, %v53_v21 }
  0x1c   :  { %227 = vmatprep.mubr.f32.mxu0 %v8377_v17  ;;  %340 = vmatprep.mubr.f32.mxu1 %v8377_v17 }
  0x1f   :  { %4742 = vmatmul.mubr.msk.f32.gmra.mxu0 %vm95_vm1, %v54_v22  ;;  %4752 = vmatmul.mubr.msk.f32.gmra.mxu1 %vm95_vm1, %v54_v22 }
  0x20   :  { %233 = vmatprep.mubr.f32.mxu0 %v8377_v17  ;;  %346 = vmatprep.mubr.f32.mxu1 %v8377_v17 }
  0x23   :  { %4743 = vmatmul.mubr.msk.f32.gmra.mxu0 %vm95_vm1, %v55_v23  ;;  %4753 = vmatmul.mubr.msk.f32.gmra.mxu1 %vm95_vm1, %v55_v23 }
  0x24   :  { %239 = vmatprep.mubr.f32.mxu0 %v8377_v17  ;;  %352 = vmatprep.mubr.f32.mxu1 %v8377_v17 }
  0x27   :  { %4744 = vmatmul.mubr.msk.f32.gmra.mxu0 %vm95_vm1, %v56_v24  ;;  %4754 = vmatmul.mubr.msk.f32.gmra.mxu1 %vm95_vm1, %v56_v24 }
  0x28   :  { %4994 = shalt.err (!%p4991_p4)  }
  0x29   :  { %36 = dma.hbm_to_vmem [thread:$0]  %s8371_s3, 8192, %s34_s10, [#allocation6] }
  0x2a   :  { %s5003_s15 = scalar_lea.vmem %s46_s12, 16384  ;;  %p5008_p6 = scmp.lt.s32.totalorder %s46_s12, %s46_s12 }
  0x2b   :  { %p5004_p5 = scmp.ne.s32.totalorder %s46_s12, %s5003_s15  ;;  %p5009_p7 = scmp.lt.s32.totalorder %s5003_s15, %s5003_s15 }
  0x2d   :  { %p5010_p8 = por %p5009_p7, %p5008_p6 }
  0x2f   :  { %p5011_p9 = pnand %p5010_p8, %p5004_p5 }
  0x31   :  { %5014 = shalt.err (!%p5011_p9)  }
  0x32   :  { %48 = dma.hbm_to_vmem [thread:$0]  %s8372_s4, 16384, %s46_s12, [#allocation6 + $0x1]  ;;  %v73_v36 = vld [vmem:[%s8370_s2] sm:$0xf] }
  0x33   :  { %v78_v37 = vrot.slane %v73_v36, %v77_v27  ;;  %v86_v38 = vrot.slane %v73_v36, %v85_v28  ;;  %v5215_v39 = vrot.slane %v73_v36, %v81_v30  ;;  %v5217_v40 = vrot.slane %v73_v36, %v89_v31 }
  0xcb   :  { %v199_v41 = vpop.f32.mrf.mxu0  ;;  %v312_v42 = vpop.f32.mrf.mxu1 }
  0xcc   :  { %v5219_v43 = vadd.f32 %v199_v41, %v78_v37  ;;  %v5221_v44 = vadd.f32 %v312_v42, %v86_v38 }
  0xcd   :  { %v201_v45 = vpop.f32.mrf.mxu0  ;;  %v314_v46 = vpop.f32.mrf.mxu1 }
  0xce   :  { %v5224_v47 = vadd.f32 %v201_v45, %v5215_v39  ;;  %v5227_v48 = vadd.f32 %v314_v46, %v5217_v40 }
  0xcf   :  { %v205_v49 = vpop.f32.mrf.mxu0  ;;  %v318_v50 = vpop.f32.mrf.mxu1 }
  0xd0   :  { %v5229_v51 = vadd.f32 %v205_v49, %v78_v37  ;;  %v5231_v52 = vadd.f32 %v318_v50, %v86_v38 }
  0xd1   :  { %v207_v53 = vpop.f32.mrf.mxu0  ;;  %v320_v54 = vpop.f32.mrf.mxu1 }
  0xd2   :  { %8881 = vst [vmem:[#allocation22_spill] sm:$0xff] %v5229_v51  ;;  %8882 = vst [vmem:[#allocation23_spill] sm:$0xff] %v5231_v52  ;;  %v5234_v55 = vadd.f32 %v207_v53, %v5215_v39  ;;  %v5237_v56 = vadd.f32 %v320_v54, %v5217_v40 }
  0xd3   :  { %v211_v57 = vpop.f32.mrf.mxu0  ;;  %v324_v58 = vpop.f32.mrf.mxu1 }
  0xd4   :  { %8883 = vst [vmem:[#allocation24_spill] sm:$0xff] %v5234_v55  ;;  %8884 = vst [vmem:[#allocation25_spill] sm:$0xff] %v5237_v56  ;;  %v5239_v59 = vadd.f32 %v211_v57, %v78_v37  ;;  %v5241_v60 = vadd.f32 %v324_v58, %v86_v38 }
  0xd5   :  { %v213_v61 = vpop.f32.mrf.mxu0  ;;  %v326_v62 = vpop.f32.mrf.mxu1 }
  0xd6   :  { %8885 = vst [vmem:[#allocation26_spill] sm:$0xff] %v5239_v59  ;;  %8886 = vst [vmem:[#allocation27_spill] sm:$0xff] %v5241_v60  ;;  %v5244_v63 = vadd.f32 %v213_v61, %v5215_v39  ;;  %v5247_v0 = vadd.f32 %v326_v62, %v5217_v40 }
  0xd7   :  { %v217_v1 = vpop.f32.mrf.mxu0  ;;  %v330_v2 = vpop.f32.mrf.mxu1 }
  0xd8   :  { %8887 = vst [vmem:[#allocation28_spill] sm:$0xff] %v5244_v63  ;;  %8888 = vst [vmem:[#allocation29_spill] sm:$0xff] %v5247_v0  ;;  %v5249_v3 = vadd.f32 %v217_v1, %v78_v37  ;;  %v5251_v4 = vadd.f32 %v330_v2, %v86_v38 }
  0xd9   :  { %v219_v5 = vpop.f32.mrf.mxu0  ;;  %v332_v6 = vpop.f32.mrf.mxu1 }
  0xda   :  { %8889 = vst [vmem:[#allocation30_spill] sm:$0xff] %v5249_v3  ;;  %8890 = vst [vmem:[#allocation31_spill] sm:$0xff] %v5251_v4  ;;  %v5254_v7 = vadd.f32 %v219_v5, %v5215_v39  ;;  %v5257_v8 = vadd.f32 %v332_v6, %v5217_v40 }
  0xdb   :  { %v223_v9 = vpop.f32.mrf.mxu0  ;;  %v336_v10 = vpop.f32.mrf.mxu1 }
  0xdc   :  { %8891 = vst [vmem:[#allocation32_spill] sm:$0xff] %v5254_v7  ;;  %8892 = vst [vmem:[#allocation33_spill] sm:$0xff] %v5257_v8  ;;  %v5259_v11 = vadd.f32 %v223_v9, %v78_v37  ;;  %v5261_v12 = vadd.f32 %v336_v10, %v86_v38 }
  0xdd   :  { %v225_v13 = vpop.f32.mrf.mxu0  ;;  %v338_v14 = vpop.f32.mrf.mxu1 }
  0xde   :  { %8893 = vst [vmem:[#allocation34_spill] sm:$0xff] %v5259_v11  ;;  %8894 = vst [vmem:[#allocation35_spill] sm:$0xff] %v5261_v12  ;;  %v5264_v15 = vadd.f32 %v225_v13, %v5215_v39  ;;  %v5267_v16 = vadd.f32 %v338_v14, %v5217_v40 }
  0xdf   :  { %v229_v18 = vpop.f32.mrf.mxu0  ;;  %v342_v19 = vpop.f32.mrf.mxu1 }
  0xe0   :  { %8895 = vst [vmem:[#allocation36_spill] sm:$0xff] %v5264_v15  ;;  %8896 = vst [vmem:[#allocation37_spill] sm:$0xff] %v5267_v16  ;;  %v5269_v20 = vadd.f32 %v229_v18, %v78_v37  ;;  %v5271_v21 = vadd.f32 %v342_v19, %v86_v38 }
  0xe1   :  { %v231_v22 = vpop.f32.mrf.mxu0  ;;  %v344_v23 = vpop.f32.mrf.mxu1 }
  0xe2   :  { %8897 = vst [vmem:[#allocation38_spill] sm:$0xff] %v5269_v20  ;;  %8898 = vst [vmem:[#allocation39_spill] sm:$0xff] %v5271_v21  ;;  %v5274_v24 = vadd.f32 %v231_v22, %v5215_v39  ;;  %v5277_v25 = vadd.f32 %v344_v23, %v5217_v40 }
  0xe3   :  { %v235_v26 = vpop.f32.mrf.mxu0  ;;  %v348_v27 = vpop.f32.mrf.mxu1 }
  0xe4   :  { %8899 = vst [vmem:[#allocation40_spill] sm:$0xff] %v5274_v24  ;;  %8900 = vst [vmem:[#allocation41_spill] sm:$0xff] %v5277_v25  ;;  %v5279_v28 = vadd.f32 %v235_v26, %v78_v37  ;;  %v5281_v29 = vadd.f32 %v348_v27, %v86_v38 }
  0xe5   :  { %v237_v30 = vpop.f32.mrf.mxu0  ;;  %v350_v31 = vpop.f32.mrf.mxu1 }
  0xe6   :  { %8901 = vst [vmem:[#allocation42_spill] sm:$0xff] %v5279_v28  ;;  %8902 = vst [vmem:[#allocation43_spill] sm:$0xff] %v5281_v29  ;;  %v5284_v36 = vadd.f32 %v237_v30, %v5215_v39  ;;  %v5287_v41 = vadd.f32 %v350_v31, %v5217_v40 }
  0xe7   :  { %v241_v42 = vpop.f32.mrf.mxu0  ;;  %v354_v45 = vpop.f32.mrf.mxu1 }
  0xe8   :  { %8903 = vst [vmem:[#allocation44_spill] sm:$0xff] %v5284_v36  ;;  %8904 = vst [vmem:[#allocation45_spill] sm:$0xff] %v5287_v41  ;;  %v5289_v46 = vadd.f32 %v241_v42, %v78_v37  ;;  %v5291_v49 = vadd.f32 %v354_v45, %v86_v38 }
  0xe9   :  { %v243_v50 = vpop.f32.mrf.mxu0  ;;  %v356_v53 = vpop.f32.mrf.mxu1 }
  0xea   :  { %8905 = vst [vmem:[#allocation46_spill] sm:$0xff] %v5289_v46  ;;  %8906 = vst [vmem:[#allocation47_spill] sm:$0xff] %v5291_v49  ;;  %v5294_v54 = vadd.f32 %v243_v50, %v5215_v39  ;;  %v5297_v57 = vadd.f32 %v356_v53, %v5217_v40 }
  0xec   :  { %8907 = vst [vmem:[#allocation48_spill] sm:$0xff] %v5294_v54  ;;  %8908 = vst [vmem:[#allocation49_spill] sm:$0xff] %v5297_v57 }
  0xed   :  { %5035 = dma.done.wait [#allocation6], 8192 }
  0xee   :  { %5036 = vsyncadd [#allocation6], 4294959104  ;;  %549 = vmatprep.mubr.f32.mxu0 %v8377_v17  ;;  %620 = vmatprep.mubr.f32.mxu1 %v8377_v17  ;;  %v482_v58 = vld [vmem:[#allocation4 + $0x1e8] sm:$0xff]  ;;  %v481_v61 = vld [vmem:[#allocation4 + $0x1e0] sm:$0xff] }
  0xef   :  { %v478_v37 = vld [vmem:[#allocation4 + $0x1c8] sm:$0xff]  ;;  %485 = vmatprep.subr.mxu0 %v482_v58  ;;  %v477_v38 = vld [vmem:[#allocation4 + $0x1c0] sm:$0xff]  ;;  %v484_v62 = vld [vmem:[#allocation4 + $0x1f8] sm:$0xff] }
  0xf0   :  { %486 = vmatpush1.msra.mxu0 %v481_v61  ;;  %v474_v1 = vld [vmem:[#allocation4 + $0x1a8] sm:$0xff]  ;;  %556 = vmatprep.subr.mxu1 %v484_v62  ;;  %v483_v39 = vld [vmem:[#allocation4 + $0x1f0] sm:$0xff]  ;;  %v473_v2 = vld [vmem:[#allocation4 + $0x1a0] sm:$0xff] }
  0xf1   :  { %487 = vmatprep.subr.mxu0 %v478_v37  ;;  %557 = vmatpush1.msra.mxu1 %v483_v39  ;;  %v480_v40 = vld [vmem:[#allocation4 + $0x1d8] sm:$0xff]  ;;  %v479_v5 = vld [vmem:[#allocation4 + $0x1d0] sm:$0xff]  ;;  %v470_v6 = vld [vmem:[#allocation4 + $0x188] sm:$0xff] }
  0xf2   :  { %488 = vmatpush1.msra.mxu0 %v477_v38  ;;  %558 = vmatprep.subr.mxu1 %v480_v40  ;;  %v476_v9 = vld [vmem:[#allocation4 + $0x1b8] sm:$0xff]  ;;  %v469_v10 = vld [vmem:[#allocation4 + $0x180] sm:$0xff]  ;;  %v475_v13 = vld [vmem:[#allocation4 + $0x1b0] sm:$0xff] }
  0xf3   :  { %489 = vmatprep.subr.mxu0 %v474_v1  ;;  %559 = vmatpush1.msra.mxu1 %v479_v5  ;;  %v472_v14 = vld [vmem:[#allocation4 + $0x198] sm:$0xff]  ;;  %v466_v18 = vld [vmem:[#allocation4 + $0x168] sm:$0xff]  ;;  %v471_v19 = vld [vmem:[#allocation4 + $0x190] sm:$0xff] }
  0xf4   :  { %490 = vmatpush1.msra.mxu0 %v473_v2  ;;  %560 = vmatprep.subr.mxu1 %v476_v9  ;;  %v465_v22 = vld [vmem:[#allocation4 + $0x160] sm:$0xff]  ;;  %v468_v23 = vld [vmem:[#allocation4 + $0x178] sm:$0xff]  ;;  %v462_v26 = vld [vmem:[#allocation4 + $0x148] sm:$0xff] }
  0xf5   :  { %491 = vmatprep.subr.mxu0 %v470_v6  ;;  %561 = vmatpush1.msra.mxu1 %v475_v13  ;;  %v467_v27 = vld [vmem:[#allocation4 + $0x170] sm:$0xff]  ;;  %v461_v30 = vld [vmem:[#allocation4 + $0x140] sm:$0xff]  ;;  %v464_v31 = vld [vmem:[#allocation4 + $0x158] sm:$0xff] }
  0xf6   :  { %492 = vmatpush1.msra.mxu0 %v469_v10  ;;  %562 = vmatprep.subr.mxu1 %v472_v14  ;;  %v458_v42 = vld [vmem:[#allocation4 + $0x128] sm:$0xff]  ;;  %v463_v45 = vld [vmem:[#allocation4 + $0x150] sm:$0xff]  ;;  %v457_v50 = vld [vmem:[#allocation4 + $0x120] sm:$0xff] }
  0xf7   :  { %493 = vmatprep.subr.mxu0 %v466_v18  ;;  %563 = vmatpush1.msra.mxu1 %v471_v19  ;;  %v460_v53 = vld [vmem:[#allocation4 + $0x138] sm:$0xff]  ;;  %v454_v58 = vld [vmem:[#allocation4 + $0x108] sm:$0xff]  ;;  %v459_v61 = vld [vmem:[#allocation4 + $0x130] sm:$0xff] }
  0xf8   :  { %494 = vmatpush1.msra.mxu0 %v465_v22  ;;  %564 = vmatprep.subr.mxu1 %v468_v23  ;;  %v453_v37 = vld [vmem:[#allocation4 + $0x100] sm:$0xff]  ;;  %v456_v38 = vld [vmem:[#allocation4 + $0x118] sm:$0xff]  ;;  %v450_v62 = vld [vmem:[#allocation4 + $0xe8] sm:$0xff] }
  0xf9   :  { %495 = vmatprep.subr.mxu0 %v462_v26  ;;  %565 = vmatpush1.msra.mxu1 %v467_v27  ;;  %v455_v1 = vld [vmem:[#allocation4 + $0x110] sm:$0xff]  ;;  %v449_v39 = vld [vmem:[#allocation4 + $0xe0] sm:$0xff]  ;;  %v452_v2 = vld [vmem:[#allocation4 + $0xf8] sm:$0xff] }
  0xfa   :  { %496 = vmatpush1.msra.mxu0 %v461_v30  ;;  %566 = vmatprep.subr.mxu1 %v464_v31  ;;  %v446_v40 = vld [vmem:[#allocation4 + $0xc8] sm:$0xff]  ;;  %v451_v5 = vld [vmem:[#allocation4 + $0xf0] sm:$0xff]  ;;  %v445_v6 = vld [vmem:[#allocation4 + $0xc0] sm:$0xff] }
  0xfb   :  { %497 = vmatprep.subr.mxu0 %v458_v42  ;;  %567 = vmatpush1.msra.mxu1 %v463_v45  ;;  %v448_v9 = vld [vmem:[#allocation4 + $0xd8] sm:$0xff]  ;;  %v442_v10 = vld [vmem:[#allocation4 + $0xa8] sm:$0xff]  ;;  %v447_v13 = vld [vmem:[#allocation4 + $0xd0] sm:$0xff] }
  0xfc   :  { %498 = vmatpush1.msra.mxu0 %v457_v50  ;;  %568 = vmatprep.subr.mxu1 %v460_v53  ;;  %v441_v14 = vld [vmem:[#allocation4 + $0xa0] sm:$0xff]  ;;  %v444_v18 = vld [vmem:[#allocation4 + $0xb8] sm:$0xff]  ;;  %v438_v19 = vld [vmem:[#allocation4 + $0x88] sm:$0xff] }
  0xfd   :  { %499 = vmatprep.subr.mxu0 %v454_v58  ;;  %569 = vmatpush1.msra.mxu1 %v459_v61  ;;  %v443_v22 = vld [vmem:[#allocation4 + $0xb0] sm:$0xff]  ;;  %v437_v23 = vld [vmem:[#allocation4 + $0x80] sm:$0xff]  ;;  %v440_v26 = vld [vmem:[#allocation4 + $0x98] sm:$0xff] }
  0xfe   :  { %500 = vmatpush1.msra.mxu0 %v453_v37  ;;  %570 = vmatprep.subr.mxu1 %v456_v38  ;;  %v434_v27 = vld [vmem:[#allocation4 + $0x68] sm:$0xff]  ;;  %v439_v30 = vld [vmem:[#allocation4 + $0x90] sm:$0xff]  ;;  %v433_v31 = vld [vmem:[#allocation4 + $0x60] sm:$0xff] }
  0xff   :  { %501 = vmatprep.subr.mxu0 %v450_v62  ;;  %571 = vmatpush1.msra.mxu1 %v455_v1  ;;  %v436_v42 = vld [vmem:[#allocation4 + $0x78] sm:$0xff]  ;;  %v430_v45 = vld [vmem:[#allocation4 + $0x48] sm:$0xff]  ;;  %v435_v50 = vld [vmem:[#allocation4 + $0x70] sm:$0xff] }
 0x100   :  { %502 = vmatpush1.msra.mxu0 %v449_v39  ;;  %572 = vmatprep.subr.mxu1 %v452_v2  ;;  %v429_v53 = vld [vmem:[#allocation4 + $0x40] sm:$0xff]  ;;  %v432_v58 = vld [vmem:[#allocation4 + $0x58] sm:$0xff]  ;;  %v426_v61 = vld [vmem:[#allocation4 + $0x28] sm:$0xff] }
 0x101   :  { %503 = vmatprep.subr.mxu0 %v446_v40  ;;  %573 = vmatpush1.msra.mxu1 %v451_v5  ;;  %v431_v37 = vld [vmem:[#allocation4 + $0x50] sm:$0xff]  ;;  %v425_v38 = vld [vmem:[#allocation4 + $0x20] sm:$0xff]  ;;  %v428_v62 = vld [vmem:[#allocation4 + $0x38] sm:$0xff] }
 0x102   :  { %504 = vmatpush1.msra.mxu0 %v445_v6  ;;  %574 = vmatprep.subr.mxu1 %v448_v9  ;;  %v422_v1 = vld [vmem:[#allocation4 + $0x8] sm:$0xff]  ;;  %v427_v39 = vld [vmem:[#allocation4 + $0x30] sm:$0xff]  ;;  %v421_v2 = vld [vmem:[#allocation4] sm:$0xff] }
 0x103   :  { %505 = vmatprep.subr.mxu0 %v442_v10  ;;  %575 = vmatpush1.msra.mxu1 %v447_v13  ;;  %v424_v40 = vld [vmem:[#allocation4 + $0x18] sm:$0xff]  ;;  %v423_v5 = vld [vmem:[#allocation4 + $0x10] sm:$0xff] }
 0x104   :  { %506 = vmatpush1.msra.mxu0 %v441_v14  ;;  %576 = vmatprep.subr.mxu1 %v444_v18 }
 0x105   :  { %507 = vmatprep.subr.mxu0 %v438_v19  ;;  %577 = vmatpush1.msra.mxu1 %v443_v22 }
 0x106   :  { %508 = vmatpush1.msra.mxu0 %v437_v23  ;;  %578 = vmatprep.subr.mxu1 %v440_v26 }
 0x107   :  { %509 = vmatprep.subr.mxu0 %v434_v27  ;;  %579 = vmatpush1.msra.mxu1 %v439_v30 }
 0x108   :  { %510 = vmatpush1.msra.mxu0 %v433_v31  ;;  %580 = vmatprep.subr.mxu1 %v436_v42 }
 0x109   :  { %511 = vmatprep.subr.mxu0 %v430_v45  ;;  %581 = vmatpush1.msra.mxu1 %v435_v50 }
 0x10a   :  { %512 = vmatpush1.msra.mxu0 %v429_v53  ;;  %582 = vmatprep.subr.mxu1 %v432_v58 }
 0x10b   :  { %513 = vmatprep.subr.mxu0 %v426_v61  ;;  %583 = vmatpush1.msra.mxu1 %v431_v37 }
 0x10c   :  { %514 = vmatpush1.msra.mxu0 %v425_v38  ;;  %584 = vmatprep.subr.mxu1 %v428_v62 }
 0x10d   :  { %515 = vmatprep.subr.mxu0 %v422_v1  ;;  %585 = vmatpush1.msra.mxu1 %v427_v39 }
 0x10e   :  { %516 = vmatpush1.msra.mxu0 %v421_v2  ;;  %586 = vmatprep.subr.mxu1 %v424_v40 }
 0x10f   :  { %550 = vmatmul.mubr.f32.vlgmr.msra.gmra.mxu0 %v8377_v17  ;;  %587 = vmatpush1.msra.mxu1 %v423_v5 }
 0x110   :  { %621 = vmatmul.mubr.f32.vlgmr.msra.gmra.mxu1 %v8377_v17 }
 0x1cf   :  { %v551_v6 = vpop.f32.mrf.mxu0 }
 0x1d0   :  { %v627_v9 = vadd.f32 %v551_v6, %v5219_v43  ;;  %v622_v10 = vpop.f32.mrf.mxu1 }
 0x1d1   :  { %v553_v13 = vpop.f32.mrf.mxu0  ;;  %v629_v26 = vadd.f32 %v622_v10, %v5221_v44 }
 0x1d2   :  { %v631_v14 = vmul.f32 0.5, %v627_v9  ;;  %v628_v18 = vadd.f32 %v553_v13, %v5224_v47  ;;  %v624_v19 = vpop.f32.mrf.mxu1 }
 0x1d3   :  { %v630_v23 = vadd.f32 %v624_v19, %v5227_v48  ;;  %v633_v27 = vmul.f32 0.5, %v629_v26 }
 0x1d4   :  { %4815 = vtanh.f32 %v631_v14  ;;  %v632_v22 = vmul.f32 0.5, %v628_v18 }
 0x1d6   :  { %4817 = vtanh.f32 %v632_v22 }
 0x1d7   :  { %4819 = vtanh.f32 %v630_v23 }
 0x1d8   :  { %4821 = vtanh.f32 %v633_v27 }
 0x1e1   :  { %v4816_v30 = vpop.eup %4815 }
 0x1e2   :  { %v637_v31 = vmul.f32 0.5, %v4816_v30 }
 0x1e3   :  { %v4818_v42 = vpop.eup %4817 }
 0x1e4   :  { %v640_v45 = vadd.f32 0.5, %v637_v31  ;;  %v638_v43 = vmul.f32 0.5, %v4818_v42  ;;  %v4820_v50 = vpop.eup %4819 }
 0x1e5   :  { %v4822_v48 = vpop.eup %4821 }
 0x1e6   :  { %v641_v53 = vadd.f32 0.5, %v638_v43  ;;  %v645_v47 = vmul.f32 %v4820_v50, %v640_v45  ;;  %v639_v37 = vmul.f32 0.5, %v4822_v48 }
 0x1e8   :  { %v644_v58 = vmul.f32 0.0, %v641_v53  ;;  %v642_v38 = vadd.f32 0.5, %v639_v37 }
 0x1ea   :  { %v5307_v61 = vadd.f32 %v645_v47, %v644_v58 }
 0x1ec   :  { %8909 = vst [vmem:[#allocation50_spill] sm:$0xff] %v5307_v61  ;;  %4823 = vtanh.f32 %v5307_v61 }
 0x1f9   :  { %v4824_v62 = vpop.eup %4823 }
 0x1fa   :  { %v5310_v44 = vmul.f32 %v4824_v62, %v642_v38 }
 0x1fb   :  { %5037 = dma.done.wait [#allocation6 + $0x1], 16384 }
 0x1fc   :  { %5038 = vsyncadd [#allocation6 + $0x1], 4294950912  ;;  %849 = vmatprep.mubr.f32.mxu0 %v8377_v17  ;;  %920 = vmatprep.mubr.f32.mxu1 %v8377_v17  ;;  %v5314_v1 = vld [vmem:[#allocation5 + $0x1e8] sm:$0xff]  ;;  %v5316_v39 = vld [vmem:[#allocation5 + $0x1e0] sm:$0xff]  ;;  %vm5044_vm2 = vmmov 0   ;;  %s5045_s21 = smov [#allocation7]  }
 0x1fd   :  { %v5318_v2 = vld [vmem:[#allocation5 + $0x1c8] sm:$0xff]  ;;  %785 = vmatprep.subr.mxu0 %v5314_v1  ;;  %v5321_v40 = vld [vmem:[#allocation5 + $0x1c0] sm:$0xff]  ;;  %v5323_v5 = vld [vmem:[#allocation5 + $0x1f8] sm:$0xff]  ;;  %s4714_s22 = sshll.u32 %s5045_s21, 4  ;;  %vm4706_vm3 = vcmask 80896   ;;  %s4715_s22 = int_to_ptr.vmem [resolvable:$true] %s4714_s22 }
 0x1fe   :  { %786 = vmatpush1.msra.mxu0 %v5316_v39  ;;  %v5326_v6 = vld [vmem:[#allocation5 + $0x1a8] sm:$0xff]  ;;  %856 = vmatprep.subr.mxu1 %v5323_v5  ;;  %v5329_v9 = vld [vmem:[#allocation5 + $0x1f0] sm:$0xff]  ;;  %v5332_v10 = vld [vmem:[#allocation5 + $0x1a0] sm:$0xff]  ;;  %s5015_s23 = scalar_lea.vmem %s4715_s22, 128  ;;  %p5020_p11 = scmp.lt.s32.totalorder %s4715_s22, %s4715_s22 }
 0x1ff   :  { %787 = vmatprep.subr.mxu0 %v5318_v2  ;;  %857 = vmatpush1.msra.mxu1 %v5329_v9  ;;  %v5335_v13 = vld [vmem:[#allocation5 + $0x1d8] sm:$0xff]  ;;  %v5337_v14 = vld [vmem:[#allocation5 + $0x1d0] sm:$0xff]  ;;  %v5340_v18 = vld [vmem:[#allocation5 + $0x188] sm:$0xff]  ;;  %p5016_p10 = scmp.ne.s32.totalorder %s4715_s22, %s5015_s23  ;;  %p5021_p12 = scmp.lt.s32.totalorder %s5015_s23, %s5015_s23 }
 0x200   :  { %788 = vmatpush1.msra.mxu0 %v5321_v40  ;;  %858 = vmatprep.subr.mxu1 %v5335_v13  ;;  %v5343_v19 = vld [vmem:[#allocation5 + $0x1b8] sm:$0xff]  ;;  %v5346_v22 = vld [vmem:[#allocation5 + $0x180] sm:$0xff]  ;;  %v5349_v23 = vld [vmem:[#allocation5 + $0x1b0] sm:$0xff] }
 0x201   :  { %789 = vmatprep.subr.mxu0 %v5326_v6  ;;  %859 = vmatpush1.msra.mxu1 %v5337_v14  ;;  %v5351_v26 = vld [vmem:[#allocation5 + $0x198] sm:$0xff]  ;;  %v5354_v27 = vld [vmem:[#allocation5 + $0x168] sm:$0xff]  ;;  %v5357_v30 = vld [vmem:[#allocation5 + $0x190] sm:$0xff]  ;;  %p5022_p13 = por %p5021_p12, %p5020_p11 }
 0x202   :  { %790 = vmatpush1.msra.mxu0 %v5332_v10  ;;  %860 = vmatprep.subr.mxu1 %v5343_v19  ;;  %v5360_v31 = vld [vmem:[#allocation5 + $0x160] sm:$0xff]  ;;  %v5363_v42 = vld [vmem:[#allocation5 + $0x178] sm:$0xff]  ;;  %v5366_v45 = vld [vmem:[#allocation5 + $0x148] sm:$0xff] }
 0x203   :  { %791 = vmatprep.subr.mxu0 %v5340_v18  ;;  %861 = vmatpush1.msra.mxu1 %v5349_v23  ;;  %v5369_v43 = vld [vmem:[#allocation5 + $0x170] sm:$0xff]  ;;  %v5372_v50 = vld [vmem:[#allocation5 + $0x140] sm:$0xff]  ;;  %v5375_v53 = vld [vmem:[#allocation5 + $0x158] sm:$0xff]  ;;  %p5023_p0 = pnand %p5022_p13, %p5016_p10 }
 0x204   :  { %792 = vmatpush1.msra.mxu0 %v5346_v22  ;;  %862 = vmatprep.subr.mxu1 %v5351_v26  ;;  %v5378_v58 = vld [vmem:[#allocation5 + $0x128] sm:$0xff]  ;;  %v5381_v47 = vld [vmem:[#allocation5 + $0x150] sm:$0xff]  ;;  %v5384_v48 = vld [vmem:[#allocation5 + $0x120] sm:$0xff] }
 0x205   :  { %793 = vmatprep.subr.mxu0 %v5354_v27  ;;  %863 = vmatpush1.msra.mxu1 %v5357_v30  ;;  %v5387_v37 = vld [vmem:[#allocation5 + $0x138] sm:$0xff]  ;;  %v5390_v38 = vld [vmem:[#allocation5 + $0x108] sm:$0xff]  ;;  %v5393_v62 = vld [vmem:[#allocation5 + $0x130] sm:$0xff] }
 0x206   :  { %794 = vmatpush1.msra.mxu0 %v5360_v31  ;;  %864 = vmatprep.subr.mxu1 %v5363_v42  ;;  %v5396_v17 = vld [vmem:[#allocation5 + $0x100] sm:$0xff]  ;;  %v5399_v49 = vld [vmem:[#allocation5 + $0x118] sm:$0xff]  ;;  %v5402_v57 = vld [vmem:[#allocation5 + $0xe8] sm:$0xff] }
 0x207   :  { %795 = vmatprep.subr.mxu0 %v5366_v45  ;;  %865 = vmatpush1.msra.mxu1 %v5369_v43  ;;  %v5405_v54 = vld [vmem:[#allocation5 + $0x110] sm:$0xff]  ;;  %v5408_v46 = vld [vmem:[#allocation5 + $0xe0] sm:$0xff]  ;;  %v5411_v29 = vld [vmem:[#allocation5 + $0xf8] sm:$0xff] }
 0x208   :  { %796 = vmatpush1.msra.mxu0 %v5372_v50  ;;  %866 = vmatprep.subr.mxu1 %v5375_v53  ;;  %v5414_v41 = vld [vmem:[#allocation5 + $0xc8] sm:$0xff]  ;;  %v5417_v36 = vld [vmem:[#allocation5 + $0xf0] sm:$0xff]  ;;  %v5420_v28 = vld [vmem:[#allocation5 + $0xc0] sm:$0xff] }
 0x209   :  { %797 = vmatprep.subr.mxu0 %v5378_v58  ;;  %867 = vmatpush1.msra.mxu1 %v5381_v47  ;;  %v5423_v21 = vld [vmem:[#allocation5 + $0xd8] sm:$0xff]  ;;  %v5426_v25 = vld [vmem:[#allocation5 + $0xa8] sm:$0xff]  ;;  %v5429_v24 = vld [vmem:[#allocation5 + $0xd0] sm:$0xff] }
 0x20a   :  { %798 = vmatpush1.msra.mxu0 %v5384_v48  ;;  %868 = vmatprep.subr.mxu1 %v5387_v37  ;;  %v5432_v20 = vld [vmem:[#allocation5 + $0xa0] sm:$0xff]  ;;  %v5435_v12 = vld [vmem:[#allocation5 + $0xb8] sm:$0xff]  ;;  %v5438_v16 = vld [vmem:[#allocation5 + $0x88] sm:$0xff] }
 0x20b   :  { %799 = vmatprep.subr.mxu0 %v5390_v38  ;;  %869 = vmatpush1.msra.mxu1 %v5393_v62  ;;  %v5441_v15 = vld [vmem:[#allocation5 + $0xb0] sm:$0xff]  ;;  %v5444_v11 = vld [vmem:[#allocation5 + $0x80] sm:$0xff]  ;;  %v5447_v4 = vld [vmem:[#allocation5 + $0x98] sm:$0xff] }
 0x20c   :  { %800 = vmatpush1.msra.mxu0 %v5396_v17  ;;  %870 = vmatprep.subr.mxu1 %v5399_v49  ;;  %v5450_v8 = vld [vmem:[#allocation5 + $0x68] sm:$0xff]  ;;  %v5453_v7 = vld [vmem:[#allocation5 + $0x90] sm:$0xff]  ;;  %v5456_v3 = vld [vmem:[#allocation5 + $0x60] sm:$0xff] }
 0x20d   :  { %801 = vmatprep.subr.mxu0 %v5402_v57  ;;  %871 = vmatpush1.msra.mxu1 %v5405_v54  ;;  %v5459_v60 = vld [vmem:[#allocation5 + $0x78] sm:$0xff]  ;;  %v5462_v0 = vld [vmem:[#allocation5 + $0x48] sm:$0xff]  ;;  %v5465_v63 = vld [vmem:[#allocation5 + $0x70] sm:$0xff] }
 0x20e   :  { %802 = vmatpush1.msra.mxu0 %v5408_v46  ;;  %872 = vmatprep.subr.mxu1 %v5411_v29  ;;  %8910 = vst [vmem:[#allocation51_spill] sm:$0xff] %v5462_v0  ;;  %v5468_v59 = vld [vmem:[#allocation5 + $0x40] sm:$0xff]  ;;  %v5471_v61 = vld [vmem:[#allocation5 + $0x58] sm:$0xff]  ;;  %v5474_v52 = vld [vmem:[#allocation5 + $0x28] sm:$0xff] }
 0x20f   :  { %803 = vmatprep.subr.mxu0 %v5414_v41  ;;  %873 = vmatpush1.msra.mxu1 %v5417_v36  ;;  %8911 = vst [vmem:[#allocation52_spill] sm:$0xff] %v5468_v59  ;;  %8912 = vst [vmem:[#allocation53_spill] sm:$0xff] %v5471_v61  ;;  %v5477_v56 = vld [vmem:[#allocation5 + $0x50] sm:$0xff]  ;;  %v5480_v55 = vld [vmem:[#allocation5 + $0x20] sm:$0xff] }
 0x210   :  { %804 = vmatpush1.msra.mxu0 %v5420_v28  ;;  %874 = vmatprep.subr.mxu1 %v5423_v21  ;;  %8913 = vst [vmem:[#allocation54_spill] sm:$0xff] %v5474_v52  ;;  %8914 = vst [vmem:[#allocation55_spill] sm:$0xff] %v5477_v56  ;;  %v5483_v51 = vld [vmem:[#allocation5 + $0x38] sm:$0xff]  ;;  %v5486_v33 = vld [vmem:[#allocation5 + $0x8] sm:$0xff] }
 0x211   :  { %805 = vmatprep.subr.mxu0 %v5426_v25  ;;  %875 = vmatpush1.msra.mxu1 %v5429_v24  ;;  %8915 = vst [vmem:[#allocation56_spill] sm:$0xff] %v5480_v55  ;;  %8916 = vst [vmem:[#allocation57_spill] sm:$0xff] %v5483_v51  ;;  %v5489_v35 = vld [vmem:[#allocation5 + $0x30] sm:$0xff]  ;;  %v5492_v34 = vld [vmem:[#allocation5] sm:$0xff] }
 0x212   :  { %806 = vmatpush1.msra.mxu0 %v5432_v20  ;;  %876 = vmatprep.subr.mxu1 %v5435_v12  ;;  %8917 = vst [vmem:[#allocation58_spill] sm:$0xff] %v5486_v33  ;;  %8918 = vst [vmem:[#allocation59_spill] sm:$0xff] %v5489_v35  ;;  %v5495_v32 = vld [vmem:[#allocation5 + $0x18] sm:$0xff] }
 0x213   :  { %807 = vmatprep.subr.mxu0 %v5438_v16  ;;  %877 = vmatpush1.msra.mxu1 %v5441_v15  ;;  %8919 = vst [vmem:[#allocation60_spill] sm:$0xff] %v5492_v34  ;;  %8920 = vst [vmem:[#allocation61_spill] sm:$0xff] %v5495_v32 }
 0x214   :  { %808 = vmatpush1.msra.mxu0 %v5444_v11  ;;  %878 = vmatprep.subr.mxu1 %v5447_v4 }
 0x215   :  { %809 = vmatprep.subr.mxu0 %v5450_v8  ;;  %879 = vmatpush1.msra.mxu1 %v5453_v7 }
 0x216   :  { %810 = vmatpush1.msra.mxu0 %v5456_v3  ;;  %880 = vmatprep.subr.mxu1 %v5459_v60 }
 0x217   :  { %811 = vmatprep.subr.mxu0 %v5462_v0  ;;  %881 = vmatpush1.msra.mxu1 %v5465_v63  ;;  %v5498_v0 = vld [vmem:[#allocation5 + $0x3e8] sm:$0xff] }
 0x218   :  { %812 = vmatpush1.msra.mxu0 %v5468_v59  ;;  %882 = vmatprep.subr.mxu1 %v5471_v61  ;;  %8921 = vst [vmem:[#allocation62_spill] sm:$0xff] %v5498_v0  ;;  %v5501_v59 = vld [vmem:[#allocation5 + $0x10] sm:$0xff]  ;;  %v5504_v61 = vld [vmem:[#allocation5 + $0x3e0] sm:$0xff] }
 0x219   :  { %813 = vmatprep.subr.mxu0 %v5474_v52  ;;  %883 = vmatpush1.msra.mxu1 %v5477_v56  ;;  %8922 = vst [vmem:[#allocation63_spill] sm:$0xff] %v5501_v59  ;;  %8923 = vst [vmem:[#allocation64_spill] sm:$0xff] %v5504_v61  ;;  %v5507_v52 = vld [vmem:[#allocation5 + $0x3f8] sm:$0xff]  ;;  %v5510_v56 = vld [vmem:[#allocation5 + $0x3c8] sm:$0xff] }
 0x21a   :  { %814 = vmatpush1.msra.mxu0 %v5480_v55  ;;  %884 = vmatprep.subr.mxu1 %v5483_v51  ;;  %8924 = vst [vmem:[#allocation65_spill] sm:$0xff] %v5507_v52  ;;  %8925 = vst [vmem:[#allocation66_spill] sm:$0xff] %v5510_v56  ;;  %v5513_v55 = vld [vmem:[#allocation5 + $0x3f0] sm:$0xff]  ;;  %v5516_v51 = vld [vmem:[#allocation5 + $0x3c0] sm:$0xff] }
 0x21b   :  { %815 = vmatprep.subr.mxu0 %v5486_v33  ;;  %885 = vmatpush1.msra.mxu1 %v5489_v35  ;;  %8926 = vst [vmem:[#allocation67_spill] sm:$0xff] %v5513_v55  ;;  %8927 = vst [vmem:[#allocation68_spill] sm:$0xff] %v5516_v51  ;;  %v5519_v33 = vld [vmem:[#allocation5 + $0x3d8] sm:$0xff]  ;;  %v5522_v35 = vld [vmem:[#allocation5 + $0x3a8] sm:$0xff] }
 0x21c   :  { %816 = vmatpush1.msra.mxu0 %v5492_v34  ;;  %886 = vmatprep.subr.mxu1 %v5495_v32  ;;  %8928 = vst [vmem:[#allocation69_spill] sm:$0xff] %v5519_v33  ;;  %8929 = vst [vmem:[#allocation70_spill] sm:$0xff] %v5522_v35  ;;  %v5525_v34 = vld [vmem:[#allocation5 + $0x3d0] sm:$0xff]  ;;  %v5528_v32 = vld [vmem:[#allocation5 + $0x3a0] sm:$0xff] }
 0x21d   :  { %817 = vmatprep.subr.mxu0 %v5498_v0  ;;  %887 = vmatpush1.msra.mxu1 %v5501_v59  ;;  %8930 = vst [vmem:[#allocation71_spill] sm:$0xff] %v5525_v34  ;;  %8931 = vst [vmem:[#allocation72_spill] sm:$0xff] %v5528_v32  ;;  %v5531_v0 = vld [vmem:[#allocation5 + $0x3b8] sm:$0xff]  ;;  %v5534_v59 = vld [vmem:[#allocation5 + $0x388] sm:$0xff] }
 0x21e   :  { %818 = vmatpush2.msra.mxu0 %v5504_v61  ;;  %888 = vmatprep.subr.mxu1 %v5507_v52  ;;  %8932 = vst [vmem:[#allocation73_spill] sm:$0xff] %v5531_v0  ;;  %8933 = vst [vmem:[#allocation74_spill] sm:$0xff] %v5534_v59  ;;  %v5537_v61 = vld [vmem:[#allocation5 + $0x3b0] sm:$0xff]  ;;  %v5540_v52 = vld [vmem:[#allocation5 + $0x380] sm:$0xff] }
 0x21f   :  { %819 = vmatprep.subr.mxu0 %v5510_v56  ;;  %889 = vmatpush2.msra.mxu1 %v5513_v55  ;;  %8934 = vst [vmem:[#allocation75_spill] sm:$0xff] %v5537_v61  ;;  %8935 = vst [vmem:[#allocation76_spill] sm:$0xff] %v5540_v52  ;;  %v5543_v56 = vld [vmem:[#allocation5 + $0x398] sm:$0xff]  ;;  %v5546_v55 = vld [vmem:[#allocation5 + $0x368] sm:$0xff] }
 0x220   :  { %820 = vmatpush2.msra.mxu0 %v5516_v51  ;;  %890 = vmatprep.subr.mxu1 %v5519_v33  ;;  %8936 = vst [vmem:[#allocation77_spill] sm:$0xff] %v5543_v56  ;;  %8937 = vst [vmem:[#allocation78_spill] sm:$0xff] %v5546_v55  ;;  %v5549_v51 = vld [vmem:[#allocation5 + $0x390] sm:$0xff]  ;;  %v5552_v33 = vld [vmem:[#allocation5 + $0x360] sm:$0xff] }
 0x221   :  { %821 = vmatprep.subr.mxu0 %v5522_v35  ;;  %891 = vmatpush2.msra.mxu1 %v5525_v34  ;;  %8938 = vst [vmem:[#allocation79_spill] sm:$0xff] %v5549_v51  ;;  %8939 = vst [vmem:[#allocation80_spill] sm:$0xff] %v5552_v33  ;;  %v5555_v35 = vld [vmem:[#allocation5 + $0x378] sm:$0xff]  ;;  %v5558_v34 = vld [vmem:[#allocation5 + $0x348] sm:$0xff] }
 0x222   :  { %822 = vmatpush2.msra.mxu0 %v5528_v32  ;;  %892 = vmatprep.subr.mxu1 %v5531_v0  ;;  %8940 = vst [vmem:[#allocation81_spill] sm:$0xff] %v5555_v35  ;;  %8941 = vst [vmem:[#allocation82_spill] sm:$0xff] %v5558_v34  ;;  %v5561_v32 = vld [vmem:[#allocation5 + $0x370] sm:$0xff]  ;;  %v5564_v0 = vld [vmem:[#allocation5 + $0x340] sm:$0xff] }
 0x223   :  { %823 = vmatprep.subr.mxu0 %v5534_v59  ;;  %893 = vmatpush2.msra.mxu1 %v5537_v61  ;;  %8942 = vst [vmem:[#allocation83_spill] sm:$0xff] %v5561_v32  ;;  %8943 = vst [vmem:[#allocation84_spill] sm:$0xff] %v5564_v0  ;;  %v5567_v59 = vld [vmem:[#allocation5 + $0x358] sm:$0xff]  ;;  %v5570_v61 = vld [vmem:[#allocation5 + $0x328] sm:$0xff] }
 0x224   :  { %824 = vmatpush2.msra.mxu0 %v5540_v52  ;;  %894 = vmatprep.subr.mxu1 %v5543_v56  ;;  %8944 = vst [vmem:[#allocation85_spill] sm:$0xff] %v5567_v59  ;;  %8945 = vst [vmem:[#allocation86_spill] sm:$0xff] %v5570_v61  ;;  %v5573_v52 = vld [vmem:[#allocation5 + $0x350] sm:$0xff]  ;;  %v5576_v56 = vld [vmem:[#allocation5 + $0x320] sm:$0xff] }
 0x225   :  { %825 = vmatprep.subr.mxu0 %v5546_v55  ;;  %895 = vmatpush2.msra.mxu1 %v5549_v51  ;;  %8946 = vst [vmem:[#allocation87_spill] sm:$0xff] %v5573_v52  ;;  %8947 = vst [vmem:[#allocation88_spill] sm:$0xff] %v5576_v56  ;;  %v5579_v55 = vld [vmem:[#allocation5 + $0x338] sm:$0xff]  ;;  %v5582_v51 = vld [vmem:[#allocation5 + $0x308] sm:$0xff] }
 0x226   :  { %826 = vmatpush2.msra.mxu0 %v5552_v33  ;;  %896 = vmatprep.subr.mxu1 %v5555_v35  ;;  %8948 = vst [vmem:[#allocation89_spill] sm:$0xff] %v5579_v55  ;;  %8949 = vst [vmem:[#allocation90_spill] sm:$0xff] %v5582_v51  ;;  %v5585_v33 = vld [vmem:[#allocation5 + $0x330] sm:$0xff]  ;;  %v5588_v35 = vld [vmem:[#allocation5 + $0x300] sm:$0xff] }
 0x227   :  { %827 = vmatprep.subr.mxu0 %v5558_v34  ;;  %897 = vmatpush2.msra.mxu1 %v5561_v32  ;;  %8950 = vst [vmem:[#allocation91_spill] sm:$0xff] %v5585_v33  ;;  %8951 = vst [vmem:[#allocation92_spill] sm:$0xff] %v5588_v35  ;;  %v5591_v34 = vld [vmem:[#allocation5 + $0x318] sm:$0xff]  ;;  %v5594_v32 = vld [vmem:[#allocation5 + $0x2e8] sm:$0xff] }
 0x228   :  { %828 = vmatpush2.msra.mxu0 %v5564_v0  ;;  %898 = vmatprep.subr.mxu1 %v5567_v59  ;;  %8952 = vst [vmem:[#allocation93_spill] sm:$0xff] %v5591_v34  ;;  %8953 = vst [vmem:[#allocation94_spill] sm:$0xff] %v5594_v32  ;;  %v5597_v0 = vld [vmem:[#allocation5 + $0x310] sm:$0xff]  ;;  %v5600_v59 = vld [vmem:[#allocation5 + $0x2e0] sm:$0xff] }
 0x229   :  { %829 = vmatprep.subr.mxu0 %v5570_v61  ;;  %899 = vmatpush2.msra.mxu1 %v5573_v52  ;;  %8954 = vst [vmem:[#allocation95_spill] sm:$0xff] %v5597_v0  ;;  %8955 = vst [vmem:[#allocation96_spill] sm:$0xff] %v5600_v59  ;;  %v5603_v61 = vld [vmem:[#allocation5 + $0x2f8] sm:$0xff]  ;;  %v5606_v52 = vld [vmem:[#allocation5 + $0x2c8] sm:$0xff] }
 0x22a   :  { %830 = vmatpush2.msra.mxu0 %v5576_v56  ;;  %900 = vmatprep.subr.mxu1 %v5579_v55  ;;  %8956 = vst [vmem:[#allocation97_spill] sm:$0xff] %v5603_v61  ;;  %8957 = vst [vmem:[#allocation98_spill] sm:$0xff] %v5606_v52  ;;  %v5609_v56 = vld [vmem:[#allocation5 + $0x2f0] sm:$0xff]  ;;  %v5612_v55 = vld [vmem:[#allocation5 + $0x2c0] sm:$0xff] }
 0x22b   :  { %831 = vmatprep.subr.mxu0 %v5582_v51  ;;  %901 = vmatpush2.msra.mxu1 %v5585_v33  ;;  %8958 = vst [vmem:[#allocation99_spill] sm:$0xff] %v5609_v56  ;;  %8959 = vst [vmem:[#allocation100_spill] sm:$0xff] %v5612_v55  ;;  %v5615_v51 = vld [vmem:[#allocation5 + $0x2d8] sm:$0xff]  ;;  %v5618_v33 = vld [vmem:[#allocation5 + $0x2a8] sm:$0xff] }
 0x22c   :  { %832 = vmatpush2.msra.mxu0 %v5588_v35  ;;  %902 = vmatprep.subr.mxu1 %v5591_v34  ;;  %8960 = vst [vmem:[#allocation101_spill] sm:$0xff] %v5615_v51  ;;  %8961 = vst [vmem:[#allocation102_spill] sm:$0xff] %v5618_v33  ;;  %v5621_v35 = vld [vmem:[#allocation5 + $0x2d0] sm:$0xff]  ;;  %v5624_v34 = vld [vmem:[#allocation5 + $0x2a0] sm:$0xff] }
 0x22d   :  { %833 = vmatprep.subr.mxu0 %v5594_v32  ;;  %903 = vmatpush2.msra.mxu1 %v5597_v0  ;;  %8962 = vst [vmem:[#allocation103_spill] sm:$0xff] %v5621_v35  ;;  %8963 = vst [vmem:[#allocation104_spill] sm:$0xff] %v5624_v34  ;;  %v5627_v32 = vld [vmem:[#allocation5 + $0x2b8] sm:$0xff]  ;;  %v5630_v0 = vld [vmem:[#allocation5 + $0x288] sm:$0xff] }
 0x22e   :  { %834 = vmatpush2.msra.mxu0 %v5600_v59  ;;  %904 = vmatprep.subr.mxu1 %v5603_v61  ;;  %8964 = vst [vmem:[#allocation105_spill] sm:$0xff] %v5627_v32  ;;  %8965 = vst [vmem:[#allocation106_spill] sm:$0xff] %v5630_v0  ;;  %v5633_v59 = vld [vmem:[#allocation5 + $0x2b0] sm:$0xff]  ;;  %v5636_v61 = vld [vmem:[#allocation5 + $0x280] sm:$0xff] }
 0x22f   :  { %835 = vmatprep.subr.mxu0 %v5606_v52  ;;  %905 = vmatpush2.msra.mxu1 %v5609_v56  ;;  %8966 = vst [vmem:[#allocation107_spill] sm:$0xff] %v5633_v59  ;;  %8967 = vst [vmem:[#allocation108_spill] sm:$0xff] %v5636_v61  ;;  %v5639_v52 = vld [vmem:[#allocation5 + $0x298] sm:$0xff]  ;;  %v5642_v56 = vld [vmem:[#allocation5 + $0x268] sm:$0xff] }
 0x230   :  { %836 = vmatpush2.msra.mxu0 %v5612_v55  ;;  %906 = vmatprep.subr.mxu1 %v5615_v51  ;;  %8968 = vst [vmem:[#allocation109_spill] sm:$0xff] %v5639_v52  ;;  %8969 = vst [vmem:[#allocation110_spill] sm:$0xff] %v5642_v56  ;;  %v5645_v55 = vld [vmem:[#allocation5 + $0x290] sm:$0xff]  ;;  %v5648_v51 = vld [vmem:[#allocation5 + $0x260] sm:$0xff] }
 0x231   :  { %837 = vmatprep.subr.mxu0 %v5618_v33  ;;  %907 = vmatpush2.msra.mxu1 %v5621_v35  ;;  %8970 = vst [vmem:[#allocation111_spill] sm:$0xff] %v5645_v55  ;;  %8971 = vst [vmem:[#allocation112_spill] sm:$0xff] %v5648_v51  ;;  %v5651_v33 = vld [vmem:[#allocation5 + $0x278] sm:$0xff]  ;;  %v5654_v35 = vld [vmem:[#allocation5 + $0x248] sm:$0xff] }
 0x232   :  { %838 = vmatpush2.msra.mxu0 %v5624_v34  ;;  %908 = vmatprep.subr.mxu1 %v5627_v32  ;;  %8972 = vst [vmem:[#allocation113_spill] sm:$0xff] %v5651_v33  ;;  %8973 = vst [vmem:[#allocation114_spill] sm:$0xff] %v5654_v35  ;;  %v5657_v34 = vld [vmem:[#allocation5 + $0x270] sm:$0xff]  ;;  %v5660_v32 = vld [vmem:[#allocation5 + $0x240] sm:$0xff] }
 0x233   :  { %839 = vmatprep.subr.mxu0 %v5630_v0  ;;  %909 = vmatpush2.msra.mxu1 %v5633_v59  ;;  %8974 = vst [vmem:[#allocation115_spill] sm:$0xff] %v5657_v34  ;;  %8975 = vst [vmem:[#allocation116_spill] sm:$0xff] %v5660_v32  ;;  %v5663_v0 = vld [vmem:[#allocation5 + $0x258] sm:$0xff]  ;;  %v5666_v59 = vld [vmem:[#allocation5 + $0x228] sm:$0xff] }
 0x234   :  { %840 = vmatpush2.msra.mxu0 %v5636_v61  ;;  %910 = vmatprep.subr.mxu1 %v5639_v52  ;;  %8976 = vst [vmem:[#allocation117_spill] sm:$0xff] %v5663_v0  ;;  %8977 = vst [vmem:[#allocation118_spill] sm:$0xff] %v5666_v59  ;;  %v5669_v61 = vld [vmem:[#allocation5 + $0x250] sm:$0xff]  ;;  %v5672_v52 = vld [vmem:[#allocation5 + $0x220] sm:$0xff] }
 0x235   :  { %841 = vmatprep.subr.mxu0 %v5642_v56  ;;  %911 = vmatpush2.msra.mxu1 %v5645_v55  ;;  %8978 = vst [vmem:[#allocation119_spill] sm:$0xff] %v5669_v61  ;;  %8979 = vst [vmem:[#allocation120_spill] sm:$0xff] %v5672_v52  ;;  %v5675_v56 = vld [vmem:[#allocation5 + $0x238] sm:$0xff]  ;;  %v5678_v55 = vld [vmem:[#allocation5 + $0x208] sm:$0xff] }
 0x236   :  { %842 = vmatpush2.msra.mxu0 %v5648_v51  ;;  %912 = vmatprep.subr.mxu1 %v5651_v33  ;;  %8980 = vst [vmem:[#allocation121_spill] sm:$0xff] %v5675_v56  ;;  %8981 = vst [vmem:[#allocation122_spill] sm:$0xff] %v5678_v55  ;;  %v5681_v51 = vld [vmem:[#allocation5 + $0x230] sm:$0xff]  ;;  %v5684_v33 = vld [vmem:[#allocation5 + $0x200] sm:$0xff] }
 0x237   :  { %843 = vmatprep.subr.mxu0 %v5654_v35  ;;  %913 = vmatpush2.msra.mxu1 %v5657_v34  ;;  %8982 = vst [vmem:[#allocation123_spill] sm:$0xff] %v5681_v51  ;;  %8983 = vst [vmem:[#allocation124_spill] sm:$0xff] %v5684_v33  ;;  %v5687_v35 = vld [vmem:[#allocation5 + $0x218] sm:$0xff]  ;;  %v5691_v34 = vld [vmem:[#allocation4 + $0x1e8] sm:$0xff] }
 0x238   :  { %844 = vmatpush2.msra.mxu0 %v5660_v32  ;;  %914 = vmatprep.subr.mxu1 %v5663_v0  ;;  %8984 = vst [vmem:[#allocation125_spill] sm:$0xff] %v5687_v35  ;;  %8985 = vst [vmem:[#allocation126_spill] sm:$0xff] %v5691_v34  ;;  %v5695_v32 = vld [vmem:[#allocation4 + $0x1e0] sm:$0xff]  ;;  %v5697_v0 = vld [vmem:[#allocation5 + $0x210] sm:$0xff] }
 0x239   :  { %845 = vmatprep.subr.mxu0 %v5666_v59  ;;  %915 = vmatpush2.msra.mxu1 %v5669_v61  ;;  %8986 = vst [vmem:[#allocation127_spill] sm:$0xff] %v5695_v32  ;;  %8987 = vst [vmem:[#allocation128_spill] sm:$0xff] %v5697_v0  ;;  %v5701_v59 = vld [vmem:[#allocation4 + $0x1c8] sm:$0xff]  ;;  %v5703_v61 = vld [vmem:[#allocation4 + $0x1f8] sm:$0xff] }
 0x23a   :  { %846 = vmatpush2.msra.mxu0 %v5672_v52  ;;  %916 = vmatprep.subr.mxu1 %v5675_v56  ;;  %8988 = vst [vmem:[#allocation129_spill] sm:$0xff] %v5701_v59  ;;  %8989 = vst [vmem:[#allocation130_spill] sm:$0xff] %v5703_v61  ;;  %v5707_v52 = vld [vmem:[#allocation4 + $0x1c0] sm:$0xff] }
 0x23b   :  { %847 = vmatprep.subr.mxu0 %v5678_v55  ;;  %917 = vmatpush2.msra.mxu1 %v5681_v51  ;;  %8990 = vst [vmem:[#allocation131_spill] sm:$0xff] %v5707_v52  ;;  %v5711_v55 = vld [vmem:[#allocation4 + $0x1a8] sm:$0xff]  ;;  %v5713_v51 = vld [vmem:[#allocation4 + $0x1f0] sm:$0xff]  ;;  %v5741_v56 = vld [vmem:[#allocation4 + $0x160] sm:$0xff] }
 0x23c   :  { %848 = vmatpush2.msra.mxu0 %v5684_v33  ;;  %918 = vmatprep.subr.mxu1 %v5687_v35  ;;  %8991 = vst [vmem:[#allocation132_spill] sm:$0xff] %v5711_v55  ;;  %8992 = vst [vmem:[#allocation133_spill] sm:$0xff] %v5713_v51  ;;  %v5717_v33 = vld [vmem:[#allocation4 + $0x1a0] sm:$0xff]  ;;  %v5719_v35 = vld [vmem:[#allocation4 + $0x1d8] sm:$0xff] }
 0x23d   :  { %850 = vmatmul.mubr.f32.vlgmr.msra.gmra.mxu0 %v5310_v44  ;;  %1013 = vmatprep.subr.mxu0 %v5691_v34  ;;  %8993 = vst [vmem:[#allocation134_spill] sm:$0xff] %v5717_v33  ;;  %8994 = vst [vmem:[#allocation135_spill] sm:$0xff] %v5719_v35  ;;  %v5723_v34 = vld [vmem:[#allocation4 + $0x188] sm:$0xff] }
 0x23e   :  { %1014 = vmatpush1.msra.mxu0 %v5695_v32  ;;  %919 = vmatpush2.msra.mxu1 %v5697_v0  ;;  %8995 = vst [vmem:[#allocation136_spill] sm:$0xff] %v5723_v34  ;;  %v5725_v32 = vld [vmem:[#allocation4 + $0x1d0] sm:$0xff]  ;;  %v5729_v0 = vld [vmem:[#allocation4 + $0x180] sm:$0xff]  ;;  %9001 = vst [vmem:[#allocation142_spill] sm:$0xff] %v5741_v56 }
 0x23f   :  { %1015 = vmatprep.subr.mxu0 %v5701_v59  ;;  %1084 = vmatprep.subr.mxu1 %v5703_v61  ;;  %8996 = vst [vmem:[#allocation137_spill] sm:$0xff] %v5725_v32  ;;  %8997 = vst [vmem:[#allocation138_spill] sm:$0xff] %v5729_v0  ;;  %v5731_v59 = vld [vmem:[#allocation4 + $0x1b8] sm:$0xff]  ;;  %v5735_v61 = vld [vmem:[#allocation4 + $0x168] sm:$0xff] }
 0x240   :  { %1016 = vmatpush1.msra.mxu0 %v5707_v52  ;;  %921 = vmatmul.mubr.f32.vlgmr.msra.gmra.mxu1 %v5310_v44  ;;  %8998 = vst [vmem:[#allocation139_spill] sm:$0xff] %v5731_v59  ;;  %8999 = vst [vmem:[#allocation140_spill] sm:$0xff] %v5735_v61  ;;  %v5737_v52 = vld [vmem:[#allocation4 + $0x1b0] sm:$0xff] }
 0x241   :  { %1017 = vmatprep.subr.mxu0 %v5711_v55  ;;  %1085 = vmatpush1.msra.mxu1 %v5713_v51  ;;  %9000 = vst [vmem:[#allocation141_spill] sm:$0xff] %v5737_v52  ;;  %v5743_v55 = vld [vmem:[#allocation4 + $0x198] sm:$0xff]  ;;  %v5747_v51 = vld [vmem:[#allocation4 + $0x148] sm:$0xff] }
 0x242   :  { %1018 = vmatpush1.msra.mxu0 %v5717_v33  ;;  %1086 = vmatprep.subr.mxu1 %v5719_v35  ;;  %9002 = vst [vmem:[#allocation143_spill] sm:$0xff] %v5743_v55  ;;  %9003 = vst [vmem:[#allocation144_spill] sm:$0xff] %v5747_v51  ;;  %v5749_v33 = vld [vmem:[#allocation4 + $0x190] sm:$0xff]  ;;  %v5753_v35 = vld [vmem:[#allocation4 + $0x140] sm:$0xff] }
 0x243   :  { %1019 = vmatprep.subr.mxu0 %v5723_v34  ;;  %1087 = vmatpush1.msra.mxu1 %v5725_v32  ;;  %9004 = vst [vmem:[#allocation145_spill] sm:$0xff] %v5749_v33  ;;  %9005 = vst [vmem:[#allocation146_spill] sm:$0xff] %v5753_v35  ;;  %v5755_v34 = vld [vmem:[#allocation4 + $0x178] sm:$0xff]  ;;  %v5759_v32 = vld [vmem:[#allocation4 + $0x128] sm:$0xff] }
 0x244   :  { %1020 = vmatpush1.msra.mxu0 %v5729_v0  ;;  %1088 = vmatprep.subr.mxu1 %v5731_v59  ;;  %9006 = vst [vmem:[#allocation147_spill] sm:$0xff] %v5755_v34  ;;  %9007 = vst [vmem:[#allocation148_spill] sm:$0xff] %v5759_v32  ;;  %v5761_v0 = vld [vmem:[#allocation4 + $0x170] sm:$0xff]  ;;  %v5765_v59 = vld [vmem:[#allocation4 + $0x120] sm:$0xff] }
 0x245   :  { %1021 = vmatprep.subr.mxu0 %v5735_v61  ;;  %1089 = vmatpush1.msra.mxu1 %v5737_v52  ;;  %9008 = vst [vmem:[#allocation149_spill] sm:$0xff] %v5761_v0  ;;  %9009 = vst [vmem:[#allocation150_spill] sm:$0xff] %v5765_v59  ;;  %v5767_v61 = vld [vmem:[#allocation4 + $0x158] sm:$0xff]  ;;  %v5771_v52 = vld [vmem:[#allocation4 + $0x108] sm:$0xff] }
 0x246   :  { %1022 = vmatpush1.msra.mxu0 %v5741_v56  ;;  %1090 = vmatprep.subr.mxu1 %v5743_v55  ;;  %9010 = vst [vmem:[#allocation151_spill] sm:$0xff] %v5767_v61  ;;  %9011 = vst [vmem:[#allocation152_spill] sm:$0xff] %v5771_v52  ;;  %v5773_v56 = vld [vmem:[#allocation4 + $0x150] sm:$0xff]  ;;  %v5777_v55 = vld [vmem:[#allocation4 + $0x100] sm:$0xff] }
 0x247   :  { %1023 = vmatprep.subr.mxu0 %v5747_v51  ;;  %1091 = vmatpush1.msra.mxu1 %v5749_v33  ;;  %9012 = vst [vmem:[#allocation153_spill] sm:$0xff] %v5773_v56  ;;  %9013 = vst [vmem:[#allocation154_spill] sm:$0xff] %v5777_v55  ;;  %v5779_v51 = vld [vmem:[#allocation4 + $0x138] sm:$0xff]  ;;  %v5783_v33 = vld [vmem:[#allocation4 + $0xe8] sm:$0xff] }
 0x248   :  { %1024 = vmatpush1.msra.mxu0 %v5753_v35  ;;  %1092 = vmatprep.subr.mxu1 %v5755_v34  ;;  %9014 = vst [vmem:[#allocation155_spill] sm:$0xff] %v5779_v51  ;;  %9015 = vst [vmem:[#allocation156_spill] sm:$0xff] %v5783_v33  ;;  %v5785_v35 = vld [vmem:[#allocation4 + $0x130] sm:$0xff]  ;;  %v5789_v34 = vld [vmem:[#allocation4 + $0xe0] sm:$0xff] }
 0x249   :  { %1025 = vmatprep.subr.mxu0 %v5759_v32  ;;  %1093 = vmatpush1.msra.mxu1 %v5761_v0  ;;  %9016 = vst [vmem:[#allocation157_spill] sm:$0xff] %v5785_v35  ;;  %9017 = vst [vmem:[#allocation158_spill] sm:$0xff] %v5789_v34  ;;  %v5791_v32 = vld [vmem:[#allocation4 + $0x118] sm:$0xff]  ;;  %v5795_v0 = vld [vmem:[#allocation4 + $0xc8] sm:$0xff] }
 0x24a   :  { %1026 = vmatpush1.msra.mxu0 %v5765_v59  ;;  %1094 = vmatprep.subr.mxu1 %v5767_v61  ;;  %9018 = vst [vmem:[#allocation159_spill] sm:$0xff] %v5791_v32  ;;  %9019 = vst [vmem:[#allocation160_spill] sm:$0xff] %v5795_v0  ;;  %v5797_v59 = vld [vmem:[#allocation4 + $0x110] sm:$0xff]  ;;  %v5801_v61 = vld [vmem:[#allocation4 + $0xc0] sm:$0xff] }
 0x24b   :  { %1027 = vmatprep.subr.mxu0 %v5771_v52  ;;  %1095 = vmatpush1.msra.mxu1 %v5773_v56  ;;  %9020 = vst [vmem:[#allocation161_spill] sm:$0xff] %v5797_v59  ;;  %9021 = vst [vmem:[#allocation162_spill] sm:$0xff] %v5801_v61  ;;  %v5803_v52 = vld [vmem:[#allocation4 + $0xf8] sm:$0xff]  ;;  %v5807_v56 = vld [vmem:[#allocation4 + $0xa8] sm:$0xff] }
 0x24c   :  { %1028 = vmatpush1.msra.mxu0 %v5777_v55  ;;  %1096 = vmatprep.subr.mxu1 %v5779_v51  ;;  %9022 = vst [vmem:[#allocation163_spill] sm:$0xff] %v5803_v52  ;;  %9023 = vst [vmem:[#allocation164_spill] sm:$0xff] %v5807_v56  ;;  %v5809_v55 = vld [vmem:[#allocation4 + $0xf0] sm:$0xff]  ;;  %v5813_v51 = vld [vmem:[#allocation4 + $0xa0] sm:$0xff] }
 0x24d   :  { %1029 = vmatprep.subr.mxu0 %v5783_v33  ;;  %1097 = vmatpush1.msra.mxu1 %v5785_v35  ;;  %9024 = vst [vmem:[#allocation165_spill] sm:$0xff] %v5809_v55  ;;  %9025 = vst [vmem:[#allocation166_spill] sm:$0xff] %v5813_v51  ;;  %v5815_v33 = vld [vmem:[#allocation4 + $0xd8] sm:$0xff]  ;;  %v5819_v35 = vld [vmem:[#allocation4 + $0x88] sm:$0xff] }
 0x24e   :  { %1030 = vmatpush1.msra.mxu0 %v5789_v34  ;;  %1098 = vmatprep.subr.mxu1 %v5791_v32  ;;  %9026 = vst [vmem:[#allocation167_spill] sm:$0xff] %v5815_v33  ;;  %9027 = vst [vmem:[#allocation168_spill] sm:$0xff] %v5819_v35  ;;  %v5821_v34 = vld [vmem:[#allocation4 + $0xd0] sm:$0xff]  ;;  %v5825_v32 = vld [vmem:[#allocation4 + $0x80] sm:$0xff] }
 0x24f   :  { %1031 = vmatprep.subr.mxu0 %v5795_v0  ;;  %1099 = vmatpush1.msra.mxu1 %v5797_v59  ;;  %9028 = vst [vmem:[#allocation169_spill] sm:$0xff] %v5821_v34  ;;  %9029 = vst [vmem:[#allocation170_spill] sm:$0xff] %v5825_v32  ;;  %v5827_v0 = vld [vmem:[#allocation4 + $0xb8] sm:$0xff]  ;;  %v5831_v59 = vld [vmem:[#allocation4 + $0x68] sm:$0xff] }
 0x250   :  { %1032 = vmatpush1.msra.mxu0 %v5801_v61  ;;  %1100 = vmatprep.subr.mxu1 %v5803_v52  ;;  %9030 = vst [vmem:[#allocation171_spill] sm:$0xff] %v5827_v0  ;;  %9031 = vst [vmem:[#allocation172_spill] sm:$0xff] %v5831_v59  ;;  %v5833_v61 = vld [vmem:[#allocation4 + $0xb0] sm:$0xff]  ;;  %v5837_v52 = vld [vmem:[#allocation4 + $0x60] sm:$0xff] }
 0x251   :  { %1033 = vmatprep.subr.mxu0 %v5807_v56  ;;  %1101 = vmatpush1.msra.mxu1 %v5809_v55  ;;  %9032 = vst [vmem:[#allocation173_spill] sm:$0xff] %v5833_v61  ;;  %9033 = vst [vmem:[#allocation174_spill] sm:$0xff] %v5837_v52  ;;  %v5839_v56 = vld [vmem:[#allocation4 + $0x98] sm:$0xff]  ;;  %v5843_v55 = vld [vmem:[#allocation4 + $0x48] sm:$0xff] }
 0x252   :  { %1034 = vmatpush1.msra.mxu0 %v5813_v51  ;;  %1102 = vmatprep.subr.mxu1 %v5815_v33  ;;  %9034 = vst [vmem:[#allocation175_spill] sm:$0xff] %v5839_v56  ;;  %9035 = vst [vmem:[#allocation176_spill] sm:$0xff] %v5843_v55  ;;  %v5845_v51 = vld [vmem:[#allocation4 + $0x90] sm:$0xff]  ;;  %v5849_v33 = vld [vmem:[#allocation4 + $0x40] sm:$0xff] }
 0x253   :  { %1035 = vmatprep.subr.mxu0 %v5819_v35  ;;  %1103 = vmatpush1.msra.mxu1 %v5821_v34  ;;  %9036 = vst [vmem:[#allocation177_spill] sm:$0xff] %v5849_v33  ;;  %v5851_v35 = vld [vmem:[#allocation4 + $0x78] sm:$0xff]  ;;  %v5855_v34 = vld [vmem:[#allocation4 + $0x28] sm:$0xff] }
 0x254   :  { %1036 = vmatpush1.msra.mxu0 %v5825_v32  ;;  %1104 = vmatprep.subr.mxu1 %v5827_v0  ;;  %9037 = vst [vmem:[#allocation178_spill] sm:$0xff] %v5851_v35  ;;  %9038 = vst [vmem:[#allocation179_spill] sm:$0xff] %v5855_v34  ;;  %v5857_v32 = vld [vmem:[#allocation4 + $0x70] sm:$0xff]  ;;  %v5861_v0 = vld [vmem:[#allocation4 + $0x20] sm:$0xff] }
 0x255   :  { %1037 = vmatprep.subr.mxu0 %v5831_v59  ;;  %1105 = vmatpush1.msra.mxu1 %v5833_v61  ;;  %9039 = vst [vmem:[#allocation180_spill] sm:$0xff] %v5861_v0  ;;  %v5863_v59 = vld [vmem:[#allocation4 + $0x58] sm:$0xff]  ;;  %v5867_v61 = vld [vmem:[#allocation4 + $0x8] sm:$0xff] }
 0x256   :  { %1038 = vmatpush1.msra.mxu0 %v5837_v52  ;;  %1106 = vmatprep.subr.mxu1 %v5839_v56  ;;  %v5871_v52 = vld [vmem:[#allocation4] sm:$0xff]  ;;  %v5873_v56 = vld [vmem:[#allocation4 + $0x50] sm:$0xff] }
 0x257   :  { %1039 = vmatprep.subr.mxu0 %v5843_v55  ;;  %1107 = vmatpush1.msra.mxu1 %v5845_v51  ;;  %v5877_v55 = vld [vmem:[#allocation4 + $0x38] sm:$0xff] }
 0x258   :  { %1040 = vmatpush1.msra.mxu0 %v5849_v33  ;;  %1108 = vmatprep.subr.mxu1 %v5851_v35  ;;  %v9040_v33 = vmov 0.0   ;;  %v5881_v35 = vld [vmem:[#allocation4 + $0x30] sm:$0xff] }
 0x259   :  { %1041 = vmatprep.subr.mxu0 %v5855_v34  ;;  %1109 = vmatpush1.msra.mxu1 %v5857_v32  ;;  %v5885_v34 = vld [vmem:[#allocation4 + $0x18] sm:$0xff] }
 0x25a   :  { %1042 = vmatpush1.msra.mxu0 %v5861_v0  ;;  %1110 = vmatprep.subr.mxu1 %v5863_v59  ;;  %v5889_v0 = vld [vmem:[#allocation4 + $0x10] sm:$0xff] }
 0x25b   :  { %1043 = vmatprep.subr.mxu0 %v5867_v61  ;;  %1077 = vmatprep.mubr.f32.mxu0 %v9040_v33 }
 0x25c   :  { %1044 = vmatpush1.msra.mxu0 %v5871_v52  ;;  %1111 = vmatpush1.msra.mxu1 %v5873_v56 }
 0x25d   :  { %1078 = vmatmul.mubr.f32.vlgmr.msra.gmra.mxu0 %v5310_v44  ;;  %1112 = vmatprep.subr.mxu1 %v5877_v55 }
 0x25e   :  { %1113 = vmatpush1.msra.mxu1 %v5881_v35  ;;  %1148 = vmatprep.mubr.f32.mxu1 %v9040_v33 }
 0x25f   :  { %1114 = vmatprep.subr.mxu1 %v5885_v34  ;;  %1309 = vmatprep.subr.mxu0 %v5314_v1  ;;  %v9065_v1 = vld [vmem:[#allocation74_spill] sm:$0xff] }
 0x260   :  { %1115 = vmatpush1.msra.mxu1 %v5889_v0  ;;  %1310 = vmatpush1.msra.mxu0 %v5316_v39  ;;  %v9066_v39 = vld [vmem:[#allocation77_spill] sm:$0xff] }
 0x261   :  { %1149 = vmatmul.mubr.f32.vlgmr.msra.gmra.mxu1 %v5310_v44  ;;  %1380 = vmatprep.subr.mxu1 %v5323_v5  ;;  %v9064_v44 = vld [vmem:[#allocation75_spill] sm:$0xff]  ;;  %v9069_v5 = vld [vmem:[#allocation78_spill] sm:$0xff] }
 0x262   :  { %1381 = vmatpush1.msra.mxu1 %v5329_v9  ;;  %1311 = vmatprep.subr.mxu0 %v5318_v2  ;;  %v9067_v2 = vld [vmem:[#allocation76_spill] sm:$0xff] }
 0x263   :  { %1382 = vmatprep.subr.mxu1 %v5335_v13  ;;  %1312 = vmatpush1.msra.mxu0 %v5321_v40  ;;  %v9068_v40 = vld [vmem:[#allocation79_spill] sm:$0xff]  ;;  %v9071_v9 = vld [vmem:[#allocation80_spill] sm:$0xff]  ;;  %v9073_v13 = vld [vmem:[#allocation82_spill] sm:$0xff] }
 0x264   :  { %1383 = vmatpush1.msra.mxu1 %v5337_v14  ;;  %1313 = vmatprep.subr.mxu0 %v5326_v6  ;;  %v9070_v6 = vld [vmem:[#allocation81_spill] sm:$0xff] }
 0x265   :  { %1384 = vmatprep.subr.mxu1 %v5343_v19  ;;  %1314 = vmatpush1.msra.mxu0 %v5332_v10  ;;  %v9072_v10 = vld [vmem:[#allocation83_spill] sm:$0xff]  ;;  %v9074_v14 = vld [vmem:[#allocation85_spill] sm:$0xff] }
 0x266   :  { %1385 = vmatpush1.msra.mxu1 %v5349_v23  ;;  %1315 = vmatprep.subr.mxu0 %v5340_v18  ;;  %v9075_v18 = vld [vmem:[#allocation84_spill] sm:$0xff]  ;;  %v9076_v19 = vld [vmem:[#allocation87_spill] sm:$0xff]  ;;  %v9078_v23 = vld [vmem:[#allocation89_spill] sm:$0xff] }
 0x267   :  { %1386 = vmatprep.subr.mxu1 %v5351_v26  ;;  %1316 = vmatpush1.msra.mxu0 %v5346_v22  ;;  %v9077_v22 = vld [vmem:[#allocation86_spill] sm:$0xff]  ;;  %v9079_v26 = vld [vmem:[#allocation88_spill] sm:$0xff] }
 0x268   :  { %1387 = vmatpush1.msra.mxu1 %v5357_v30  ;;  %1317 = vmatprep.subr.mxu0 %v5354_v27  ;;  %v9080_v27 = vld [vmem:[#allocation91_spill] sm:$0xff]  ;;  %v9081_v30 = vld [vmem:[#allocation90_spill] sm:$0xff] }
 0x269   :  { %1388 = vmatprep.subr.mxu1 %v5363_v42  ;;  %1318 = vmatpush1.msra.mxu0 %v5360_v31  ;;  %v9082_v31 = vld [vmem:[#allocation93_spill] sm:$0xff]  ;;  %v9083_v42 = vld [vmem:[#allocation92_spill] sm:$0xff] }
 0x26a   :  { %1389 = vmatpush1.msra.mxu1 %v5369_v43  ;;  %1319 = vmatprep.subr.mxu0 %v5366_v45  ;;  %v9084_v45 = vld [vmem:[#allocation95_spill] sm:$0xff]  ;;  %v9085_v43 = vld [vmem:[#allocation94_spill] sm:$0xff] }
 0x26b   :  { %1390 = vmatprep.subr.mxu1 %v5375_v53  ;;  %1320 = vmatpush1.msra.mxu0 %v5372_v50  ;;  %v9086_v50 = vld [vmem:[#allocation97_spill] sm:$0xff]  ;;  %v9087_v53 = vld [vmem:[#allocation96_spill] sm:$0xff] }
 0x26c   :  { %1391 = vmatpush1.msra.mxu1 %v5381_v47  ;;  %1321 = vmatprep.subr.mxu0 %v5378_v58  ;;  %v9088_v58 = vld [vmem:[#allocation99_spill] sm:$0xff]  ;;  %v9089_v47 = vld [vmem:[#allocation98_spill] sm:$0xff] }
 0x26d   :  { %1392 = vmatprep.subr.mxu1 %v5387_v37  ;;  %1322 = vmatpush1.msra.mxu0 %v5384_v48  ;;  %v9090_v48 = vld [vmem:[#allocation101_spill] sm:$0xff]  ;;  %v9091_v37 = vld [vmem:[#allocation100_spill] sm:$0xff] }
 0x26e   :  { %1393 = vmatpush1.msra.mxu1 %v5393_v62  ;;  %1323 = vmatprep.subr.mxu0 %v5390_v38  ;;  %v9092_v38 = vld [vmem:[#allocation103_spill] sm:$0xff]  ;;  %v9093_v62 = vld [vmem:[#allocation102_spill] sm:$0xff] }
 0x26f   :  { %1394 = vmatprep.subr.mxu1 %v5399_v49  ;;  %1324 = vmatpush1.msra.mxu0 %v5396_v17  ;;  %v9041_v17 = vld [vmem:[#allocation51_spill] sm:$0xff]  ;;  %v9061_v49 = vld [vmem:[#allocation70_spill] sm:$0xff] }
 0x270   :  { %1395 = vmatpush1.msra.mxu1 %v5405_v54  ;;  %1325 = vmatprep.subr.mxu0 %v5402_v57  ;;  %v9062_v54 = vld [vmem:[#allocation73_spill] sm:$0xff]  ;;  %v9063_v57 = vld [vmem:[#allocation72_spill] sm:$0xff] }
 0x271   :  { %1396 = vmatprep.subr.mxu1 %v5411_v29  ;;  %1326 = vmatpush1.msra.mxu0 %v5408_v46  ;;  %v9057_v29 = vld [vmem:[#allocation66_spill] sm:$0xff]  ;;  %v9060_v46 = vld [vmem:[#allocation71_spill] sm:$0xff] }
 0x272   :  { %1397 = vmatpush1.msra.mxu1 %v5417_v36  ;;  %1327 = vmatprep.subr.mxu0 %v5414_v41  ;;  %v9058_v36 = vld [vmem:[#allocation69_spill] sm:$0xff]  ;;  %v9059_v41 = vld [vmem:[#allocation68_spill] sm:$0xff] }
 0x273   :  { %1398 = vmatprep.subr.mxu1 %v5423_v21  ;;  %1328 = vmatpush1.msra.mxu0 %v5420_v28  ;;  %v9053_v21 = vld [vmem:[#allocation62_spill] sm:$0xff]  ;;  %v9056_v28 = vld [vmem:[#allocation67_spill] sm:$0xff] }
 0x274   :  { %1399 = vmatpush1.msra.mxu1 %v5429_v24  ;;  %1329 = vmatprep.subr.mxu0 %v5426_v25  ;;  %v9054_v24 = vld [vmem:[#allocation65_spill] sm:$0xff]  ;;  %v9055_v25 = vld [vmem:[#allocation64_spill] sm:$0xff] }
 0x275   :  { %1400 = vmatprep.subr.mxu1 %v5435_v12  ;;  %1330 = vmatpush1.msra.mxu0 %v5432_v20  ;;  %v9042_v12 = vld [vmem:[#allocation53_spill] sm:$0xff]  ;;  %v9052_v20 = vld [vmem:[#allocation63_spill] sm:$0xff] }
 0x276   :  { %1401 = vmatpush1.msra.mxu1 %v5441_v15  ;;  %1331 = vmatprep.subr.mxu0 %v5438_v16  ;;  %v9043_v15 = vld [vmem:[#allocation52_spill] sm:$0xff]  ;;  %v9044_v16 = vld [vmem:[#allocation55_spill] sm:$0xff] }
 0x277   :  { %1402 = vmatprep.subr.mxu1 %v5447_v4  ;;  %1332 = vmatpush1.msra.mxu0 %v5444_v11  ;;  %v9045_v4 = vld [vmem:[#allocation54_spill] sm:$0xff]  ;;  %v9046_v11 = vld [vmem:[#allocation57_spill] sm:$0xff] }
 0x278   :  { %1403 = vmatpush1.msra.mxu1 %v5453_v7  ;;  %1333 = vmatprep.subr.mxu0 %v5450_v8  ;;  %v9047_v7 = vld [vmem:[#allocation56_spill] sm:$0xff]  ;;  %v9048_v8 = vld [vmem:[#allocation59_spill] sm:$0xff] }
 0x279   :  { %1404 = vmatprep.subr.mxu1 %v5459_v60  ;;  %1334 = vmatpush1.msra.mxu0 %v5456_v3  ;;  %v9049_v60 = vld [vmem:[#allocation58_spill] sm:$0xff]  ;;  %v9050_v3 = vld [vmem:[#allocation61_spill] sm:$0xff] }
 0x27a   :  { %1405 = vmatpush1.msra.mxu1 %v5465_v63  ;;  %1335 = vmatprep.subr.mxu0 %v9041_v17  ;;  %v9051_v63 = vld [vmem:[#allocation60_spill] sm:$0xff]  ;;  %v9094_v17 = vld [vmem:[#allocation105_spill] sm:$0xff] }
 0x27b   :  { %1406 = vmatprep.subr.mxu1 %v9042_v12  ;;  %1336 = vmatpush1.msra.mxu0 %v9043_v15  ;;  %v9095_v12 = vld [vmem:[#allocation104_spill] sm:$0xff]  ;;  %v9096_v15 = vld [vmem:[#allocation107_spill] sm:$0xff] }
 0x27c   :  { %1407 = vmatpush1.msra.mxu1 %v9044_v16  ;;  %1337 = vmatprep.subr.mxu0 %v9045_v4  ;;  %v9097_v16 = vld [vmem:[#allocation106_spill] sm:$0xff]  ;;  %v9098_v4 = vld [vmem:[#allocation109_spill] sm:$0xff] }
 0x27d   :  { %1408 = vmatprep.subr.mxu1 %v9046_v11  ;;  %1338 = vmatpush1.msra.mxu0 %v9047_v7  ;;  %v9099_v11 = vld [vmem:[#allocation108_spill] sm:$0xff]  ;;  %v9100_v7 = vld [vmem:[#allocation111_spill] sm:$0xff] }
 0x27e   :  { %1409 = vmatpush1.msra.mxu1 %v9048_v8  ;;  %1339 = vmatprep.subr.mxu0 %v9049_v60  ;;  %v9101_v8 = vld [vmem:[#allocation110_spill] sm:$0xff]  ;;  %v9102_v60 = vld [vmem:[#allocation113_spill] sm:$0xff] }
 0x27f   :  { %1410 = vmatprep.subr.mxu1 %v9050_v3  ;;  %1340 = vmatpush1.msra.mxu0 %v9051_v63  ;;  %v9103_v3 = vld [vmem:[#allocation112_spill] sm:$0xff]  ;;  %v9104_v63 = vld [vmem:[#allocation115_spill] sm:$0xff] }
 0x280   :  { %1411 = vmatpush1.msra.mxu1 %v9052_v20  ;;  %1341 = vmatprep.subr.mxu0 %v9053_v21  ;;  %v9105_v20 = vld [vmem:[#allocation114_spill] sm:$0xff]  ;;  %v9106_v21 = vld [vmem:[#allocation117_spill] sm:$0xff] }
 0x281   :  { %1412 = vmatprep.subr.mxu1 %v9054_v24  ;;  %1342 = vmatpush2.msra.mxu0 %v9055_v25  ;;  %v9107_v24 = vld [vmem:[#allocation116_spill] sm:$0xff]  ;;  %v9108_v25 = vld [vmem:[#allocation119_spill] sm:$0xff] }
 0x282   :  { %1413 = vmatpush2.msra.mxu1 %v9056_v28  ;;  %1343 = vmatprep.subr.mxu0 %v9057_v29  ;;  %v9109_v28 = vld [vmem:[#allocation118_spill] sm:$0xff]  ;;  %v9110_v29 = vld [vmem:[#allocation121_spill] sm:$0xff] }
 0x283   :  { %1414 = vmatprep.subr.mxu1 %v9058_v36  ;;  %1344 = vmatpush2.msra.mxu0 %v9059_v41  ;;  %v9111_v36 = vld [vmem:[#allocation120_spill] sm:$0xff]  ;;  %v9112_v41 = vld [vmem:[#allocation123_spill] sm:$0xff] }
 0x284   :  { %1415 = vmatpush2.msra.mxu1 %v9060_v46  ;;  %1345 = vmatprep.subr.mxu0 %v9061_v49  ;;  %v9113_v46 = vld [vmem:[#allocation122_spill] sm:$0xff]  ;;  %v9114_v49 = vld [vmem:[#allocation125_spill] sm:$0xff] }
 0x285   :  { %1416 = vmatprep.subr.mxu1 %v9062_v54  ;;  %1346 = vmatpush2.msra.mxu0 %v9063_v57  ;;  %v9115_v54 = vld [vmem:[#allocation124_spill] sm:$0xff] }
 0x286   :  { %1417 = vmatpush2.msra.mxu1 %v9064_v44  ;;  %1347 = vmatprep.subr.mxu0 %v9065_v1  ;;  %v9116_v57 = vld [vmem:[#allocation128_spill] sm:$0xff]  ;;  %v9117_v44 = vld [vmem:[#allocation126_spill] sm:$0xff] }
 0x287   :  { %1418 = vmatprep.subr.mxu1 %v9066_v39  ;;  %1348 = vmatpush2.msra.mxu0 %v9067_v2  ;;  %v9118_v1 = vld [vmem:[#allocation130_spill] sm:$0xff] }
 0x288   :  { %1419 = vmatpush2.msra.mxu1 %v9068_v40  ;;  %1349 = vmatprep.subr.mxu0 %v9069_v5  ;;  %v9119_v2 = vld [vmem:[#allocation18_spill] sm:$0xff] }
 0x289   :  { %1420 = vmatprep.subr.mxu1 %v9070_v6  ;;  %1350 = vmatpush2.msra.mxu0 %v9071_v9  ;;  %v9120_v9 = vld [vmem:[#allocation20_spill] sm:$0xff] }
 0x28a   :  { %1421 = vmatpush2.msra.mxu1 %v9072_v10  ;;  %1351 = vmatprep.subr.mxu0 %v9073_v13 }
 0x28b   :  { %1422 = vmatprep.subr.mxu1 %v9074_v14  ;;  %1352 = vmatpush2.msra.mxu0 %v9075_v18 }
 0x28c   :  { %1423 = vmatpush2.msra.mxu1 %v9076_v19  ;;  %1353 = vmatprep.subr.mxu0 %v9077_v22  ;;  %v9121_v19 = vld [vmem:[#allocation21_spill] sm:$0xff] }
 0x28d   :  { %1424 = vmatprep.subr.mxu1 %v9078_v23  ;;  %1354 = vmatpush2.msra.mxu0 %v9079_v26  ;;  %v9122_v23 = vld [vmem:[#allocation19_spill] sm:$0xff] }
 0x28e   :  { %1425 = vmatpush2.msra.mxu1 %v9080_v27  ;;  %1355 = vmatprep.subr.mxu0 %v9081_v30 }
 0x28f   :  { %1426 = vmatprep.subr.mxu1 %v9082_v31  ;;  %1356 = vmatpush2.msra.mxu0 %v9083_v42 }
 0x290   :  { %1427 = vmatpush2.msra.mxu1 %v9084_v45  ;;  %1357 = vmatprep.subr.mxu0 %v9085_v43 }
 0x291   :  { %1428 = vmatprep.subr.mxu1 %v9086_v50  ;;  %1358 = vmatpush2.msra.mxu0 %v9087_v53 }
 0x292   :  { %1429 = vmatpush2.msra.mxu1 %v9088_v58  ;;  %1359 = vmatprep.subr.mxu0 %v9089_v47 }
 0x293   :  { %1430 = vmatprep.subr.mxu1 %v9090_v48  ;;  %1360 = vmatpush2.msra.mxu0 %v9091_v37 }
 0x294   :  { %1431 = vmatpush2.msra.mxu1 %v9092_v38  ;;  %1361 = vmatprep.subr.mxu0 %v9093_v62  ;;  %v9123_v38 = vld [vmem:[#allocation22_spill] sm:$0xff] }
 0x295   :  { %1432 = vmatprep.subr.mxu1 %v9094_v17  ;;  %1362 = vmatpush2.msra.mxu0 %v9095_v12 }
 0x296   :  { %1433 = vmatpush2.msra.mxu1 %v9096_v15  ;;  %1363 = vmatprep.subr.mxu0 %v9097_v16  ;;  %v9124_v16 = vld [vmem:[#allocation24_spill] sm:$0xff] }
 0x297   :  { %1434 = vmatprep.subr.mxu1 %v9098_v4  ;;  %1364 = vmatpush2.msra.mxu0 %v9099_v11 }
 0x298   :  { %1435 = vmatpush2.msra.mxu1 %v9100_v7  ;;  %1365 = vmatprep.subr.mxu0 %v9101_v8 }
 0x299   :  { %1436 = vmatprep.subr.mxu1 %v9102_v60  ;;  %1366 = vmatpush2.msra.mxu0 %v9103_v3  ;;  %v9125_v3 = vld [vmem:[#allocation25_spill] sm:$0xff] }
 0x29a   :  { %1437 = vmatpush2.msra.mxu1 %v9104_v63  ;;  %1367 = vmatprep.subr.mxu0 %v9105_v20 }
 0x29b   :  { %1438 = vmatprep.subr.mxu1 %v9106_v21  ;;  %1368 = vmatpush2.msra.mxu0 %v9107_v24 }
 0x29c   :  { %1439 = vmatpush2.msra.mxu1 %v9108_v25  ;;  %1369 = vmatprep.subr.mxu0 %v9109_v28  ;;  %v9126_v25 = vld [vmem:[#allocation23_spill] sm:$0xff] }
 0x29d   :  { %1440 = vmatprep.subr.mxu1 %v9110_v29  ;;  %1370 = vmatpush2.msra.mxu0 %v9111_v36 }
 0x29e   :  { %1441 = vmatpush2.msra.mxu1 %v9112_v41  ;;  %1371 = vmatprep.subr.mxu0 %v9113_v46 }
 0x29f   :  { %1442 = vmatprep.subr.mxu1 %v9114_v49  ;;  %1372 = vmatpush2.msra.mxu0 %v9115_v54 }
 0x2a0   :  { %1443 = vmatpush2.msra.mxu1 %v9116_v57  ;;  %1537 = vmatprep.subr.mxu0 %v9117_v44 }
 0x2a1   :  { %1608 = vmatprep.subr.mxu1 %v9118_v1  ;;  %v9127_v1 = vld [vmem:[#allocation50_spill] sm:$0xff] }
 0x2fd   :  { %v851_v39 = vpop.f32.mrf.mxu0 }
 0x2fe   :  { %v852_v40 = vadd.f32 %v851_v39, %v9119_v2 }
 0x2ff   :  { %v853_v5 = vpop.f32.mrf.mxu0 }
 0x300   :  { %v927_v6 = vmul.f32 0.5, %v852_v40  ;;  %v854_v10 = vadd.f32 %v853_v5, %v9120_v9  ;;  %v922_v13 = vpop.f32.mrf.mxu1 }
 0x301   :  { %v923_v26 = vadd.f32 %v922_v13, %v9122_v23 }
 0x302   :  { %4825 = vtanh.f32 %v927_v6  ;;  %v928_v14 = vmul.f32 0.5, %v854_v10  ;;  %v924_v18 = vpop.f32.mrf.mxu1 }
 0x303   :  { %v925_v22 = vadd.f32 %v924_v18, %v9121_v19  ;;  %v929_v27 = vmul.f32 0.5, %v923_v26  ;;  %v9129_v26 = vld [vmem:[#allocation133_spill] sm:$0xff] }
 0x304   :  { %4827 = vtanh.f32 %v928_v14 }
 0x305   :  { %4829 = vtanh.f32 %v925_v22  ;;  %v9128_v22 = vld [vmem:[#allocation127_spill] sm:$0xff] }
 0x306   :  { %4831 = vtanh.f32 %v929_v27  ;;  %v9130_v27 = vld [vmem:[#allocation129_spill] sm:$0xff] }
 0x30f   :  { %v4826_v30 = vpop.eup %4825 }
 0x310   :  { %v933_v31 = vmul.f32 0.5, %v4826_v30  ;;  %v9131_v30 = vld [vmem:[#allocation135_spill] sm:$0xff] }
 0x311   :  { %v4828_v42 = vpop.eup %4827 }
 0x312   :  { %v936_v45 = vadd.f32 0.5, %v933_v31  ;;  %v934_v43 = vmul.f32 0.5, %v4828_v42  ;;  %v4830_v50 = vpop.eup %4829  ;;  %v9132_v31 = vld [vmem:[#allocation131_spill] sm:$0xff]  ;;  %v9133_v42 = vld [vmem:[#allocation137_spill] sm:$0xff] }
 0x313   :  { %v4832_v17 = vpop.eup %4831 }
 0x314   :  { %v937_v53 = vadd.f32 0.5, %v934_v43  ;;  %v941_v58 = vmul.f32 %v4830_v50, %v936_v45  ;;  %v935_v7 = vmul.f32 0.5, %v4832_v17  ;;  %v9134_v45 = vld [vmem:[#allocation132_spill] sm:$0xff]  ;;  %v9135_v43 = vld [vmem:[#allocation139_spill] sm:$0xff]  ;;  %v9136_v50 = vld [vmem:[#allocation134_spill] sm:$0xff] }
 0x315   :  { %v9143_v17 = vld [vmem:[#allocation147_spill] sm:$0xff] }
 0x316   :  { %v940_v47 = vmul.f32 0.0, %v937_v53  ;;  %v938_v20 = vadd.f32 0.5, %v935_v7  ;;  %v9137_v53 = vld [vmem:[#allocation141_spill] sm:$0xff] }
 0x317   :  { %v9149_v7 = vld [vmem:[#allocation153_spill] sm:$0xff] }
 0x318   :  { %v6030_v48 = vadd.f32 %v941_v58, %v940_v47  ;;  %v9138_v58 = vld [vmem:[#allocation136_spill] sm:$0xff]  ;;  %v9139_v47 = vld [vmem:[#allocation143_spill] sm:$0xff] }
 0x31a   :  { %4833 = vtanh.f32 %v6030_v48 }
 0x31d   :  { %v1079_v37 = vpop.f32.mrf.mxu0 }
 0x31e   :  { %v1155_v62 = vadd.f32 %v1079_v37, %v9123_v38  ;;  %v9140_v37 = vld [vmem:[#allocation138_spill] sm:$0xff]  ;;  %v9141_v38 = vld [vmem:[#allocation145_spill] sm:$0xff] }
 0x31f   :  { %v1081_v12 = vpop.f32.mrf.mxu0 }
 0x320   :  { %v1159_v15 = vmul.f32 0.5, %v1155_v62  ;;  %v1156_v4 = vadd.f32 %v1081_v12, %v9124_v16  ;;  %v9142_v62 = vld [vmem:[#allocation140_spill] sm:$0xff]  ;;  %v9144_v12 = vld [vmem:[#allocation142_spill] sm:$0xff] }
 0x321   :  { %v1150_v11 = vpop.f32.mrf.mxu1  ;;  %v9146_v16 = vld [vmem:[#allocation144_spill] sm:$0xff] }
 0x322   :  { %4835 = vtanh.f32 %v1159_v15  ;;  %v1160_v8 = vmul.f32 0.5, %v1156_v4  ;;  %v1157_v28 = vadd.f32 %v1150_v11, %v9126_v25  ;;  %v9145_v15 = vld [vmem:[#allocation149_spill] sm:$0xff]  ;;  %v9147_v4 = vld [vmem:[#allocation151_spill] sm:$0xff]  ;;  %v9148_v11 = vld [vmem:[#allocation146_spill] sm:$0xff] }
 0x323   :  { %v1152_v60 = vpop.f32.mrf.mxu1  ;;  %v9157_v25 = vld [vmem:[#allocation161_spill] sm:$0xff] }
 0x324   :  { %4837 = vtanh.f32 %v1160_v8  ;;  %v1158_v63 = vadd.f32 %v1152_v60, %v9125_v3  ;;  %v1161_v29 = vmul.f32 0.5, %v1157_v28  ;;  %v9150_v8 = vld [vmem:[#allocation148_spill] sm:$0xff]  ;;  %v9151_v60 = vld [vmem:[#allocation155_spill] sm:$0xff]  ;;  %v9152_v3 = vld [vmem:[#allocation150_spill] sm:$0xff] }
 0x325   :  { %v9158_v28 = vld [vmem:[#allocation156_spill] sm:$0xff] }
 0x326   :  { %4839 = vtanh.f32 %v1158_v63  ;;  %v9153_v63 = vld [vmem:[#allocation157_spill] sm:$0xff] }
 0x327   :  { %v4834_v21 = vpop.eup %4833  ;;  %4841 = vtanh.f32 %v1161_v29  ;;  %v9159_v29 = vld [vmem:[#allocation163_spill] sm:$0xff] }
 0x328   :  { %v944_v24 = vmul.f32 %v4834_v21, %v938_v20  ;;  %v9154_v20 = vld [vmem:[#allocation152_spill] sm:$0xff]  ;;  %v9155_v21 = vld [vmem:[#allocation159_spill] sm:$0xff] }
 0x32a   :  { %1373 = vmatprep.mubr.f32.mxu0 %v944_v24  ;;  %1444 = vmatprep.mubr.f32.mxu1 %v944_v24  ;;  %v9156_v24 = vld [vmem:[#allocation154_spill] sm:$0xff] }
 0x32f   :  { %v4836_v36 = vpop.eup %4835 }
 0x330   :  { %v1165_v41 = vmul.f32 0.5, %v4836_v36  ;;  %v9160_v36 = vld [vmem:[#allocation158_spill] sm:$0xff] }
 0x331   :  { %v4838_v46 = vpop.eup %4837 }
 0x332   :  { %v1168_v49 = vadd.f32 0.5, %v1165_v41  ;;  %v1166_v54 = vmul.f32 0.5, %v4838_v46  ;;  %v9161_v41 = vld [vmem:[#allocation165_spill] sm:$0xff]  ;;  %v9162_v46 = vld [vmem:[#allocation160_spill] sm:$0xff] }
 0x333   :  { %v4840_v57 = vpop.eup %4839 }
 0x334   :  { %v1169_v44 = vadd.f32 0.5, %v1166_v54  ;;  %v1173_v40 = vmul.f32 %v4840_v57, %v1168_v49  ;;  %v4842_v6 = vpop.eup %4841  ;;  %v9163_v49 = vld [vmem:[#allocation167_spill] sm:$0xff]  ;;  %v9164_v54 = vld [vmem:[#allocation162_spill] sm:$0xff]  ;;  %v9165_v57 = vld [vmem:[#allocation169_spill] sm:$0xff] }
 0x335   :  { %v1167_v10 = vmul.f32 0.5, %v4842_v6  ;;  %v9170_v6 = vld [vmem:[#allocation168_spill] sm:$0xff] }
 0x336   :  { %v1172_v39 = vmul.f32 %v1169_v44, %v9127_v1  ;;  %v9166_v44 = vld [vmem:[#allocation164_spill] sm:$0xff]  ;;  %v9167_v1 = vld [vmem:[#allocation171_spill] sm:$0xff] }
 0x337   :  { %v1170_v13 = vadd.f32 0.5, %v1167_v10  ;;  %v9171_v10 = vld [vmem:[#allocation175_spill] sm:$0xff] }
 0x338   :  { %v6038_v5 = vadd.f32 %v1173_v40, %v1172_v39  ;;  %v9168_v39 = vld [vmem:[#allocation166_spill] sm:$0xff]  ;;  %v9169_v40 = vld [vmem:[#allocation173_spill] sm:$0xff] }
 0x33a   :  { %4843 = vtanh.f32 %v6038_v5 }
 0x347   :  { %v4844_v14 = vpop.eup %4843 }
 0x348   :  { %v6041_v18 = vmul.f32 %v4844_v14, %v1170_v13  ;;  %v9172_v13 = vld [vmem:[#allocation170_spill] sm:$0xff]  ;;  %v9173_v14 = vld [vmem:[#allocation172_spill] sm:$0xff] }
 0x34a   :  { %1374 = vmatmul.mubr.f32.vlgmr.msra.gmra.mxu0 %v6041_v18  ;;  %1445 = vmatmul.mubr.f32.vlgmr.msra.gmra.mxu1 %v6041_v18 }
 0x34b   :  { %1538 = vmatpush1.msra.mxu0 %v9128_v22  ;;  %1609 = vmatpush1.msra.mxu1 %v9129_v26  ;;  %v9174_v22 = vld [vmem:[#allocation178_spill] sm:$0xff] }
 0x34c   :  { %1539 = vmatprep.subr.mxu0 %v9130_v27  ;;  %1610 = vmatprep.subr.mxu1 %v9131_v30  ;;  %v9175_v26 = vld [vmem:[#allocation174_spill] sm:$0xff]  ;;  %v9176_v27 = vld [vmem:[#allocation176_spill] sm:$0xff]  ;;  %v9177_v30 = vld [vmem:[#allocation177_spill] sm:$0xff] }
 0x34d   :  { %1540 = vmatpush1.msra.mxu0 %v9132_v31  ;;  %1611 = vmatpush1.msra.mxu1 %v9133_v42  ;;  %v9178_v31 = vld [vmem:[#allocation179_spill] sm:$0xff]  ;;  %v6141_v42 = vld [vmem:[#allocation5 + $0x1a0] sm:$0xff] }
 0x34e   :  { %1541 = vmatprep.subr.mxu0 %v9134_v45  ;;  %1612 = vmatprep.subr.mxu1 %v9135_v43  ;;  %v6143_v45 = vld [vmem:[#allocation5 + $0x1b0] sm:$0xff]  ;;  %v6147_v43 = vld [vmem:[#allocation5 + $0x188] sm:$0xff] }
 0x34f   :  { %1542 = vmatpush1.msra.mxu0 %v9136_v50  ;;  %1613 = vmatpush1.msra.mxu1 %v9137_v53  ;;  %v6149_v50 = vld [vmem:[#allocation5 + $0x198] sm:$0xff]  ;;  %v6153_v53 = vld [vmem:[#allocation5 + $0x180] sm:$0xff] }
 0x350   :  { %1543 = vmatprep.subr.mxu0 %v9138_v58  ;;  %1614 = vmatprep.subr.mxu1 %v9139_v47  ;;  %v6155_v58 = vld [vmem:[#allocation5 + $0x190] sm:$0xff]  ;;  %v6159_v47 = vld [vmem:[#allocation5 + $0x168] sm:$0xff] }
 0x351   :  { %1544 = vmatpush1.msra.mxu0 %v9140_v37  ;;  %1615 = vmatpush1.msra.mxu1 %v9141_v38  ;;  %v6161_v37 = vld [vmem:[#allocation5 + $0x178] sm:$0xff]  ;;  %v6165_v38 = vld [vmem:[#allocation5 + $0x160] sm:$0xff] }
 0x352   :  { %1545 = vmatprep.subr.mxu0 %v9142_v62  ;;  %1616 = vmatprep.subr.mxu1 %v9143_v17  ;;  %v6167_v62 = vld [vmem:[#allocation5 + $0x170] sm:$0xff]  ;;  %v6171_v17 = vld [vmem:[#allocation5 + $0x148] sm:$0xff] }
 0x353   :  { %1546 = vmatpush1.msra.mxu0 %v9144_v12  ;;  %1617 = vmatpush1.msra.mxu1 %v9145_v15  ;;  %v6173_v12 = vld [vmem:[#allocation5 + $0x158] sm:$0xff]  ;;  %v6177_v15 = vld [vmem:[#allocation5 + $0x140] sm:$0xff] }
 0x354   :  { %1547 = vmatprep.subr.mxu0 %v9146_v16  ;;  %1618 = vmatprep.subr.mxu1 %v9147_v4  ;;  %v6179_v16 = vld [vmem:[#allocation5 + $0x150] sm:$0xff]  ;;  %v6183_v4 = vld [vmem:[#allocation5 + $0x128] sm:$0xff] }
 0x355   :  { %1548 = vmatpush1.msra.mxu0 %v9148_v11  ;;  %1619 = vmatpush1.msra.mxu1 %v9149_v7  ;;  %v6185_v11 = vld [vmem:[#allocation5 + $0x138] sm:$0xff]  ;;  %v6189_v7 = vld [vmem:[#allocation5 + $0x120] sm:$0xff] }
 0x356   :  { %1549 = vmatprep.subr.mxu0 %v9150_v8  ;;  %1620 = vmatprep.subr.mxu1 %v9151_v60  ;;  %v6191_v8 = vld [vmem:[#allocation5 + $0x130] sm:$0xff]  ;;  %v6195_v60 = vld [vmem:[#allocation5 + $0x108] sm:$0xff] }
 0x357   :  { %1550 = vmatpush1.msra.mxu0 %v9152_v3  ;;  %1621 = vmatpush1.msra.mxu1 %v9153_v63  ;;  %v6197_v3 = vld [vmem:[#allocation5 + $0x118] sm:$0xff]  ;;  %v6199_v63 = vld [vmem:[#allocation5 + $0x100] sm:$0xff] }
 0x358   :  { %1551 = vmatprep.subr.mxu0 %v9154_v20  ;;  %1622 = vmatprep.subr.mxu1 %v9155_v21  ;;  %v6203_v20 = vld [vmem:[#allocation5 + $0x110] sm:$0xff]  ;;  %v6205_v21 = vld [vmem:[#allocation5 + $0xe8] sm:$0xff] }
 0x359   :  { %1552 = vmatpush1.msra.mxu0 %v9156_v24  ;;  %1623 = vmatpush1.msra.mxu1 %v9157_v25  ;;  %v6207_v24 = vld [vmem:[#allocation5 + $0xf8] sm:$0xff]  ;;  %v6211_v25 = vld [vmem:[#allocation5 + $0xe0] sm:$0xff] }
 0x35a   :  { %1553 = vmatprep.subr.mxu0 %v9158_v28  ;;  %1624 = vmatprep.subr.mxu1 %v9159_v29  ;;  %v6213_v28 = vld [vmem:[#allocation5 + $0xf0] sm:$0xff]  ;;  %v6215_v29 = vld [vmem:[#allocation5 + $0xc8] sm:$0xff] }
 0x35b   :  { %1554 = vmatpush1.msra.mxu0 %v9160_v36  ;;  %1625 = vmatpush1.msra.mxu1 %v9161_v41  ;;  %v6219_v36 = vld [vmem:[#allocation5 + $0xd8] sm:$0xff]  ;;  %v6221_v41 = vld [vmem:[#allocation5 + $0xc0] sm:$0xff] }
 0x35c   :  { %1555 = vmatprep.subr.mxu0 %v9162_v46  ;;  %1626 = vmatprep.subr.mxu1 %v9163_v49  ;;  %v6223_v46 = vld [vmem:[#allocation5 + $0xd0] sm:$0xff]  ;;  %v6231_v49 = vld [vmem:[#allocation5 + $0xa8] sm:$0xff] }
 0x35d   :  { %1556 = vmatpush1.msra.mxu0 %v9164_v54  ;;  %1627 = vmatpush1.msra.mxu1 %v9165_v57  ;;  %v6233_v54 = vld [vmem:[#allocation5 + $0xb8] sm:$0xff]  ;;  %v6237_v57 = vld [vmem:[#allocation5 + $0xa0] sm:$0xff] }
 0x35e   :  { %1557 = vmatprep.subr.mxu0 %v9166_v44  ;;  %1628 = vmatprep.subr.mxu1 %v9167_v1  ;;  %9180 = vst [vmem:[#allocation51_spill] sm:$0xff] %v6237_v57  ;;  %v6239_v44 = vld [vmem:[#allocation5 + $0xb0] sm:$0xff]  ;;  %v6243_v1 = vld [vmem:[#allocation5 + $0x88] sm:$0xff] }
 0x35f   :  { %1558 = vmatpush1.msra.mxu0 %v9168_v39  ;;  %1629 = vmatpush1.msra.mxu1 %v9169_v40  ;;  %9181 = vst [vmem:[#allocation53_spill] sm:$0xff] %v6239_v44  ;;  %9182 = vst [vmem:[#allocation52_spill] sm:$0xff] %v6243_v1  ;;  %v6245_v39 = vld [vmem:[#allocation5 + $0x98] sm:$0xff]  ;;  %v6249_v40 = vld [vmem:[#allocation5 + $0x80] sm:$0xff] }
 0x360   :  { %1559 = vmatprep.subr.mxu0 %v9170_v6  ;;  %1630 = vmatprep.subr.mxu1 %v9171_v10  ;;  %9183 = vst [vmem:[#allocation55_spill] sm:$0xff] %v6245_v39  ;;  %9184 = vst [vmem:[#allocation54_spill] sm:$0xff] %v6249_v40  ;;  %v6251_v6 = vld [vmem:[#allocation5 + $0x90] sm:$0xff]  ;;  %v6255_v10 = vld [vmem:[#allocation5 + $0x68] sm:$0xff] }
 0x361   :  { %1560 = vmatpush1.msra.mxu0 %v9172_v13  ;;  %1631 = vmatpush1.msra.mxu1 %v5845_v51  ;;  %v9179_v51 = vld [vmem:[#allocation180_spill] sm:$0xff]  ;;  %9185 = vst [vmem:[#allocation57_spill] sm:$0xff] %v6251_v6  ;;  %9186 = vst [vmem:[#allocation56_spill] sm:$0xff] %v6255_v10 }
 0x362   :  { %1561 = vmatprep.subr.mxu0 %v9173_v14  ;;  %1632 = vmatprep.subr.mxu1 %v9174_v22  ;;  %v6257_v13 = vld [vmem:[#allocation5 + $0x78] sm:$0xff]  ;;  %v6261_v14 = vld [vmem:[#allocation5 + $0x60] sm:$0xff]  ;;  %v6263_v22 = vld [vmem:[#allocation5 + $0x70] sm:$0xff] }
 0x363   :  { %1562 = vmatpush1.msra.mxu0 %v9175_v26  ;;  %1633 = vmatpush1.msra.mxu1 %v5857_v32  ;;  %v6111_v32 = vld [vmem:[#allocation5 + $0x1e8] sm:$0xff]  ;;  %9187 = vst [vmem:[#allocation59_spill] sm:$0xff] %v6257_v13  ;;  %9188 = vst [vmem:[#allocation58_spill] sm:$0xff] %v6261_v14 }
 0x364   :  { %1563 = vmatprep.subr.mxu0 %v9176_v27  ;;  %1634 = vmatprep.subr.mxu1 %v5863_v59  ;;  %v6129_v59 = vld [vmem:[#allocation5 + $0x1c0] sm:$0xff]  ;;  %9189 = vst [vmem:[#allocation61_spill] sm:$0xff] %v6263_v22  ;;  %v6267_v26 = vld [vmem:[#allocation5 + $0x48] sm:$0xff]  ;;  %v6269_v27 = vld [vmem:[#allocation5 + $0x58] sm:$0xff] }
 0x365   :  { %1564 = vmatpush1.msra.mxu0 %v9177_v30  ;;  %1635 = vmatpush1.msra.mxu1 %v5873_v56  ;;  %v6125_v56 = vld [vmem:[#allocation5 + $0x1d8] sm:$0xff]  ;;  %9190 = vst [vmem:[#allocation60_spill] sm:$0xff] %v6267_v26  ;;  %9191 = vst [vmem:[#allocation63_spill] sm:$0xff] %v6269_v27  ;;  %v6273_v30 = vld [vmem:[#allocation5 + $0x40] sm:$0xff] }
 0x366   :  { %1565 = vmatprep.subr.mxu0 %v9178_v31  ;;  %1636 = vmatprep.subr.mxu1 %v5877_v55  ;;  %v6113_v55 = vld [vmem:[#allocation5 + $0x1f8] sm:$0xff]  ;;  %9192 = vst [vmem:[#allocation62_spill] sm:$0xff] %v6273_v30  ;;  %v6275_v31 = vld [vmem:[#allocation5 + $0x50] sm:$0xff] }
 0x367   :  { %1566 = vmatpush1.msra.mxu0 %v9179_v51  ;;  %1637 = vmatpush1.msra.mxu1 %v5881_v35  ;;  %v6119_v35 = vld [vmem:[#allocation5 + $0x1f0] sm:$0xff]  ;;  %9193 = vst [vmem:[#allocation65_spill] sm:$0xff] %v6275_v31  ;;  %v6279_v51 = vld [vmem:[#allocation5 + $0x28] sm:$0xff] }
 0x368   :  { %1567 = vmatprep.subr.mxu0 %v5867_v61  ;;  %1638 = vmatprep.subr.mxu1 %v5885_v34  ;;  %v6117_v34 = vld [vmem:[#allocation5 + $0x1e0] sm:$0xff]  ;;  %v6135_v61 = vld [vmem:[#allocation5 + $0x1a8] sm:$0xff]  ;;  %9194 = vst [vmem:[#allocation64_spill] sm:$0xff] %v6279_v51 }
 0x369   :  { %1568 = vmatpush1.msra.mxu0 %v5871_v52  ;;  %1601 = vmatprep.mubr.f32.mxu0 %v9040_v33  ;;  %v6123_v52 = vld [vmem:[#allocation5 + $0x1c8] sm:$0xff] }
 0x36a   :  { %1639 = vmatpush1.msra.mxu1 %v5889_v0  ;;  %1672 = vmatprep.mubr.f32.mxu1 %v9040_v33  ;;  %v6131_v0 = vld [vmem:[#allocation5 + $0x1d0] sm:$0xff] }
 0x36b   :  { %1602 = vmatmul.mubr.f32.vlgmr.msra.gmra.mxu0 %v6041_v18  ;;  %1673 = vmatmul.mubr.f32.vlgmr.msra.gmra.mxu1 %v6041_v18  ;;  %v6137_v18 = vld [vmem:[#allocation5 + $0x1b8] sm:$0xff] }
 0x36c   :  { %1833 = vmatprep.subr.mxu0 %v6111_v32  ;;  %1904 = vmatprep.subr.mxu1 %v6113_v55 }
 0x36d   :  { %1834 = vmatpush1.msra.mxu0 %v6117_v34  ;;  %1905 = vmatpush1.msra.mxu1 %v6119_v35 }
 0x36e   :  { %1835 = vmatprep.subr.mxu0 %v6123_v52  ;;  %1906 = vmatprep.subr.mxu1 %v6125_v56 }
 0x36f   :  { %1836 = vmatpush1.msra.mxu0 %v6129_v59  ;;  %1907 = vmatpush1.msra.mxu1 %v6131_v0 }
 0x370   :  { %1837 = vmatprep.subr.mxu0 %v6135_v61  ;;  %1908 = vmatprep.subr.mxu1 %v6137_v18 }
 0x371   :  { %1838 = vmatpush1.msra.mxu0 %v6141_v42  ;;  %1909 = vmatpush1.msra.mxu1 %v6143_v45 }
 0x372   :  { %1839 = vmatprep.subr.mxu0 %v6147_v43  ;;  %1910 = vmatprep.subr.mxu1 %v6149_v50 }
 0x373   :  { %1840 = vmatpush1.msra.mxu0 %v6153_v53  ;;  %1911 = vmatpush1.msra.mxu1 %v6155_v58 }
 0x374   :  { %1841 = vmatprep.subr.mxu0 %v6159_v47  ;;  %1912 = vmatprep.subr.mxu1 %v6161_v37 }
 0x375   :  { %1842 = vmatpush1.msra.mxu0 %v6165_v38  ;;  %1913 = vmatpush1.msra.mxu1 %v6167_v62 }
 0x376   :  { %1843 = vmatprep.subr.mxu0 %v6171_v17  ;;  %1914 = vmatprep.subr.mxu1 %v6173_v12 }
 0x377   :  { %1844 = vmatpush1.msra.mxu0 %v6177_v15  ;;  %1915 = vmatpush1.msra.mxu1 %v6179_v16 }
 0x378   :  { %1845 = vmatprep.subr.mxu0 %v6183_v4  ;;  %1916 = vmatprep.subr.mxu1 %v6185_v11 }
 0x379   :  { %1846 = vmatpush1.msra.mxu0 %v6189_v7  ;;  %1917 = vmatpush1.msra.mxu1 %v6191_v8 }
 0x37a   :  { %1847 = vmatprep.subr.mxu0 %v6195_v60  ;;  %1918 = vmatprep.subr.mxu1 %v6197_v3 }
 0x37b   :  { %1848 = vmatpush1.msra.mxu0 %v6199_v63  ;;  %1919 = vmatpush1.msra.mxu1 %v6203_v20 }
 0x37c   :  { %1849 = vmatprep.subr.mxu0 %v6205_v21  ;;  %1920 = vmatprep.subr.mxu1 %v6207_v24 }
 0x37d   :  { %1850 = vmatpush1.msra.mxu0 %v6211_v25  ;;  %1921 = vmatpush1.msra.mxu1 %v6213_v28 }
 0x37e   :  { %1851 = vmatprep.subr.mxu0 %v6215_v29  ;;  %1922 = vmatprep.subr.mxu1 %v6219_v36 }
 0x37f   :  { %1852 = vmatpush1.msra.mxu0 %v6221_v41  ;;  %1923 = vmatpush1.msra.mxu1 %v6223_v46 }
 0x380   :  { %1853 = vmatprep.subr.mxu0 %v6231_v49  ;;  %1924 = vmatprep.subr.mxu1 %v6233_v54 }
 0x381   :  { %1854 = vmatpush1.msra.mxu0 %v6237_v57  ;;  %1925 = vmatpush1.msra.mxu1 %v6239_v44 }
 0x382   :  { %1855 = vmatprep.subr.mxu0 %v6243_v1  ;;  %1926 = vmatprep.subr.mxu1 %v6245_v39 }
 0x383   :  { %1856 = vmatpush1.msra.mxu0 %v6249_v40  ;;  %1927 = vmatpush1.msra.mxu1 %v6251_v6  ;;  %v6421_v6 = vld [vmem:[#allocation5 + $0x2b8] sm:$0xff]  ;;  %v6437_v40 = vld [vmem:[#allocation5 + $0x280] sm:$0xff] }
 0x384   :  { %1857 = vmatprep.subr.mxu0 %v6255_v10  ;;  %1928 = vmatprep.subr.mxu1 %v6257_v13  ;;  %v6405_v13 = vld [vmem:[#allocation5 + $0x2f0] sm:$0xff]  ;;  %v6413_v10 = vld [vmem:[#allocation5 + $0x2c0] sm:$0xff]  ;;  %9243 = vst [vmem:[#allocation115_spill] sm:$0xff] %v6421_v6  ;;  %9248 = vst [vmem:[#allocation118_spill] sm:$0xff] %v6437_v40 }
 0x385   :  { %1858 = vmatpush1.msra.mxu0 %v6261_v14  ;;  %1929 = vmatpush1.msra.mxu1 %v6263_v22  ;;  %v6281_v14 = vld [vmem:[#allocation5 + $0x38] sm:$0xff]  ;;  %v6285_v22 = vld [vmem:[#allocation5 + $0x20] sm:$0xff]  ;;  %9237 = vst [vmem:[#allocation109_spill] sm:$0xff] %v6405_v13  ;;  %9240 = vst [vmem:[#allocation110_spill] sm:$0xff] %v6413_v10 }
 0x386   :  { %1859 = vmatprep.subr.mxu0 %v6267_v26  ;;  %1930 = vmatprep.subr.mxu1 %v6269_v27  ;;  %9195 = vst [vmem:[#allocation67_spill] sm:$0xff] %v6281_v14  ;;  %9196 = vst [vmem:[#allocation66_spill] sm:$0xff] %v6285_v22  ;;  %v6287_v26 = vld [vmem:[#allocation5 + $0x30] sm:$0xff]  ;;  %v6291_v27 = vld [vmem:[#allocation5 + $0x8] sm:$0xff] }
 0x387   :  { %1860 = vmatpush1.msra.mxu0 %v6273_v30  ;;  %1931 = vmatpush1.msra.mxu1 %v6275_v31  ;;  %9197 = vst [vmem:[#allocation69_spill] sm:$0xff] %v6287_v26  ;;  %9198 = vst [vmem:[#allocation68_spill] sm:$0xff] %v6291_v27  ;;  %v6293_v30 = vld [vmem:[#allocation5 + $0x18] sm:$0xff]  ;;  %v6297_v31 = vld [vmem:[#allocation5] sm:$0xff] }
 0x388   :  { %1861 = vmatprep.subr.mxu0 %v6279_v51  ;;  %1932 = vmatprep.subr.mxu1 %v6281_v14  ;;  %9199 = vst [vmem:[#allocation71_spill] sm:$0xff] %v6293_v30  ;;  %9200 = vst [vmem:[#allocation70_spill] sm:$0xff] %v6297_v31  ;;  %v6299_v51 = vld [vmem:[#allocation5 + $0x10] sm:$0xff]  ;;  %v6303_v14 = vld [vmem:[#allocation5 + $0x3e8] sm:$0xff] }
 0x389   :  { %1862 = vmatpush1.msra.mxu0 %v6285_v22  ;;  %1933 = vmatpush1.msra.mxu1 %v6287_v26  ;;  %9201 = vst [vmem:[#allocation73_spill] sm:$0xff] %v6299_v51  ;;  %9202 = vst [vmem:[#allocation72_spill] sm:$0xff] %v6303_v14  ;;  %v6305_v22 = vld [vmem:[#allocation5 + $0x3f8] sm:$0xff]  ;;  %v6309_v26 = vld [vmem:[#allocation5 + $0x3e0] sm:$0xff] }
 0x38a   :  { %1863 = vmatprep.subr.mxu0 %v6291_v27  ;;  %1934 = vmatprep.subr.mxu1 %v6293_v30  ;;  %9203 = vst [vmem:[#allocation75_spill] sm:$0xff] %v6305_v22  ;;  %9204 = vst [vmem:[#allocation74_spill] sm:$0xff] %v6309_v26  ;;  %v6311_v27 = vld [vmem:[#allocation5 + $0x3f0] sm:$0xff]  ;;  %v6315_v30 = vld [vmem:[#allocation5 + $0x3c8] sm:$0xff] }
 0x38b   :  { %1864 = vmatpush1.msra.mxu0 %v6297_v31  ;;  %1935 = vmatpush1.msra.mxu1 %v6299_v51  ;;  %9205 = vst [vmem:[#allocation77_spill] sm:$0xff] %v6311_v27  ;;  %9206 = vst [vmem:[#allocation76_spill] sm:$0xff] %v6315_v30  ;;  %v6317_v31 = vld [vmem:[#allocation5 + $0x3d8] sm:$0xff]  ;;  %v6321_v51 = vld [vmem:[#allocation5 + $0x3c0] sm:$0xff] }
 0x38c   :  { %1865 = vmatprep.subr.mxu0 %v6303_v14  ;;  %1936 = vmatprep.subr.mxu1 %v6305_v22  ;;  %9207 = vst [vmem:[#allocation79_spill] sm:$0xff] %v6317_v31  ;;  %9208 = vst [vmem:[#allocation78_spill] sm:$0xff] %v6321_v51  ;;  %v6323_v14 = vld [vmem:[#allocation5 + $0x3d0] sm:$0xff]  ;;  %v6327_v22 = vld [vmem:[#allocation5 + $0x3a8] sm:$0xff] }
 0x38d   :  { %1866 = vmatpush2.msra.mxu0 %v6309_v26  ;;  %1937 = vmatpush2.msra.mxu1 %v6311_v27  ;;  %9209 = vst [vmem:[#allocation81_spill] sm:$0xff] %v6323_v14  ;;  %9210 = vst [vmem:[#allocation80_spill] sm:$0xff] %v6327_v22  ;;  %v6329_v26 = vld [vmem:[#allocation5 + $0x3b8] sm:$0xff]  ;;  %v6333_v27 = vld [vmem:[#allocation5 + $0x3a0] sm:$0xff] }
 0x38e   :  { %1867 = vmatprep.subr.mxu0 %v6315_v30  ;;  %1938 = vmatprep.subr.mxu1 %v6317_v31  ;;  %9211 = vst [vmem:[#allocation83_spill] sm:$0xff] %v6329_v26  ;;  %9212 = vst [vmem:[#allocation82_spill] sm:$0xff] %v6333_v27  ;;  %v6335_v30 = vld [vmem:[#allocation5 + $0x3b0] sm:$0xff]  ;;  %v6339_v31 = vld [vmem:[#allocation5 + $0x388] sm:$0xff] }
 0x38f   :  { %1868 = vmatpush2.msra.mxu0 %v6321_v51  ;;  %1939 = vmatpush2.msra.mxu1 %v6323_v14  ;;  %9213 = vst [vmem:[#allocation85_spill] sm:$0xff] %v6335_v30  ;;  %9214 = vst [vmem:[#allocation84_spill] sm:$0xff] %v6339_v31  ;;  %v6341_v51 = vld [vmem:[#allocation5 + $0x398] sm:$0xff]  ;;  %v6345_v14 = vld [vmem:[#allocation5 + $0x380] sm:$0xff] }
 0x390   :  { %1869 = vmatprep.subr.mxu0 %v6327_v22  ;;  %1940 = vmatprep.subr.mxu1 %v6329_v26  ;;  %9215 = vst [vmem:[#allocation87_spill] sm:$0xff] %v6341_v51  ;;  %9216 = vst [vmem:[#allocation86_spill] sm:$0xff] %v6345_v14  ;;  %v6347_v22 = vld [vmem:[#allocation5 + $0x390] sm:$0xff]  ;;  %v6351_v26 = vld [vmem:[#allocation5 + $0x368] sm:$0xff] }
 0x391   :  { %1870 = vmatpush2.msra.mxu0 %v6333_v27  ;;  %1941 = vmatpush2.msra.mxu1 %v6335_v30  ;;  %9217 = vst [vmem:[#allocation89_spill] sm:$0xff] %v6347_v22  ;;  %9218 = vst [vmem:[#allocation88_spill] sm:$0xff] %v6351_v26  ;;  %v6353_v27 = vld [vmem:[#allocation5 + $0x378] sm:$0xff]  ;;  %v6357_v30 = vld [vmem:[#allocation5 + $0x360] sm:$0xff] }
 0x392   :  { %1871 = vmatprep.subr.mxu0 %v6339_v31  ;;  %1942 = vmatprep.subr.mxu1 %v6341_v51  ;;  %9219 = vst [vmem:[#allocation91_spill] sm:$0xff] %v6353_v27  ;;  %9220 = vst [vmem:[#allocation90_spill] sm:$0xff] %v6357_v30  ;;  %v6359_v31 = vld [vmem:[#allocation5 + $0x370] sm:$0xff]  ;;  %v6363_v51 = vld [vmem:[#allocation5 + $0x348] sm:$0xff] }
 0x393   :  { %1872 = vmatpush2.msra.mxu0 %v6345_v14  ;;  %1943 = vmatpush2.msra.mxu1 %v6347_v22  ;;  %9221 = vst [vmem:[#allocation93_spill] sm:$0xff] %v6359_v31  ;;  %9222 = vst [vmem:[#allocation92_spill] sm:$0xff] %v6363_v51  ;;  %v6365_v14 = vld [vmem:[#allocation5 + $0x358] sm:$0xff]  ;;  %v6369_v22 = vld [vmem:[#allocation5 + $0x340] sm:$0xff] }
 0x394   :  { %1873 = vmatprep.subr.mxu0 %v6351_v26  ;;  %1944 = vmatprep.subr.mxu1 %v6353_v27  ;;  %9223 = vst [vmem:[#allocation95_spill] sm:$0xff] %v6365_v14  ;;  %9224 = vst [vmem:[#allocation94_spill] sm:$0xff] %v6369_v22  ;;  %v6371_v26 = vld [vmem:[#allocation5 + $0x350] sm:$0xff]  ;;  %v6375_v27 = vld [vmem:[#allocation5 + $0x328] sm:$0xff] }
 0x395   :  { %1874 = vmatpush2.msra.mxu0 %v6357_v30  ;;  %1945 = vmatpush2.msra.mxu1 %v6359_v31  ;;  %9225 = vst [vmem:[#allocation97_spill] sm:$0xff] %v6371_v26  ;;  %9226 = vst [vmem:[#allocation96_spill] sm:$0xff] %v6375_v27  ;;  %v6377_v30 = vld [vmem:[#allocation5 + $0x338] sm:$0xff]  ;;  %v6381_v31 = vld [vmem:[#allocation5 + $0x320] sm:$0xff] }
 0x396   :  { %1875 = vmatprep.subr.mxu0 %v6363_v51  ;;  %1946 = vmatprep.subr.mxu1 %v6365_v14  ;;  %9227 = vst [vmem:[#allocation99_spill] sm:$0xff] %v6377_v30  ;;  %9228 = vst [vmem:[#allocation98_spill] sm:$0xff] %v6381_v31  ;;  %v6383_v51 = vld [vmem:[#allocation5 + $0x330] sm:$0xff]  ;;  %v6387_v14 = vld [vmem:[#allocation5 + $0x308] sm:$0xff] }
 0x397   :  { %1876 = vmatpush2.msra.mxu0 %v6369_v22  ;;  %1947 = vmatpush2.msra.mxu1 %v6371_v26  ;;  %9229 = vst [vmem:[#allocation101_spill] sm:$0xff] %v6383_v51  ;;  %9230 = vst [vmem:[#allocation100_spill] sm:$0xff] %v6387_v14  ;;  %v6389_v22 = vld [vmem:[#allocation5 + $0x318] sm:$0xff]  ;;  %v6393_v26 = vld [vmem:[#allocation5 + $0x300] sm:$0xff] }
 0x398   :  { %1877 = vmatprep.subr.mxu0 %v6375_v27  ;;  %1948 = vmatprep.subr.mxu1 %v6377_v30  ;;  %9231 = vst [vmem:[#allocation103_spill] sm:$0xff] %v6389_v22  ;;  %9232 = vst [vmem:[#allocation102_spill] sm:$0xff] %v6393_v26  ;;  %v6395_v27 = vld [vmem:[#allocation5 + $0x310] sm:$0xff]  ;;  %v6397_v30 = vld [vmem:[#allocation5 + $0x2e8] sm:$0xff] }
 0x399   :  { %1878 = vmatpush2.msra.mxu0 %v6381_v31  ;;  %1949 = vmatpush2.msra.mxu1 %v6383_v51  ;;  %9233 = vst [vmem:[#allocation105_spill] sm:$0xff] %v6395_v27  ;;  %9234 = vst [vmem:[#allocation104_spill] sm:$0xff] %v6397_v30  ;;  %v6401_v31 = vld [vmem:[#allocation5 + $0x2f8] sm:$0xff]  ;;  %v6403_v51 = vld [vmem:[#allocation5 + $0x2e0] sm:$0xff] }
 0x39a   :  { %1879 = vmatprep.subr.mxu0 %v6387_v14  ;;  %1950 = vmatprep.subr.mxu1 %v6389_v22  ;;  %9235 = vst [vmem:[#allocation107_spill] sm:$0xff] %v6401_v31  ;;  %9236 = vst [vmem:[#allocation106_spill] sm:$0xff] %v6403_v51  ;;  %v6409_v22 = vld [vmem:[#allocation5 + $0x2c8] sm:$0xff]  ;;  %v6411_v14 = vld [vmem:[#allocation5 + $0x2d8] sm:$0xff] }
 0x39b   :  { %1880 = vmatpush2.msra.mxu0 %v6393_v26  ;;  %1951 = vmatpush2.msra.mxu1 %v6395_v27  ;;  %9238 = vst [vmem:[#allocation108_spill] sm:$0xff] %v6409_v22  ;;  %9239 = vst [vmem:[#allocation111_spill] sm:$0xff] %v6411_v14  ;;  %v6417_v27 = vld [vmem:[#allocation5 + $0x2d0] sm:$0xff]  ;;  %v6419_v26 = vld [vmem:[#allocation5 + $0x2a8] sm:$0xff] }
 0x39c   :  { %1881 = vmatprep.subr.mxu0 %v6397_v30  ;;  %1952 = vmatprep.subr.mxu1 %v6401_v31  ;;  %9241 = vst [vmem:[#allocation113_spill] sm:$0xff] %v6417_v27  ;;  %9242 = vst [vmem:[#allocation112_spill] sm:$0xff] %v6419_v26  ;;  %v6425_v31 = vld [vmem:[#allocation5 + $0x2a0] sm:$0xff]  ;;  %v6427_v30 = vld [vmem:[#allocation5 + $0x2b0] sm:$0xff] }
 0x39d   :  { %1882 = vmatpush2.msra.mxu0 %v6403_v51  ;;  %1953 = vmatpush2.msra.mxu1 %v6405_v13  ;;  %9244 = vst [vmem:[#allocation114_spill] sm:$0xff] %v6425_v31  ;;  %9245 = vst [vmem:[#allocation117_spill] sm:$0xff] %v6427_v30  ;;  %v6431_v51 = vld [vmem:[#allocation5 + $0x288] sm:$0xff]  ;;  %v6433_v13 = vld [vmem:[#allocation5 + $0x298] sm:$0xff] }
 0x39e   :  { %1883 = vmatprep.subr.mxu0 %v6409_v22  ;;  %1954 = vmatprep.subr.mxu1 %v6411_v14  ;;  %9246 = vst [vmem:[#allocation116_spill] sm:$0xff] %v6431_v51  ;;  %9247 = vst [vmem:[#allocation119_spill] sm:$0xff] %v6433_v13  ;;  %v6439_v22 = vld [vmem:[#allocation5 + $0x290] sm:$0xff]  ;;  %v6443_v14 = vld [vmem:[#allocation5 + $0x268] sm:$0xff] }
 0x39f   :  { %1884 = vmatpush2.msra.mxu0 %v6413_v10  ;;  %1955 = vmatpush2.msra.mxu1 %v6417_v27  ;;  %9249 = vst [vmem:[#allocation121_spill] sm:$0xff] %v6439_v22  ;;  %9250 = vst [vmem:[#allocation120_spill] sm:$0xff] %v6443_v14  ;;  %v6445_v10 = vld [vmem:[#allocation5 + $0x278] sm:$0xff]  ;;  %v6449_v27 = vld [vmem:[#allocation5 + $0x260] sm:$0xff] }
 0x3a0   :  { %1885 = vmatprep.subr.mxu0 %v6419_v26  ;;  %1956 = vmatprep.subr.mxu1 %v6421_v6  ;;  %9251 = vst [vmem:[#allocation123_spill] sm:$0xff] %v6445_v10  ;;  %9252 = vst [vmem:[#allocation122_spill] sm:$0xff] %v6449_v27  ;;  %v6451_v26 = vld [vmem:[#allocation5 + $0x270] sm:$0xff]  ;;  %v6455_v6 = vld [vmem:[#allocation5 + $0x248] sm:$0xff] }
 0x3a1   :  { %1886 = vmatpush2.msra.mxu0 %v6425_v31  ;;  %1957 = vmatpush2.msra.mxu1 %v6427_v30  ;;  %9253 = vst [vmem:[#allocation125_spill] sm:$0xff] %v6451_v26  ;;  %9254 = vst [vmem:[#allocation124_spill] sm:$0xff] %v6455_v6  ;;  %v6457_v31 = vld [vmem:[#allocation5 + $0x258] sm:$0xff]  ;;  %v6461_v30 = vld [vmem:[#allocation5 + $0x240] sm:$0xff] }
 0x3a2   :  { %1887 = vmatprep.subr.mxu0 %v6431_v51  ;;  %1958 = vmatprep.subr.mxu1 %v6433_v13  ;;  %9255 = vst [vmem:[#allocation128_spill] sm:$0xff] %v6457_v31  ;;  %9256 = vst [vmem:[#allocation126_spill] sm:$0xff] %v6461_v30  ;;  %v6463_v51 = vld [vmem:[#allocation5 + $0x250] sm:$0xff]  ;;  %v6467_v13 = vld [vmem:[#allocation5 + $0x228] sm:$0xff] }
 0x3a3   :  { %1888 = vmatpush2.msra.mxu0 %v6437_v40  ;;  %1959 = vmatpush2.msra.mxu1 %v6439_v22  ;;  %9257 = vst [vmem:[#allocation130_spill] sm:$0xff] %v6463_v51  ;;  %9258 = vst [vmem:[#allocation22_spill] sm:$0xff] %v6467_v13  ;;  %v6469_v40 = vld [vmem:[#allocation5 + $0x238] sm:$0xff]  ;;  %v6473_v22 = vld [vmem:[#allocation5 + $0x220] sm:$0xff] }
 0x3a4   :  { %1889 = vmatprep.subr.mxu0 %v6443_v14  ;;  %1960 = vmatprep.subr.mxu1 %v6445_v10  ;;  %9259 = vst [vmem:[#allocation24_spill] sm:$0xff] %v6469_v40  ;;  %9260 = vst [vmem:[#allocation25_spill] sm:$0xff] %v6473_v22  ;;  %v6475_v14 = vld [vmem:[#allocation5 + $0x230] sm:$0xff]  ;;  %v6479_v10 = vld [vmem:[#allocation5 + $0x208] sm:$0xff] }
 0x3a5   :  { %1890 = vmatpush2.msra.mxu0 %v6449_v27  ;;  %1961 = vmatpush2.msra.mxu1 %v6451_v26  ;;  %9261 = vst [vmem:[#allocation23_spill] sm:$0xff] %v6475_v14  ;;  %9262 = vst [vmem:[#allocation50_spill] sm:$0xff] %v6479_v10  ;;  %v6481_v27 = vld [vmem:[#allocation5 + $0x218] sm:$0xff]  ;;  %v6485_v26 = vld [vmem:[#allocation5 + $0x200] sm:$0xff] }
 0x3a6   :  { %1891 = vmatprep.subr.mxu0 %v6455_v6  ;;  %1962 = vmatprep.subr.mxu1 %v6457_v31  ;;  %9263 = vst [vmem:[#allocation127_spill] sm:$0xff] %v6481_v27  ;;  %9264 = vst [vmem:[#allocation133_spill] sm:$0xff] %v6485_v26  ;;  %v6487_v6 = vld [vmem:[#allocation5 + $0x210] sm:$0xff]  ;;  %v6491_v31 = vld [vmem:[#allocation4 + $0x1e8] sm:$0xff] }
 0x3a7   :  { %1892 = vmatpush2.msra.mxu0 %v6461_v30  ;;  %1963 = vmatpush2.msra.mxu1 %v6463_v51  ;;  %9265 = vst [vmem:[#allocation129_spill] sm:$0xff] %v6487_v6  ;;  %9266 = vst [vmem:[#allocation135_spill] sm:$0xff] %v6491_v31  ;;  %v6493_v30 = vld [vmem:[#allocation4 + $0x1f8] sm:$0xff] }
 0x3a8   :  { %1893 = vmatprep.subr.mxu0 %v6467_v13  ;;  %1964 = vmatprep.subr.mxu1 %v6469_v40  ;;  %9267 = vst [vmem:[#allocation131_spill] sm:$0xff] %v6493_v30 }
 0x3a9   :  { %1894 = vmatpush2.msra.mxu0 %v6473_v22  ;;  %1965 = vmatpush2.msra.mxu1 %v6475_v14 }
 0x3aa   :  { %1895 = vmatprep.subr.mxu0 %v6479_v10  ;;  %1966 = vmatprep.subr.mxu1 %v6481_v27 }
 0x3ab   :  { %1896 = vmatpush2.msra.mxu0 %v6485_v26  ;;  %1967 = vmatpush2.msra.mxu1 %v6487_v6 }
 0x3ac   :  { %2061 = vmatprep.subr.mxu0 %v6491_v31  ;;  %2132 = vmatprep.subr.mxu1 %v6493_v30 }
 0x40a   :  { %v1375_v40 = vpop.f32.mrf.mxu0  ;;  %v1446_v22 = vpop.f32.mrf.mxu1 }
 0x40b   :  { %v1376_v14 = vadd.f32 %v1375_v40, %v9119_v2  ;;  %v1447_v6 = vadd.f32 %v1446_v22, %v9122_v23  ;;  %v9269_v22 = vld [vmem:[#allocation26_spill] sm:$0xff]  ;;  %v9270_v23 = vld [vmem:[#allocation28_spill] sm:$0xff] }
 0x40c   :  { %v1377_v13 = vpop.f32.mrf.mxu0  ;;  %v1448_v1 = vpop.f32.mrf.mxu1 }
 0x40d   :  { %v1451_v51 = vmul.f32 0.5, %v1376_v14  ;;  %v1378_v39 = vadd.f32 %v1377_v13, %v9120_v9  ;;  %v1449_v26 = vadd.f32 %v1448_v1, %v9121_v19  ;;  %v1453_v31 = vmul.f32 0.5, %v1447_v6 }
 0x40f   :  { %4845 = vtanh.f32 %v1451_v51  ;;  %v1452_v10 = vmul.f32 0.5, %v1378_v39 }
 0x411   :  { %4847 = vtanh.f32 %v1452_v10 }
 0x412   :  { %4849 = vtanh.f32 %v1449_v26 }
 0x413   :  { %4851 = vtanh.f32 %v1453_v31 }
 0x41c   :  { %v4846_v27 = vpop.eup %4845 }
 0x41d   :  { %v1457_v30 = vmul.f32 0.5, %v4846_v27 }
 0x41e   :  { %v4848_v44 = vpop.eup %4847 }
 0x41f   :  { %v1460_v57 = vadd.f32 0.5, %v1457_v30  ;;  %v1458_v40 = vmul.f32 0.5, %v4848_v44  ;;  %v4850_v14 = vpop.eup %4849 }
 0x420   :  { %v4852_v10 = vpop.eup %4851 }
 0x421   :  { %v1461_v2 = vadd.f32 0.5, %v1458_v40  ;;  %v1465_v9 = vmul.f32 %v4850_v14, %v1460_v57  ;;  %v1459_v31 = vmul.f32 0.5, %v4852_v10 }
 0x423   :  { %v1464_v13 = vmul.f32 %v1461_v2, %v6030_v48  ;;  %v9271_v2 = vld [vmem:[#allocation29_spill] sm:$0xff] }
 0x425   :  { %v6506_v51 = vadd.f32 %v1465_v9, %v1464_v13  ;;  %v1462_v9 = vadd.f32 0.5, %v1459_v31  ;;  %v9272_v13 = vld [vmem:[#allocation27_spill] sm:$0xff] }
 0x427   :  { %9268 = vst [vmem:[#allocation137_spill] sm:$0xff] %v6506_v51  ;;  %4853 = vtanh.f32 %v6506_v51 }
 0x42b   :  { %v1603_v1 = vpop.f32.mrf.mxu0  ;;  %v1674_v39 = vpop.f32.mrf.mxu1 }
 0x42c   :  { %v1679_v6 = vadd.f32 %v1603_v1, %v9269_v22  ;;  %v1681_v51 = vadd.f32 %v1674_v39, %v9272_v13  ;;  %v6531_v13 = vld [vmem:[#allocation4 + $0x1d0] sm:$0xff] }
 0x42d   :  { %v1605_v26 = vpop.f32.mrf.mxu0  ;;  %v1676_v44 = vpop.f32.mrf.mxu1 }
 0x42e   :  { %v1683_v27 = vmul.f32 0.5, %v1679_v6  ;;  %v1680_v30 = vadd.f32 %v1605_v26, %v9270_v23  ;;  %v1682_v48 = vadd.f32 %v1676_v44, %v9271_v2  ;;  %v1685_v1 = vmul.f32 0.5, %v1681_v51 }
 0x430   :  { %4855 = vtanh.f32 %v1683_v27  ;;  %v1684_v40 = vmul.f32 0.5, %v1680_v30 }
 0x432   :  { %4857 = vtanh.f32 %v1684_v40 }
 0x433   :  { %4859 = vtanh.f32 %v1682_v48 }
 0x434   :  { %v4854_v57 = vpop.eup %4853  ;;  %4861 = vtanh.f32 %v1685_v1  ;;  %v6535_v1 = vld [vmem:[#allocation4 + $0x1a8] sm:$0xff] }
 0x435   :  { %v1468_v14 = vmul.f32 %v4854_v57, %v1462_v9  ;;  %v6519_v9 = vld [vmem:[#allocation4 + $0x1e0] sm:$0xff]  ;;  %v6521_v57 = vld [vmem:[#allocation4 + $0x1f0] sm:$0xff] }
 0x437   :  { %1897 = vmatprep.mubr.f32.mxu0 %v1468_v14  ;;  %1968 = vmatprep.mubr.f32.mxu1 %v1468_v14  ;;  %v6525_v14 = vld [vmem:[#allocation4 + $0x1d8] sm:$0xff] }
 0x43d   :  { %v4856_v22 = vpop.eup %4855 }
 0x43e   :  { %v1689_v6 = vmul.f32 0.5, %v4856_v22  ;;  %v6537_v22 = vld [vmem:[#allocation4 + $0x1b8] sm:$0xff] }
 0x43f   :  { %v4858_v19 = vpop.eup %4857 }
 0x440   :  { %v1692_v23 = vadd.f32 0.5, %v1689_v6  ;;  %v1690_v10 = vmul.f32 0.5, %v4858_v19  ;;  %v4860_v27 = vpop.eup %4859  ;;  %v6523_v19 = vld [vmem:[#allocation4 + $0x1c8] sm:$0xff]  ;;  %v6541_v6 = vld [vmem:[#allocation4 + $0x1a0] sm:$0xff] }
 0x441   :  { %v4862_v40 = vpop.eup %4861  ;;  %9273 = vst [vmem:[#allocation132_spill] sm:$0xff] %v6541_v6 }
 0x442   :  { %v1693_v26 = vadd.f32 0.5, %v1690_v10  ;;  %v1697_v44 = vmul.f32 %v4860_v27, %v1692_v23  ;;  %v1691_v2 = vmul.f32 0.5, %v4862_v40  ;;  %v6543_v23 = vld [vmem:[#allocation4 + $0x1b0] sm:$0xff]  ;;  %v6547_v10 = vld [vmem:[#allocation4 + $0x188] sm:$0xff]  ;;  %v6553_v27 = vld [vmem:[#allocation4 + $0x180] sm:$0xff] }
 0x443   :  { %9274 = vst [vmem:[#allocation139_spill] sm:$0xff] %v6543_v23  ;;  %9275 = vst [vmem:[#allocation134_spill] sm:$0xff] %v6547_v10  ;;  %v6561_v40 = vld [vmem:[#allocation4 + $0x178] sm:$0xff] }
 0x444   :  { %v1696_v30 = vmul.f32 %v1693_v26, %v6038_v5  ;;  %v1694_v48 = vadd.f32 0.5, %v1691_v2  ;;  %v6529_v5 = vld [vmem:[#allocation4 + $0x1c0] sm:$0xff]  ;;  %v6549_v26 = vld [vmem:[#allocation4 + $0x198] sm:$0xff]  ;;  %9277 = vst [vmem:[#allocation136_spill] sm:$0xff] %v6553_v27  ;;  %9280 = vst [vmem:[#allocation145_spill] sm:$0xff] %v6561_v40 }
 0x445   :  { %9276 = vst [vmem:[#allocation141_spill] sm:$0xff] %v6549_v26  ;;  %v6565_v2 = vld [vmem:[#allocation4 + $0x160] sm:$0xff] }
 0x446   :  { %v6514_v31 = vadd.f32 %v1697_v44, %v1696_v30  ;;  %v6555_v30 = vld [vmem:[#allocation4 + $0x190] sm:$0xff]  ;;  %v6559_v44 = vld [vmem:[#allocation4 + $0x168] sm:$0xff]  ;;  %9281 = vst [vmem:[#allocation140_spill] sm:$0xff] %v6565_v2 }
 0x447   :  { %9278 = vst [vmem:[#allocation143_spill] sm:$0xff] %v6555_v30  ;;  %9279 = vst [vmem:[#allocation138_spill] sm:$0xff] %v6559_v44 }
 0x448   :  { %4863 = vtanh.f32 %v6514_v31 }
 0x455   :  { %v4864_v39 = vpop.eup %4863 }
 0x456   :  { %v6517_v51 = vmul.f32 %v4864_v39, %v1694_v48  ;;  %v6567_v48 = vld [vmem:[#allocation4 + $0x170] sm:$0xff]  ;;  %v6571_v39 = vld [vmem:[#allocation4 + $0x148] sm:$0xff] }
 0x457   :  { %9282 = vst [vmem:[#allocation147_spill] sm:$0xff] %v6567_v48  ;;  %9283 = vst [vmem:[#allocation142_spill] sm:$0xff] %v6571_v39 }
 0x458   :  { %1898 = vmatmul.mubr.f32.vlgmr.msra.gmra.mxu0 %v6517_v51  ;;  %1969 = vmatmul.mubr.f32.vlgmr.msra.gmra.mxu1 %v6517_v51 }
 0x459   :  { %2062 = vmatpush1.msra.mxu0 %v6519_v9  ;;  %2133 = vmatpush1.msra.mxu1 %v6521_v57 }
 0x45a   :  { %2063 = vmatprep.subr.mxu0 %v6523_v19  ;;  %2134 = vmatprep.subr.mxu1 %v6525_v14 }
 0x45b   :  { %2064 = vmatpush1.msra.mxu0 %v6529_v5  ;;  %2135 = vmatpush1.msra.mxu1 %v6531_v13 }
 0x45c   :  { %2065 = vmatprep.subr.mxu0 %v6535_v1  ;;  %2136 = vmatprep.subr.mxu1 %v6537_v22 }
 0x45d   :  { %2066 = vmatpush1.msra.mxu0 %v6541_v6  ;;  %2137 = vmatpush1.msra.mxu1 %v6543_v23  ;;  %v6573_v6 = vld [vmem:[#allocation4 + $0x158] sm:$0xff]  ;;  %v6577_v23 = vld [vmem:[#allocation4 + $0x140] sm:$0xff] }
 0x45e   :  { %2067 = vmatprep.subr.mxu0 %v6547_v10  ;;  %2138 = vmatprep.subr.mxu1 %v6549_v26  ;;  %9284 = vst [vmem:[#allocation149_spill] sm:$0xff] %v6573_v6  ;;  %9285 = vst [vmem:[#allocation144_spill] sm:$0xff] %v6577_v23  ;;  %v6579_v10 = vld [vmem:[#allocation4 + $0x150] sm:$0xff]  ;;  %v6583_v26 = vld [vmem:[#allocation4 + $0x128] sm:$0xff] }
 0x45f   :  { %2068 = vmatpush1.msra.mxu0 %v6553_v27  ;;  %2139 = vmatpush1.msra.mxu1 %v6555_v30  ;;  %9286 = vst [vmem:[#allocation151_spill] sm:$0xff] %v6579_v10  ;;  %9287 = vst [vmem:[#allocation146_spill] sm:$0xff] %v6583_v26  ;;  %v6585_v27 = vld [vmem:[#allocation4 + $0x138] sm:$0xff]  ;;  %v6589_v30 = vld [vmem:[#allocation4 + $0x120] sm:$0xff] }
 0x460   :  { %2069 = vmatprep.subr.mxu0 %v6559_v44  ;;  %2140 = vmatprep.subr.mxu1 %v6561_v40  ;;  %9288 = vst [vmem:[#allocation153_spill] sm:$0xff] %v6585_v27  ;;  %9289 = vst [vmem:[#allocation148_spill] sm:$0xff] %v6589_v30  ;;  %v6591_v44 = vld [vmem:[#allocation4 + $0x130] sm:$0xff]  ;;  %v6595_v40 = vld [vmem:[#allocation4 + $0x108] sm:$0xff] }
 0x461   :  { %2070 = vmatpush1.msra.mxu0 %v6565_v2  ;;  %2141 = vmatpush1.msra.mxu1 %v6567_v48  ;;  %9290 = vst [vmem:[#allocation155_spill] sm:$0xff] %v6591_v44  ;;  %9291 = vst [vmem:[#allocation150_spill] sm:$0xff] %v6595_v40  ;;  %v6597_v2 = vld [vmem:[#allocation4 + $0x118] sm:$0xff]  ;;  %v6601_v48 = vld [vmem:[#allocation4 + $0x100] sm:$0xff] }
 0x462   :  { %2071 = vmatprep.subr.mxu0 %v6571_v39  ;;  %2142 = vmatprep.subr.mxu1 %v6573_v6  ;;  %9292 = vst [vmem:[#allocation157_spill] sm:$0xff] %v6597_v2  ;;  %9293 = vst [vmem:[#allocation152_spill] sm:$0xff] %v6601_v48  ;;  %v6603_v39 = vld [vmem:[#allocation4 + $0x110] sm:$0xff]  ;;  %v6607_v6 = vld [vmem:[#allocation4 + $0xe8] sm:$0xff] }
 0x463   :  { %2072 = vmatpush1.msra.mxu0 %v6577_v23  ;;  %2143 = vmatpush1.msra.mxu1 %v6579_v10  ;;  %9294 = vst [vmem:[#allocation159_spill] sm:$0xff] %v6603_v39  ;;  %9295 = vst [vmem:[#allocation154_spill] sm:$0xff] %v6607_v6  ;;  %v6609_v23 = vld [vmem:[#allocation4 + $0xf8] sm:$0xff]  ;;  %v6613_v10 = vld [vmem:[#allocation4 + $0xe0] sm:$0xff] }
 0x464   :  { %2073 = vmatprep.subr.mxu0 %v6583_v26  ;;  %2144 = vmatprep.subr.mxu1 %v6585_v27  ;;  %9296 = vst [vmem:[#allocation161_spill] sm:$0xff] %v6609_v23  ;;  %9297 = vst [vmem:[#allocation156_spill] sm:$0xff] %v6613_v10  ;;  %v6615_v26 = vld [vmem:[#allocation4 + $0xf0] sm:$0xff]  ;;  %v6619_v27 = vld [vmem:[#allocation4 + $0xc8] sm:$0xff] }
 0x465   :  { %2074 = vmatpush1.msra.mxu0 %v6589_v30  ;;  %2145 = vmatpush1.msra.mxu1 %v6591_v44  ;;  %9298 = vst [vmem:[#allocation163_spill] sm:$0xff] %v6615_v26  ;;  %9299 = vst [vmem:[#allocation158_spill] sm:$0xff] %v6619_v27  ;;  %v6621_v30 = vld [vmem:[#allocation4 + $0xd8] sm:$0xff]  ;;  %v6625_v44 = vld [vmem:[#allocation4 + $0xc0] sm:$0xff] }
 0x466   :  { %2075 = vmatprep.subr.mxu0 %v6595_v40  ;;  %2146 = vmatprep.subr.mxu1 %v6597_v2  ;;  %9300 = vst [vmem:[#allocation165_spill] sm:$0xff] %v6621_v30  ;;  %9301 = vst [vmem:[#allocation160_spill] sm:$0xff] %v6625_v44  ;;  %v6627_v40 = vld [vmem:[#allocation4 + $0xd0] sm:$0xff]  ;;  %v6631_v2 = vld [vmem:[#allocation4 + $0xa8] sm:$0xff] }
 0x467   :  { %2076 = vmatpush1.msra.mxu0 %v6601_v48  ;;  %2147 = vmatpush1.msra.mxu1 %v6603_v39  ;;  %9302 = vst [vmem:[#allocation167_spill] sm:$0xff] %v6627_v40  ;;  %9303 = vst [vmem:[#allocation162_spill] sm:$0xff] %v6631_v2  ;;  %v6633_v48 = vld [vmem:[#allocation4 + $0xb8] sm:$0xff]  ;;  %v6637_v39 = vld [vmem:[#allocation4 + $0xa0] sm:$0xff] }
 0x468   :  { %2077 = vmatprep.subr.mxu0 %v6607_v6  ;;  %2148 = vmatprep.subr.mxu1 %v6609_v23  ;;  %9304 = vst [vmem:[#allocation169_spill] sm:$0xff] %v6633_v48  ;;  %9305 = vst [vmem:[#allocation164_spill] sm:$0xff] %v6637_v39  ;;  %v6639_v6 = vld [vmem:[#allocation4 + $0xb0] sm:$0xff]  ;;  %v6643_v23 = vld [vmem:[#allocation4 + $0x88] sm:$0xff] }
 0x469   :  { %2078 = vmatpush1.msra.mxu0 %v6613_v10  ;;  %2149 = vmatpush1.msra.mxu1 %v6615_v26  ;;  %9306 = vst [vmem:[#allocation171_spill] sm:$0xff] %v6639_v6  ;;  %9307 = vst [vmem:[#allocation166_spill] sm:$0xff] %v6643_v23  ;;  %v6645_v10 = vld [vmem:[#allocation4 + $0x98] sm:$0xff]  ;;  %v6649_v26 = vld [vmem:[#allocation4 + $0x80] sm:$0xff] }
 0x46a   :  { %2079 = vmatprep.subr.mxu0 %v6619_v27  ;;  %2150 = vmatprep.subr.mxu1 %v6621_v30  ;;  %9308 = vst [vmem:[#allocation173_spill] sm:$0xff] %v6645_v10  ;;  %9309 = vst [vmem:[#allocation168_spill] sm:$0xff] %v6649_v26  ;;  %v6651_v27 = vld [vmem:[#allocation4 + $0x90] sm:$0xff]  ;;  %v6655_v30 = vld [vmem:[#allocation4 + $0x68] sm:$0xff] }
 0x46b   :  { %2080 = vmatpush1.msra.mxu0 %v6625_v44  ;;  %2151 = vmatpush1.msra.mxu1 %v6627_v40  ;;  %9310 = vst [vmem:[#allocation175_spill] sm:$0xff] %v6651_v27  ;;  %9311 = vst [vmem:[#allocation170_spill] sm:$0xff] %v6655_v30  ;;  %v6657_v44 = vld [vmem:[#allocation4 + $0x78] sm:$0xff]  ;;  %v6661_v40 = vld [vmem:[#allocation4 + $0x60] sm:$0xff] }
 0x46c   :  { %2081 = vmatprep.subr.mxu0 %v6631_v2  ;;  %2152 = vmatprep.subr.mxu1 %v6633_v48  ;;  %9312 = vst [vmem:[#allocation172_spill] sm:$0xff] %v6657_v44  ;;  %9313 = vst [vmem:[#allocation178_spill] sm:$0xff] %v6661_v40  ;;  %v6663_v2 = vld [vmem:[#allocation4 + $0x70] sm:$0xff]  ;;  %v6667_v48 = vld [vmem:[#allocation4 + $0x48] sm:$0xff] }
 0x46d   :  { %2082 = vmatpush1.msra.mxu0 %v6637_v39  ;;  %2153 = vmatpush1.msra.mxu1 %v6639_v6  ;;  %9314 = vst [vmem:[#allocation174_spill] sm:$0xff] %v6663_v2  ;;  %v6669_v39 = vld [vmem:[#allocation4 + $0x58] sm:$0xff]  ;;  %v6673_v6 = vld [vmem:[#allocation4 + $0x40] sm:$0xff] }
 0x46e   :  { %2083 = vmatprep.subr.mxu0 %v6643_v23  ;;  %2154 = vmatprep.subr.mxu1 %v6645_v10  ;;  %9315 = vst [vmem:[#allocation176_spill] sm:$0xff] %v6669_v39  ;;  %v6675_v23 = vld [vmem:[#allocation4 + $0x50] sm:$0xff]  ;;  %v6679_v10 = vld [vmem:[#allocation4 + $0x28] sm:$0xff] }
 0x46f   :  { %2084 = vmatpush1.msra.mxu0 %v6649_v26  ;;  %2155 = vmatpush1.msra.mxu1 %v6651_v27  ;;  %v6681_v26 = vld [vmem:[#allocation4 + $0x38] sm:$0xff]  ;;  %v6685_v27 = vld [vmem:[#allocation4 + $0x20] sm:$0xff] }
 0x470   :  { %2085 = vmatprep.subr.mxu0 %v6655_v30  ;;  %2156 = vmatprep.subr.mxu1 %v6657_v44  ;;  %v6687_v30 = vld [vmem:[#allocation4 + $0x30] sm:$0xff]  ;;  %v6691_v44 = vld [vmem:[#allocation4 + $0x8] sm:$0xff] }
 0x471   :  { %2086 = vmatpush1.msra.mxu0 %v6661_v40  ;;  %2157 = vmatpush1.msra.mxu1 %v6663_v2  ;;  %v6693_v40 = vld [vmem:[#allocation4 + $0x18] sm:$0xff]  ;;  %v6697_v2 = vld [vmem:[#allocation4] sm:$0xff] }
 0x472   :  { %2087 = vmatprep.subr.mxu0 %v6667_v48  ;;  %2158 = vmatprep.subr.mxu1 %v6669_v39  ;;  %v6701_v39 = vld [vmem:[#allocation4 + $0x10] sm:$0xff] }
 0x473   :  { %2088 = vmatpush1.msra.mxu0 %v6673_v6  ;;  %2159 = vmatpush1.msra.mxu1 %v6675_v23 }
 0x474   :  { %2089 = vmatprep.subr.mxu0 %v6679_v10  ;;  %2160 = vmatprep.subr.mxu1 %v6681_v26 }
 0x475   :  { %2090 = vmatpush1.msra.mxu0 %v6685_v27  ;;  %2161 = vmatpush1.msra.mxu1 %v6687_v30 }
 0x476   :  { %2091 = vmatprep.subr.mxu0 %v6691_v44  ;;  %2162 = vmatprep.subr.mxu1 %v6693_v40 }
 0x477   :  { %2092 = vmatpush1.msra.mxu0 %v6697_v2  ;;  %2125 = vmatprep.mubr.f32.mxu0 %v9040_v33 }
 0x478   :  { %2163 = vmatpush1.msra.mxu1 %v6701_v39  ;;  %2196 = vmatprep.mubr.f32.mxu1 %v9040_v33 }
 0x479   :  { %2126 = vmatmul.mubr.f32.vlgmr.msra.gmra.mxu0 %v6517_v51  ;;  %2197 = vmatmul.mubr.f32.vlgmr.msra.gmra.mxu1 %v6517_v51  ;;  %v9358_v51 = vld [vmem:[#allocation92_spill] sm:$0xff] }
 0x47a   :  { %2357 = vmatprep.subr.mxu0 %v6111_v32  ;;  %2428 = vmatprep.subr.mxu1 %v6113_v55  ;;  %v9316_v32 = vld [vmem:[#allocation51_spill] sm:$0xff]  ;;  %v9317_v55 = vld [vmem:[#allocation53_spill] sm:$0xff] }
 0x47b   :  { %2358 = vmatpush1.msra.mxu0 %v6117_v34  ;;  %2429 = vmatpush1.msra.mxu1 %v6119_v35  ;;  %v9318_v34 = vld [vmem:[#allocation52_spill] sm:$0xff]  ;;  %v9319_v35 = vld [vmem:[#allocation55_spill] sm:$0xff] }
 0x47c   :  { %2359 = vmatprep.subr.mxu0 %v6123_v52  ;;  %2430 = vmatprep.subr.mxu1 %v6125_v56  ;;  %v9320_v52 = vld [vmem:[#allocation54_spill] sm:$0xff]  ;;  %v9321_v56 = vld [vmem:[#allocation57_spill] sm:$0xff] }
 0x47d   :  { %2360 = vmatpush1.msra.mxu0 %v6129_v59  ;;  %2431 = vmatpush1.msra.mxu1 %v6131_v0  ;;  %v9322_v59 = vld [vmem:[#allocation56_spill] sm:$0xff]  ;;  %v9323_v0 = vld [vmem:[#allocation59_spill] sm:$0xff] }
 0x47e   :  { %2361 = vmatprep.subr.mxu0 %v6135_v61  ;;  %2432 = vmatprep.subr.mxu1 %v6137_v18  ;;  %v9324_v61 = vld [vmem:[#allocation58_spill] sm:$0xff]  ;;  %v9325_v18 = vld [vmem:[#allocation61_spill] sm:$0xff] }
 0x47f   :  { %2362 = vmatpush1.msra.mxu0 %v6141_v42  ;;  %2433 = vmatpush1.msra.mxu1 %v6143_v45  ;;  %v9326_v42 = vld [vmem:[#allocation60_spill] sm:$0xff]  ;;  %v9327_v45 = vld [vmem:[#allocation63_spill] sm:$0xff] }
 0x480   :  { %2363 = vmatprep.subr.mxu0 %v6147_v43  ;;  %2434 = vmatprep.subr.mxu1 %v6149_v50  ;;  %v9328_v43 = vld [vmem:[#allocation62_spill] sm:$0xff]  ;;  %v9329_v50 = vld [vmem:[#allocation65_spill] sm:$0xff] }
 0x481   :  { %2364 = vmatpush1.msra.mxu0 %v6153_v53  ;;  %2435 = vmatpush1.msra.mxu1 %v6155_v58  ;;  %v9330_v53 = vld [vmem:[#allocation64_spill] sm:$0xff]  ;;  %v9331_v58 = vld [vmem:[#allocation67_spill] sm:$0xff] }
 0x482   :  { %2365 = vmatprep.subr.mxu0 %v6159_v47  ;;  %2436 = vmatprep.subr.mxu1 %v6161_v37  ;;  %v9332_v47 = vld [vmem:[#allocation66_spill] sm:$0xff]  ;;  %v9333_v37 = vld [vmem:[#allocation69_spill] sm:$0xff] }
 0x483   :  { %2366 = vmatpush1.msra.mxu0 %v6165_v38  ;;  %2437 = vmatpush1.msra.mxu1 %v6167_v62  ;;  %v9334_v38 = vld [vmem:[#allocation68_spill] sm:$0xff]  ;;  %v9335_v62 = vld [vmem:[#allocation71_spill] sm:$0xff] }
 0x484   :  { %2367 = vmatprep.subr.mxu0 %v6171_v17  ;;  %2438 = vmatprep.subr.mxu1 %v6173_v12  ;;  %v9336_v17 = vld [vmem:[#allocation70_spill] sm:$0xff]  ;;  %v9337_v12 = vld [vmem:[#allocation73_spill] sm:$0xff] }
 0x485   :  { %2368 = vmatpush1.msra.mxu0 %v6177_v15  ;;  %2439 = vmatpush1.msra.mxu1 %v6179_v16  ;;  %v9338_v15 = vld [vmem:[#allocation72_spill] sm:$0xff]  ;;  %v9339_v16 = vld [vmem:[#allocation75_spill] sm:$0xff] }
 0x486   :  { %2369 = vmatprep.subr.mxu0 %v6183_v4  ;;  %2440 = vmatprep.subr.mxu1 %v6185_v11  ;;  %v9340_v4 = vld [vmem:[#allocation74_spill] sm:$0xff]  ;;  %v9341_v11 = vld [vmem:[#allocation77_spill] sm:$0xff] }
 0x487   :  { %2370 = vmatpush1.msra.mxu0 %v6189_v7  ;;  %2441 = vmatpush1.msra.mxu1 %v6191_v8  ;;  %v9342_v7 = vld [vmem:[#allocation76_spill] sm:$0xff]  ;;  %v9343_v8 = vld [vmem:[#allocation79_spill] sm:$0xff] }
 0x488   :  { %2371 = vmatprep.subr.mxu0 %v6195_v60  ;;  %2442 = vmatprep.subr.mxu1 %v6197_v3  ;;  %v9344_v60 = vld [vmem:[#allocation78_spill] sm:$0xff]  ;;  %v9345_v3 = vld [vmem:[#allocation81_spill] sm:$0xff] }
 0x489   :  { %2372 = vmatpush1.msra.mxu0 %v6199_v63  ;;  %2443 = vmatpush1.msra.mxu1 %v6203_v20  ;;  %v9346_v63 = vld [vmem:[#allocation80_spill] sm:$0xff]  ;;  %v9347_v20 = vld [vmem:[#allocation83_spill] sm:$0xff] }
 0x48a   :  { %2373 = vmatprep.subr.mxu0 %v6205_v21  ;;  %2444 = vmatprep.subr.mxu1 %v6207_v24  ;;  %v9348_v21 = vld [vmem:[#allocation82_spill] sm:$0xff]  ;;  %v9349_v24 = vld [vmem:[#allocation85_spill] sm:$0xff] }
 0x48b   :  { %2374 = vmatpush1.msra.mxu0 %v6211_v25  ;;  %2445 = vmatpush1.msra.mxu1 %v6213_v28  ;;  %v9350_v25 = vld [vmem:[#allocation84_spill] sm:$0xff]  ;;  %v9351_v28 = vld [vmem:[#allocation87_spill] sm:$0xff] }
 0x48c   :  { %2375 = vmatprep.subr.mxu0 %v6215_v29  ;;  %2446 = vmatprep.subr.mxu1 %v6219_v36  ;;  %v9352_v29 = vld [vmem:[#allocation86_spill] sm:$0xff]  ;;  %v9353_v36 = vld [vmem:[#allocation89_spill] sm:$0xff] }
 0x48d   :  { %2376 = vmatpush1.msra.mxu0 %v6221_v41  ;;  %2447 = vmatpush1.msra.mxu1 %v6223_v46  ;;  %v9354_v41 = vld [vmem:[#allocation88_spill] sm:$0xff]  ;;  %v9355_v46 = vld [vmem:[#allocation91_spill] sm:$0xff] }
 0x48e   :  { %2377 = vmatprep.subr.mxu0 %v6231_v49  ;;  %2448 = vmatprep.subr.mxu1 %v6233_v54  ;;  %v9356_v49 = vld [vmem:[#allocation90_spill] sm:$0xff]  ;;  %v9357_v54 = vld [vmem:[#allocation93_spill] sm:$0xff] }
 0x48f   :  { %2378 = vmatpush1.msra.mxu0 %v9316_v32  ;;  %2449 = vmatpush1.msra.mxu1 %v9317_v55  ;;  %v9359_v32 = vld [vmem:[#allocation95_spill] sm:$0xff]  ;;  %v9360_v55 = vld [vmem:[#allocation94_spill] sm:$0xff] }
 0x490   :  { %2379 = vmatprep.subr.mxu0 %v9318_v34  ;;  %2450 = vmatprep.subr.mxu1 %v9319_v35  ;;  %v9361_v34 = vld [vmem:[#allocation97_spill] sm:$0xff]  ;;  %v9362_v35 = vld [vmem:[#allocation96_spill] sm:$0xff] }
 0x491   :  { %2380 = vmatpush1.msra.mxu0 %v9320_v52  ;;  %2451 = vmatpush1.msra.mxu1 %v9321_v56  ;;  %v9363_v52 = vld [vmem:[#allocation99_spill] sm:$0xff]  ;;  %v9364_v56 = vld [vmem:[#allocation98_spill] sm:$0xff] }
 0x492   :  { %2381 = vmatprep.subr.mxu0 %v9322_v59  ;;  %2452 = vmatprep.subr.mxu1 %v9323_v0  ;;  %v9365_v59 = vld [vmem:[#allocation101_spill] sm:$0xff]  ;;  %v9366_v0 = vld [vmem:[#allocation100_spill] sm:$0xff] }
 0x493   :  { %2382 = vmatpush1.msra.mxu0 %v9324_v61  ;;  %2453 = vmatpush1.msra.mxu1 %v9325_v18  ;;  %v9367_v61 = vld [vmem:[#allocation103_spill] sm:$0xff]  ;;  %v9368_v18 = vld [vmem:[#allocation102_spill] sm:$0xff] }
 0x494   :  { %2383 = vmatprep.subr.mxu0 %v9326_v42  ;;  %2454 = vmatprep.subr.mxu1 %v9327_v45  ;;  %v9369_v42 = vld [vmem:[#allocation105_spill] sm:$0xff]  ;;  %v9370_v45 = vld [vmem:[#allocation104_spill] sm:$0xff] }
 0x495   :  { %2384 = vmatpush1.msra.mxu0 %v9328_v43  ;;  %2455 = vmatpush1.msra.mxu1 %v9329_v50  ;;  %v9371_v43 = vld [vmem:[#allocation107_spill] sm:$0xff]  ;;  %v9372_v50 = vld [vmem:[#allocation106_spill] sm:$0xff] }
 0x496   :  { %2385 = vmatprep.subr.mxu0 %v9330_v53  ;;  %2456 = vmatprep.subr.mxu1 %v9331_v58  ;;  %v9373_v53 = vld [vmem:[#allocation109_spill] sm:$0xff]  ;;  %v9374_v58 = vld [vmem:[#allocation108_spill] sm:$0xff] }
 0x497   :  { %2386 = vmatpush1.msra.mxu0 %v9332_v47  ;;  %2457 = vmatpush1.msra.mxu1 %v9333_v37  ;;  %v9375_v47 = vld [vmem:[#allocation111_spill] sm:$0xff]  ;;  %v9376_v37 = vld [vmem:[#allocation110_spill] sm:$0xff] }
 0x498   :  { %2387 = vmatprep.subr.mxu0 %v9334_v38  ;;  %2458 = vmatprep.subr.mxu1 %v9335_v62  ;;  %v9377_v38 = vld [vmem:[#allocation113_spill] sm:$0xff]  ;;  %v9378_v62 = vld [vmem:[#allocation112_spill] sm:$0xff] }
 0x499   :  { %2388 = vmatpush1.msra.mxu0 %v9336_v17  ;;  %2459 = vmatpush1.msra.mxu1 %v9337_v12  ;;  %v9379_v17 = vld [vmem:[#allocation115_spill] sm:$0xff]  ;;  %v9380_v12 = vld [vmem:[#allocation114_spill] sm:$0xff] }
 0x49a   :  { %2389 = vmatprep.subr.mxu0 %v9338_v15  ;;  %2460 = vmatprep.subr.mxu1 %v9339_v16  ;;  %v9381_v15 = vld [vmem:[#allocation117_spill] sm:$0xff]  ;;  %v9382_v16 = vld [vmem:[#allocation116_spill] sm:$0xff] }
 0x49b   :  { %2390 = vmatpush2.msra.mxu0 %v9340_v4  ;;  %2461 = vmatpush2.msra.mxu1 %v9341_v11  ;;  %v9383_v4 = vld [vmem:[#allocation119_spill] sm:$0xff]  ;;  %v9384_v11 = vld [vmem:[#allocation118_spill] sm:$0xff] }
 0x49c   :  { %2391 = vmatprep.subr.mxu0 %v9342_v7  ;;  %2462 = vmatprep.subr.mxu1 %v9343_v8  ;;  %v9385_v7 = vld [vmem:[#allocation121_spill] sm:$0xff]  ;;  %v9386_v8 = vld [vmem:[#allocation120_spill] sm:$0xff] }
 0x49d   :  { %2392 = vmatpush2.msra.mxu0 %v9344_v60  ;;  %2463 = vmatpush2.msra.mxu1 %v9345_v3  ;;  %v9387_v60 = vld [vmem:[#allocation123_spill] sm:$0xff]  ;;  %v9388_v3 = vld [vmem:[#allocation122_spill] sm:$0xff] }
 0x49e   :  { %2393 = vmatprep.subr.mxu0 %v9346_v63  ;;  %2464 = vmatprep.subr.mxu1 %v9347_v20  ;;  %v9389_v63 = vld [vmem:[#allocation125_spill] sm:$0xff]  ;;  %v9390_v20 = vld [vmem:[#allocation124_spill] sm:$0xff] }
 0x49f   :  { %2394 = vmatpush2.msra.mxu0 %v9348_v21  ;;  %2465 = vmatpush2.msra.mxu1 %v9349_v24  ;;  %v9391_v21 = vld [vmem:[#allocation128_spill] sm:$0xff]  ;;  %v9392_v24 = vld [vmem:[#allocation126_spill] sm:$0xff] }
 0x4a0   :  { %2395 = vmatprep.subr.mxu0 %v9350_v25  ;;  %2466 = vmatprep.subr.mxu1 %v9351_v28  ;;  %v9393_v25 = vld [vmem:[#allocation130_spill] sm:$0xff] }
 0x4a1   :  { %2396 = vmatpush2.msra.mxu0 %v9352_v29  ;;  %2467 = vmatpush2.msra.mxu1 %v9353_v36  ;;  %v9394_v28 = vld [vmem:[#allocation22_spill] sm:$0xff]  ;;  %v9395_v29 = vld [vmem:[#allocation24_spill] sm:$0xff]  ;;  %v9396_v36 = vld [vmem:[#allocation25_spill] sm:$0xff] }
 0x4a2   :  { %2397 = vmatprep.subr.mxu0 %v9354_v41  ;;  %2468 = vmatprep.subr.mxu1 %v9355_v46  ;;  %v9397_v41 = vld [vmem:[#allocation23_spill] sm:$0xff]  ;;  %v9398_v46 = vld [vmem:[#allocation50_spill] sm:$0xff] }
 0x4a3   :  { %2398 = vmatpush2.msra.mxu0 %v9356_v49  ;;  %2469 = vmatpush2.msra.mxu1 %v9357_v54  ;;  %v9399_v49 = vld [vmem:[#allocation127_spill] sm:$0xff]  ;;  %v9400_v54 = vld [vmem:[#allocation133_spill] sm:$0xff] }
 0x4a4   :  { %2399 = vmatprep.subr.mxu0 %v9358_v51  ;;  %2470 = vmatprep.subr.mxu1 %v9359_v32  ;;  %v9401_v51 = vld [vmem:[#allocation129_spill] sm:$0xff]  ;;  %v9402_v32 = vld [vmem:[#allocation135_spill] sm:$0xff] }
 0x4a5   :  { %2400 = vmatpush2.msra.mxu0 %v9360_v55  ;;  %2471 = vmatpush2.msra.mxu1 %v9361_v34  ;;  %v9403_v55 = vld [vmem:[#allocation131_spill] sm:$0xff] }
 0x4a6   :  { %2401 = vmatprep.subr.mxu0 %v9362_v35  ;;  %2472 = vmatprep.subr.mxu1 %v9363_v52  ;;  %v9404_v52 = vld [vmem:[#allocation18_spill] sm:$0xff] }
 0x4a7   :  { %2402 = vmatpush2.msra.mxu0 %v9364_v56  ;;  %2473 = vmatpush2.msra.mxu1 %v9365_v59 }
 0x4a8   :  { %2403 = vmatprep.subr.mxu0 %v9366_v0  ;;  %2474 = vmatprep.subr.mxu1 %v9367_v61  ;;  %v9405_v61 = vld [vmem:[#allocation20_spill] sm:$0xff] }
 0x4a9   :  { %2404 = vmatpush2.msra.mxu0 %v9368_v18  ;;  %2475 = vmatpush2.msra.mxu1 %v9369_v42 }
 0x4aa   :  { %2405 = vmatprep.subr.mxu0 %v9370_v45  ;;  %2476 = vmatprep.subr.mxu1 %v9371_v43  ;;  %v9406_v43 = vld [vmem:[#allocation21_spill] sm:$0xff] }
 0x4ab   :  { %2406 = vmatpush2.msra.mxu0 %v9372_v50  ;;  %2477 = vmatpush2.msra.mxu1 %v9373_v53  ;;  %v9407_v53 = vld [vmem:[#allocation19_spill] sm:$0xff] }
 0x4ac   :  { %2407 = vmatprep.subr.mxu0 %v9374_v58  ;;  %2478 = vmatprep.subr.mxu1 %v9375_v47 }
 0x4ad   :  { %2408 = vmatpush2.msra.mxu0 %v9376_v37  ;;  %2479 = vmatpush2.msra.mxu1 %v9377_v38 }
 0x4ae   :  { %2409 = vmatprep.subr.mxu0 %v9378_v62  ;;  %2480 = vmatprep.subr.mxu1 %v9379_v17 }
 0x4af   :  { %2410 = vmatpush2.msra.mxu0 %v9380_v12  ;;  %2481 = vmatpush2.msra.mxu1 %v9381_v15 }
 0x4b0   :  { %2411 = vmatprep.subr.mxu0 %v9382_v16  ;;  %2482 = vmatprep.subr.mxu1 %v9383_v4  ;;  %v9408_v4 = vld [vmem:[#allocation137_spill] sm:$0xff] }
 0x4b1   :  { %2412 = vmatpush2.msra.mxu0 %v9384_v11  ;;  %2483 = vmatpush2.msra.mxu1 %v9385_v7 }
 0x4b2   :  { %2413 = vmatprep.subr.mxu0 %v9386_v8  ;;  %2484 = vmatprep.subr.mxu1 %v9387_v60 }
 0x4b3   :  { %2414 = vmatpush2.msra.mxu0 %v9388_v3  ;;  %2485 = vmatpush2.msra.mxu1 %v9389_v63 }
 0x4b4   :  { %2415 = vmatprep.subr.mxu0 %v9390_v20  ;;  %2486 = vmatprep.subr.mxu1 %v9391_v21  ;;  %v9409_v20 = vld [vmem:[#allocation30_spill] sm:$0xff] }
 0x4b5   :  { %2416 = vmatpush2.msra.mxu0 %v9392_v24  ;;  %2487 = vmatpush2.msra.mxu1 %v9393_v25 }
 0x4b6   :  { %2417 = vmatprep.subr.mxu0 %v9394_v28  ;;  %2488 = vmatprep.subr.mxu1 %v9395_v29  ;;  %v9410_v28 = vld [vmem:[#allocation32_spill] sm:$0xff] }
 0x4b7   :  { %2418 = vmatpush2.msra.mxu0 %v9396_v36  ;;  %2489 = vmatpush2.msra.mxu1 %v9397_v41 }
 0x4b8   :  { %2419 = vmatprep.subr.mxu0 %v9398_v46  ;;  %2490 = vmatprep.subr.mxu1 %v9399_v49  ;;  %v9411_v49 = vld [vmem:[#allocation33_spill] sm:$0xff] }
 0x4b9   :  { %2420 = vmatpush2.msra.mxu0 %v9400_v54  ;;  %2491 = vmatpush2.msra.mxu1 %v9401_v51 }
 0x4ba   :  { %2585 = vmatprep.subr.mxu0 %v9402_v32  ;;  %2656 = vmatprep.subr.mxu1 %v9403_v55 }
 0x518   :  { %v1899_v34 = vpop.f32.mrf.mxu0  ;;  %v1970_v35 = vpop.f32.mrf.mxu1 }
 0x519   :  { %v1900_v56 = vadd.f32 %v1899_v34, %v9404_v52  ;;  %v1971_v58 = vadd.f32 %v1970_v35, %v9407_v53  ;;  %v9412_v34 = vld [vmem:[#allocation31_spill] sm:$0xff] }
 0x51a   :  { %v1901_v59 = vpop.f32.mrf.mxu0  ;;  %v1972_v42 = vpop.f32.mrf.mxu1 }
 0x51b   :  { %v1975_v0 = vmul.f32 0.5, %v1900_v56  ;;  %v1902_v18 = vadd.f32 %v1901_v59, %v9405_v61  ;;  %v1973_v50 = vadd.f32 %v1972_v42, %v9406_v43  ;;  %v1977_v47 = vmul.f32 0.5, %v1971_v58 }
 0x51d   :  { %4865 = vtanh.f32 %v1975_v0  ;;  %v1976_v45 = vmul.f32 0.5, %v1902_v18 }
 0x51f   :  { %4867 = vtanh.f32 %v1976_v45 }
 0x520   :  { %4869 = vtanh.f32 %v1973_v50 }
 0x521   :  { %4871 = vtanh.f32 %v1977_v47 }
 0x52a   :  { %v4866_v37 = vpop.eup %4865 }
 0x52b   :  { %v1981_v38 = vmul.f32 0.5, %v4866_v37 }
 0x52c   :  { %v4868_v62 = vpop.eup %4867 }
 0x52d   :  { %v1984_v17 = vadd.f32 0.5, %v1981_v38  ;;  %v1982_v12 = vmul.f32 0.5, %v4868_v62  ;;  %v4870_v16 = vpop.eup %4869 }
 0x52e   :  { %v4872_v63 = vpop.eup %4871 }
 0x52f   :  { %v1985_v15 = vadd.f32 0.5, %v1982_v12  ;;  %v1989_v7 = vmul.f32 %v4870_v16, %v1984_v17  ;;  %v1983_v36 = vmul.f32 0.5, %v4872_v63  ;;  %v9427_v63 = vld [vmem:[#allocation146_spill] sm:$0xff] }
 0x531   :  { %v1988_v11 = vmul.f32 %v1985_v15, %v9408_v4  ;;  %v1986_v51 = vadd.f32 0.5, %v1983_v36  ;;  %v9414_v4 = vld [vmem:[#allocation139_spill] sm:$0xff] }
 0x532   :  { %v9434_v36 = vld [vmem:[#allocation159_spill] sm:$0xff] }
 0x533   :  { %v6846_v8 = vadd.f32 %v1989_v7, %v1988_v11  ;;  %v9415_v11 = vld [vmem:[#allocation134_spill] sm:$0xff]  ;;  %v9424_v7 = vld [vmem:[#allocation149_spill] sm:$0xff] }
 0x535   :  { %4873 = vtanh.f32 %v6846_v8 }
 0x539   :  { %v2127_v60 = vpop.f32.mrf.mxu0  ;;  %v2198_v3 = vpop.f32.mrf.mxu1 }
 0x53a   :  { %v2203_v21 = vadd.f32 %v2127_v60, %v9409_v20  ;;  %v2205_v35 = vadd.f32 %v2198_v3, %v9412_v34  ;;  %v9425_v60 = vld [vmem:[#allocation144_spill] sm:$0xff]  ;;  %v9426_v3 = vld [vmem:[#allocation151_spill] sm:$0xff]  ;;  %v9428_v20 = vld [vmem:[#allocation153_spill] sm:$0xff] }
 0x53b   :  { %v2129_v24 = vpop.f32.mrf.mxu0  ;;  %v2200_v41 = vpop.f32.mrf.mxu1  ;;  %v9442_v34 = vld [vmem:[#allocation167_spill] sm:$0xff] }
 0x53c   :  { %v2207_v25 = vmul.f32 0.5, %v2203_v21  ;;  %v2204_v29 = vadd.f32 %v2129_v24, %v9410_v28  ;;  %v2206_v54 = vadd.f32 %v2200_v41, %v9411_v49  ;;  %v2209_v56 = vmul.f32 0.5, %v2205_v35  ;;  %v9429_v21 = vld [vmem:[#allocation148_spill] sm:$0xff]  ;;  %v9430_v24 = vld [vmem:[#allocation155_spill] sm:$0xff]  ;;  %v9432_v28 = vld [vmem:[#allocation157_spill] sm:$0xff] }
 0x53d   :  { %v9435_v41 = vld [vmem:[#allocation154_spill] sm:$0xff]  ;;  %v9437_v49 = vld [vmem:[#allocation156_spill] sm:$0xff] }
 0x53e   :  { %4875 = vtanh.f32 %v2207_v25  ;;  %v2208_v46 = vmul.f32 0.5, %v2204_v29  ;;  %v9431_v25 = vld [vmem:[#allocation150_spill] sm:$0xff]  ;;  %v9433_v29 = vld [vmem:[#allocation152_spill] sm:$0xff] }
 0x53f   :  { %v9443_v35 = vld [vmem:[#allocation162_spill] sm:$0xff] }
 0x540   :  { %4877 = vtanh.f32 %v2208_v46  ;;  %v9436_v46 = vld [vmem:[#allocation161_spill] sm:$0xff] }
 0x541   :  { %4879 = vtanh.f32 %v2206_v54  ;;  %v9438_v54 = vld [vmem:[#allocation163_spill] sm:$0xff] }
 0x542   :  { %v4874_v32 = vpop.eup %4873  ;;  %4881 = vtanh.f32 %v2209_v56  ;;  %v9444_v56 = vld [vmem:[#allocation169_spill] sm:$0xff] }
 0x543   :  { %v1992_v55 = vmul.f32 %v4874_v32, %v1986_v51  ;;  %v9439_v51 = vld [vmem:[#allocation158_spill] sm:$0xff]  ;;  %v9440_v32 = vld [vmem:[#allocation165_spill] sm:$0xff] }
 0x545   :  { %2421 = vmatprep.mubr.f32.mxu0 %v1992_v55  ;;  %2492 = vmatprep.mubr.f32.mxu1 %v1992_v55  ;;  %v9441_v55 = vld [vmem:[#allocation160_spill] sm:$0xff] }
 0x54b   :  { %v4876_v59 = vpop.eup %4875 }
 0x54c   :  { %v2213_v0 = vmul.f32 0.5, %v4876_v59  ;;  %v9445_v59 = vld [vmem:[#allocation164_spill] sm:$0xff] }
 0x54d   :  { %v4878_v18 = vpop.eup %4877 }
 0x54e   :  { %v2216_v42 = vadd.f32 0.5, %v2213_v0  ;;  %v2214_v45 = vmul.f32 0.5, %v4878_v18  ;;  %v4880_v58 = vpop.eup %4879  ;;  %v9446_v0 = vld [vmem:[#allocation171_spill] sm:$0xff]  ;;  %v9447_v18 = vld [vmem:[#allocation166_spill] sm:$0xff] }
 0x54f   :  { %v4882_v62 = vpop.eup %4881 }
 0x550   :  { %v2217_v50 = vadd.f32 0.5, %v2214_v45  ;;  %v2221_v37 = vmul.f32 %v4880_v58, %v2216_v42  ;;  %v2215_v17 = vmul.f32 0.5, %v4882_v62  ;;  %v9448_v42 = vld [vmem:[#allocation173_spill] sm:$0xff]  ;;  %v9449_v45 = vld [vmem:[#allocation168_spill] sm:$0xff]  ;;  %v9451_v58 = vld [vmem:[#allocation170_spill] sm:$0xff] }
 0x551   :  { %v9454_v62 = vld [vmem:[#allocation174_spill] sm:$0xff] }
 0x552   :  { %v2220_v47 = vmul.f32 %v2217_v50, %v6514_v31  ;;  %v2218_v12 = vadd.f32 0.5, %v2215_v17  ;;  %v9413_v31 = vld [vmem:[#allocation132_spill] sm:$0xff]  ;;  %v9450_v50 = vld [vmem:[#allocation175_spill] sm:$0xff] }
 0x553   :  { %v9455_v17 = vld [vmem:[#allocation176_spill] sm:$0xff] }
 0x554   :  { %v6854_v38 = vadd.f32 %v2221_v37, %v2220_v47  ;;  %v9452_v47 = vld [vmem:[#allocation172_spill] sm:$0xff]  ;;  %v9453_v37 = vld [vmem:[#allocation178_spill] sm:$0xff] }
 0x556   :  { %4883 = vtanh.f32 %v6854_v38 }
 0x563   :  { %v4884_v15 = vpop.eup %4883 }
 0x564   :  { %v6857_v16 = vmul.f32 %v4884_v15, %v2218_v12  ;;  %v6959_v12 = vld [vmem:[#allocation5 + $0x1b0] sm:$0xff]  ;;  %v6963_v15 = vld [vmem:[#allocation5 + $0x188] sm:$0xff] }
 0x566   :  { %2422 = vmatmul.mubr.f32.vlgmr.msra.gmra.mxu0 %v6857_v16  ;;  %2493 = vmatmul.mubr.f32.vlgmr.msra.gmra.mxu1 %v6857_v16 }
 0x567   :  { %2586 = vmatpush1.msra.mxu0 %v6519_v9  ;;  %2657 = vmatpush1.msra.mxu1 %v6521_v57  ;;  %v9416_v9 = vld [vmem:[#allocation141_spill] sm:$0xff]  ;;  %v9417_v57 = vld [vmem:[#allocation136_spill] sm:$0xff] }
 0x568   :  { %2587 = vmatprep.subr.mxu0 %v6523_v19  ;;  %2658 = vmatprep.subr.mxu1 %v6525_v14  ;;  %v9418_v19 = vld [vmem:[#allocation143_spill] sm:$0xff]  ;;  %v9419_v14 = vld [vmem:[#allocation138_spill] sm:$0xff] }
 0x569   :  { %2588 = vmatpush1.msra.mxu0 %v6529_v5  ;;  %2659 = vmatpush1.msra.mxu1 %v6531_v13  ;;  %v9420_v5 = vld [vmem:[#allocation145_spill] sm:$0xff]  ;;  %v9421_v13 = vld [vmem:[#allocation140_spill] sm:$0xff] }
 0x56a   :  { %2589 = vmatprep.subr.mxu0 %v6535_v1  ;;  %2660 = vmatprep.subr.mxu1 %v6537_v22  ;;  %v9422_v1 = vld [vmem:[#allocation147_spill] sm:$0xff]  ;;  %v9423_v22 = vld [vmem:[#allocation142_spill] sm:$0xff] }
 0x56b   :  { %2590 = vmatpush1.msra.mxu0 %v9413_v31  ;;  %2661 = vmatpush1.msra.mxu1 %v9414_v4  ;;  %v6969_v31 = vld [vmem:[#allocation5 + $0x180] sm:$0xff]  ;;  %v6971_v4 = vld [vmem:[#allocation5 + $0x190] sm:$0xff] }
 0x56c   :  { %2591 = vmatprep.subr.mxu0 %v9415_v11  ;;  %2662 = vmatprep.subr.mxu1 %v9416_v9  ;;  %v6975_v11 = vld [vmem:[#allocation5 + $0x168] sm:$0xff]  ;;  %v6977_v9 = vld [vmem:[#allocation5 + $0x178] sm:$0xff] }
 0x56d   :  { %2592 = vmatpush1.msra.mxu0 %v9417_v57  ;;  %2663 = vmatpush1.msra.mxu1 %v9418_v19  ;;  %v6981_v57 = vld [vmem:[#allocation5 + $0x160] sm:$0xff]  ;;  %v6983_v19 = vld [vmem:[#allocation5 + $0x170] sm:$0xff] }
 0x56e   :  { %2593 = vmatprep.subr.mxu0 %v9419_v14  ;;  %2664 = vmatprep.subr.mxu1 %v9420_v5  ;;  %v6987_v14 = vld [vmem:[#allocation5 + $0x148] sm:$0xff]  ;;  %v6989_v5 = vld [vmem:[#allocation5 + $0x158] sm:$0xff] }
 0x56f   :  { %2594 = vmatpush1.msra.mxu0 %v9421_v13  ;;  %2665 = vmatpush1.msra.mxu1 %v9422_v1  ;;  %v6993_v13 = vld [vmem:[#allocation5 + $0x140] sm:$0xff]  ;;  %v6995_v1 = vld [vmem:[#allocation5 + $0x150] sm:$0xff] }
 0x570   :  { %2595 = vmatprep.subr.mxu0 %v9423_v22  ;;  %2666 = vmatprep.subr.mxu1 %v9424_v7  ;;  %v6999_v22 = vld [vmem:[#allocation5 + $0x128] sm:$0xff]  ;;  %v7001_v7 = vld [vmem:[#allocation5 + $0x138] sm:$0xff] }
 0x571   :  { %2596 = vmatpush1.msra.mxu0 %v9425_v60  ;;  %2667 = vmatpush1.msra.mxu1 %v9426_v3  ;;  %v7005_v60 = vld [vmem:[#allocation5 + $0x120] sm:$0xff]  ;;  %v7007_v3 = vld [vmem:[#allocation5 + $0x130] sm:$0xff] }
 0x572   :  { %2597 = vmatprep.subr.mxu0 %v9427_v63  ;;  %2668 = vmatprep.subr.mxu1 %v9428_v20  ;;  %v7011_v63 = vld [vmem:[#allocation5 + $0x108] sm:$0xff]  ;;  %v7013_v20 = vld [vmem:[#allocation5 + $0x118] sm:$0xff] }
 0x573   :  { %2598 = vmatpush1.msra.mxu0 %v9429_v21  ;;  %2669 = vmatpush1.msra.mxu1 %v9430_v24  ;;  %v7015_v21 = vld [vmem:[#allocation5 + $0x100] sm:$0xff]  ;;  %v7019_v24 = vld [vmem:[#allocation5 + $0x110] sm:$0xff] }
 0x574   :  { %2599 = vmatprep.subr.mxu0 %v9431_v25  ;;  %2670 = vmatprep.subr.mxu1 %v9432_v28  ;;  %v7021_v25 = vld [vmem:[#allocation5 + $0xe8] sm:$0xff]  ;;  %v7023_v28 = vld [vmem:[#allocation5 + $0xf8] sm:$0xff] }
 0x575   :  { %2600 = vmatpush1.msra.mxu0 %v9433_v29  ;;  %2671 = vmatpush1.msra.mxu1 %v9434_v36  ;;  %v7027_v29 = vld [vmem:[#allocation5 + $0xe0] sm:$0xff]  ;;  %v7029_v36 = vld [vmem:[#allocation5 + $0xf0] sm:$0xff] }
 0x576   :  { %2601 = vmatprep.subr.mxu0 %v9435_v41  ;;  %2672 = vmatprep.subr.mxu1 %v9436_v46  ;;  %v7031_v41 = vld [vmem:[#allocation5 + $0xc8] sm:$0xff]  ;;  %v7035_v46 = vld [vmem:[#allocation5 + $0xd8] sm:$0xff] }
 0x577   :  { %2602 = vmatpush1.msra.mxu0 %v9437_v49  ;;  %2673 = vmatpush1.msra.mxu1 %v9438_v54  ;;  %v7037_v49 = vld [vmem:[#allocation5 + $0xc0] sm:$0xff]  ;;  %v7039_v54 = vld [vmem:[#allocation5 + $0xd0] sm:$0xff] }
 0x578   :  { %2603 = vmatprep.subr.mxu0 %v9439_v51  ;;  %2674 = vmatprep.subr.mxu1 %v9440_v32  ;;  %v7047_v51 = vld [vmem:[#allocation5 + $0xa8] sm:$0xff]  ;;  %v7049_v32 = vld [vmem:[#allocation5 + $0xb8] sm:$0xff] }
 0x579   :  { %2604 = vmatpush1.msra.mxu0 %v9441_v55  ;;  %2675 = vmatpush1.msra.mxu1 %v9442_v34  ;;  %v7053_v55 = vld [vmem:[#allocation5 + $0xa0] sm:$0xff]  ;;  %v7055_v34 = vld [vmem:[#allocation5 + $0xb0] sm:$0xff] }
 0x57a   :  { %2605 = vmatprep.subr.mxu0 %v9443_v35  ;;  %2676 = vmatprep.subr.mxu1 %v9444_v56  ;;  %9456 = vst [vmem:[#allocation177_spill] sm:$0xff] %v7053_v55  ;;  %9457 = vst [vmem:[#allocation179_spill] sm:$0xff] %v7055_v34  ;;  %v7059_v35 = vld [vmem:[#allocation5 + $0x88] sm:$0xff]  ;;  %v7061_v56 = vld [vmem:[#allocation5 + $0x98] sm:$0xff] }
 0x57b   :  { %2606 = vmatpush1.msra.mxu0 %v9445_v59  ;;  %2677 = vmatpush1.msra.mxu1 %v9446_v0  ;;  %9458 = vst [vmem:[#allocation180_spill] sm:$0xff] %v7059_v35  ;;  %9459 = vst [vmem:[#allocation26_spill] sm:$0xff] %v7061_v56  ;;  %v7065_v59 = vld [vmem:[#allocation5 + $0x80] sm:$0xff]  ;;  %v7067_v0 = vld [vmem:[#allocation5 + $0x90] sm:$0xff] }
 0x57c   :  { %2607 = vmatprep.subr.mxu0 %v9447_v18  ;;  %2678 = vmatprep.subr.mxu1 %v9448_v42  ;;  %9460 = vst [vmem:[#allocation28_spill] sm:$0xff] %v7065_v59  ;;  %9461 = vst [vmem:[#allocation29_spill] sm:$0xff] %v7067_v0  ;;  %v7071_v18 = vld [vmem:[#allocation5 + $0x68] sm:$0xff]  ;;  %v7073_v42 = vld [vmem:[#allocation5 + $0x78] sm:$0xff] }
 0x57d   :  { %2608 = vmatpush1.msra.mxu0 %v9449_v45  ;;  %2679 = vmatpush1.msra.mxu1 %v9450_v50  ;;  %9462 = vst [vmem:[#allocation27_spill] sm:$0xff] %v7071_v18  ;;  %9463 = vst [vmem:[#allocation51_spill] sm:$0xff] %v7073_v42  ;;  %v7077_v45 = vld [vmem:[#allocation5 + $0x60] sm:$0xff]  ;;  %v7079_v50 = vld [vmem:[#allocation5 + $0x70] sm:$0xff] }
 0x57e   :  { %2609 = vmatprep.subr.mxu0 %v9451_v58  ;;  %2680 = vmatprep.subr.mxu1 %v9452_v47  ;;  %9464 = vst [vmem:[#allocation53_spill] sm:$0xff] %v7077_v45  ;;  %9465 = vst [vmem:[#allocation52_spill] sm:$0xff] %v7079_v50  ;;  %v7083_v58 = vld [vmem:[#allocation5 + $0x48] sm:$0xff]  ;;  %v7085_v47 = vld [vmem:[#allocation5 + $0x58] sm:$0xff] }
 0x57f   :  { %2610 = vmatpush1.msra.mxu0 %v9453_v37  ;;  %2681 = vmatpush1.msra.mxu1 %v9454_v62  ;;  %9466 = vst [vmem:[#allocation55_spill] sm:$0xff] %v7083_v58  ;;  %9467 = vst [vmem:[#allocation54_spill] sm:$0xff] %v7085_v47  ;;  %v7089_v37 = vld [vmem:[#allocation5 + $0x40] sm:$0xff]  ;;  %v7091_v62 = vld [vmem:[#allocation5 + $0x50] sm:$0xff] }
 0x580   :  { %2611 = vmatprep.subr.mxu0 %v6667_v48  ;;  %2682 = vmatprep.subr.mxu1 %v9455_v17  ;;  %v6953_v48 = vld [vmem:[#allocation5 + $0x1b8] sm:$0xff]  ;;  %9468 = vst [vmem:[#allocation57_spill] sm:$0xff] %v7089_v37  ;;  %9469 = vst [vmem:[#allocation56_spill] sm:$0xff] %v7091_v62  ;;  %v7095_v17 = vld [vmem:[#allocation5 + $0x28] sm:$0xff] }
 0x581   :  { %2612 = vmatpush1.msra.mxu0 %v6673_v6  ;;  %2683 = vmatpush1.msra.mxu1 %v6675_v23  ;;  %v6927_v6 = vld [vmem:[#allocation5 + $0x1e8] sm:$0xff]  ;;  %v6929_v23 = vld [vmem:[#allocation5 + $0x1f8] sm:$0xff]  ;;  %9470 = vst [vmem:[#allocation59_spill] sm:$0xff] %v7095_v17 }
 0x582   :  { %2613 = vmatprep.subr.mxu0 %v6679_v10  ;;  %2684 = vmatprep.subr.mxu1 %v6681_v26  ;;  %v6933_v10 = vld [vmem:[#allocation5 + $0x1e0] sm:$0xff]  ;;  %v6935_v26 = vld [vmem:[#allocation5 + $0x1f0] sm:$0xff] }
 0x583   :  { %2614 = vmatpush1.msra.mxu0 %v6685_v27  ;;  %2685 = vmatpush1.msra.mxu1 %v6687_v30  ;;  %v6939_v27 = vld [vmem:[#allocation5 + $0x1c8] sm:$0xff]  ;;  %v6941_v30 = vld [vmem:[#allocation5 + $0x1d8] sm:$0xff] }
 0x584   :  { %2615 = vmatprep.subr.mxu0 %v6691_v44  ;;  %2686 = vmatprep.subr.mxu1 %v6693_v40  ;;  %v6945_v44 = vld [vmem:[#allocation5 + $0x1c0] sm:$0xff]  ;;  %v6947_v40 = vld [vmem:[#allocation5 + $0x1d0] sm:$0xff] }
 0x585   :  { %2616 = vmatpush1.msra.mxu0 %v6697_v2  ;;  %2649 = vmatprep.mubr.f32.mxu0 %v9040_v33  ;;  %v6951_v2 = vld [vmem:[#allocation5 + $0x1a8] sm:$0xff] }
 0x586   :  { %2687 = vmatpush1.msra.mxu1 %v6701_v39  ;;  %2720 = vmatprep.mubr.f32.mxu1 %v9040_v33  ;;  %v6957_v39 = vld [vmem:[#allocation5 + $0x1a0] sm:$0xff] }
 0x587   :  { %2650 = vmatmul.mubr.f32.vlgmr.msra.gmra.mxu0 %v6857_v16  ;;  %2721 = vmatmul.mubr.f32.vlgmr.msra.gmra.mxu1 %v6857_v16  ;;  %v6965_v16 = vld [vmem:[#allocation5 + $0x198] sm:$0xff] }
 0x588   :  { %2881 = vmatprep.subr.mxu0 %v6927_v6  ;;  %2952 = vmatprep.subr.mxu1 %v6929_v23 }
 0x589   :  { %2882 = vmatpush1.msra.mxu0 %v6933_v10  ;;  %2953 = vmatpush1.msra.mxu1 %v6935_v26 }
 0x58a   :  { %2883 = vmatprep.subr.mxu0 %v6939_v27  ;;  %2954 = vmatprep.subr.mxu1 %v6941_v30 }
 0x58b   :  { %2884 = vmatpush1.msra.mxu0 %v6945_v44  ;;  %2955 = vmatpush1.msra.mxu1 %v6947_v40 }
 0x58c   :  { %2885 = vmatprep.subr.mxu0 %v6951_v2  ;;  %2956 = vmatprep.subr.mxu1 %v6953_v48 }
 0x58d   :  { %2886 = vmatpush1.msra.mxu0 %v6957_v39  ;;  %2957 = vmatpush1.msra.mxu1 %v6959_v12 }
 0x58e   :  { %2887 = vmatprep.subr.mxu0 %v6963_v15  ;;  %2958 = vmatprep.subr.mxu1 %v6965_v16 }
 0x58f   :  { %2888 = vmatpush1.msra.mxu0 %v6969_v31  ;;  %2959 = vmatpush1.msra.mxu1 %v6971_v4 }
 0x590   :  { %2889 = vmatprep.subr.mxu0 %v6975_v11  ;;  %2960 = vmatprep.subr.mxu1 %v6977_v9 }
 0x591   :  { %2890 = vmatpush1.msra.mxu0 %v6981_v57  ;;  %2961 = vmatpush1.msra.mxu1 %v6983_v19 }
 0x592   :  { %2891 = vmatprep.subr.mxu0 %v6987_v14  ;;  %2962 = vmatprep.subr.mxu1 %v6989_v5 }
 0x593   :  { %2892 = vmatpush1.msra.mxu0 %v6993_v13  ;;  %2963 = vmatpush1.msra.mxu1 %v6995_v1 }
 0x594   :  { %2893 = vmatprep.subr.mxu0 %v6999_v22  ;;  %2964 = vmatprep.subr.mxu1 %v7001_v7 }
 0x595   :  { %2894 = vmatpush1.msra.mxu0 %v7005_v60  ;;  %2965 = vmatpush1.msra.mxu1 %v7007_v3 }
 0x596   :  { %2895 = vmatprep.subr.mxu0 %v7011_v63  ;;  %2966 = vmatprep.subr.mxu1 %v7013_v20 }
 0x597   :  { %2896 = vmatpush1.msra.mxu0 %v7015_v21  ;;  %2967 = vmatpush1.msra.mxu1 %v7019_v24 }
 0x598   :  { %2897 = vmatprep.subr.mxu0 %v7021_v25  ;;  %2968 = vmatprep.subr.mxu1 %v7023_v28 }
 0x599   :  { %2898 = vmatpush1.msra.mxu0 %v7027_v29  ;;  %2969 = vmatpush1.msra.mxu1 %v7029_v36 }
 0x59a   :  { %2899 = vmatprep.subr.mxu0 %v7031_v41  ;;  %2970 = vmatprep.subr.mxu1 %v7035_v46 }
 0x59b   :  { %2900 = vmatpush1.msra.mxu0 %v7037_v49  ;;  %2971 = vmatpush1.msra.mxu1 %v7039_v54 }
 0x59c   :  { %2901 = vmatprep.subr.mxu0 %v7047_v51  ;;  %2972 = vmatprep.subr.mxu1 %v7049_v32 }
 0x59d   :  { %2902 = vmatpush1.msra.mxu0 %v7053_v55  ;;  %2973 = vmatpush1.msra.mxu1 %v7055_v34 }
 0x59e   :  { %2903 = vmatprep.subr.mxu0 %v7059_v35  ;;  %2974 = vmatprep.subr.mxu1 %v7061_v56 }
 0x59f   :  { %2904 = vmatpush1.msra.mxu0 %v7065_v59  ;;  %2975 = vmatpush1.msra.mxu1 %v7067_v0  ;;  %v7237_v0 = vld [vmem:[#allocation5 + $0x2b8] sm:$0xff]  ;;  %v7253_v59 = vld [vmem:[#allocation5 + $0x280] sm:$0xff] }
 0x5a0   :  { %2905 = vmatprep.subr.mxu0 %v7071_v18  ;;  %2976 = vmatprep.subr.mxu1 %v7073_v42  ;;  %v7221_v42 = vld [vmem:[#allocation5 + $0x2f0] sm:$0xff]  ;;  %v7229_v18 = vld [vmem:[#allocation5 + $0x2c0] sm:$0xff]  ;;  %9519 = vst [vmem:[#allocation106_spill] sm:$0xff] %v7237_v0  ;;  %9524 = vst [vmem:[#allocation113_spill] sm:$0xff] %v7253_v59 }
 0x5a1   :  { %2906 = vmatpush1.msra.mxu0 %v7077_v45  ;;  %2977 = vmatpush1.msra.mxu1 %v7079_v50  ;;  %v7097_v45 = vld [vmem:[#allocation5 + $0x38] sm:$0xff]  ;;  %v7101_v50 = vld [vmem:[#allocation5 + $0x20] sm:$0xff]  ;;  %9513 = vst [vmem:[#allocation100_spill] sm:$0xff] %v7221_v42  ;;  %9516 = vst [vmem:[#allocation105_spill] sm:$0xff] %v7229_v18 }
 0x5a2   :  { %2907 = vmatprep.subr.mxu0 %v7083_v58  ;;  %2978 = vmatprep.subr.mxu1 %v7085_v47  ;;  %9471 = vst [vmem:[#allocation58_spill] sm:$0xff] %v7097_v45  ;;  %9472 = vst [vmem:[#allocation61_spill] sm:$0xff] %v7101_v50  ;;  %v7103_v58 = vld [vmem:[#allocation5 + $0x30] sm:$0xff]  ;;  %v7107_v47 = vld [vmem:[#allocation5 + $0x8] sm:$0xff] }
 0x5a3   :  { %2908 = vmatpush1.msra.mxu0 %v7089_v37  ;;  %2979 = vmatpush1.msra.mxu1 %v7091_v62  ;;  %9473 = vst [vmem:[#allocation60_spill] sm:$0xff] %v7103_v58  ;;  %9474 = vst [vmem:[#allocation63_spill] sm:$0xff] %v7107_v47  ;;  %v7109_v37 = vld [vmem:[#allocation5 + $0x18] sm:$0xff]  ;;  %v7113_v62 = vld [vmem:[#allocation5] sm:$0xff] }
 0x5a4   :  { %2909 = vmatprep.subr.mxu0 %v7095_v17  ;;  %2980 = vmatprep.subr.mxu1 %v7097_v45  ;;  %9475 = vst [vmem:[#allocation62_spill] sm:$0xff] %v7109_v37  ;;  %9476 = vst [vmem:[#allocation65_spill] sm:$0xff] %v7113_v62  ;;  %v7115_v17 = vld [vmem:[#allocation5 + $0x10] sm:$0xff]  ;;  %v7119_v45 = vld [vmem:[#allocation5 + $0x3e8] sm:$0xff] }
 0x5a5   :  { %2910 = vmatpush1.msra.mxu0 %v7101_v50  ;;  %2981 = vmatpush1.msra.mxu1 %v7103_v58  ;;  %9477 = vst [vmem:[#allocation64_spill] sm:$0xff] %v7115_v17  ;;  %9478 = vst [vmem:[#allocation67_spill] sm:$0xff] %v7119_v45  ;;  %v7121_v50 = vld [vmem:[#allocation5 + $0x3f8] sm:$0xff]  ;;  %v7125_v58 = vld [vmem:[#allocation5 + $0x3e0] sm:$0xff] }
 0x5a6   :  { %2911 = vmatprep.subr.mxu0 %v7107_v47  ;;  %2982 = vmatprep.subr.mxu1 %v7109_v37  ;;  %9479 = vst [vmem:[#allocation66_spill] sm:$0xff] %v7121_v50  ;;  %9480 = vst [vmem:[#allocation69_spill] sm:$0xff] %v7125_v58  ;;  %v7127_v47 = vld [vmem:[#allocation5 + $0x3f0] sm:$0xff]  ;;  %v7131_v37 = vld [vmem:[#allocation5 + $0x3c8] sm:$0xff] }
 0x5a7   :  { %2912 = vmatpush1.msra.mxu0 %v7113_v62  ;;  %2983 = vmatpush1.msra.mxu1 %v7115_v17  ;;  %9481 = vst [vmem:[#allocation68_spill] sm:$0xff] %v7127_v47  ;;  %9482 = vst [vmem:[#allocation71_spill] sm:$0xff] %v7131_v37  ;;  %v7133_v62 = vld [vmem:[#allocation5 + $0x3d8] sm:$0xff]  ;;  %v7137_v17 = vld [vmem:[#allocation5 + $0x3c0] sm:$0xff] }
 0x5a8   :  { %2913 = vmatprep.subr.mxu0 %v7119_v45  ;;  %2984 = vmatprep.subr.mxu1 %v7121_v50  ;;  %9483 = vst [vmem:[#allocation70_spill] sm:$0xff] %v7133_v62  ;;  %9484 = vst [vmem:[#allocation73_spill] sm:$0xff] %v7137_v17  ;;  %v7139_v45 = vld [vmem:[#allocation5 + $0x3d0] sm:$0xff]  ;;  %v7143_v50 = vld [vmem:[#allocation5 + $0x3a8] sm:$0xff] }
 0x5a9   :  { %2914 = vmatpush2.msra.mxu0 %v7125_v58  ;;  %2985 = vmatpush2.msra.mxu1 %v7127_v47  ;;  %9485 = vst [vmem:[#allocation72_spill] sm:$0xff] %v7139_v45  ;;  %9486 = vst [vmem:[#allocation75_spill] sm:$0xff] %v7143_v50  ;;  %v7145_v58 = vld [vmem:[#allocation5 + $0x3b8] sm:$0xff]  ;;  %v7149_v47 = vld [vmem:[#allocation5 + $0x3a0] sm:$0xff] }
 0x5aa   :  { %2915 = vmatprep.subr.mxu0 %v7131_v37  ;;  %2986 = vmatprep.subr.mxu1 %v7133_v62  ;;  %9487 = vst [vmem:[#allocation74_spill] sm:$0xff] %v7145_v58  ;;  %9488 = vst [vmem:[#allocation77_spill] sm:$0xff] %v7149_v47  ;;  %v7151_v37 = vld [vmem:[#allocation5 + $0x3b0] sm:$0xff]  ;;  %v7155_v62 = vld [vmem:[#allocation5 + $0x388] sm:$0xff] }
 0x5ab   :  { %2916 = vmatpush2.msra.mxu0 %v7137_v17  ;;  %2987 = vmatpush2.msra.mxu1 %v7139_v45  ;;  %9489 = vst [vmem:[#allocation76_spill] sm:$0xff] %v7151_v37  ;;  %9490 = vst [vmem:[#allocation79_spill] sm:$0xff] %v7155_v62  ;;  %v7157_v17 = vld [vmem:[#allocation5 + $0x398] sm:$0xff]  ;;  %v7161_v45 = vld [vmem:[#allocation5 + $0x380] sm:$0xff] }
 0x5ac   :  { %2917 = vmatprep.subr.mxu0 %v7143_v50  ;;  %2988 = vmatprep.subr.mxu1 %v7145_v58  ;;  %9491 = vst [vmem:[#allocation78_spill] sm:$0xff] %v7157_v17  ;;  %9492 = vst [vmem:[#allocation81_spill] sm:$0xff] %v7161_v45  ;;  %v7163_v50 = vld [vmem:[#allocation5 + $0x390] sm:$0xff]  ;;  %v7167_v58 = vld [vmem:[#allocation5 + $0x368] sm:$0xff] }
 0x5ad   :  { %2918 = vmatpush2.msra.mxu0 %v7149_v47  ;;  %2989 = vmatpush2.msra.mxu1 %v7151_v37  ;;  %9493 = vst [vmem:[#allocation80_spill] sm:$0xff] %v7163_v50  ;;  %9494 = vst [vmem:[#allocation83_spill] sm:$0xff] %v7167_v58  ;;  %v7169_v47 = vld [vmem:[#allocation5 + $0x378] sm:$0xff]  ;;  %v7173_v37 = vld [vmem:[#allocation5 + $0x360] sm:$0xff] }
 0x5ae   :  { %2919 = vmatprep.subr.mxu0 %v7155_v62  ;;  %2990 = vmatprep.subr.mxu1 %v7157_v17  ;;  %9495 = vst [vmem:[#allocation82_spill] sm:$0xff] %v7169_v47  ;;  %9496 = vst [vmem:[#allocation85_spill] sm:$0xff] %v7173_v37  ;;  %v7175_v62 = vld [vmem:[#allocation5 + $0x370] sm:$0xff]  ;;  %v7179_v17 = vld [vmem:[#allocation5 + $0x348] sm:$0xff] }
 0x5af   :  { %2920 = vmatpush2.msra.mxu0 %v7161_v45  ;;  %2991 = vmatpush2.msra.mxu1 %v7163_v50  ;;  %9497 = vst [vmem:[#allocation84_spill] sm:$0xff] %v7175_v62  ;;  %9498 = vst [vmem:[#allocation87_spill] sm:$0xff] %v7179_v17  ;;  %v7181_v45 = vld [vmem:[#allocation5 + $0x358] sm:$0xff]  ;;  %v7185_v50 = vld [vmem:[#allocation5 + $0x340] sm:$0xff] }
 0x5b0   :  { %2921 = vmatprep.subr.mxu0 %v7167_v58  ;;  %2992 = vmatprep.subr.mxu1 %v7169_v47  ;;  %9499 = vst [vmem:[#allocation86_spill] sm:$0xff] %v7181_v45  ;;  %9500 = vst [vmem:[#allocation89_spill] sm:$0xff] %v7185_v50  ;;  %v7187_v58 = vld [vmem:[#allocation5 + $0x350] sm:$0xff]  ;;  %v7191_v47 = vld [vmem:[#allocation5 + $0x328] sm:$0xff] }
 0x5b1   :  { %2922 = vmatpush2.msra.mxu0 %v7173_v37  ;;  %2993 = vmatpush2.msra.mxu1 %v7175_v62  ;;  %9501 = vst [vmem:[#allocation88_spill] sm:$0xff] %v7187_v58  ;;  %9502 = vst [vmem:[#allocation91_spill] sm:$0xff] %v7191_v47  ;;  %v7193_v37 = vld [vmem:[#allocation5 + $0x338] sm:$0xff]  ;;  %v7197_v62 = vld [vmem:[#allocation5 + $0x320] sm:$0xff] }
 0x5b2   :  { %2923 = vmatprep.subr.mxu0 %v7179_v17  ;;  %2994 = vmatprep.subr.mxu1 %v7181_v45  ;;  %9503 = vst [vmem:[#allocation90_spill] sm:$0xff] %v7193_v37  ;;  %9504 = vst [vmem:[#allocation93_spill] sm:$0xff] %v7197_v62  ;;  %v7199_v17 = vld [vmem:[#allocation5 + $0x330] sm:$0xff]  ;;  %v7203_v45 = vld [vmem:[#allocation5 + $0x308] sm:$0xff] }
 0x5b3   :  { %2924 = vmatpush2.msra.mxu0 %v7185_v50  ;;  %2995 = vmatpush2.msra.mxu1 %v7187_v58  ;;  %9505 = vst [vmem:[#allocation92_spill] sm:$0xff] %v7199_v17  ;;  %9506 = vst [vmem:[#allocation95_spill] sm:$0xff] %v7203_v45  ;;  %v7205_v50 = vld [vmem:[#allocation5 + $0x318] sm:$0xff]  ;;  %v7209_v58 = vld [vmem:[#allocation5 + $0x300] sm:$0xff] }
 0x5b4   :  { %2925 = vmatprep.subr.mxu0 %v7191_v47  ;;  %2996 = vmatprep.subr.mxu1 %v7193_v37  ;;  %9507 = vst [vmem:[#allocation94_spill] sm:$0xff] %v7205_v50  ;;  %9508 = vst [vmem:[#allocation97_spill] sm:$0xff] %v7209_v58  ;;  %v7211_v47 = vld [vmem:[#allocation5 + $0x310] sm:$0xff]  ;;  %v7213_v37 = vld [vmem:[#allocation5 + $0x2e8] sm:$0xff] }
 0x5b5   :  { %2926 = vmatpush2.msra.mxu0 %v7197_v62  ;;  %2997 = vmatpush2.msra.mxu1 %v7199_v17  ;;  %9509 = vst [vmem:[#allocation96_spill] sm:$0xff] %v7211_v47  ;;  %9510 = vst [vmem:[#allocation99_spill] sm:$0xff] %v7213_v37  ;;  %v7217_v62 = vld [vmem:[#allocation5 + $0x2f8] sm:$0xff]  ;;  %v7219_v17 = vld [vmem:[#allocation5 + $0x2e0] sm:$0xff] }
 0x5b6   :  { %2927 = vmatprep.subr.mxu0 %v7203_v45  ;;  %2998 = vmatprep.subr.mxu1 %v7205_v50  ;;  %9511 = vst [vmem:[#allocation98_spill] sm:$0xff] %v7217_v62  ;;  %9512 = vst [vmem:[#allocation101_spill] sm:$0xff] %v7219_v17  ;;  %v7225_v50 = vld [vmem:[#allocation5 + $0x2c8] sm:$0xff]  ;;  %v7227_v45 = vld [vmem:[#allocation5 + $0x2d8] sm:$0xff] }
 0x5b7   :  { %2928 = vmatpush2.msra.mxu0 %v7209_v58  ;;  %2999 = vmatpush2.msra.mxu1 %v7211_v47  ;;  %9514 = vst [vmem:[#allocation103_spill] sm:$0xff] %v7225_v50  ;;  %9515 = vst [vmem:[#allocation102_spill] sm:$0xff] %v7227_v45  ;;  %v7233_v47 = vld [vmem:[#allocation5 + $0x2d0] sm:$0xff]  ;;  %v7235_v58 = vld [vmem:[#allocation5 + $0x2a8] sm:$0xff] }
 0x5b8   :  { %2929 = vmatprep.subr.mxu0 %v7213_v37  ;;  %3000 = vmatprep.subr.mxu1 %v7217_v62  ;;  %9517 = vst [vmem:[#allocation104_spill] sm:$0xff] %v7233_v47  ;;  %9518 = vst [vmem:[#allocation107_spill] sm:$0xff] %v7235_v58  ;;  %v7241_v62 = vld [vmem:[#allocation5 + $0x2a0] sm:$0xff]  ;;  %v7243_v37 = vld [vmem:[#allocation5 + $0x2b0] sm:$0xff] }
 0x5b9   :  { %2930 = vmatpush2.msra.mxu0 %v7219_v17  ;;  %3001 = vmatpush2.msra.mxu1 %v7221_v42  ;;  %9520 = vst [vmem:[#allocation109_spill] sm:$0xff] %v7241_v62  ;;  %9521 = vst [vmem:[#allocation108_spill] sm:$0xff] %v7243_v37  ;;  %v7247_v17 = vld [vmem:[#allocation5 + $0x288] sm:$0xff]  ;;  %v7249_v42 = vld [vmem:[#allocation5 + $0x298] sm:$0xff] }
 0x5ba   :  { %2931 = vmatprep.subr.mxu0 %v7225_v50  ;;  %3002 = vmatprep.subr.mxu1 %v7227_v45  ;;  %9522 = vst [vmem:[#allocation111_spill] sm:$0xff] %v7247_v17  ;;  %9523 = vst [vmem:[#allocation110_spill] sm:$0xff] %v7249_v42  ;;  %v7255_v50 = vld [vmem:[#allocation5 + $0x290] sm:$0xff]  ;;  %v7259_v45 = vld [vmem:[#allocation5 + $0x268] sm:$0xff] }
 0x5bb   :  { %2932 = vmatpush2.msra.mxu0 %v7229_v18  ;;  %3003 = vmatpush2.msra.mxu1 %v7233_v47  ;;  %9525 = vst [vmem:[#allocation112_spill] sm:$0xff] %v7255_v50  ;;  %9526 = vst [vmem:[#allocation115_spill] sm:$0xff] %v7259_v45  ;;  %v7261_v18 = vld [vmem:[#allocation5 + $0x278] sm:$0xff]  ;;  %v7265_v47 = vld [vmem:[#allocation5 + $0x260] sm:$0xff] }
 0x5bc   :  { %2933 = vmatprep.subr.mxu0 %v7235_v58  ;;  %3004 = vmatprep.subr.mxu1 %v7237_v0  ;;  %9527 = vst [vmem:[#allocation114_spill] sm:$0xff] %v7261_v18  ;;  %9528 = vst [vmem:[#allocation117_spill] sm:$0xff] %v7265_v47  ;;  %v7267_v58 = vld [vmem:[#allocation5 + $0x270] sm:$0xff]  ;;  %v7271_v0 = vld [vmem:[#allocation5 + $0x248] sm:$0xff] }
 0x5bd   :  { %2934 = vmatpush2.msra.mxu0 %v7241_v62  ;;  %3005 = vmatpush2.msra.mxu1 %v7243_v37  ;;  %9529 = vst [vmem:[#allocation116_spill] sm:$0xff] %v7267_v58  ;;  %9530 = vst [vmem:[#allocation119_spill] sm:$0xff] %v7271_v0  ;;  %v7273_v62 = vld [vmem:[#allocation5 + $0x258] sm:$0xff]  ;;  %v7277_v37 = vld [vmem:[#allocation5 + $0x240] sm:$0xff] }
 0x5be   :  { %2935 = vmatprep.subr.mxu0 %v7247_v17  ;;  %3006 = vmatprep.subr.mxu1 %v7249_v42  ;;  %9531 = vst [vmem:[#allocation118_spill] sm:$0xff] %v7273_v62  ;;  %9532 = vst [vmem:[#allocation121_spill] sm:$0xff] %v7277_v37  ;;  %v7279_v17 = vld [vmem:[#allocation5 + $0x250] sm:$0xff]  ;;  %v7283_v42 = vld [vmem:[#allocation5 + $0x228] sm:$0xff] }
 0x5bf   :  { %2936 = vmatpush2.msra.mxu0 %v7253_v59  ;;  %3007 = vmatpush2.msra.mxu1 %v7255_v50  ;;  %9533 = vst [vmem:[#allocation120_spill] sm:$0xff] %v7279_v17  ;;  %9534 = vst [vmem:[#allocation123_spill] sm:$0xff] %v7283_v42  ;;  %v7285_v59 = vld [vmem:[#allocation5 + $0x238] sm:$0xff]  ;;  %v7289_v50 = vld [vmem:[#allocation5 + $0x220] sm:$0xff] }
 0x5c0   :  { %2937 = vmatprep.subr.mxu0 %v7259_v45  ;;  %3008 = vmatprep.subr.mxu1 %v7261_v18  ;;  %9535 = vst [vmem:[#allocation122_spill] sm:$0xff] %v7285_v59  ;;  %9536 = vst [vmem:[#allocation125_spill] sm:$0xff] %v7289_v50  ;;  %v7291_v45 = vld [vmem:[#allocation5 + $0x230] sm:$0xff]  ;;  %v7295_v18 = vld [vmem:[#allocation5 + $0x208] sm:$0xff] }
 0x5c1   :  { %2938 = vmatpush2.msra.mxu0 %v7265_v47  ;;  %3009 = vmatpush2.msra.mxu1 %v7267_v58  ;;  %9537 = vst [vmem:[#allocation124_spill] sm:$0xff] %v7291_v45  ;;  %9538 = vst [vmem:[#allocation128_spill] sm:$0xff] %v7295_v18  ;;  %v7297_v47 = vld [vmem:[#allocation5 + $0x218] sm:$0xff]  ;;  %v7301_v58 = vld [vmem:[#allocation5 + $0x200] sm:$0xff] }
 0x5c2   :  { %2939 = vmatprep.subr.mxu0 %v7271_v0  ;;  %3010 = vmatprep.subr.mxu1 %v7273_v62  ;;  %9539 = vst [vmem:[#allocation126_spill] sm:$0xff] %v7297_v47  ;;  %9540 = vst [vmem:[#allocation130_spill] sm:$0xff] %v7301_v58  ;;  %v7303_v0 = vld [vmem:[#allocation5 + $0x210] sm:$0xff]  ;;  %v7307_v62 = vld [vmem:[#allocation4 + $0x1e8] sm:$0xff] }
 0x5c3   :  { %2940 = vmatpush2.msra.mxu0 %v7277_v37  ;;  %3011 = vmatpush2.msra.mxu1 %v7279_v17  ;;  %9541 = vst [vmem:[#allocation22_spill] sm:$0xff] %v7303_v0  ;;  %9542 = vst [vmem:[#allocation24_spill] sm:$0xff] %v7307_v62  ;;  %v7309_v37 = vld [vmem:[#allocation4 + $0x1f8] sm:$0xff] }
 0x5c4   :  { %2941 = vmatprep.subr.mxu0 %v7283_v42  ;;  %3012 = vmatprep.subr.mxu1 %v7285_v59  ;;  %9543 = vst [vmem:[#allocation25_spill] sm:$0xff] %v7309_v37 }
 0x5c5   :  { %2942 = vmatpush2.msra.mxu0 %v7289_v50  ;;  %3013 = vmatpush2.msra.mxu1 %v7291_v45 }
 0x5c6   :  { %2943 = vmatprep.subr.mxu0 %v7295_v18  ;;  %3014 = vmatprep.subr.mxu1 %v7297_v47 }
 0x5c7   :  { %2944 = vmatpush2.msra.mxu0 %v7301_v58  ;;  %3015 = vmatpush2.msra.mxu1 %v7303_v0 }
 0x5c8   :  { %3109 = vmatprep.subr.mxu0 %v7307_v62  ;;  %3180 = vmatprep.subr.mxu1 %v7309_v37 }
 0x626   :  { %v2423_v59 = vpop.f32.mrf.mxu0  ;;  %v2494_v50 = vpop.f32.mrf.mxu1 }
 0x627   :  { %v2424_v45 = vadd.f32 %v2423_v59, %v9404_v52  ;;  %v2495_v0 = vadd.f32 %v2494_v50, %v9407_v53  ;;  %v9545_v50 = vld [vmem:[#allocation34_spill] sm:$0xff]  ;;  %v9546_v53 = vld [vmem:[#allocation36_spill] sm:$0xff] }
 0x628   :  { %v2425_v42 = vpop.f32.mrf.mxu0  ;;  %v2496_v35 = vpop.f32.mrf.mxu1 }
 0x629   :  { %v2499_v17 = vmul.f32 0.5, %v2424_v45  ;;  %v2426_v56 = vadd.f32 %v2425_v42, %v9405_v61  ;;  %v2497_v58 = vadd.f32 %v2496_v35, %v9406_v43  ;;  %v2501_v62 = vmul.f32 0.5, %v2495_v0 }
 0x62b   :  { %4885 = vtanh.f32 %v2499_v17  ;;  %v2500_v18 = vmul.f32 0.5, %v2426_v56 }
 0x62d   :  { %4887 = vtanh.f32 %v2500_v18 }
 0x62e   :  { %4889 = vtanh.f32 %v2497_v58 }
 0x62f   :  { %4891 = vtanh.f32 %v2501_v62 }
 0x638   :  { %v4886_v47 = vpop.eup %4885 }
 0x639   :  { %v2505_v37 = vmul.f32 0.5, %v4886_v47 }
 0x63a   :  { %v4888_v34 = vpop.eup %4887 }
 0x63b   :  { %v2508_v55 = vadd.f32 0.5, %v2505_v37  ;;  %v2506_v59 = vmul.f32 0.5, %v4888_v34  ;;  %v4890_v45 = vpop.eup %4889 }
 0x63c   :  { %v4892_v18 = vpop.eup %4891 }
 0x63d   :  { %v2509_v52 = vadd.f32 0.5, %v2506_v59  ;;  %v2513_v61 = vmul.f32 %v4890_v45, %v2508_v55  ;;  %v2507_v62 = vmul.f32 0.5, %v4892_v18 }
 0x63f   :  { %v2512_v42 = vmul.f32 %v2509_v52, %v6846_v8  ;;  %v9547_v52 = vld [vmem:[#allocation37_spill] sm:$0xff] }
 0x641   :  { %v7322_v17 = vadd.f32 %v2513_v61, %v2512_v42  ;;  %v2510_v61 = vadd.f32 0.5, %v2507_v62  ;;  %v9548_v42 = vld [vmem:[#allocation35_spill] sm:$0xff] }
 0x643   :  { %9544 = vst [vmem:[#allocation23_spill] sm:$0xff] %v7322_v17  ;;  %4893 = vtanh.f32 %v7322_v17 }
 0x647   :  { %v2651_v35 = vpop.f32.mrf.mxu0  ;;  %v2722_v56 = vpop.f32.mrf.mxu1 }
 0x648   :  { %v2727_v0 = vadd.f32 %v2651_v35, %v9545_v50  ;;  %v2729_v17 = vadd.f32 %v2722_v56, %v9548_v42  ;;  %v7347_v42 = vld [vmem:[#allocation4 + $0x1d0] sm:$0xff] }
 0x649   :  { %v2653_v58 = vpop.f32.mrf.mxu0  ;;  %v2724_v34 = vpop.f32.mrf.mxu1 }
 0x64a   :  { %v2731_v47 = vmul.f32 0.5, %v2727_v0  ;;  %v2728_v37 = vadd.f32 %v2653_v58, %v9546_v53  ;;  %v2730_v8 = vadd.f32 %v2724_v34, %v9547_v52  ;;  %v2733_v35 = vmul.f32 0.5, %v2729_v17 }
 0x64c   :  { %4895 = vtanh.f32 %v2731_v47  ;;  %v2732_v59 = vmul.f32 0.5, %v2728_v37 }
 0x64e   :  { %4897 = vtanh.f32 %v2732_v59 }
 0x64f   :  { %4899 = vtanh.f32 %v2730_v8 }
 0x650   :  { %v4894_v55 = vpop.eup %4893  ;;  %4901 = vtanh.f32 %v2733_v35  ;;  %v7351_v35 = vld [vmem:[#allocation4 + $0x1a8] sm:$0xff] }
 0x651   :  { %v2516_v45 = vmul.f32 %v4894_v55, %v2510_v61  ;;  %v7335_v61 = vld [vmem:[#allocation4 + $0x1e0] sm:$0xff]  ;;  %v7337_v55 = vld [vmem:[#allocation4 + $0x1f0] sm:$0xff] }
 0x653   :  { %2945 = vmatprep.mubr.f32.mxu0 %v2516_v45  ;;  %3016 = vmatprep.mubr.f32.mxu1 %v2516_v45  ;;  %v7341_v45 = vld [vmem:[#allocation4 + $0x1d8] sm:$0xff] }
 0x659   :  { %v4896_v50 = vpop.eup %4895 }
 0x65a   :  { %v2737_v0 = vmul.f32 0.5, %v4896_v50  ;;  %v7353_v50 = vld [vmem:[#allocation4 + $0x1b8] sm:$0xff] }
 0x65b   :  { %v4898_v43 = vpop.eup %4897 }
 0x65c   :  { %v2740_v53 = vadd.f32 0.5, %v2737_v0  ;;  %v2738_v18 = vmul.f32 0.5, %v4898_v43  ;;  %v4900_v47 = vpop.eup %4899  ;;  %v7339_v43 = vld [vmem:[#allocation4 + $0x1c8] sm:$0xff]  ;;  %v7357_v0 = vld [vmem:[#allocation4 + $0x1a0] sm:$0xff] }
 0x65d   :  { %v4902_v59 = vpop.eup %4901  ;;  %9549 = vst [vmem:[#allocation50_spill] sm:$0xff] %v7357_v0 }
 0x65e   :  { %v2741_v58 = vadd.f32 0.5, %v2738_v18  ;;  %v2745_v34 = vmul.f32 %v4900_v47, %v2740_v53  ;;  %v2739_v52 = vmul.f32 0.5, %v4902_v59  ;;  %v7359_v53 = vld [vmem:[#allocation4 + $0x1b0] sm:$0xff]  ;;  %v7363_v18 = vld [vmem:[#allocation4 + $0x188] sm:$0xff]  ;;  %v7369_v47 = vld [vmem:[#allocation4 + $0x180] sm:$0xff] }
 0x65f   :  { %9550 = vst [vmem:[#allocation127_spill] sm:$0xff] %v7359_v53  ;;  %9551 = vst [vmem:[#allocation133_spill] sm:$0xff] %v7363_v18  ;;  %v7377_v59 = vld [vmem:[#allocation4 + $0x178] sm:$0xff] }
 0x660   :  { %v2744_v37 = vmul.f32 %v2741_v58, %v6854_v38  ;;  %v2742_v8 = vadd.f32 0.5, %v2739_v52  ;;  %v7345_v38 = vld [vmem:[#allocation4 + $0x1c0] sm:$0xff]  ;;  %v7365_v58 = vld [vmem:[#allocation4 + $0x198] sm:$0xff]  ;;  %9553 = vst [vmem:[#allocation135_spill] sm:$0xff] %v7369_v47  ;;  %9556 = vst [vmem:[#allocation30_spill] sm:$0xff] %v7377_v59 }
 0x661   :  { %9552 = vst [vmem:[#allocation129_spill] sm:$0xff] %v7365_v58  ;;  %v7381_v52 = vld [vmem:[#allocation4 + $0x160] sm:$0xff] }
 0x662   :  { %v7330_v62 = vadd.f32 %v2745_v34, %v2744_v37  ;;  %v7371_v37 = vld [vmem:[#allocation4 + $0x190] sm:$0xff]  ;;  %v7375_v34 = vld [vmem:[#allocation4 + $0x168] sm:$0xff]  ;;  %9557 = vst [vmem:[#allocation32_spill] sm:$0xff] %v7381_v52 }
 0x663   :  { %9554 = vst [vmem:[#allocation131_spill] sm:$0xff] %v7371_v37  ;;  %9555 = vst [vmem:[#allocation137_spill] sm:$0xff] %v7375_v34 }
 0x664   :  { %4903 = vtanh.f32 %v7330_v62 }
 0x671   :  { %v4904_v56 = vpop.eup %4903 }
 0x672   :  { %v7333_v17 = vmul.f32 %v4904_v56, %v2742_v8  ;;  %v7383_v8 = vld [vmem:[#allocation4 + $0x170] sm:$0xff]  ;;  %v7387_v56 = vld [vmem:[#allocation4 + $0x148] sm:$0xff] }
 0x673   :  { %9558 = vst [vmem:[#allocation33_spill] sm:$0xff] %v7383_v8  ;;  %9559 = vst [vmem:[#allocation31_spill] sm:$0xff] %v7387_v56 }
 0x674   :  { %2946 = vmatmul.mubr.f32.vlgmr.msra.gmra.mxu0 %v7333_v17  ;;  %3017 = vmatmul.mubr.f32.vlgmr.msra.gmra.mxu1 %v7333_v17 }
 0x675   :  { %3110 = vmatpush1.msra.mxu0 %v7335_v61  ;;  %3181 = vmatpush1.msra.mxu1 %v7337_v55 }
 0x676   :  { %3111 = vmatprep.subr.mxu0 %v7339_v43  ;;  %3182 = vmatprep.subr.mxu1 %v7341_v45 }
 0x677   :  { %3112 = vmatpush1.msra.mxu0 %v7345_v38  ;;  %3183 = vmatpush1.msra.mxu1 %v7347_v42 }
 0x678   :  { %3113 = vmatprep.subr.mxu0 %v7351_v35  ;;  %3184 = vmatprep.subr.mxu1 %v7353_v50 }
 0x679   :  { %3114 = vmatpush1.msra.mxu0 %v7357_v0  ;;  %3185 = vmatpush1.msra.mxu1 %v7359_v53  ;;  %v7389_v0 = vld [vmem:[#allocation4 + $0x158] sm:$0xff]  ;;  %v7393_v53 = vld [vmem:[#allocation4 + $0x140] sm:$0xff] }
 0x67a   :  { %3115 = vmatprep.subr.mxu0 %v7363_v18  ;;  %3186 = vmatprep.subr.mxu1 %v7365_v58  ;;  %9560 = vst [vmem:[#allocation132_spill] sm:$0xff] %v7389_v0  ;;  %9561 = vst [vmem:[#allocation139_spill] sm:$0xff] %v7393_v53  ;;  %v7395_v18 = vld [vmem:[#allocation4 + $0x150] sm:$0xff]  ;;  %v7399_v58 = vld [vmem:[#allocation4 + $0x128] sm:$0xff] }
 0x67b   :  { %3116 = vmatpush1.msra.mxu0 %v7369_v47  ;;  %3187 = vmatpush1.msra.mxu1 %v7371_v37  ;;  %9562 = vst [vmem:[#allocation134_spill] sm:$0xff] %v7395_v18  ;;  %9563 = vst [vmem:[#allocation141_spill] sm:$0xff] %v7399_v58  ;;  %v7401_v47 = vld [vmem:[#allocation4 + $0x138] sm:$0xff]  ;;  %v7405_v37 = vld [vmem:[#allocation4 + $0x120] sm:$0xff] }
 0x67c   :  { %3117 = vmatprep.subr.mxu0 %v7375_v34  ;;  %3188 = vmatprep.subr.mxu1 %v7377_v59  ;;  %9564 = vst [vmem:[#allocation136_spill] sm:$0xff] %v7401_v47  ;;  %9565 = vst [vmem:[#allocation143_spill] sm:$0xff] %v7405_v37  ;;  %v7407_v34 = vld [vmem:[#allocation4 + $0x130] sm:$0xff]  ;;  %v7411_v59 = vld [vmem:[#allocation4 + $0x108] sm:$0xff] }
 0x67d   :  { %3118 = vmatpush1.msra.mxu0 %v7381_v52  ;;  %3189 = vmatpush1.msra.mxu1 %v7383_v8  ;;  %9566 = vst [vmem:[#allocation138_spill] sm:$0xff] %v7407_v34  ;;  %9567 = vst [vmem:[#allocation145_spill] sm:$0xff] %v7411_v59  ;;  %v7413_v52 = vld [vmem:[#allocation4 + $0x118] sm:$0xff]  ;;  %v7417_v8 = vld [vmem:[#allocation4 + $0x100] sm:$0xff] }
 0x67e   :  { %3119 = vmatprep.subr.mxu0 %v7387_v56  ;;  %3190 = vmatprep.subr.mxu1 %v7389_v0  ;;  %9568 = vst [vmem:[#allocation140_spill] sm:$0xff] %v7413_v52  ;;  %9569 = vst [vmem:[#allocation147_spill] sm:$0xff] %v7417_v8  ;;  %v7419_v56 = vld [vmem:[#allocation4 + $0x110] sm:$0xff]  ;;  %v7423_v0 = vld [vmem:[#allocation4 + $0xe8] sm:$0xff] }
 0x67f   :  { %3120 = vmatpush1.msra.mxu0 %v7393_v53  ;;  %3191 = vmatpush1.msra.mxu1 %v7395_v18  ;;  %9570 = vst [vmem:[#allocation142_spill] sm:$0xff] %v7419_v56  ;;  %9571 = vst [vmem:[#allocation149_spill] sm:$0xff] %v7423_v0  ;;  %v7425_v53 = vld [vmem:[#allocation4 + $0xf8] sm:$0xff]  ;;  %v7429_v18 = vld [vmem:[#allocation4 + $0xe0] sm:$0xff] }
 0x680   :  { %3121 = vmatprep.subr.mxu0 %v7399_v58  ;;  %3192 = vmatprep.subr.mxu1 %v7401_v47  ;;  %9572 = vst [vmem:[#allocation144_spill] sm:$0xff] %v7425_v53  ;;  %9573 = vst [vmem:[#allocation151_spill] sm:$0xff] %v7429_v18  ;;  %v7431_v58 = vld [vmem:[#allocation4 + $0xf0] sm:$0xff]  ;;  %v7435_v47 = vld [vmem:[#allocation4 + $0xc8] sm:$0xff] }
 0x681   :  { %3122 = vmatpush1.msra.mxu0 %v7405_v37  ;;  %3193 = vmatpush1.msra.mxu1 %v7407_v34  ;;  %9574 = vst [vmem:[#allocation146_spill] sm:$0xff] %v7431_v58  ;;  %9575 = vst [vmem:[#allocation153_spill] sm:$0xff] %v7435_v47  ;;  %v7437_v37 = vld [vmem:[#allocation4 + $0xd8] sm:$0xff]  ;;  %v7441_v34 = vld [vmem:[#allocation4 + $0xc0] sm:$0xff] }
 0x682   :  { %3123 = vmatprep.subr.mxu0 %v7411_v59  ;;  %3194 = vmatprep.subr.mxu1 %v7413_v52  ;;  %9576 = vst [vmem:[#allocation148_spill] sm:$0xff] %v7437_v37  ;;  %9577 = vst [vmem:[#allocation155_spill] sm:$0xff] %v7441_v34  ;;  %v7443_v59 = vld [vmem:[#allocation4 + $0xd0] sm:$0xff]  ;;  %v7447_v52 = vld [vmem:[#allocation4 + $0xa8] sm:$0xff] }
 0x683   :  { %3124 = vmatpush1.msra.mxu0 %v7417_v8  ;;  %3195 = vmatpush1.msra.mxu1 %v7419_v56  ;;  %9578 = vst [vmem:[#allocation150_spill] sm:$0xff] %v7443_v59  ;;  %9579 = vst [vmem:[#allocation157_spill] sm:$0xff] %v7447_v52  ;;  %v7449_v8 = vld [vmem:[#allocation4 + $0xb8] sm:$0xff]  ;;  %v7453_v56 = vld [vmem:[#allocation4 + $0xa0] sm:$0xff] }
 0x684   :  { %3125 = vmatprep.subr.mxu0 %v7423_v0  ;;  %3196 = vmatprep.subr.mxu1 %v7425_v53  ;;  %9580 = vst [vmem:[#allocation152_spill] sm:$0xff] %v7449_v8  ;;  %9581 = vst [vmem:[#allocation159_spill] sm:$0xff] %v7453_v56  ;;  %v7455_v0 = vld [vmem:[#allocation4 + $0xb0] sm:$0xff]  ;;  %v7459_v53 = vld [vmem:[#allocation4 + $0x88] sm:$0xff] }
 0x685   :  { %3126 = vmatpush1.msra.mxu0 %v7429_v18  ;;  %3197 = vmatpush1.msra.mxu1 %v7431_v58  ;;  %9582 = vst [vmem:[#allocation154_spill] sm:$0xff] %v7455_v0  ;;  %9583 = vst [vmem:[#allocation161_spill] sm:$0xff] %v7459_v53  ;;  %v7461_v18 = vld [vmem:[#allocation4 + $0x98] sm:$0xff]  ;;  %v7465_v58 = vld [vmem:[#allocation4 + $0x80] sm:$0xff] }
 0x686   :  { %3127 = vmatprep.subr.mxu0 %v7435_v47  ;;  %3198 = vmatprep.subr.mxu1 %v7437_v37  ;;  %9584 = vst [vmem:[#allocation156_spill] sm:$0xff] %v7461_v18  ;;  %9585 = vst [vmem:[#allocation163_spill] sm:$0xff] %v7465_v58  ;;  %v7467_v47 = vld [vmem:[#allocation4 + $0x90] sm:$0xff]  ;;  %v7471_v37 = vld [vmem:[#allocation4 + $0x68] sm:$0xff] }
 0x687   :  { %3128 = vmatpush1.msra.mxu0 %v7441_v34  ;;  %3199 = vmatpush1.msra.mxu1 %v7443_v59  ;;  %9586 = vst [vmem:[#allocation158_spill] sm:$0xff] %v7467_v47  ;;  %9587 = vst [vmem:[#allocation165_spill] sm:$0xff] %v7471_v37  ;;  %v7473_v34 = vld [vmem:[#allocation4 + $0x78] sm:$0xff]  ;;  %v7477_v59 = vld [vmem:[#allocation4 + $0x60] sm:$0xff] }
 0x688   :  { %3129 = vmatprep.subr.mxu0 %v7447_v52  ;;  %3200 = vmatprep.subr.mxu1 %v7449_v8  ;;  %9588 = vst [vmem:[#allocation160_spill] sm:$0xff] %v7473_v34  ;;  %9589 = vst [vmem:[#allocation167_spill] sm:$0xff] %v7477_v59  ;;  %v7479_v52 = vld [vmem:[#allocation4 + $0x70] sm:$0xff]  ;;  %v7483_v8 = vld [vmem:[#allocation4 + $0x48] sm:$0xff] }
 0x689   :  { %3130 = vmatpush1.msra.mxu0 %v7453_v56  ;;  %3201 = vmatpush1.msra.mxu1 %v7455_v0  ;;  %9590 = vst [vmem:[#allocation162_spill] sm:$0xff] %v7479_v52  ;;  %v7485_v56 = vld [vmem:[#allocation4 + $0x58] sm:$0xff]  ;;  %v7489_v0 = vld [vmem:[#allocation4 + $0x40] sm:$0xff] }
 0x68a   :  { %3131 = vmatprep.subr.mxu0 %v7459_v53  ;;  %3202 = vmatprep.subr.mxu1 %v7461_v18  ;;  %9591 = vst [vmem:[#allocation169_spill] sm:$0xff] %v7485_v56  ;;  %v7491_v53 = vld [vmem:[#allocation4 + $0x50] sm:$0xff]  ;;  %v7495_v18 = vld [vmem:[#allocation4 + $0x28] sm:$0xff] }
 0x68b   :  { %3132 = vmatpush1.msra.mxu0 %v7465_v58  ;;  %3203 = vmatpush1.msra.mxu1 %v7467_v47  ;;  %v7497_v58 = vld [vmem:[#allocation4 + $0x38] sm:$0xff]  ;;  %v7501_v47 = vld [vmem:[#allocation4 + $0x20] sm:$0xff] }
 0x68c   :  { %3133 = vmatprep.subr.mxu0 %v7471_v37  ;;  %3204 = vmatprep.subr.mxu1 %v7473_v34  ;;  %v7503_v37 = vld [vmem:[#allocation4 + $0x30] sm:$0xff]  ;;  %v7507_v34 = vld [vmem:[#allocation4 + $0x8] sm:$0xff] }
 0x68d   :  { %3134 = vmatpush1.msra.mxu0 %v7477_v59  ;;  %3205 = vmatpush1.msra.mxu1 %v7479_v52  ;;  %v7509_v59 = vld [vmem:[#allocation4 + $0x18] sm:$0xff]  ;;  %v7513_v52 = vld [vmem:[#allocation4] sm:$0xff] }
 0x68e   :  { %3135 = vmatprep.subr.mxu0 %v7483_v8  ;;  %3206 = vmatprep.subr.mxu1 %v7485_v56  ;;  %v7517_v56 = vld [vmem:[#allocation4 + $0x10] sm:$0xff] }
 0x68f   :  { %3136 = vmatpush1.msra.mxu0 %v7489_v0  ;;  %3207 = vmatpush1.msra.mxu1 %v7491_v53 }
 0x690   :  { %3137 = vmatprep.subr.mxu0 %v7495_v18  ;;  %3208 = vmatprep.subr.mxu1 %v7497_v58 }
 0x691   :  { %3138 = vmatpush1.msra.mxu0 %v7501_v47  ;;  %3209 = vmatpush1.msra.mxu1 %v7503_v37 }
 0x692   :  { %3139 = vmatprep.subr.mxu0 %v7507_v34  ;;  %3210 = vmatprep.subr.mxu1 %v7509_v59 }
 0x693   :  { %3140 = vmatpush1.msra.mxu0 %v7513_v52  ;;  %3173 = vmatprep.mubr.f32.mxu0 %v9040_v33 }
 0x694   :  { %3211 = vmatpush1.msra.mxu1 %v7517_v56  ;;  %3244 = vmatprep.mubr.f32.mxu1 %v9040_v33 }
 0x695   :  { %3174 = vmatmul.mubr.f32.vlgmr.msra.gmra.mxu0 %v7333_v17  ;;  %3245 = vmatmul.mubr.f32.vlgmr.msra.gmra.mxu1 %v7333_v17  ;;  %v9634_v17 = vld [vmem:[#allocation87_spill] sm:$0xff] }
 0x696   :  { %3405 = vmatprep.subr.mxu0 %v6927_v6  ;;  %3476 = vmatprep.subr.mxu1 %v6929_v23  ;;  %v9592_v6 = vld [vmem:[#allocation177_spill] sm:$0xff]  ;;  %v9593_v23 = vld [vmem:[#allocation179_spill] sm:$0xff] }
 0x697   :  { %3406 = vmatpush1.msra.mxu0 %v6933_v10  ;;  %3477 = vmatpush1.msra.mxu1 %v6935_v26  ;;  %v9594_v10 = vld [vmem:[#allocation180_spill] sm:$0xff]  ;;  %v9595_v26 = vld [vmem:[#allocation26_spill] sm:$0xff] }
 0x698   :  { %3407 = vmatprep.subr.mxu0 %v6939_v27  ;;  %3478 = vmatprep.subr.mxu1 %v6941_v30  ;;  %v9596_v27 = vld [vmem:[#allocation28_spill] sm:$0xff]  ;;  %v9597_v30 = vld [vmem:[#allocation29_spill] sm:$0xff] }
 0x699   :  { %3408 = vmatpush1.msra.mxu0 %v6945_v44  ;;  %3479 = vmatpush1.msra.mxu1 %v6947_v40  ;;  %v9598_v44 = vld [vmem:[#allocation27_spill] sm:$0xff] }
 0x69a   :  { %3409 = vmatprep.subr.mxu0 %v6951_v2  ;;  %3480 = vmatprep.subr.mxu1 %v6953_v48  ;;  %v9599_v40 = vld [vmem:[#allocation51_spill] sm:$0xff]  ;;  %v9600_v2 = vld [vmem:[#allocation53_spill] sm:$0xff]  ;;  %v9601_v48 = vld [vmem:[#allocation52_spill] sm:$0xff] }
 0x69b   :  { %3410 = vmatpush1.msra.mxu0 %v6957_v39  ;;  %3481 = vmatpush1.msra.mxu1 %v6959_v12  ;;  %v9602_v39 = vld [vmem:[#allocation55_spill] sm:$0xff]  ;;  %v9603_v12 = vld [vmem:[#allocation54_spill] sm:$0xff] }
 0x69c   :  { %3411 = vmatprep.subr.mxu0 %v6963_v15  ;;  %3482 = vmatprep.subr.mxu1 %v6965_v16  ;;  %v9604_v15 = vld [vmem:[#allocation57_spill] sm:$0xff]  ;;  %v9605_v16 = vld [vmem:[#allocation56_spill] sm:$0xff] }
 0x69d   :  { %3412 = vmatpush1.msra.mxu0 %v6969_v31  ;;  %3483 = vmatpush1.msra.mxu1 %v6971_v4  ;;  %v9606_v31 = vld [vmem:[#allocation59_spill] sm:$0xff]  ;;  %v9607_v4 = vld [vmem:[#allocation58_spill] sm:$0xff] }
 0x69e   :  { %3413 = vmatprep.subr.mxu0 %v6975_v11  ;;  %3484 = vmatprep.subr.mxu1 %v6977_v9  ;;  %v9608_v11 = vld [vmem:[#allocation61_spill] sm:$0xff]  ;;  %v9609_v9 = vld [vmem:[#allocation60_spill] sm:$0xff] }
 0x69f   :  { %3414 = vmatpush1.msra.mxu0 %v6981_v57  ;;  %3485 = vmatpush1.msra.mxu1 %v6983_v19  ;;  %v9610_v57 = vld [vmem:[#allocation63_spill] sm:$0xff]  ;;  %v9611_v19 = vld [vmem:[#allocation62_spill] sm:$0xff] }
 0x6a0   :  { %3415 = vmatprep.subr.mxu0 %v6987_v14  ;;  %3486 = vmatprep.subr.mxu1 %v6989_v5  ;;  %v9612_v14 = vld [vmem:[#allocation65_spill] sm:$0xff]  ;;  %v9613_v5 = vld [vmem:[#allocation64_spill] sm:$0xff] }
 0x6a1   :  { %3416 = vmatpush1.msra.mxu0 %v6993_v13  ;;  %3487 = vmatpush1.msra.mxu1 %v6995_v1  ;;  %v9614_v13 = vld [vmem:[#allocation67_spill] sm:$0xff]  ;;  %v9615_v1 = vld [vmem:[#allocation66_spill] sm:$0xff] }
 0x6a2   :  { %3417 = vmatprep.subr.mxu0 %v6999_v22  ;;  %3488 = vmatprep.subr.mxu1 %v7001_v7  ;;  %v9616_v22 = vld [vmem:[#allocation69_spill] sm:$0xff]  ;;  %v9617_v7 = vld [vmem:[#allocation68_spill] sm:$0xff] }
 0x6a3   :  { %3418 = vmatpush1.msra.mxu0 %v7005_v60  ;;  %3489 = vmatpush1.msra.mxu1 %v7007_v3  ;;  %v9618_v60 = vld [vmem:[#allocation71_spill] sm:$0xff]  ;;  %v9619_v3 = vld [vmem:[#allocation70_spill] sm:$0xff] }
 0x6a4   :  { %3419 = vmatprep.subr.mxu0 %v7011_v63  ;;  %3490 = vmatprep.subr.mxu1 %v7013_v20  ;;  %v9620_v63 = vld [vmem:[#allocation73_spill] sm:$0xff]  ;;  %v9621_v20 = vld [vmem:[#allocation72_spill] sm:$0xff] }
 0x6a5   :  { %3420 = vmatpush1.msra.mxu0 %v7015_v21  ;;  %3491 = vmatpush1.msra.mxu1 %v7019_v24  ;;  %v9622_v21 = vld [vmem:[#allocation75_spill] sm:$0xff]  ;;  %v9623_v24 = vld [vmem:[#allocation74_spill] sm:$0xff] }
 0x6a6   :  { %3421 = vmatprep.subr.mxu0 %v7021_v25  ;;  %3492 = vmatprep.subr.mxu1 %v7023_v28  ;;  %v9624_v25 = vld [vmem:[#allocation77_spill] sm:$0xff]  ;;  %v9625_v28 = vld [vmem:[#allocation76_spill] sm:$0xff] }
 0x6a7   :  { %3422 = vmatpush1.msra.mxu0 %v7027_v29  ;;  %3493 = vmatpush1.msra.mxu1 %v7029_v36  ;;  %v9626_v29 = vld [vmem:[#allocation79_spill] sm:$0xff]  ;;  %v9627_v36 = vld [vmem:[#allocation78_spill] sm:$0xff] }
 0x6a8   :  { %3423 = vmatprep.subr.mxu0 %v7031_v41  ;;  %3494 = vmatprep.subr.mxu1 %v7035_v46  ;;  %v9628_v41 = vld [vmem:[#allocation81_spill] sm:$0xff]  ;;  %v9629_v46 = vld [vmem:[#allocation80_spill] sm:$0xff] }
 0x6a9   :  { %3424 = vmatpush1.msra.mxu0 %v7037_v49  ;;  %3495 = vmatpush1.msra.mxu1 %v7039_v54  ;;  %v9630_v49 = vld [vmem:[#allocation83_spill] sm:$0xff]  ;;  %v9631_v54 = vld [vmem:[#allocation82_spill] sm:$0xff] }
 0x6aa   :  { %3425 = vmatprep.subr.mxu0 %v7047_v51  ;;  %3496 = vmatprep.subr.mxu1 %v7049_v32  ;;  %v9632_v51 = vld [vmem:[#allocation85_spill] sm:$0xff]  ;;  %v9633_v32 = vld [vmem:[#allocation84_spill] sm:$0xff] }
 0x6ab   :  { %3426 = vmatpush1.msra.mxu0 %v9592_v6  ;;  %3497 = vmatpush1.msra.mxu1 %v9593_v23  ;;  %v9635_v6 = vld [vmem:[#allocation86_spill] sm:$0xff]  ;;  %v9636_v23 = vld [vmem:[#allocation89_spill] sm:$0xff] }
 0x6ac   :  { %3427 = vmatprep.subr.mxu0 %v9594_v10  ;;  %3498 = vmatprep.subr.mxu1 %v9595_v26  ;;  %v9637_v10 = vld [vmem:[#allocation88_spill] sm:$0xff]  ;;  %v9638_v26 = vld [vmem:[#allocation91_spill] sm:$0xff] }
 0x6ad   :  { %3428 = vmatpush1.msra.mxu0 %v9596_v27  ;;  %3499 = vmatpush1.msra.mxu1 %v9597_v30  ;;  %v9639_v27 = vld [vmem:[#allocation90_spill] sm:$0xff]  ;;  %v9640_v30 = vld [vmem:[#allocation93_spill] sm:$0xff] }
 0x6ae   :  { %3429 = vmatprep.subr.mxu0 %v9598_v44  ;;  %3500 = vmatprep.subr.mxu1 %v9599_v40  ;;  %v9641_v44 = vld [vmem:[#allocation92_spill] sm:$0xff]  ;;  %v9642_v40 = vld [vmem:[#allocation95_spill] sm:$0xff] }
 0x6af   :  { %3430 = vmatpush1.msra.mxu0 %v9600_v2  ;;  %3501 = vmatpush1.msra.mxu1 %v9601_v48  ;;  %v9643_v2 = vld [vmem:[#allocation94_spill] sm:$0xff]  ;;  %v9644_v48 = vld [vmem:[#allocation97_spill] sm:$0xff] }
 0x6b0   :  { %3431 = vmatprep.subr.mxu0 %v9602_v39  ;;  %3502 = vmatprep.subr.mxu1 %v9603_v12  ;;  %v9645_v39 = vld [vmem:[#allocation96_spill] sm:$0xff]  ;;  %v9646_v12 = vld [vmem:[#allocation99_spill] sm:$0xff] }
 0x6b1   :  { %3432 = vmatpush1.msra.mxu0 %v9604_v15  ;;  %3503 = vmatpush1.msra.mxu1 %v9605_v16  ;;  %v9647_v15 = vld [vmem:[#allocation98_spill] sm:$0xff]  ;;  %v9648_v16 = vld [vmem:[#allocation101_spill] sm:$0xff] }
 0x6b2   :  { %3433 = vmatprep.subr.mxu0 %v9606_v31  ;;  %3504 = vmatprep.subr.mxu1 %v9607_v4  ;;  %v9649_v31 = vld [vmem:[#allocation100_spill] sm:$0xff]  ;;  %v9650_v4 = vld [vmem:[#allocation103_spill] sm:$0xff] }
 0x6b3   :  { %3434 = vmatpush1.msra.mxu0 %v9608_v11  ;;  %3505 = vmatpush1.msra.mxu1 %v9609_v9  ;;  %v9651_v11 = vld [vmem:[#allocation102_spill] sm:$0xff]  ;;  %v9652_v9 = vld [vmem:[#allocation105_spill] sm:$0xff] }
 0x6b4   :  { %3435 = vmatprep.subr.mxu0 %v9610_v57  ;;  %3506 = vmatprep.subr.mxu1 %v9611_v19  ;;  %v9653_v57 = vld [vmem:[#allocation104_spill] sm:$0xff]  ;;  %v9654_v19 = vld [vmem:[#allocation107_spill] sm:$0xff] }
 0x6b5   :  { %3436 = vmatpush1.msra.mxu0 %v9612_v14  ;;  %3507 = vmatpush1.msra.mxu1 %v9613_v5  ;;  %v9655_v14 = vld [vmem:[#allocation106_spill] sm:$0xff]  ;;  %v9656_v5 = vld [vmem:[#allocation109_spill] sm:$0xff] }
 0x6b6   :  { %3437 = vmatprep.subr.mxu0 %v9614_v13  ;;  %3508 = vmatprep.subr.mxu1 %v9615_v1  ;;  %v9657_v13 = vld [vmem:[#allocation108_spill] sm:$0xff]  ;;  %v9658_v1 = vld [vmem:[#allocation111_spill] sm:$0xff] }
 0x6b7   :  { %3438 = vmatpush2.msra.mxu0 %v9616_v22  ;;  %3509 = vmatpush2.msra.mxu1 %v9617_v7  ;;  %v9659_v22 = vld [vmem:[#allocation110_spill] sm:$0xff]  ;;  %v9660_v7 = vld [vmem:[#allocation113_spill] sm:$0xff] }
 0x6b8   :  { %3439 = vmatprep.subr.mxu0 %v9618_v60  ;;  %3510 = vmatprep.subr.mxu1 %v9619_v3  ;;  %v9661_v60 = vld [vmem:[#allocation112_spill] sm:$0xff]  ;;  %v9662_v3 = vld [vmem:[#allocation115_spill] sm:$0xff] }
 0x6b9   :  { %3440 = vmatpush2.msra.mxu0 %v9620_v63  ;;  %3511 = vmatpush2.msra.mxu1 %v9621_v20  ;;  %v9663_v63 = vld [vmem:[#allocation114_spill] sm:$0xff]  ;;  %v9664_v20 = vld [vmem:[#allocation117_spill] sm:$0xff] }
 0x6ba   :  { %3441 = vmatprep.subr.mxu0 %v9622_v21  ;;  %3512 = vmatprep.subr.mxu1 %v9623_v24  ;;  %v9665_v21 = vld [vmem:[#allocation116_spill] sm:$0xff]  ;;  %v9666_v24 = vld [vmem:[#allocation119_spill] sm:$0xff] }
 0x6bb   :  { %3442 = vmatpush2.msra.mxu0 %v9624_v25  ;;  %3513 = vmatpush2.msra.mxu1 %v9625_v28  ;;  %v9667_v25 = vld [vmem:[#allocation118_spill] sm:$0xff]  ;;  %v9668_v28 = vld [vmem:[#allocation121_spill] sm:$0xff] }
 0x6bc   :  { %3443 = vmatprep.subr.mxu0 %v9626_v29  ;;  %3514 = vmatprep.subr.mxu1 %v9627_v36  ;;  %v9669_v29 = vld [vmem:[#allocation120_spill] sm:$0xff]  ;;  %v9670_v36 = vld [vmem:[#allocation123_spill] sm:$0xff] }
 0x6bd   :  { %3444 = vmatpush2.msra.mxu0 %v9628_v41  ;;  %3515 = vmatpush2.msra.mxu1 %v9629_v46  ;;  %v9671_v41 = vld [vmem:[#allocation122_spill] sm:$0xff]  ;;  %v9672_v46 = vld [vmem:[#allocation125_spill] sm:$0xff] }
 0x6be   :  { %3445 = vmatprep.subr.mxu0 %v9630_v49  ;;  %3516 = vmatprep.subr.mxu1 %v9631_v54  ;;  %v9673_v49 = vld [vmem:[#allocation124_spill] sm:$0xff] }
 0x6bf   :  { %3446 = vmatpush2.msra.mxu0 %v9632_v51  ;;  %3517 = vmatpush2.msra.mxu1 %v9633_v32  ;;  %v9674_v54 = vld [vmem:[#allocation128_spill] sm:$0xff]  ;;  %v9675_v51 = vld [vmem:[#allocation126_spill] sm:$0xff] }
 0x6c0   :  { %3447 = vmatprep.subr.mxu0 %v9634_v17  ;;  %3518 = vmatprep.subr.mxu1 %v9635_v6  ;;  %v9676_v32 = vld [vmem:[#allocation130_spill] sm:$0xff]  ;;  %v9678_v6 = vld [vmem:[#allocation24_spill] sm:$0xff] }
 0x6c1   :  { %3448 = vmatpush2.msra.mxu0 %v9636_v23  ;;  %3519 = vmatpush2.msra.mxu1 %v9637_v10  ;;  %v9677_v17 = vld [vmem:[#allocation22_spill] sm:$0xff]  ;;  %v9679_v23 = vld [vmem:[#allocation25_spill] sm:$0xff] }
 0x6c2   :  { %3449 = vmatprep.subr.mxu0 %v9638_v26  ;;  %3520 = vmatprep.subr.mxu1 %v9639_v27  ;;  %v9680_v27 = vld [vmem:[#allocation18_spill] sm:$0xff] }
 0x6c3   :  { %3450 = vmatpush2.msra.mxu0 %v9640_v30  ;;  %3521 = vmatpush2.msra.mxu1 %v9641_v44 }
 0x6c4   :  { %3451 = vmatprep.subr.mxu0 %v9642_v40  ;;  %3522 = vmatprep.subr.mxu1 %v9643_v2  ;;  %v9681_v2 = vld [vmem:[#allocation20_spill] sm:$0xff] }
 0x6c5   :  { %3452 = vmatpush2.msra.mxu0 %v9644_v48  ;;  %3523 = vmatpush2.msra.mxu1 %v9645_v39 }
 0x6c6   :  { %3453 = vmatprep.subr.mxu0 %v9646_v12  ;;  %3524 = vmatprep.subr.mxu1 %v9647_v15  ;;  %v9682_v15 = vld [vmem:[#allocation21_spill] sm:$0xff] }
 0x6c7   :  { %3454 = vmatpush2.msra.mxu0 %v9648_v16  ;;  %3525 = vmatpush2.msra.mxu1 %v9649_v31  ;;  %v9683_v31 = vld [vmem:[#allocation19_spill] sm:$0xff] }
 0x6c8   :  { %3455 = vmatprep.subr.mxu0 %v9650_v4  ;;  %3526 = vmatprep.subr.mxu1 %v9651_v11 }
 0x6c9   :  { %3456 = vmatpush2.msra.mxu0 %v9652_v9  ;;  %3527 = vmatpush2.msra.mxu1 %v9653_v57 }
 0x6ca   :  { %3457 = vmatprep.subr.mxu0 %v9654_v19  ;;  %3528 = vmatprep.subr.mxu1 %v9655_v14 }
 0x6cb   :  { %3458 = vmatpush2.msra.mxu0 %v9656_v5  ;;  %3529 = vmatpush2.msra.mxu1 %v9657_v13 }
 0x6cc   :  { %3459 = vmatprep.subr.mxu0 %v9658_v1  ;;  %3530 = vmatprep.subr.mxu1 %v9659_v22  ;;  %v9684_v22 = vld [vmem:[#allocation23_spill] sm:$0xff] }
 0x6cd   :  { %3460 = vmatpush2.msra.mxu0 %v9660_v7  ;;  %3531 = vmatpush2.msra.mxu1 %v9661_v60 }
 0x6ce   :  { %3461 = vmatprep.subr.mxu0 %v9662_v3  ;;  %3532 = vmatprep.subr.mxu1 %v9663_v63 }
 0x6cf   :  { %3462 = vmatpush2.msra.mxu0 %v9664_v20  ;;  %3533 = vmatpush2.msra.mxu1 %v9665_v21 }
 0x6d0   :  { %3463 = vmatprep.subr.mxu0 %v9666_v24  ;;  %3534 = vmatprep.subr.mxu1 %v9667_v25  ;;  %v9685_v24 = vld [vmem:[#allocation38_spill] sm:$0xff] }
 0x6d1   :  { %3464 = vmatpush2.msra.mxu0 %v9668_v28  ;;  %3535 = vmatpush2.msra.mxu1 %v9669_v29 }
 0x6d2   :  { %3465 = vmatprep.subr.mxu0 %v9670_v36  ;;  %3536 = vmatprep.subr.mxu1 %v9671_v41  ;;  %v9686_v36 = vld [vmem:[#allocation40_spill] sm:$0xff] }
 0x6d3   :  { %3466 = vmatpush2.msra.mxu0 %v9672_v46  ;;  %3537 = vmatpush2.msra.mxu1 %v9673_v49 }
 0x6d4   :  { %3467 = vmatprep.subr.mxu0 %v9674_v54  ;;  %3538 = vmatprep.subr.mxu1 %v9675_v51  ;;  %v9687_v51 = vld [vmem:[#allocation41_spill] sm:$0xff] }
 0x6d5   :  { %3468 = vmatpush2.msra.mxu0 %v9676_v32  ;;  %3539 = vmatpush2.msra.mxu1 %v9677_v17 }
 0x6d6   :  { %3633 = vmatprep.subr.mxu0 %v9678_v6  ;;  %3704 = vmatprep.subr.mxu1 %v9679_v23 }
 0x734   :  { %v2947_v10 = vpop.f32.mrf.mxu0  ;;  %v3018_v26 = vpop.f32.mrf.mxu1 }
 0x735   :  { %v2948_v30 = vadd.f32 %v2947_v10, %v9680_v27  ;;  %v3019_v4 = vadd.f32 %v3018_v26, %v9683_v31  ;;  %v9688_v10 = vld [vmem:[#allocation39_spill] sm:$0xff] }
 0x736   :  { %v2949_v44 = vpop.f32.mrf.mxu0  ;;  %v3020_v39 = vpop.f32.mrf.mxu1 }
 0x737   :  { %v3023_v40 = vmul.f32 0.5, %v2948_v30  ;;  %v2950_v48 = vadd.f32 %v2949_v44, %v9681_v2  ;;  %v3021_v16 = vadd.f32 %v3020_v39, %v9682_v15  ;;  %v3025_v11 = vmul.f32 0.5, %v3019_v4 }
 0x739   :  { %4905 = vtanh.f32 %v3023_v40  ;;  %v3024_v12 = vmul.f32 0.5, %v2950_v48 }
 0x73b   :  { %4907 = vtanh.f32 %v3024_v12 }
 0x73c   :  { %4909 = vtanh.f32 %v3021_v16 }
 0x73d   :  { %4911 = vtanh.f32 %v3025_v11 }
 0x746   :  { %v4906_v9 = vpop.eup %4905 }
 0x747   :  { %v3029_v57 = vmul.f32 0.5, %v4906_v9 }
 0x748   :  { %v4908_v19 = vpop.eup %4907 }
 0x749   :  { %v3032_v14 = vadd.f32 0.5, %v3029_v57  ;;  %v3030_v5 = vmul.f32 0.5, %v4908_v19  ;;  %v4910_v1 = vpop.eup %4909 }
 0x74a   :  { %v4912_v21 = vpop.eup %4911 }
 0x74b   :  { %v3033_v13 = vadd.f32 0.5, %v3030_v5  ;;  %v3037_v60 = vmul.f32 %v4910_v1, %v3032_v14  ;;  %v3031_v46 = vmul.f32 0.5, %v4912_v21  ;;  %v9703_v21 = vld [vmem:[#allocation141_spill] sm:$0xff] }
 0x74d   :  { %v3036_v7 = vmul.f32 %v3033_v13, %v9684_v22  ;;  %v3034_v17 = vadd.f32 0.5, %v3031_v46  ;;  %v9690_v22 = vld [vmem:[#allocation127_spill] sm:$0xff]  ;;  %v9710_v46 = vld [vmem:[#allocation142_spill] sm:$0xff] }
 0x74f   :  { %v7662_v3 = vadd.f32 %v3037_v60, %v3036_v7  ;;  %v9691_v7 = vld [vmem:[#allocation133_spill] sm:$0xff]  ;;  %v9700_v60 = vld [vmem:[#allocation132_spill] sm:$0xff] }
 0x751   :  { %4913 = vtanh.f32 %v7662_v3 }
 0x755   :  { %v3175_v63 = vpop.f32.mrf.mxu0  ;;  %v3246_v20 = vpop.f32.mrf.mxu1 }
 0x756   :  { %v3251_v25 = vadd.f32 %v3175_v63, %v9685_v24  ;;  %v3253_v26 = vadd.f32 %v3246_v20, %v9688_v10  ;;  %v9701_v63 = vld [vmem:[#allocation139_spill] sm:$0xff]  ;;  %v9702_v20 = vld [vmem:[#allocation134_spill] sm:$0xff]  ;;  %v9704_v24 = vld [vmem:[#allocation136_spill] sm:$0xff] }
 0x757   :  { %v3177_v28 = vpop.f32.mrf.mxu0  ;;  %v3248_v49 = vpop.f32.mrf.mxu1  ;;  %v9718_v10 = vld [vmem:[#allocation150_spill] sm:$0xff] }
 0x758   :  { %v3255_v29 = vmul.f32 0.5, %v3251_v25  ;;  %v3252_v41 = vadd.f32 %v3177_v28, %v9686_v36  ;;  %v3254_v32 = vadd.f32 %v3248_v49, %v9687_v51  ;;  %v3257_v30 = vmul.f32 0.5, %v3253_v26  ;;  %v9705_v25 = vld [vmem:[#allocation143_spill] sm:$0xff]  ;;  %v9706_v28 = vld [vmem:[#allocation138_spill] sm:$0xff]  ;;  %v9708_v36 = vld [vmem:[#allocation140_spill] sm:$0xff] }
 0x759   :  { %v9711_v49 = vld [vmem:[#allocation149_spill] sm:$0xff]  ;;  %v9713_v51 = vld [vmem:[#allocation151_spill] sm:$0xff] }
 0x75a   :  { %4915 = vtanh.f32 %v3255_v29  ;;  %v3256_v54 = vmul.f32 0.5, %v3252_v41  ;;  %v9707_v29 = vld [vmem:[#allocation145_spill] sm:$0xff]  ;;  %v9709_v41 = vld [vmem:[#allocation147_spill] sm:$0xff] }
 0x75b   :  { %v9719_v26 = vld [vmem:[#allocation157_spill] sm:$0xff] }
 0x75c   :  { %4917 = vtanh.f32 %v3256_v54  ;;  %v9712_v54 = vld [vmem:[#allocation144_spill] sm:$0xff] }
 0x75d   :  { %4919 = vtanh.f32 %v3254_v32  ;;  %v9714_v32 = vld [vmem:[#allocation146_spill] sm:$0xff] }
 0x75e   :  { %v4914_v6 = vpop.eup %4913  ;;  %4921 = vtanh.f32 %v3257_v30  ;;  %v9720_v30 = vld [vmem:[#allocation152_spill] sm:$0xff] }
 0x75f   :  { %v3040_v23 = vmul.f32 %v4914_v6, %v3034_v17  ;;  %v9715_v17 = vld [vmem:[#allocation153_spill] sm:$0xff]  ;;  %v9716_v6 = vld [vmem:[#allocation148_spill] sm:$0xff] }
 0x761   :  { %3469 = vmatprep.mubr.f32.mxu0 %v3040_v23  ;;  %3540 = vmatprep.mubr.f32.mxu1 %v3040_v23  ;;  %v9717_v23 = vld [vmem:[#allocation155_spill] sm:$0xff] }
 0x767   :  { %v4916_v44 = vpop.eup %4915 }
 0x768   :  { %v3261_v40 = vmul.f32 0.5, %v4916_v44  ;;  %v9721_v44 = vld [vmem:[#allocation159_spill] sm:$0xff] }
 0x769   :  { %v4918_v48 = vpop.eup %4917 }
 0x76a   :  { %v3264_v39 = vadd.f32 0.5, %v3261_v40  ;;  %v3262_v12 = vmul.f32 0.5, %v4918_v48  ;;  %v4920_v4 = vpop.eup %4919  ;;  %v9722_v40 = vld [vmem:[#allocation154_spill] sm:$0xff]  ;;  %v9723_v48 = vld [vmem:[#allocation161_spill] sm:$0xff] }
 0x76b   :  { %v4922_v19 = vpop.eup %4921 }
 0x76c   :  { %v3265_v16 = vadd.f32 0.5, %v3262_v12  ;;  %v3269_v9 = vmul.f32 %v4920_v4, %v3264_v39  ;;  %v3263_v14 = vmul.f32 0.5, %v4922_v19  ;;  %v9724_v39 = vld [vmem:[#allocation156_spill] sm:$0xff]  ;;  %v9725_v12 = vld [vmem:[#allocation163_spill] sm:$0xff]  ;;  %v9727_v4 = vld [vmem:[#allocation165_spill] sm:$0xff] }
 0x76d   :  { %v9730_v19 = vld [vmem:[#allocation162_spill] sm:$0xff] }
 0x76e   :  { %v3268_v11 = vmul.f32 %v3265_v16, %v7330_v62  ;;  %v3266_v5 = vadd.f32 0.5, %v3263_v14  ;;  %v9689_v62 = vld [vmem:[#allocation50_spill] sm:$0xff]  ;;  %v9731_v14 = vld [vmem:[#allocation169_spill] sm:$0xff] }
 0x76f   :  { %v9726_v16 = vld [vmem:[#allocation158_spill] sm:$0xff] }
 0x770   :  { %v7670_v57 = vadd.f32 %v3269_v9, %v3268_v11  ;;  %v9728_v11 = vld [vmem:[#allocation160_spill] sm:$0xff]  ;;  %v9729_v9 = vld [vmem:[#allocation167_spill] sm:$0xff] }
 0x772   :  { %4923 = vtanh.f32 %v7670_v57 }
 0x77f   :  { %v4924_v13 = vpop.eup %4923 }
 0x780   :  { %v7673_v1 = vmul.f32 %v4924_v13, %v3266_v5  ;;  %v7775_v5 = vld [vmem:[#allocation5 + $0x1b0] sm:$0xff]  ;;  %v7779_v13 = vld [vmem:[#allocation5 + $0x188] sm:$0xff] }
 0x782   :  { %3470 = vmatmul.mubr.f32.vlgmr.msra.gmra.mxu0 %v7673_v1  ;;  %3541 = vmatmul.mubr.f32.vlgmr.msra.gmra.mxu1 %v7673_v1 }
 0x783   :  { %3634 = vmatpush1.msra.mxu0 %v7335_v61  ;;  %3705 = vmatpush1.msra.mxu1 %v7337_v55  ;;  %v9692_v61 = vld [vmem:[#allocation129_spill] sm:$0xff]  ;;  %v9693_v55 = vld [vmem:[#allocation135_spill] sm:$0xff] }
 0x784   :  { %3635 = vmatprep.subr.mxu0 %v7339_v43  ;;  %3706 = vmatprep.subr.mxu1 %v7341_v45  ;;  %v9694_v43 = vld [vmem:[#allocation131_spill] sm:$0xff]  ;;  %v9695_v45 = vld [vmem:[#allocation137_spill] sm:$0xff] }
 0x785   :  { %3636 = vmatpush1.msra.mxu0 %v7345_v38  ;;  %3707 = vmatpush1.msra.mxu1 %v7347_v42  ;;  %v9696_v38 = vld [vmem:[#allocation30_spill] sm:$0xff]  ;;  %v9697_v42 = vld [vmem:[#allocation32_spill] sm:$0xff] }
 0x786   :  { %3637 = vmatprep.subr.mxu0 %v7351_v35  ;;  %3708 = vmatprep.subr.mxu1 %v7353_v50  ;;  %v9698_v35 = vld [vmem:[#allocation33_spill] sm:$0xff]  ;;  %v9699_v50 = vld [vmem:[#allocation31_spill] sm:$0xff] }
 0x787   :  { %3638 = vmatpush1.msra.mxu0 %v9689_v62  ;;  %3709 = vmatpush1.msra.mxu1 %v9690_v22  ;;  %v7785_v62 = vld [vmem:[#allocation5 + $0x180] sm:$0xff]  ;;  %v7787_v22 = vld [vmem:[#allocation5 + $0x190] sm:$0xff] }
 0x788   :  { %3639 = vmatprep.subr.mxu0 %v9691_v7  ;;  %3710 = vmatprep.subr.mxu1 %v9692_v61  ;;  %v7791_v7 = vld [vmem:[#allocation5 + $0x168] sm:$0xff]  ;;  %v7793_v61 = vld [vmem:[#allocation5 + $0x178] sm:$0xff] }
 0x789   :  { %3640 = vmatpush1.msra.mxu0 %v9693_v55  ;;  %3711 = vmatpush1.msra.mxu1 %v9694_v43  ;;  %v7797_v55 = vld [vmem:[#allocation5 + $0x160] sm:$0xff]  ;;  %v7799_v43 = vld [vmem:[#allocation5 + $0x170] sm:$0xff] }
 0x78a   :  { %3641 = vmatprep.subr.mxu0 %v9695_v45  ;;  %3712 = vmatprep.subr.mxu1 %v9696_v38  ;;  %v7803_v45 = vld [vmem:[#allocation5 + $0x148] sm:$0xff]  ;;  %v7805_v38 = vld [vmem:[#allocation5 + $0x158] sm:$0xff] }
 0x78b   :  { %3642 = vmatpush1.msra.mxu0 %v9697_v42  ;;  %3713 = vmatpush1.msra.mxu1 %v9698_v35  ;;  %v7809_v42 = vld [vmem:[#allocation5 + $0x140] sm:$0xff]  ;;  %v7811_v35 = vld [vmem:[#allocation5 + $0x150] sm:$0xff] }
 0x78c   :  { %3643 = vmatprep.subr.mxu0 %v9699_v50  ;;  %3714 = vmatprep.subr.mxu1 %v9700_v60  ;;  %v7815_v50 = vld [vmem:[#allocation5 + $0x128] sm:$0xff]  ;;  %v7817_v60 = vld [vmem:[#allocation5 + $0x138] sm:$0xff] }
 0x78d   :  { %3644 = vmatpush1.msra.mxu0 %v9701_v63  ;;  %3715 = vmatpush1.msra.mxu1 %v9702_v20  ;;  %v7821_v63 = vld [vmem:[#allocation5 + $0x120] sm:$0xff]  ;;  %v7823_v20 = vld [vmem:[#allocation5 + $0x130] sm:$0xff] }
 0x78e   :  { %3645 = vmatprep.subr.mxu0 %v9703_v21  ;;  %3716 = vmatprep.subr.mxu1 %v9704_v24  ;;  %v7827_v21 = vld [vmem:[#allocation5 + $0x108] sm:$0xff]  ;;  %v7829_v24 = vld [vmem:[#allocation5 + $0x118] sm:$0xff] }
 0x78f   :  { %3646 = vmatpush1.msra.mxu0 %v9705_v25  ;;  %3717 = vmatpush1.msra.mxu1 %v9706_v28  ;;  %v7831_v25 = vld [vmem:[#allocation5 + $0x100] sm:$0xff]  ;;  %v7835_v28 = vld [vmem:[#allocation5 + $0x110] sm:$0xff] }
 0x790   :  { %3647 = vmatprep.subr.mxu0 %v9707_v29  ;;  %3718 = vmatprep.subr.mxu1 %v9708_v36  ;;  %v7837_v29 = vld [vmem:[#allocation5 + $0xe8] sm:$0xff]  ;;  %v7839_v36 = vld [vmem:[#allocation5 + $0xf8] sm:$0xff] }
 0x791   :  { %3648 = vmatpush1.msra.mxu0 %v9709_v41  ;;  %3719 = vmatpush1.msra.mxu1 %v9710_v46  ;;  %v7843_v41 = vld [vmem:[#allocation5 + $0xe0] sm:$0xff]  ;;  %v7845_v46 = vld [vmem:[#allocation5 + $0xf0] sm:$0xff] }
 0x792   :  { %3649 = vmatprep.subr.mxu0 %v9711_v49  ;;  %3720 = vmatprep.subr.mxu1 %v9712_v54  ;;  %v7847_v49 = vld [vmem:[#allocation5 + $0xc8] sm:$0xff]  ;;  %v7851_v54 = vld [vmem:[#allocation5 + $0xd8] sm:$0xff] }
 0x793   :  { %3650 = vmatpush1.msra.mxu0 %v9713_v51  ;;  %3721 = vmatpush1.msra.mxu1 %v9714_v32  ;;  %v7853_v51 = vld [vmem:[#allocation5 + $0xc0] sm:$0xff]  ;;  %v7855_v32 = vld [vmem:[#allocation5 + $0xd0] sm:$0xff] }
 0x794   :  { %3651 = vmatprep.subr.mxu0 %v9715_v17  ;;  %3722 = vmatprep.subr.mxu1 %v9716_v6  ;;  %v7863_v17 = vld [vmem:[#allocation5 + $0xa8] sm:$0xff]  ;;  %v7865_v6 = vld [vmem:[#allocation5 + $0xb8] sm:$0xff] }
 0x795   :  { %3652 = vmatpush1.msra.mxu0 %v9717_v23  ;;  %3723 = vmatpush1.msra.mxu1 %v9718_v10  ;;  %v7869_v23 = vld [vmem:[#allocation5 + $0xa0] sm:$0xff]  ;;  %v7871_v10 = vld [vmem:[#allocation5 + $0xb0] sm:$0xff] }
 0x796   :  { %3653 = vmatprep.subr.mxu0 %v9719_v26  ;;  %3724 = vmatprep.subr.mxu1 %v9720_v30  ;;  %9732 = vst [vmem:[#allocation164_spill] sm:$0xff] %v7869_v23  ;;  %9733 = vst [vmem:[#allocation171_spill] sm:$0xff] %v7871_v10  ;;  %v7875_v26 = vld [vmem:[#allocation5 + $0x88] sm:$0xff]  ;;  %v7877_v30 = vld [vmem:[#allocation5 + $0x98] sm:$0xff] }
 0x797   :  { %3654 = vmatpush1.msra.mxu0 %v9721_v44  ;;  %3725 = vmatpush1.msra.mxu1 %v9722_v40  ;;  %9734 = vst [vmem:[#allocation166_spill] sm:$0xff] %v7875_v26  ;;  %9735 = vst [vmem:[#allocation173_spill] sm:$0xff] %v7877_v30  ;;  %v7881_v44 = vld [vmem:[#allocation5 + $0x80] sm:$0xff]  ;;  %v7883_v40 = vld [vmem:[#allocation5 + $0x90] sm:$0xff] }
 0x798   :  { %3655 = vmatprep.subr.mxu0 %v9723_v48  ;;  %3726 = vmatprep.subr.mxu1 %v9724_v39  ;;  %9736 = vst [vmem:[#allocation168_spill] sm:$0xff] %v7881_v44  ;;  %9737 = vst [vmem:[#allocation175_spill] sm:$0xff] %v7883_v40  ;;  %v7887_v48 = vld [vmem:[#allocation5 + $0x68] sm:$0xff]  ;;  %v7889_v39 = vld [vmem:[#allocation5 + $0x78] sm:$0xff] }
 0x799   :  { %3656 = vmatpush1.msra.mxu0 %v9725_v12  ;;  %3727 = vmatpush1.msra.mxu1 %v9726_v16  ;;  %9738 = vst [vmem:[#allocation170_spill] sm:$0xff] %v7887_v48  ;;  %9739 = vst [vmem:[#allocation172_spill] sm:$0xff] %v7889_v39  ;;  %v7893_v12 = vld [vmem:[#allocation5 + $0x60] sm:$0xff]  ;;  %v7895_v16 = vld [vmem:[#allocation5 + $0x70] sm:$0xff] }
 0x79a   :  { %3657 = vmatprep.subr.mxu0 %v9727_v4  ;;  %3728 = vmatprep.subr.mxu1 %v9728_v11  ;;  %9740 = vst [vmem:[#allocation178_spill] sm:$0xff] %v7893_v12  ;;  %9741 = vst [vmem:[#allocation174_spill] sm:$0xff] %v7895_v16  ;;  %v7899_v4 = vld [vmem:[#allocation5 + $0x48] sm:$0xff]  ;;  %v7901_v11 = vld [vmem:[#allocation5 + $0x58] sm:$0xff] }
 0x79b   :  { %3658 = vmatpush1.msra.mxu0 %v9729_v9  ;;  %3729 = vmatpush1.msra.mxu1 %v9730_v19  ;;  %9742 = vst [vmem:[#allocation176_spill] sm:$0xff] %v7899_v4  ;;  %9743 = vst [vmem:[#allocation34_spill] sm:$0xff] %v7901_v11  ;;  %v7905_v9 = vld [vmem:[#allocation5 + $0x40] sm:$0xff]  ;;  %v7907_v19 = vld [vmem:[#allocation5 + $0x50] sm:$0xff] }
 0x79c   :  { %3659 = vmatprep.subr.mxu0 %v7483_v8  ;;  %3730 = vmatprep.subr.mxu1 %v9731_v14  ;;  %v7769_v8 = vld [vmem:[#allocation5 + $0x1b8] sm:$0xff]  ;;  %9744 = vst [vmem:[#allocation36_spill] sm:$0xff] %v7905_v9  ;;  %9745 = vst [vmem:[#allocation37_spill] sm:$0xff] %v7907_v19  ;;  %v7911_v14 = vld [vmem:[#allocation5 + $0x28] sm:$0xff] }
 0x79d   :  { %3660 = vmatpush1.msra.mxu0 %v7489_v0  ;;  %3731 = vmatpush1.msra.mxu1 %v7491_v53  ;;  %v7743_v0 = vld [vmem:[#allocation5 + $0x1e8] sm:$0xff]  ;;  %v7745_v53 = vld [vmem:[#allocation5 + $0x1f8] sm:$0xff]  ;;  %9746 = vst [vmem:[#allocation35_spill] sm:$0xff] %v7911_v14 }
 0x79e   :  { %3661 = vmatprep.subr.mxu0 %v7495_v18  ;;  %3732 = vmatprep.subr.mxu1 %v7497_v58  ;;  %v7749_v18 = vld [vmem:[#allocation5 + $0x1e0] sm:$0xff]  ;;  %v7751_v58 = vld [vmem:[#allocation5 + $0x1f0] sm:$0xff] }
 0x79f   :  { %3662 = vmatpush1.msra.mxu0 %v7501_v47  ;;  %3733 = vmatpush1.msra.mxu1 %v7503_v37  ;;  %v7755_v47 = vld [vmem:[#allocation5 + $0x1c8] sm:$0xff]  ;;  %v7757_v37 = vld [vmem:[#allocation5 + $0x1d8] sm:$0xff] }
 0x7a0   :  { %3663 = vmatprep.subr.mxu0 %v7507_v34  ;;  %3734 = vmatprep.subr.mxu1 %v7509_v59  ;;  %v7761_v34 = vld [vmem:[#allocation5 + $0x1c0] sm:$0xff]  ;;  %v7763_v59 = vld [vmem:[#allocation5 + $0x1d0] sm:$0xff] }
 0x7a1   :  { %3664 = vmatpush1.msra.mxu0 %v7513_v52  ;;  %3697 = vmatprep.mubr.f32.mxu0 %v9040_v33  ;;  %v7767_v52 = vld [vmem:[#allocation5 + $0x1a8] sm:$0xff] }
 0x7a2   :  { %3735 = vmatpush1.msra.mxu1 %v7517_v56  ;;  %3768 = vmatprep.mubr.f32.mxu1 %v9040_v33  ;;  %v7773_v56 = vld [vmem:[#allocation5 + $0x1a0] sm:$0xff] }
 0x7a3   :  { %3698 = vmatmul.mubr.f32.vlgmr.msra.gmra.mxu0 %v7673_v1  ;;  %3769 = vmatmul.mubr.f32.vlgmr.msra.gmra.mxu1 %v7673_v1  ;;  %v7781_v1 = vld [vmem:[#allocation5 + $0x198] sm:$0xff] }
 0x7a4   :  { %3929 = vmatprep.subr.mxu0 %v7743_v0  ;;  %4000 = vmatprep.subr.mxu1 %v7745_v53 }
 0x7a5   :  { %3930 = vmatpush1.msra.mxu0 %v7749_v18  ;;  %4001 = vmatpush1.msra.mxu1 %v7751_v58 }
 0x7a6   :  { %3931 = vmatprep.subr.mxu0 %v7755_v47  ;;  %4002 = vmatprep.subr.mxu1 %v7757_v37 }
 0x7a7   :  { %3932 = vmatpush1.msra.mxu0 %v7761_v34  ;;  %4003 = vmatpush1.msra.mxu1 %v7763_v59 }
 0x7a8   :  { %3933 = vmatprep.subr.mxu0 %v7767_v52  ;;  %4004 = vmatprep.subr.mxu1 %v7769_v8 }
 0x7a9   :  { %3934 = vmatpush1.msra.mxu0 %v7773_v56  ;;  %4005 = vmatpush1.msra.mxu1 %v7775_v5 }
 0x7aa   :  { %3935 = vmatprep.subr.mxu0 %v7779_v13  ;;  %4006 = vmatprep.subr.mxu1 %v7781_v1 }
 0x7ab   :  { %3936 = vmatpush1.msra.mxu0 %v7785_v62  ;;  %4007 = vmatpush1.msra.mxu1 %v7787_v22 }
 0x7ac   :  { %3937 = vmatprep.subr.mxu0 %v7791_v7  ;;  %4008 = vmatprep.subr.mxu1 %v7793_v61 }
 0x7ad   :  { %3938 = vmatpush1.msra.mxu0 %v7797_v55  ;;  %4009 = vmatpush1.msra.mxu1 %v7799_v43 }
 0x7ae   :  { %3939 = vmatprep.subr.mxu0 %v7803_v45  ;;  %4010 = vmatprep.subr.mxu1 %v7805_v38 }
 0x7af   :  { %3940 = vmatpush1.msra.mxu0 %v7809_v42  ;;  %4011 = vmatpush1.msra.mxu1 %v7811_v35 }
 0x7b0   :  { %3941 = vmatprep.subr.mxu0 %v7815_v50  ;;  %4012 = vmatprep.subr.mxu1 %v7817_v60 }
 0x7b1   :  { %3942 = vmatpush1.msra.mxu0 %v7821_v63  ;;  %4013 = vmatpush1.msra.mxu1 %v7823_v20 }
 0x7b2   :  { %3943 = vmatprep.subr.mxu0 %v7827_v21  ;;  %4014 = vmatprep.subr.mxu1 %v7829_v24 }
 0x7b3   :  { %3944 = vmatpush1.msra.mxu0 %v7831_v25  ;;  %4015 = vmatpush1.msra.mxu1 %v7835_v28 }
 0x7b4   :  { %3945 = vmatprep.subr.mxu0 %v7837_v29  ;;  %4016 = vmatprep.subr.mxu1 %v7839_v36 }
 0x7b5   :  { %3946 = vmatpush1.msra.mxu0 %v7843_v41  ;;  %4017 = vmatpush1.msra.mxu1 %v7845_v46 }
 0x7b6   :  { %3947 = vmatprep.subr.mxu0 %v7847_v49  ;;  %4018 = vmatprep.subr.mxu1 %v7851_v54 }
 0x7b7   :  { %3948 = vmatpush1.msra.mxu0 %v7853_v51  ;;  %4019 = vmatpush1.msra.mxu1 %v7855_v32 }
 0x7b8   :  { %3949 = vmatprep.subr.mxu0 %v7863_v17  ;;  %4020 = vmatprep.subr.mxu1 %v7865_v6 }
 0x7b9   :  { %3950 = vmatpush1.msra.mxu0 %v7869_v23  ;;  %4021 = vmatpush1.msra.mxu1 %v7871_v10 }
 0x7ba   :  { %3951 = vmatprep.subr.mxu0 %v7875_v26  ;;  %4022 = vmatprep.subr.mxu1 %v7877_v30 }
 0x7bb   :  { %3952 = vmatpush1.msra.mxu0 %v7881_v44  ;;  %4023 = vmatpush1.msra.mxu1 %v7883_v40  ;;  %v8053_v40 = vld [vmem:[#allocation5 + $0x2b8] sm:$0xff]  ;;  %v8069_v44 = vld [vmem:[#allocation5 + $0x280] sm:$0xff] }
 0x7bc   :  { %3953 = vmatprep.subr.mxu0 %v7887_v48  ;;  %4024 = vmatprep.subr.mxu1 %v7889_v39  ;;  %v8037_v39 = vld [vmem:[#allocation5 + $0x2f0] sm:$0xff]  ;;  %v8045_v48 = vld [vmem:[#allocation5 + $0x2c0] sm:$0xff]  ;;  %9795 = vst [vmem:[#allocation93_spill] sm:$0xff] %v8053_v40  ;;  %9800 = vst [vmem:[#allocation96_spill] sm:$0xff] %v8069_v44 }
 0x7bd   :  { %3954 = vmatpush1.msra.mxu0 %v7893_v12  ;;  %4025 = vmatpush1.msra.mxu1 %v7895_v16  ;;  %v7913_v12 = vld [vmem:[#allocation5 + $0x38] sm:$0xff]  ;;  %v7917_v16 = vld [vmem:[#allocation5 + $0x20] sm:$0xff]  ;;  %9789 = vst [vmem:[#allocation87_spill] sm:$0xff] %v8037_v39  ;;  %9792 = vst [vmem:[#allocation88_spill] sm:$0xff] %v8045_v48 }
 0x7be   :  { %3955 = vmatprep.subr.mxu0 %v7899_v4  ;;  %4026 = vmatprep.subr.mxu1 %v7901_v11  ;;  %9747 = vst [vmem:[#allocation177_spill] sm:$0xff] %v7913_v12  ;;  %9748 = vst [vmem:[#allocation179_spill] sm:$0xff] %v7917_v16  ;;  %v7919_v4 = vld [vmem:[#allocation5 + $0x30] sm:$0xff]  ;;  %v7923_v11 = vld [vmem:[#allocation5 + $0x8] sm:$0xff] }
 0x7bf   :  { %3956 = vmatpush1.msra.mxu0 %v7905_v9  ;;  %4027 = vmatpush1.msra.mxu1 %v7907_v19  ;;  %9749 = vst [vmem:[#allocation180_spill] sm:$0xff] %v7919_v4  ;;  %9750 = vst [vmem:[#allocation26_spill] sm:$0xff] %v7923_v11  ;;  %v7925_v9 = vld [vmem:[#allocation5 + $0x18] sm:$0xff]  ;;  %v7929_v19 = vld [vmem:[#allocation5] sm:$0xff] }
 0x7c0   :  { %3957 = vmatprep.subr.mxu0 %v7911_v14  ;;  %4028 = vmatprep.subr.mxu1 %v7913_v12  ;;  %9751 = vst [vmem:[#allocation28_spill] sm:$0xff] %v7925_v9  ;;  %9752 = vst [vmem:[#allocation29_spill] sm:$0xff] %v7929_v19  ;;  %v7931_v14 = vld [vmem:[#allocation5 + $0x10] sm:$0xff]  ;;  %v7935_v12 = vld [vmem:[#allocation5 + $0x3e8] sm:$0xff] }
 0x7c1   :  { %3958 = vmatpush1.msra.mxu0 %v7917_v16  ;;  %4029 = vmatpush1.msra.mxu1 %v7919_v4  ;;  %9753 = vst [vmem:[#allocation27_spill] sm:$0xff] %v7931_v14  ;;  %9754 = vst [vmem:[#allocation51_spill] sm:$0xff] %v7935_v12  ;;  %v7937_v16 = vld [vmem:[#allocation5 + $0x3f8] sm:$0xff]  ;;  %v7941_v4 = vld [vmem:[#allocation5 + $0x3e0] sm:$0xff] }
 0x7c2   :  { %3959 = vmatprep.subr.mxu0 %v7923_v11  ;;  %4030 = vmatprep.subr.mxu1 %v7925_v9  ;;  %9755 = vst [vmem:[#allocation53_spill] sm:$0xff] %v7937_v16  ;;  %9756 = vst [vmem:[#allocation52_spill] sm:$0xff] %v7941_v4  ;;  %v7943_v11 = vld [vmem:[#allocation5 + $0x3f0] sm:$0xff]  ;;  %v7947_v9 = vld [vmem:[#allocation5 + $0x3c8] sm:$0xff] }
 0x7c3   :  { %3960 = vmatpush1.msra.mxu0 %v7929_v19  ;;  %4031 = vmatpush1.msra.mxu1 %v7931_v14  ;;  %9757 = vst [vmem:[#allocation55_spill] sm:$0xff] %v7943_v11  ;;  %9758 = vst [vmem:[#allocation54_spill] sm:$0xff] %v7947_v9  ;;  %v7949_v19 = vld [vmem:[#allocation5 + $0x3d8] sm:$0xff]  ;;  %v7953_v14 = vld [vmem:[#allocation5 + $0x3c0] sm:$0xff] }
 0x7c4   :  { %3961 = vmatprep.subr.mxu0 %v7935_v12  ;;  %4032 = vmatprep.subr.mxu1 %v7937_v16  ;;  %9759 = vst [vmem:[#allocation57_spill] sm:$0xff] %v7949_v19  ;;  %9760 = vst [vmem:[#allocation56_spill] sm:$0xff] %v7953_v14  ;;  %v7955_v12 = vld [vmem:[#allocation5 + $0x3d0] sm:$0xff]  ;;  %v7959_v16 = vld [vmem:[#allocation5 + $0x3a8] sm:$0xff] }
 0x7c5   :  { %3962 = vmatpush2.msra.mxu0 %v7941_v4  ;;  %4033 = vmatpush2.msra.mxu1 %v7943_v11  ;;  %9761 = vst [vmem:[#allocation59_spill] sm:$0xff] %v7955_v12  ;;  %9762 = vst [vmem:[#allocation58_spill] sm:$0xff] %v7959_v16  ;;  %v7961_v4 = vld [vmem:[#allocation5 + $0x3b8] sm:$0xff]  ;;  %v7965_v11 = vld [vmem:[#allocation5 + $0x3a0] sm:$0xff] }
 0x7c6   :  { %3963 = vmatprep.subr.mxu0 %v7947_v9  ;;  %4034 = vmatprep.subr.mxu1 %v7949_v19  ;;  %9763 = vst [vmem:[#allocation61_spill] sm:$0xff] %v7961_v4  ;;  %9764 = vst [vmem:[#allocation60_spill] sm:$0xff] %v7965_v11  ;;  %v7967_v9 = vld [vmem:[#allocation5 + $0x3b0] sm:$0xff]  ;;  %v7971_v19 = vld [vmem:[#allocation5 + $0x388] sm:$0xff] }
 0x7c7   :  { %3964 = vmatpush2.msra.mxu0 %v7953_v14  ;;  %4035 = vmatpush2.msra.mxu1 %v7955_v12  ;;  %9765 = vst [vmem:[#allocation63_spill] sm:$0xff] %v7967_v9  ;;  %9766 = vst [vmem:[#allocation62_spill] sm:$0xff] %v7971_v19  ;;  %v7973_v14 = vld [vmem:[#allocation5 + $0x398] sm:$0xff]  ;;  %v7977_v12 = vld [vmem:[#allocation5 + $0x380] sm:$0xff] }
 0x7c8   :  { %3965 = vmatprep.subr.mxu0 %v7959_v16  ;;  %4036 = vmatprep.subr.mxu1 %v7961_v4  ;;  %9767 = vst [vmem:[#allocation65_spill] sm:$0xff] %v7973_v14  ;;  %9768 = vst [vmem:[#allocation64_spill] sm:$0xff] %v7977_v12  ;;  %v7979_v16 = vld [vmem:[#allocation5 + $0x390] sm:$0xff]  ;;  %v7983_v4 = vld [vmem:[#allocation5 + $0x368] sm:$0xff] }
 0x7c9   :  { %3966 = vmatpush2.msra.mxu0 %v7965_v11  ;;  %4037 = vmatpush2.msra.mxu1 %v7967_v9  ;;  %9769 = vst [vmem:[#allocation67_spill] sm:$0xff] %v7979_v16  ;;  %9770 = vst [vmem:[#allocation66_spill] sm:$0xff] %v7983_v4  ;;  %v7985_v11 = vld [vmem:[#allocation5 + $0x378] sm:$0xff]  ;;  %v7989_v9 = vld [vmem:[#allocation5 + $0x360] sm:$0xff] }
 0x7ca   :  { %3967 = vmatprep.subr.mxu0 %v7971_v19  ;;  %4038 = vmatprep.subr.mxu1 %v7973_v14  ;;  %9771 = vst [vmem:[#allocation69_spill] sm:$0xff] %v7985_v11  ;;  %9772 = vst [vmem:[#allocation68_spill] sm:$0xff] %v7989_v9  ;;  %v7991_v19 = vld [vmem:[#allocation5 + $0x370] sm:$0xff]  ;;  %v7995_v14 = vld [vmem:[#allocation5 + $0x348] sm:$0xff] }
 0x7cb   :  { %3968 = vmatpush2.msra.mxu0 %v7977_v12  ;;  %4039 = vmatpush2.msra.mxu1 %v7979_v16  ;;  %9773 = vst [vmem:[#allocation71_spill] sm:$0xff] %v7991_v19  ;;  %9774 = vst [vmem:[#allocation70_spill] sm:$0xff] %v7995_v14  ;;  %v7997_v12 = vld [vmem:[#allocation5 + $0x358] sm:$0xff]  ;;  %v8001_v16 = vld [vmem:[#allocation5 + $0x340] sm:$0xff] }
 0x7cc   :  { %3969 = vmatprep.subr.mxu0 %v7983_v4  ;;  %4040 = vmatprep.subr.mxu1 %v7985_v11  ;;  %9775 = vst [vmem:[#allocation73_spill] sm:$0xff] %v7997_v12  ;;  %9776 = vst [vmem:[#allocation72_spill] sm:$0xff] %v8001_v16  ;;  %v8003_v4 = vld [vmem:[#allocation5 + $0x350] sm:$0xff]  ;;  %v8007_v11 = vld [vmem:[#allocation5 + $0x328] sm:$0xff] }
 0x7cd   :  { %3970 = vmatpush2.msra.mxu0 %v7989_v9  ;;  %4041 = vmatpush2.msra.mxu1 %v7991_v19  ;;  %9777 = vst [vmem:[#allocation75_spill] sm:$0xff] %v8003_v4  ;;  %9778 = vst [vmem:[#allocation74_spill] sm:$0xff] %v8007_v11  ;;  %v8009_v9 = vld [vmem:[#allocation5 + $0x338] sm:$0xff]  ;;  %v8013_v19 = vld [vmem:[#allocation5 + $0x320] sm:$0xff] }
 0x7ce   :  { %3971 = vmatprep.subr.mxu0 %v7995_v14  ;;  %4042 = vmatprep.subr.mxu1 %v7997_v12  ;;  %9779 = vst [vmem:[#allocation77_spill] sm:$0xff] %v8009_v9  ;;  %9780 = vst [vmem:[#allocation76_spill] sm:$0xff] %v8013_v19  ;;  %v8015_v14 = vld [vmem:[#allocation5 + $0x330] sm:$0xff]  ;;  %v8019_v12 = vld [vmem:[#allocation5 + $0x308] sm:$0xff] }
 0x7cf   :  { %3972 = vmatpush2.msra.mxu0 %v8001_v16  ;;  %4043 = vmatpush2.msra.mxu1 %v8003_v4  ;;  %9781 = vst [vmem:[#allocation79_spill] sm:$0xff] %v8015_v14  ;;  %9782 = vst [vmem:[#allocation78_spill] sm:$0xff] %v8019_v12  ;;  %v8021_v16 = vld [vmem:[#allocation5 + $0x318] sm:$0xff]  ;;  %v8025_v4 = vld [vmem:[#allocation5 + $0x300] sm:$0xff] }
 0x7d0   :  { %3973 = vmatprep.subr.mxu0 %v8007_v11  ;;  %4044 = vmatprep.subr.mxu1 %v8009_v9  ;;  %9783 = vst [vmem:[#allocation81_spill] sm:$0xff] %v8021_v16  ;;  %9784 = vst [vmem:[#allocation80_spill] sm:$0xff] %v8025_v4  ;;  %v8027_v11 = vld [vmem:[#allocation5 + $0x310] sm:$0xff]  ;;  %v8029_v9 = vld [vmem:[#allocation5 + $0x2e8] sm:$0xff] }
 0x7d1   :  { %3974 = vmatpush2.msra.mxu0 %v8013_v19  ;;  %4045 = vmatpush2.msra.mxu1 %v8015_v14  ;;  %9785 = vst [vmem:[#allocation83_spill] sm:$0xff] %v8027_v11  ;;  %9786 = vst [vmem:[#allocation82_spill] sm:$0xff] %v8029_v9  ;;  %v8033_v19 = vld [vmem:[#allocation5 + $0x2f8] sm:$0xff]  ;;  %v8035_v14 = vld [vmem:[#allocation5 + $0x2e0] sm:$0xff] }
 0x7d2   :  { %3975 = vmatprep.subr.mxu0 %v8019_v12  ;;  %4046 = vmatprep.subr.mxu1 %v8021_v16  ;;  %9787 = vst [vmem:[#allocation85_spill] sm:$0xff] %v8033_v19  ;;  %9788 = vst [vmem:[#allocation84_spill] sm:$0xff] %v8035_v14  ;;  %v8041_v16 = vld [vmem:[#allocation5 + $0x2c8] sm:$0xff]  ;;  %v8043_v12 = vld [vmem:[#allocation5 + $0x2d8] sm:$0xff] }
 0x7d3   :  { %3976 = vmatpush2.msra.mxu0 %v8025_v4  ;;  %4047 = vmatpush2.msra.mxu1 %v8027_v11  ;;  %9790 = vst [vmem:[#allocation86_spill] sm:$0xff] %v8041_v16  ;;  %9791 = vst [vmem:[#allocation89_spill] sm:$0xff] %v8043_v12  ;;  %v8049_v11 = vld [vmem:[#allocation5 + $0x2d0] sm:$0xff]  ;;  %v8051_v4 = vld [vmem:[#allocation5 + $0x2a8] sm:$0xff] }
 0x7d4   :  { %3977 = vmatprep.subr.mxu0 %v8029_v9  ;;  %4048 = vmatprep.subr.mxu1 %v8033_v19  ;;  %9793 = vst [vmem:[#allocation91_spill] sm:$0xff] %v8049_v11  ;;  %9794 = vst [vmem:[#allocation90_spill] sm:$0xff] %v8051_v4  ;;  %v8057_v19 = vld [vmem:[#allocation5 + $0x2a0] sm:$0xff]  ;;  %v8059_v9 = vld [vmem:[#allocation5 + $0x2b0] sm:$0xff] }
 0x7d5   :  { %3978 = vmatpush2.msra.mxu0 %v8035_v14  ;;  %4049 = vmatpush2.msra.mxu1 %v8037_v39  ;;  %9796 = vst [vmem:[#allocation92_spill] sm:$0xff] %v8057_v19  ;;  %9797 = vst [vmem:[#allocation95_spill] sm:$0xff] %v8059_v9  ;;  %v8063_v14 = vld [vmem:[#allocation5 + $0x288] sm:$0xff]  ;;  %v8065_v39 = vld [vmem:[#allocation5 + $0x298] sm:$0xff] }
 0x7d6   :  { %3979 = vmatprep.subr.mxu0 %v8041_v16  ;;  %4050 = vmatprep.subr.mxu1 %v8043_v12  ;;  %9798 = vst [vmem:[#allocation94_spill] sm:$0xff] %v8063_v14  ;;  %9799 = vst [vmem:[#allocation97_spill] sm:$0xff] %v8065_v39  ;;  %v8071_v16 = vld [vmem:[#allocation5 + $0x290] sm:$0xff]  ;;  %v8075_v12 = vld [vmem:[#allocation5 + $0x268] sm:$0xff] }
 0x7d7   :  { %3980 = vmatpush2.msra.mxu0 %v8045_v48  ;;  %4051 = vmatpush2.msra.mxu1 %v8049_v11  ;;  %9801 = vst [vmem:[#allocation99_spill] sm:$0xff] %v8071_v16  ;;  %9802 = vst [vmem:[#allocation98_spill] sm:$0xff] %v8075_v12  ;;  %v8077_v48 = vld [vmem:[#allocation5 + $0x278] sm:$0xff]  ;;  %v8081_v11 = vld [vmem:[#allocation5 + $0x260] sm:$0xff] }
 0x7d8   :  { %3981 = vmatprep.subr.mxu0 %v8051_v4  ;;  %4052 = vmatprep.subr.mxu1 %v8053_v40  ;;  %9803 = vst [vmem:[#allocation101_spill] sm:$0xff] %v8077_v48  ;;  %9804 = vst [vmem:[#allocation100_spill] sm:$0xff] %v8081_v11  ;;  %v8083_v4 = vld [vmem:[#allocation5 + $0x270] sm:$0xff]  ;;  %v8087_v40 = vld [vmem:[#allocation5 + $0x248] sm:$0xff] }
 0x7d9   :  { %3982 = vmatpush2.msra.mxu0 %v8057_v19  ;;  %4053 = vmatpush2.msra.mxu1 %v8059_v9  ;;  %9805 = vst [vmem:[#allocation103_spill] sm:$0xff] %v8083_v4  ;;  %9806 = vst [vmem:[#allocation102_spill] sm:$0xff] %v8087_v40  ;;  %v8089_v19 = vld [vmem:[#allocation5 + $0x258] sm:$0xff]  ;;  %v8093_v9 = vld [vmem:[#allocation5 + $0x240] sm:$0xff] }
 0x7da   :  { %3983 = vmatprep.subr.mxu0 %v8063_v14  ;;  %4054 = vmatprep.subr.mxu1 %v8065_v39  ;;  %9807 = vst [vmem:[#allocation105_spill] sm:$0xff] %v8089_v19  ;;  %9808 = vst [vmem:[#allocation104_spill] sm:$0xff] %v8093_v9  ;;  %v8095_v14 = vld [vmem:[#allocation5 + $0x250] sm:$0xff]  ;;  %v8099_v39 = vld [vmem:[#allocation5 + $0x228] sm:$0xff] }
 0x7db   :  { %3984 = vmatpush2.msra.mxu0 %v8069_v44  ;;  %4055 = vmatpush2.msra.mxu1 %v8071_v16  ;;  %9809 = vst [vmem:[#allocation107_spill] sm:$0xff] %v8095_v14  ;;  %9810 = vst [vmem:[#allocation106_spill] sm:$0xff] %v8099_v39  ;;  %v8101_v44 = vld [vmem:[#allocation5 + $0x238] sm:$0xff]  ;;  %v8105_v16 = vld [vmem:[#allocation5 + $0x220] sm:$0xff] }
 0x7dc   :  { %3985 = vmatprep.subr.mxu0 %v8075_v12  ;;  %4056 = vmatprep.subr.mxu1 %v8077_v48  ;;  %9811 = vst [vmem:[#allocation109_spill] sm:$0xff] %v8101_v44  ;;  %9812 = vst [vmem:[#allocation108_spill] sm:$0xff] %v8105_v16  ;;  %v8107_v12 = vld [vmem:[#allocation5 + $0x230] sm:$0xff]  ;;  %v8111_v48 = vld [vmem:[#allocation5 + $0x208] sm:$0xff] }
 0x7dd   :  { %3986 = vmatpush2.msra.mxu0 %v8081_v11  ;;  %4057 = vmatpush2.msra.mxu1 %v8083_v4  ;;  %9813 = vst [vmem:[#allocation111_spill] sm:$0xff] %v8107_v12  ;;  %9814 = vst [vmem:[#allocation110_spill] sm:$0xff] %v8111_v48  ;;  %v8113_v11 = vld [vmem:[#allocation5 + $0x218] sm:$0xff]  ;;  %v8117_v4 = vld [vmem:[#allocation5 + $0x200] sm:$0xff] }
 0x7de   :  { %3987 = vmatprep.subr.mxu0 %v8087_v40  ;;  %4058 = vmatprep.subr.mxu1 %v8089_v19  ;;  %9815 = vst [vmem:[#allocation113_spill] sm:$0xff] %v8113_v11  ;;  %9816 = vst [vmem:[#allocation112_spill] sm:$0xff] %v8117_v4  ;;  %v8119_v40 = vld [vmem:[#allocation5 + $0x210] sm:$0xff]  ;;  %v4154_v19 = vld [vmem:[#allocation4 + $0x1e8] sm:$0xff] }
 0x7df   :  { %3988 = vmatpush2.msra.mxu0 %v8093_v9  ;;  %4059 = vmatpush2.msra.mxu1 %v8095_v14  ;;  %9817 = vst [vmem:[#allocation115_spill] sm:$0xff] %v8119_v40  ;;  %v4156_v9 = vld [vmem:[#allocation4 + $0x1f8] sm:$0xff] }
 0x7e0   :  { %3989 = vmatprep.subr.mxu0 %v8099_v39  ;;  %4060 = vmatprep.subr.mxu1 %v8101_v44 }
 0x7e1   :  { %3990 = vmatpush2.msra.mxu0 %v8105_v16  ;;  %4061 = vmatpush2.msra.mxu1 %v8107_v12 }
 0x7e2   :  { %3991 = vmatprep.subr.mxu0 %v8111_v48  ;;  %4062 = vmatprep.subr.mxu1 %v8113_v11 }
 0x7e3   :  { %3992 = vmatpush2.msra.mxu0 %v8117_v4  ;;  %4063 = vmatpush2.msra.mxu1 %v8119_v40 }
 0x7e4   :  { %4157 = vmatprep.subr.mxu0 %v4154_v19  ;;  %4228 = vmatprep.subr.mxu1 %v4156_v9 }
 0x842   :  { %v3471_v44 = vpop.f32.mrf.mxu0  ;;  %v3542_v39 = vpop.f32.mrf.mxu1 }
 0x843   :  { %v3472_v14 = vadd.f32 %v3471_v44, %v9680_v27  ;;  %v3543_v4 = vadd.f32 %v3542_v39, %v9683_v31  ;;  %v9819_v39 = vld [vmem:[#allocation42_spill] sm:$0xff]  ;;  %v9820_v31 = vld [vmem:[#allocation44_spill] sm:$0xff] }
 0x844   :  { %v3473_v30 = vpop.f32.mrf.mxu0  ;;  %v3544_v26 = vpop.f32.mrf.mxu1 }
 0x845   :  { %v3547_v16 = vmul.f32 0.5, %v3472_v14  ;;  %v3474_v12 = vadd.f32 %v3473_v30, %v9681_v2  ;;  %v3545_v11 = vadd.f32 %v3544_v26, %v9682_v15  ;;  %v3549_v40 = vmul.f32 0.5, %v3543_v4 }
 0x847   :  { %4925 = vtanh.f32 %v3547_v16  ;;  %v3548_v10 = vmul.f32 0.5, %v3474_v12 }
 0x849   :  { %4927 = vtanh.f32 %v3548_v10 }
 0x84a   :  { %4929 = vtanh.f32 %v3545_v11 }
 0x84b   :  { %4931 = vtanh.f32 %v3549_v40 }
 0x854   :  { %v4926_v19 = vpop.eup %4925 }
 0x855   :  { %v3553_v9 = vmul.f32 0.5, %v4926_v19 }
 0x856   :  { %v4928_v48 = vpop.eup %4927 }
 0x857   :  { %v3556_v23 = vadd.f32 0.5, %v3553_v9  ;;  %v3554_v44 = vmul.f32 0.5, %v4928_v48  ;;  %v4930_v14 = vpop.eup %4929 }
 0x858   :  { %v4932_v12 = vpop.eup %4931 }
 0x859   :  { %v3557_v27 = vadd.f32 0.5, %v3554_v44  ;;  %v3561_v2 = vmul.f32 %v4930_v14, %v3556_v23  ;;  %v3555_v40 = vmul.f32 0.5, %v4932_v12 }
 0x85b   :  { %v3560_v30 = vmul.f32 %v3557_v27, %v7662_v3  ;;  %v9821_v27 = vld [vmem:[#allocation45_spill] sm:$0xff] }
 0x85d   :  { %v8132_v16 = vadd.f32 %v3561_v2, %v3560_v30  ;;  %v3558_v2 = vadd.f32 0.5, %v3555_v40  ;;  %v9822_v30 = vld [vmem:[#allocation43_spill] sm:$0xff] }
 0x85f   :  { %9818 = vst [vmem:[#allocation114_spill] sm:$0xff] %v8132_v16  ;;  %4933 = vtanh.f32 %v8132_v16 }
 0x863   :  { %v3699_v10 = vpop.f32.mrf.mxu0  ;;  %v3770_v26 = vpop.f32.mrf.mxu1 }
 0x864   :  { %v3775_v4 = vadd.f32 %v3699_v10, %v9819_v39  ;;  %v3777_v16 = vadd.f32 %v3770_v26, %v9822_v30  ;;  %v4152_v30 = vld [vmem:[#allocation4 + $0x1d8] sm:$0xff] }
 0x865   :  { %v3701_v11 = vpop.f32.mrf.mxu0  ;;  %v3772_v48 = vpop.f32.mrf.mxu1 }
 0x866   :  { %v3779_v19 = vmul.f32 0.5, %v3775_v4  ;;  %v3776_v9 = vadd.f32 %v3701_v11, %v9820_v31  ;;  %v3778_v3 = vadd.f32 %v3772_v48, %v9821_v27  ;;  %v3781_v10 = vmul.f32 0.5, %v3777_v16 }
 0x868   :  { %4935 = vtanh.f32 %v3779_v19  ;;  %v3780_v44 = vmul.f32 0.5, %v3776_v9 }
 0x86a   :  { %4937 = vtanh.f32 %v3780_v44 }
 0x86b   :  { %4939 = vtanh.f32 %v3778_v3 }
 0x86c   :  { %v4934_v23 = vpop.eup %4933  ;;  %4941 = vtanh.f32 %v3781_v10  ;;  %v4146_v10 = vld [vmem:[#allocation4 + $0x1a8] sm:$0xff] }
 0x86d   :  { %v3564_v14 = vmul.f32 %v4934_v23, %v3558_v2  ;;  %v4153_v2 = vld [vmem:[#allocation4 + $0x1e0] sm:$0xff]  ;;  %v4155_v23 = vld [vmem:[#allocation4 + $0x1f0] sm:$0xff] }
 0x86f   :  { %3993 = vmatprep.mubr.f32.mxu0 %v3564_v14  ;;  %4064 = vmatprep.mubr.f32.mxu1 %v3564_v14  ;;  %v4150_v14 = vld [vmem:[#allocation4 + $0x1c8] sm:$0xff] }
 0x875   :  { %v4936_v39 = vpop.eup %4935 }
 0x876   :  { %v3785_v4 = vmul.f32 0.5, %v4936_v39  ;;  %v4148_v39 = vld [vmem:[#allocation4 + $0x1b8] sm:$0xff] }
 0x877   :  { %v4938_v15 = vpop.eup %4937 }
 0x878   :  { %v3788_v31 = vadd.f32 0.5, %v3785_v4  ;;  %v3786_v12 = vmul.f32 0.5, %v4938_v15  ;;  %v4940_v19 = vpop.eup %4939  ;;  %v4149_v15 = vld [vmem:[#allocation4 + $0x1c0] sm:$0xff] }
 0x879   :  { %v4942_v44 = vpop.eup %4941  ;;  %v4145_v4 = vld [vmem:[#allocation4 + $0x1a0] sm:$0xff] }
 0x87a   :  { %v3789_v11 = vadd.f32 0.5, %v3786_v12  ;;  %v3793_v48 = vmul.f32 %v4940_v19, %v3788_v31  ;;  %v3787_v27 = vmul.f32 0.5, %v4942_v44  ;;  %v4147_v31 = vld [vmem:[#allocation4 + $0x1b0] sm:$0xff]  ;;  %v4142_v12 = vld [vmem:[#allocation4 + $0x188] sm:$0xff]  ;;  %v4141_v19 = vld [vmem:[#allocation4 + $0x180] sm:$0xff] }
 0x87b   :  { %v4140_v44 = vld [vmem:[#allocation4 + $0x178] sm:$0xff] }
 0x87c   :  { %v3792_v9 = vmul.f32 %v3789_v11, %v7670_v57  ;;  %v3790_v3 = vadd.f32 0.5, %v3787_v27  ;;  %v4151_v57 = vld [vmem:[#allocation4 + $0x1d0] sm:$0xff]  ;;  %v4144_v11 = vld [vmem:[#allocation4 + $0x198] sm:$0xff]  ;;  %v4137_v27 = vld [vmem:[#allocation4 + $0x160] sm:$0xff] }
 0x87e   :  { %v8140_v40 = vadd.f32 %v3793_v48, %v3792_v9  ;;  %v4143_v9 = vld [vmem:[#allocation4 + $0x190] sm:$0xff]  ;;  %v4138_v48 = vld [vmem:[#allocation4 + $0x168] sm:$0xff] }
 0x880   :  { %4943 = vtanh.f32 %v8140_v40 }
 0x88d   :  { %v4944_v26 = vpop.eup %4943 }
 0x88e   :  { %v8143_v16 = vmul.f32 %v4944_v26, %v3790_v3  ;;  %v4139_v3 = vld [vmem:[#allocation4 + $0x170] sm:$0xff]  ;;  %v4134_v26 = vld [vmem:[#allocation4 + $0x148] sm:$0xff] }
 0x890   :  { %3994 = vmatmul.mubr.f32.vlgmr.msra.gmra.mxu0 %v8143_v16  ;;  %4065 = vmatmul.mubr.f32.vlgmr.msra.gmra.mxu1 %v8143_v16 }
 0x891   :  { %4158 = vmatpush1.msra.mxu0 %v4153_v2  ;;  %4229 = vmatpush1.msra.mxu1 %v4155_v23  ;;  %v4136_v2 = vld [vmem:[#allocation4 + $0x158] sm:$0xff]  ;;  %v4133_v23 = vld [vmem:[#allocation4 + $0x140] sm:$0xff] }
 0x892   :  { %4159 = vmatprep.subr.mxu0 %v4150_v14  ;;  %4230 = vmatprep.subr.mxu1 %v4152_v30  ;;  %v4135_v14 = vld [vmem:[#allocation4 + $0x150] sm:$0xff]  ;;  %v4130_v30 = vld [vmem:[#allocation4 + $0x128] sm:$0xff] }
 0x893   :  { %4160 = vmatpush1.msra.mxu0 %v4149_v15  ;;  %4231 = vmatpush1.msra.mxu1 %v4151_v57  ;;  %v4132_v15 = vld [vmem:[#allocation4 + $0x138] sm:$0xff]  ;;  %v4129_v57 = vld [vmem:[#allocation4 + $0x120] sm:$0xff] }
 0x894   :  { %4161 = vmatprep.subr.mxu0 %v4146_v10  ;;  %4232 = vmatprep.subr.mxu1 %v4148_v39  ;;  %v4131_v10 = vld [vmem:[#allocation4 + $0x130] sm:$0xff]  ;;  %v4126_v39 = vld [vmem:[#allocation4 + $0x108] sm:$0xff] }
 0x895   :  { %4162 = vmatpush1.msra.mxu0 %v4145_v4  ;;  %4233 = vmatpush1.msra.mxu1 %v4147_v31  ;;  %v4128_v4 = vld [vmem:[#allocation4 + $0x118] sm:$0xff]  ;;  %v4125_v31 = vld [vmem:[#allocation4 + $0x100] sm:$0xff] }
 0x896   :  { %4163 = vmatprep.subr.mxu0 %v4142_v12  ;;  %4234 = vmatprep.subr.mxu1 %v4144_v11  ;;  %v4127_v12 = vld [vmem:[#allocation4 + $0x110] sm:$0xff]  ;;  %v4122_v11 = vld [vmem:[#allocation4 + $0xe8] sm:$0xff] }
 0x897   :  { %4164 = vmatpush1.msra.mxu0 %v4141_v19  ;;  %4235 = vmatpush1.msra.mxu1 %v4143_v9  ;;  %v4124_v19 = vld [vmem:[#allocation4 + $0xf8] sm:$0xff]  ;;  %v4121_v9 = vld [vmem:[#allocation4 + $0xe0] sm:$0xff] }
 0x898   :  { %4165 = vmatprep.subr.mxu0 %v4138_v48  ;;  %4236 = vmatprep.subr.mxu1 %v4140_v44  ;;  %v4123_v48 = vld [vmem:[#allocation4 + $0xf0] sm:$0xff]  ;;  %v4118_v44 = vld [vmem:[#allocation4 + $0xc8] sm:$0xff] }
 0x899   :  { %4166 = vmatpush1.msra.mxu0 %v4137_v27  ;;  %4237 = vmatpush1.msra.mxu1 %v4139_v3  ;;  %v4120_v27 = vld [vmem:[#allocation4 + $0xd8] sm:$0xff]  ;;  %v4117_v3 = vld [vmem:[#allocation4 + $0xc0] sm:$0xff] }
 0x89a   :  { %4167 = vmatprep.subr.mxu0 %v4134_v26  ;;  %4238 = vmatprep.subr.mxu1 %v4136_v2  ;;  %v4119_v26 = vld [vmem:[#allocation4 + $0xd0] sm:$0xff]  ;;  %v4114_v2 = vld [vmem:[#allocation4 + $0xa8] sm:$0xff] }
 0x89b   :  { %4168 = vmatpush1.msra.mxu0 %v4133_v23  ;;  %4239 = vmatpush1.msra.mxu1 %v4135_v14  ;;  %v4116_v23 = vld [vmem:[#allocation4 + $0xb8] sm:$0xff]  ;;  %v4113_v14 = vld [vmem:[#allocation4 + $0xa0] sm:$0xff] }
 0x89c   :  { %4169 = vmatprep.subr.mxu0 %v4130_v30  ;;  %4240 = vmatprep.subr.mxu1 %v4132_v15  ;;  %v4115_v30 = vld [vmem:[#allocation4 + $0xb0] sm:$0xff]  ;;  %v4110_v15 = vld [vmem:[#allocation4 + $0x88] sm:$0xff] }
 0x89d   :  { %4170 = vmatpush1.msra.mxu0 %v4129_v57  ;;  %4241 = vmatpush1.msra.mxu1 %v4131_v10  ;;  %v4112_v57 = vld [vmem:[#allocation4 + $0x98] sm:$0xff]  ;;  %v4109_v10 = vld [vmem:[#allocation4 + $0x80] sm:$0xff] }
 0x89e   :  { %4171 = vmatprep.subr.mxu0 %v4126_v39  ;;  %4242 = vmatprep.subr.mxu1 %v4128_v4  ;;  %v4111_v39 = vld [vmem:[#allocation4 + $0x90] sm:$0xff]  ;;  %v4106_v4 = vld [vmem:[#allocation4 + $0x68] sm:$0xff] }
 0x89f   :  { %4172 = vmatpush1.msra.mxu0 %v4125_v31  ;;  %4243 = vmatpush1.msra.mxu1 %v4127_v12  ;;  %v4108_v31 = vld [vmem:[#allocation4 + $0x78] sm:$0xff]  ;;  %v4105_v12 = vld [vmem:[#allocation4 + $0x60] sm:$0xff] }
 0x8a0   :  { %4173 = vmatprep.subr.mxu0 %v4122_v11  ;;  %4244 = vmatprep.subr.mxu1 %v4124_v19  ;;  %v4107_v11 = vld [vmem:[#allocation4 + $0x70] sm:$0xff]  ;;  %v4102_v19 = vld [vmem:[#allocation4 + $0x48] sm:$0xff] }
 0x8a1   :  { %4174 = vmatpush1.msra.mxu0 %v4121_v9  ;;  %4245 = vmatpush1.msra.mxu1 %v4123_v48  ;;  %v4104_v9 = vld [vmem:[#allocation4 + $0x58] sm:$0xff]  ;;  %v4101_v48 = vld [vmem:[#allocation4 + $0x40] sm:$0xff] }
 0x8a2   :  { %4175 = vmatprep.subr.mxu0 %v4118_v44  ;;  %4246 = vmatprep.subr.mxu1 %v4120_v27  ;;  %v4103_v44 = vld [vmem:[#allocation4 + $0x50] sm:$0xff]  ;;  %v4098_v27 = vld [vmem:[#allocation4 + $0x28] sm:$0xff] }
 0x8a3   :  { %4176 = vmatpush1.msra.mxu0 %v4117_v3  ;;  %4247 = vmatpush1.msra.mxu1 %v4119_v26  ;;  %v4100_v3 = vld [vmem:[#allocation4 + $0x38] sm:$0xff]  ;;  %v4097_v26 = vld [vmem:[#allocation4 + $0x20] sm:$0xff] }
 0x8a4   :  { %4177 = vmatprep.subr.mxu0 %v4114_v2  ;;  %4248 = vmatprep.subr.mxu1 %v4116_v23  ;;  %v4099_v2 = vld [vmem:[#allocation4 + $0x30] sm:$0xff]  ;;  %v4094_v23 = vld [vmem:[#allocation4 + $0x8] sm:$0xff] }
 0x8a5   :  { %4178 = vmatpush1.msra.mxu0 %v4113_v14  ;;  %4249 = vmatpush1.msra.mxu1 %v4115_v30  ;;  %v4096_v14 = vld [vmem:[#allocation4 + $0x18] sm:$0xff]  ;;  %v4093_v30 = vld [vmem:[#allocation4] sm:$0xff] }
 0x8a6   :  { %4179 = vmatprep.subr.mxu0 %v4110_v15  ;;  %4250 = vmatprep.subr.mxu1 %v4112_v57  ;;  %v4095_v15 = vld [vmem:[#allocation4 + $0x10] sm:$0xff]  ;;  %v9866_v57 = vld [vmem:[#allocation73_spill] sm:$0xff] }
 0x8a7   :  { %4180 = vmatpush1.msra.mxu0 %v4109_v10  ;;  %4251 = vmatpush1.msra.mxu1 %v4111_v39  ;;  %v9867_v10 = vld [vmem:[#allocation72_spill] sm:$0xff]  ;;  %v9868_v39 = vld [vmem:[#allocation75_spill] sm:$0xff] }
 0x8a8   :  { %4181 = vmatprep.subr.mxu0 %v4106_v4  ;;  %4252 = vmatprep.subr.mxu1 %v4108_v31  ;;  %v9869_v4 = vld [vmem:[#allocation74_spill] sm:$0xff]  ;;  %v9870_v31 = vld [vmem:[#allocation77_spill] sm:$0xff] }
 0x8a9   :  { %4182 = vmatpush1.msra.mxu0 %v4105_v12  ;;  %4253 = vmatpush1.msra.mxu1 %v4107_v11  ;;  %v9871_v12 = vld [vmem:[#allocation76_spill] sm:$0xff]  ;;  %v9872_v11 = vld [vmem:[#allocation79_spill] sm:$0xff] }
 0x8aa   :  { %4183 = vmatprep.subr.mxu0 %v4102_v19  ;;  %4254 = vmatprep.subr.mxu1 %v4104_v9  ;;  %v9873_v19 = vld [vmem:[#allocation78_spill] sm:$0xff]  ;;  %v9874_v9 = vld [vmem:[#allocation81_spill] sm:$0xff] }
 0x8ab   :  { %4184 = vmatpush1.msra.mxu0 %v4101_v48  ;;  %4255 = vmatpush1.msra.mxu1 %v4103_v44  ;;  %v9875_v48 = vld [vmem:[#allocation80_spill] sm:$0xff]  ;;  %v9876_v44 = vld [vmem:[#allocation83_spill] sm:$0xff] }
 0x8ac   :  { %4185 = vmatprep.subr.mxu0 %v4098_v27  ;;  %4256 = vmatprep.subr.mxu1 %v4100_v3  ;;  %v9877_v27 = vld [vmem:[#allocation82_spill] sm:$0xff]  ;;  %v9878_v3 = vld [vmem:[#allocation85_spill] sm:$0xff] }
 0x8ad   :  { %4186 = vmatpush1.msra.mxu0 %v4097_v26  ;;  %4257 = vmatpush1.msra.mxu1 %v4099_v2  ;;  %v9879_v26 = vld [vmem:[#allocation84_spill] sm:$0xff]  ;;  %v9880_v2 = vld [vmem:[#allocation87_spill] sm:$0xff] }
 0x8ae   :  { %4187 = vmatprep.subr.mxu0 %v4094_v23  ;;  %4258 = vmatprep.subr.mxu1 %v4096_v14  ;;  %v9881_v23 = vld [vmem:[#allocation86_spill] sm:$0xff]  ;;  %v9882_v14 = vld [vmem:[#allocation89_spill] sm:$0xff] }
 0x8af   :  { %4188 = vmatpush1.msra.mxu0 %v4093_v30  ;;  %4221 = vmatprep.mubr.f32.mxu0 %v9040_v33  ;;  %v9883_v30 = vld [vmem:[#allocation88_spill] sm:$0xff] }
 0x8b0   :  { %4259 = vmatpush1.msra.mxu1 %v4095_v15  ;;  %4292 = vmatprep.mubr.f32.mxu1 %v9040_v33  ;;  %v9884_v15 = vld [vmem:[#allocation91_spill] sm:$0xff] }
 0x8b1   :  { %4222 = vmatmul.mubr.f32.vlgmr.msra.gmra.mxu0 %v8143_v16  ;;  %4293 = vmatmul.mubr.f32.vlgmr.msra.gmra.mxu1 %v8143_v16  ;;  %v9865_v16 = vld [vmem:[#allocation70_spill] sm:$0xff] }
 0x8b2   :  { %4453 = vmatprep.subr.mxu0 %v7743_v0  ;;  %4524 = vmatprep.subr.mxu1 %v7745_v53  ;;  %v9823_v0 = vld [vmem:[#allocation164_spill] sm:$0xff]  ;;  %v9824_v53 = vld [vmem:[#allocation171_spill] sm:$0xff] }
 0x8b3   :  { %4454 = vmatpush1.msra.mxu0 %v7749_v18  ;;  %4525 = vmatpush1.msra.mxu1 %v7751_v58  ;;  %v9825_v18 = vld [vmem:[#allocation166_spill] sm:$0xff]  ;;  %v9826_v58 = vld [vmem:[#allocation173_spill] sm:$0xff] }
 0x8b4   :  { %4455 = vmatprep.subr.mxu0 %v7755_v47  ;;  %4526 = vmatprep.subr.mxu1 %v7757_v37  ;;  %v9827_v47 = vld [vmem:[#allocation168_spill] sm:$0xff]  ;;  %v9828_v37 = vld [vmem:[#allocation175_spill] sm:$0xff] }
 0x8b5   :  { %4456 = vmatpush1.msra.mxu0 %v7761_v34  ;;  %4527 = vmatpush1.msra.mxu1 %v7763_v59  ;;  %v9829_v34 = vld [vmem:[#allocation170_spill] sm:$0xff]  ;;  %v9830_v59 = vld [vmem:[#allocation172_spill] sm:$0xff] }
 0x8b6   :  { %4457 = vmatprep.subr.mxu0 %v7767_v52  ;;  %4528 = vmatprep.subr.mxu1 %v7769_v8  ;;  %v9831_v52 = vld [vmem:[#allocation178_spill] sm:$0xff] }
 0x8b7   :  { %4458 = vmatpush1.msra.mxu0 %v7773_v56  ;;  %4529 = vmatpush1.msra.mxu1 %v7775_v5  ;;  %v9832_v8 = vld [vmem:[#allocation174_spill] sm:$0xff]  ;;  %v9833_v56 = vld [vmem:[#allocation176_spill] sm:$0xff] }
 0x8b8   :  { %4459 = vmatprep.subr.mxu0 %v7779_v13  ;;  %4530 = vmatprep.subr.mxu1 %v7781_v1  ;;  %v9834_v5 = vld [vmem:[#allocation34_spill] sm:$0xff]  ;;  %v9835_v13 = vld [vmem:[#allocation36_spill] sm:$0xff]  ;;  %v9836_v1 = vld [vmem:[#allocation37_spill] sm:$0xff] }
 0x8b9   :  { %4460 = vmatpush1.msra.mxu0 %v7785_v62  ;;  %4531 = vmatpush1.msra.mxu1 %v7787_v22  ;;  %v9837_v62 = vld [vmem:[#allocation35_spill] sm:$0xff]  ;;  %v9838_v22 = vld [vmem:[#allocation177_spill] sm:$0xff] }
 0x8ba   :  { %4461 = vmatprep.subr.mxu0 %v7791_v7  ;;  %4532 = vmatprep.subr.mxu1 %v7793_v61  ;;  %v9839_v7 = vld [vmem:[#allocation179_spill] sm:$0xff]  ;;  %v9840_v61 = vld [vmem:[#allocation180_spill] sm:$0xff] }
 0x8bb   :  { %4462 = vmatpush1.msra.mxu0 %v7797_v55  ;;  %4533 = vmatpush1.msra.mxu1 %v7799_v43  ;;  %v9841_v55 = vld [vmem:[#allocation26_spill] sm:$0xff]  ;;  %v9842_v43 = vld [vmem:[#allocation28_spill] sm:$0xff] }
 0x8bc   :  { %4463 = vmatprep.subr.mxu0 %v7803_v45  ;;  %4534 = vmatprep.subr.mxu1 %v7805_v38  ;;  %v9843_v45 = vld [vmem:[#allocation29_spill] sm:$0xff]  ;;  %v9844_v38 = vld [vmem:[#allocation27_spill] sm:$0xff] }
 0x8bd   :  { %4464 = vmatpush1.msra.mxu0 %v7809_v42  ;;  %4535 = vmatpush1.msra.mxu1 %v7811_v35  ;;  %v9845_v42 = vld [vmem:[#allocation51_spill] sm:$0xff]  ;;  %v9846_v35 = vld [vmem:[#allocation53_spill] sm:$0xff] }
 0x8be   :  { %4465 = vmatprep.subr.mxu0 %v7815_v50  ;;  %4536 = vmatprep.subr.mxu1 %v7817_v60  ;;  %v9847_v50 = vld [vmem:[#allocation52_spill] sm:$0xff]  ;;  %v9848_v60 = vld [vmem:[#allocation55_spill] sm:$0xff] }
 0x8bf   :  { %4466 = vmatpush1.msra.mxu0 %v7821_v63  ;;  %4537 = vmatpush1.msra.mxu1 %v7823_v20  ;;  %v9849_v63 = vld [vmem:[#allocation54_spill] sm:$0xff]  ;;  %v9850_v20 = vld [vmem:[#allocation57_spill] sm:$0xff] }
 0x8c0   :  { %4467 = vmatprep.subr.mxu0 %v7827_v21  ;;  %4538 = vmatprep.subr.mxu1 %v7829_v24  ;;  %v9851_v21 = vld [vmem:[#allocation56_spill] sm:$0xff]  ;;  %v9852_v24 = vld [vmem:[#allocation59_spill] sm:$0xff] }
 0x8c1   :  { %4468 = vmatpush1.msra.mxu0 %v7831_v25  ;;  %4539 = vmatpush1.msra.mxu1 %v7835_v28  ;;  %v9853_v25 = vld [vmem:[#allocation58_spill] sm:$0xff]  ;;  %v9854_v28 = vld [vmem:[#allocation61_spill] sm:$0xff] }
 0x8c2   :  { %4469 = vmatprep.subr.mxu0 %v7837_v29  ;;  %4540 = vmatprep.subr.mxu1 %v7839_v36  ;;  %v9855_v29 = vld [vmem:[#allocation60_spill] sm:$0xff]  ;;  %v9856_v36 = vld [vmem:[#allocation63_spill] sm:$0xff] }
 0x8c3   :  { %4470 = vmatpush1.msra.mxu0 %v7843_v41  ;;  %4541 = vmatpush1.msra.mxu1 %v7845_v46  ;;  %v9857_v41 = vld [vmem:[#allocation62_spill] sm:$0xff]  ;;  %v9858_v46 = vld [vmem:[#allocation65_spill] sm:$0xff] }
 0x8c4   :  { %4471 = vmatprep.subr.mxu0 %v7847_v49  ;;  %4542 = vmatprep.subr.mxu1 %v7851_v54  ;;  %v9859_v49 = vld [vmem:[#allocation64_spill] sm:$0xff]  ;;  %v9860_v54 = vld [vmem:[#allocation67_spill] sm:$0xff] }
 0x8c5   :  { %4472 = vmatpush1.msra.mxu0 %v7853_v51  ;;  %4543 = vmatpush1.msra.mxu1 %v7855_v32  ;;  %v9861_v51 = vld [vmem:[#allocation66_spill] sm:$0xff]  ;;  %v9862_v32 = vld [vmem:[#allocation69_spill] sm:$0xff] }
 0x8c6   :  { %4473 = vmatprep.subr.mxu0 %v7863_v17  ;;  %4544 = vmatprep.subr.mxu1 %v7865_v6  ;;  %v9863_v17 = vld [vmem:[#allocation68_spill] sm:$0xff]  ;;  %v9864_v6 = vld [vmem:[#allocation71_spill] sm:$0xff] }
 0x8c7   :  { %4474 = vmatpush1.msra.mxu0 %v9823_v0  ;;  %4545 = vmatpush1.msra.mxu1 %v9824_v53  ;;  %v9885_v0 = vld [vmem:[#allocation90_spill] sm:$0xff]  ;;  %v9886_v53 = vld [vmem:[#allocation93_spill] sm:$0xff] }
 0x8c8   :  { %4475 = vmatprep.subr.mxu0 %v9825_v18  ;;  %4546 = vmatprep.subr.mxu1 %v9826_v58  ;;  %v9887_v18 = vld [vmem:[#allocation92_spill] sm:$0xff]  ;;  %v9888_v58 = vld [vmem:[#allocation95_spill] sm:$0xff] }
 0x8c9   :  { %4476 = vmatpush1.msra.mxu0 %v9827_v47  ;;  %4547 = vmatpush1.msra.mxu1 %v9828_v37  ;;  %v9889_v47 = vld [vmem:[#allocation94_spill] sm:$0xff]  ;;  %v9890_v37 = vld [vmem:[#allocation97_spill] sm:$0xff] }
 0x8ca   :  { %4477 = vmatprep.subr.mxu0 %v9829_v34  ;;  %4548 = vmatprep.subr.mxu1 %v9830_v59  ;;  %v9891_v34 = vld [vmem:[#allocation96_spill] sm:$0xff]  ;;  %v9892_v59 = vld [vmem:[#allocation99_spill] sm:$0xff] }
 0x8cb   :  { %4478 = vmatpush1.msra.mxu0 %v9831_v52  ;;  %4549 = vmatpush1.msra.mxu1 %v9832_v8  ;;  %v9893_v52 = vld [vmem:[#allocation98_spill] sm:$0xff]  ;;  %v9894_v8 = vld [vmem:[#allocation101_spill] sm:$0xff] }
 0x8cc   :  { %4479 = vmatprep.subr.mxu0 %v9833_v56  ;;  %4550 = vmatprep.subr.mxu1 %v9834_v5  ;;  %v9895_v56 = vld [vmem:[#allocation100_spill] sm:$0xff]  ;;  %v9896_v5 = vld [vmem:[#allocation103_spill] sm:$0xff] }
 0x8cd   :  { %4480 = vmatpush1.msra.mxu0 %v9835_v13  ;;  %4551 = vmatpush1.msra.mxu1 %v9836_v1  ;;  %v9897_v13 = vld [vmem:[#allocation102_spill] sm:$0xff]  ;;  %v9898_v1 = vld [vmem:[#allocation105_spill] sm:$0xff] }
 0x8ce   :  { %4481 = vmatprep.subr.mxu0 %v9837_v62  ;;  %4552 = vmatprep.subr.mxu1 %v9838_v22  ;;  %v9899_v62 = vld [vmem:[#allocation104_spill] sm:$0xff]  ;;  %v9900_v22 = vld [vmem:[#allocation107_spill] sm:$0xff] }
 0x8cf   :  { %4482 = vmatpush1.msra.mxu0 %v9839_v7  ;;  %4553 = vmatpush1.msra.mxu1 %v9840_v61  ;;  %v9901_v7 = vld [vmem:[#allocation106_spill] sm:$0xff]  ;;  %v9902_v61 = vld [vmem:[#allocation109_spill] sm:$0xff] }
 0x8d0   :  { %4483 = vmatprep.subr.mxu0 %v9841_v55  ;;  %4554 = vmatprep.subr.mxu1 %v9842_v43  ;;  %v9903_v55 = vld [vmem:[#allocation108_spill] sm:$0xff]  ;;  %v9904_v43 = vld [vmem:[#allocation111_spill] sm:$0xff] }
 0x8d1   :  { %4484 = vmatpush1.msra.mxu0 %v9843_v45  ;;  %4555 = vmatpush1.msra.mxu1 %v9844_v38  ;;  %v9905_v45 = vld [vmem:[#allocation110_spill] sm:$0xff]  ;;  %v9906_v38 = vld [vmem:[#allocation113_spill] sm:$0xff] }
 0x8d2   :  { %4485 = vmatprep.subr.mxu0 %v9845_v42  ;;  %4556 = vmatprep.subr.mxu1 %v9846_v35  ;;  %v9907_v42 = vld [vmem:[#allocation112_spill] sm:$0xff]  ;;  %v9908_v35 = vld [vmem:[#allocation115_spill] sm:$0xff] }
 0x8d3   :  { %4486 = vmatpush2.msra.mxu0 %v9847_v50  ;;  %4557 = vmatpush2.msra.mxu1 %v9848_v60 }
 0x8d4   :  { %4487 = vmatprep.subr.mxu0 %v9849_v63  ;;  %4558 = vmatprep.subr.mxu1 %v9850_v20  ;;  %v9909_v63 = vld [vmem:[#allocation18_spill] sm:$0xff] }
 0x8d5   :  { %4488 = vmatpush2.msra.mxu0 %v9851_v21  ;;  %4559 = vmatpush2.msra.mxu1 %v9852_v24 }
 0x8d6   :  { %4489 = vmatprep.subr.mxu0 %v9853_v25  ;;  %4560 = vmatprep.subr.mxu1 %v9854_v28  ;;  %v9910_v25 = vld [vmem:[#allocation20_spill] sm:$0xff] }
 0x8d7   :  { %4490 = vmatpush2.msra.mxu0 %v9855_v29  ;;  %4561 = vmatpush2.msra.mxu1 %v9856_v36 }
 0x8d8   :  { %4491 = vmatprep.subr.mxu0 %v9857_v41  ;;  %4562 = vmatprep.subr.mxu1 %v9858_v46  ;;  %v9911_v41 = vld [vmem:[#allocation21_spill] sm:$0xff] }
 0x8d9   :  { %4492 = vmatpush2.msra.mxu0 %v9859_v49  ;;  %4563 = vmatpush2.msra.mxu1 %v9860_v54  ;;  %v9912_v49 = vld [vmem:[#allocation19_spill] sm:$0xff] }
 0x8da   :  { %4493 = vmatprep.subr.mxu0 %v9861_v51  ;;  %4564 = vmatprep.subr.mxu1 %v9862_v32 }
 0x8db   :  { %4494 = vmatpush2.msra.mxu0 %v9863_v17  ;;  %4565 = vmatpush2.msra.mxu1 %v9864_v6 }
 0x8dc   :  { %4495 = vmatprep.subr.mxu0 %v9865_v16  ;;  %4566 = vmatprep.subr.mxu1 %v9866_v57 }
 0x8dd   :  { %4496 = vmatpush2.msra.mxu0 %v9867_v10  ;;  %4567 = vmatpush2.msra.mxu1 %v9868_v39 }
 0x8de   :  { %4497 = vmatprep.subr.mxu0 %v9869_v4  ;;  %4568 = vmatprep.subr.mxu1 %v9870_v31  ;;  %v9913_v4 = vld [vmem:[#allocation114_spill] sm:$0xff] }
 0x8df   :  { %4498 = vmatpush2.msra.mxu0 %v9871_v12  ;;  %4569 = vmatpush2.msra.mxu1 %v9872_v11 }
 0x8e0   :  { %4499 = vmatprep.subr.mxu0 %v9873_v19  ;;  %4570 = vmatprep.subr.mxu1 %v9874_v9 }
 0x8e1   :  { %4500 = vmatpush2.msra.mxu0 %v9875_v48  ;;  %4571 = vmatpush2.msra.mxu1 %v9876_v44  ;;  %v9914_v44 = vld [vmem:[#allocation46_spill] sm:$0xff] }
 0x8e2   :  { %4501 = vmatprep.subr.mxu0 %v9877_v27  ;;  %4572 = vmatprep.subr.mxu1 %v9878_v3 }
 0x8e3   :  { %4502 = vmatpush2.msra.mxu0 %v9879_v26  ;;  %4573 = vmatpush2.msra.mxu1 %v9880_v2  ;;  %v9915_v2 = vld [vmem:[#allocation48_spill] sm:$0xff] }
 0x8e4   :  { %4503 = vmatprep.subr.mxu0 %v9881_v23  ;;  %4574 = vmatprep.subr.mxu1 %v9882_v14 }
 0x8e5   :  { %4504 = vmatpush2.msra.mxu0 %v9883_v30  ;;  %4575 = vmatpush2.msra.mxu1 %v9884_v15 }
 0x8e6   :  { %4505 = vmatprep.subr.mxu0 %v9885_v0  ;;  %4576 = vmatprep.subr.mxu1 %v9886_v53  ;;  %v9916_v0 = vld [vmem:[#allocation49_spill] sm:$0xff] }
 0x8e7   :  { %4506 = vmatpush2.msra.mxu0 %v9887_v18  ;;  %4577 = vmatpush2.msra.mxu1 %v9888_v58 }
 0x8e8   :  { %4507 = vmatprep.subr.mxu0 %v9889_v47  ;;  %4578 = vmatprep.subr.mxu1 %v9890_v37  ;;  %v9917_v37 = vld [vmem:[#allocation47_spill] sm:$0xff] }
 0x8e9   :  { %4508 = vmatpush2.msra.mxu0 %v9891_v34  ;;  %4579 = vmatpush2.msra.mxu1 %v9892_v59 }
 0x8ea   :  { %4509 = vmatprep.subr.mxu0 %v9893_v52  ;;  %4580 = vmatprep.subr.mxu1 %v9894_v8 }
 0x8eb   :  { %4510 = vmatpush2.msra.mxu0 %v9895_v56  ;;  %4581 = vmatpush2.msra.mxu1 %v9896_v5 }
 0x8ec   :  { %4511 = vmatprep.subr.mxu0 %v9897_v13  ;;  %4582 = vmatprep.subr.mxu1 %v9898_v1 }
 0x8ed   :  { %4512 = vmatpush2.msra.mxu0 %v9899_v62  ;;  %4583 = vmatpush2.msra.mxu1 %v9900_v22 }
 0x8ee   :  { %4513 = vmatprep.subr.mxu0 %v9901_v7  ;;  %4584 = vmatprep.subr.mxu1 %v9902_v61 }
 0x8ef   :  { %4514 = vmatpush2.msra.mxu0 %v9903_v55  ;;  %4585 = vmatpush2.msra.mxu1 %v9904_v43 }
 0x8f0   :  { %4515 = vmatprep.subr.mxu0 %v9905_v45  ;;  %4586 = vmatprep.subr.mxu1 %v9906_v38 }
 0x8f1   :  { %4516 = vmatpush2.msra.mxu0 %v9907_v42  ;;  %4587 = vmatpush2.msra.mxu1 %v9908_v35  ;;  %v4628_v35 = vld [vmem:[%s8374_s6 + $0x78] sm:$0xff] }
 0x8f2   :  { %4775 = vmatprep.subr.mxu0 %v9040_v33 }
 0x950   :  { %v3995_v50 = vpop.f32.mrf.mxu0  ;;  %v4066_v60 = vpop.f32.mrf.mxu1 }
 0x951   :  { %v3996_v20 = vadd.f32 %v3995_v50, %v9909_v63  ;;  %v4067_v54 = vadd.f32 %v4066_v60, %v9912_v49  ;;  %v4626_v50 = vld [vmem:[%s8374_s6 + $0x68] sm:$0xff]  ;;  %v4625_v60 = vld [vmem:[%s8374_s6 + $0x60] sm:$0xff] }
 0x952   :  { %v3997_v21 = vpop.f32.mrf.mxu0  ;;  %v4068_v29 = vpop.f32.mrf.mxu1 }
 0x953   :  { %v4071_v24 = vmul.f32 0.5, %v3996_v20  ;;  %v3998_v28 = vadd.f32 %v3997_v21, %v9910_v25  ;;  %v4069_v46 = vadd.f32 %v4068_v29, %v9911_v41  ;;  %v4073_v51 = vmul.f32 0.5, %v4067_v54  ;;  %v4624_v20 = vld [vmem:[%s8374_s6 + $0x58] sm:$0xff]  ;;  %v4623_v21 = vld [vmem:[%s8374_s6 + $0x50] sm:$0xff]  ;;  %v4617_v54 = vld [vmem:[%s8374_s6 + $0x20] sm:$0xff] }
 0x954   :  { %v4620_v29 = vld [vmem:[%s8374_s6 + $0x38] sm:$0xff] }
 0x955   :  { %4945 = vtanh.f32 %v4071_v24  ;;  %v4072_v36 = vmul.f32 0.5, %v3998_v28  ;;  %v4622_v24 = vld [vmem:[%s8374_s6 + $0x48] sm:$0xff]  ;;  %v4621_v28 = vld [vmem:[%s8374_s6 + $0x40] sm:$0xff] }
 0x957   :  { %4947 = vtanh.f32 %v4072_v36  ;;  %v4619_v36 = vld [vmem:[%s8374_s6 + $0x30] sm:$0xff] }
 0x958   :  { %4949 = vtanh.f32 %v4069_v46  ;;  %v4618_v46 = vld [vmem:[%s8374_s6 + $0x28] sm:$0xff] }
 0x959   :  { %4951 = vtanh.f32 %v4073_v51  ;;  %v4616_v51 = vld [vmem:[%s8374_s6 + $0x18] sm:$0xff] }
 0x962   :  { %v4946_v32 = vpop.eup %4945 }
 0x963   :  { %v4077_v17 = vmul.f32 0.5, %v4946_v32  ;;  %v4615_v32 = vld [vmem:[%s8374_s6 + $0x10] sm:$0xff] }
 0x964   :  { %v4948_v6 = vpop.eup %4947 }
 0x965   :  { %v4080_v16 = vadd.f32 0.5, %v4077_v17  ;;  %v4078_v57 = vmul.f32 0.5, %v4948_v6  ;;  %v4950_v39 = vpop.eup %4949  ;;  %v4614_v17 = vld [vmem:[%s8374_s6 + $0x8] sm:$0xff]  ;;  %v4613_v6 = vld [vmem:[%s8374_s6] sm:$0xff] }
 0x966   :  { %v4952_v48 = vpop.eup %4951 }
 0x967   :  { %v4081_v10 = vadd.f32 0.5, %v4078_v57  ;;  %v4085_v12 = vmul.f32 %v4950_v39, %v4080_v16  ;;  %v4079_v14 = vmul.f32 0.5, %v4952_v48 }
 0x969   :  { %v4084_v31 = vmul.f32 %v4081_v10, %v9913_v4  ;;  %v4082_v18 = vadd.f32 0.5, %v4079_v14 }
 0x96b   :  { %v8285_v11 = vadd.f32 %v4085_v12, %v4084_v31 }
 0x96d   :  { %4953 = vtanh.f32 %v8285_v11 }
 0x971   :  { %v4223_v19 = vpop.f32.mrf.mxu0  ;;  %v4294_v9 = vpop.f32.mrf.mxu1 }
 0x972   :  { %v4299_v27 = vadd.f32 %v4223_v19, %v9914_v44  ;;  %v4301_v34 = vadd.f32 %v4294_v9, %v9917_v37 }
 0x973   :  { %v4225_v3 = vpop.f32.mrf.mxu0  ;;  %v4296_v30 = vpop.f32.mrf.mxu1 }
 0x974   :  { %v4303_v26 = vmul.f32 0.5, %v4299_v27  ;;  %v4300_v23 = vadd.f32 %v4225_v3, %v9915_v2  ;;  %v4302_v53 = vadd.f32 %v4296_v30, %v9916_v0  ;;  %v4305_v59 = vmul.f32 0.5, %v4301_v34 }
 0x976   :  { %4955 = vtanh.f32 %v4303_v26  ;;  %v4304_v15 = vmul.f32 0.5, %v4300_v23 }
 0x978   :  { %4957 = vtanh.f32 %v4304_v15 }
 0x979   :  { %4959 = vtanh.f32 %v4302_v53 }
 0x97a   :  { %v4954_v58 = vpop.eup %4953  ;;  %4961 = vtanh.f32 %v4305_v59 }
 0x97b   :  { %v4088_v47 = vmul.f32 %v4954_v58, %v4082_v18 }
 0x97d   :  { %4517 = vmatprep.mubr.f32.mxu0 %v4088_v47  ;;  %4588 = vmatprep.mubr.f32.mxu1 %v4088_v47 }
 0x983   :  { %v4956_v52 = vpop.eup %4955 }
 0x984   :  { %v4309_v8 = vmul.f32 0.5, %v4956_v52 }
 0x985   :  { %v4958_v56 = vpop.eup %4957 }
 0x986   :  { %v4312_v5 = vadd.f32 0.5, %v4309_v8  ;;  %v4310_v13 = vmul.f32 0.5, %v4958_v56  ;;  %v4960_v62 = vpop.eup %4959 }
 0x987   :  { %v4962_v55 = vpop.eup %4961 }
 0x988   :  { %v4313_v1 = vadd.f32 0.5, %v4310_v13  ;;  %v4317_v7 = vmul.f32 %v4960_v62, %v4312_v5  ;;  %v4311_v43 = vmul.f32 0.5, %v4962_v55 }
 0x98a   :  { %v4316_v22 = vmul.f32 %v4313_v1, %v8140_v40  ;;  %v4314_v45 = vadd.f32 0.5, %v4311_v43  ;;  %v4627_v40 = vld [vmem:[%s8374_s6 + $0x70] sm:$0xff] }
 0x98c   :  { %v4318_v61 = vadd.f32 %v4317_v7, %v4316_v22 }
 0x98e   :  { %4963 = vtanh.f32 %v4318_v61 }
 0x99b   :  { %v4964_v38 = vpop.eup %4963 }
 0x99c   :  { %v4320_v42 = vmul.f32 %v4964_v38, %v4314_v45 }
 0x99e   :  { %4518 = vmatmul.mubr.f32.vlgmr.msra.gmra.mxu0 %v4320_v42  ;;  %4589 = vmatmul.mubr.f32.vlgmr.msra.gmra.mxu1 %v4320_v42 }
 0x99f   :  { %4776 = vmatpush3.msra.mxu0 %v4628_v35  ;;  %4807 = vmatprep.mubr.msk.f32.mxu0 %vm5044_vm2, %v9040_v33 }
 0x9a0   :  { %4777 = vmatprep.subr.mxu0 %v9040_v33 }
 0x9a1   :  { %4778 = vmatpush3.msra.mxu0 %v4627_v40 }
 0x9a2   :  { %4779 = vmatprep.subr.mxu0 %v9040_v33 }
 0x9a3   :  { %4780 = vmatpush3.msra.mxu0 %v4626_v50 }
 0x9a4   :  { %4781 = vmatprep.subr.mxu0 %v9040_v33 }
 0x9a5   :  { %4782 = vmatpush3.msra.mxu0 %v4625_v60 }
 0x9a6   :  { %4783 = vmatprep.subr.mxu0 %v9040_v33 }
 0x9a7   :  { %4784 = vmatpush3.msra.mxu0 %v4624_v20 }
 0x9a8   :  { %4785 = vmatprep.subr.mxu0 %v9040_v33 }
 0x9a9   :  { %4786 = vmatpush3.msra.mxu0 %v4623_v21 }
 0x9aa   :  { %4787 = vmatprep.subr.mxu0 %v9040_v33 }
 0x9ab   :  { %4788 = vmatpush3.msra.mxu0 %v4622_v24 }
 0x9ac   :  { %4789 = vmatprep.subr.mxu0 %v9040_v33 }
 0x9ad   :  { %4790 = vmatpush3.msra.mxu0 %v4621_v28 }
 0x9ae   :  { %4791 = vmatprep.subr.mxu0 %v9040_v33 }
 0x9af   :  { %4792 = vmatpush3.msra.mxu0 %v4620_v29 }
 0x9b0   :  { %4793 = vmatprep.subr.mxu0 %v9040_v33 }
 0x9b1   :  { %4794 = vmatpush3.msra.mxu0 %v4619_v36 }
 0x9b2   :  { %4795 = vmatprep.subr.mxu0 %v9040_v33 }
 0x9b3   :  { %4796 = vmatpush3.msra.mxu0 %v4618_v46 }
 0x9b4   :  { %4797 = vmatprep.subr.mxu0 %v9040_v33 }
 0x9b5   :  { %4798 = vmatpush3.msra.mxu0 %v4617_v54 }
 0x9b6   :  { %4799 = vmatprep.subr.mxu0 %v9040_v33 }
 0x9b7   :  { %4800 = vmatpush3.msra.mxu0 %v4616_v51 }
 0x9b8   :  { %4801 = vmatprep.subr.mxu0 %v9040_v33 }
 0x9b9   :  { %4802 = vmatpush3.msra.mxu0 %v4615_v32 }
 0x9ba   :  { %4803 = vmatprep.subr.mxu0 %v9040_v33 }
 0x9bb   :  { %4804 = vmatpush3.msra.mxu0 %v4614_v17 }
 0x9bc   :  { %4805 = vmatprep.subr.mxu0 %v9040_v33 }
 0x9bd   :  { %4806 = vmatpush3.msra.mxu0 %v4613_v6 }
 0xa5e   :  { %v4519_v16 = vpop.f32.mrf.mxu0  ;;  %v4590_v57 = vpop.f32.mrf.mxu1 }
 0xa5f   :  { %v4520_v10 = vadd.f32 %v4519_v16, %v9909_v63  ;;  %v4591_v48 = vadd.f32 %v4590_v57, %v9912_v49  ;;  %v4755_v49 = vld [vmem:[%s8375_s7] ss:$0 sm:$0xff] }
 0xa60   :  { %v4521_v39 = vpop.f32.mrf.mxu0  ;;  %v4592_v12 = vpop.f32.mrf.mxu1 }
 0xa61   :  { %v4595_v4 = vmul.f32 0.5, %v4520_v10  ;;  %v4522_v31 = vadd.f32 %v4521_v39, %v9910_v25  ;;  %v4593_v9 = vadd.f32 %v4592_v12, %v9911_v41  ;;  %v4597_v44 = vmul.f32 0.5, %v4591_v48 }
 0xa63   :  { %4965 = vtanh.f32 %v4595_v4  ;;  %v4596_v19 = vmul.f32 0.5, %v4522_v31 }
 0xa65   :  { %4967 = vtanh.f32 %v4596_v19 }
 0xa66   :  { %4969 = vtanh.f32 %v4593_v9 }
 0xa67   :  { %4971 = vtanh.f32 %v4597_v44 }
 0xa70   :  { %v4966_v33 = vpop.eup %4965 }
 0xa71   :  { %v4601_v27 = vmul.f32 0.5, %v4966_v33 }
 0xa72   :  { %v4968_v3 = vpop.eup %4967 }
 0xa73   :  { %v4604_v26 = vadd.f32 0.5, %v4601_v27  ;;  %v4602_v63 = vmul.f32 0.5, %v4968_v3  ;;  %v4970_v23 = vpop.eup %4969 }
 0xa74   :  { %v4972_v15 = vpop.eup %4971 }
 0xa75   :  { %v4605_v2 = vadd.f32 0.5, %v4602_v63  ;;  %v4609_v14 = vmul.f32 %v4970_v23, %v4604_v26  ;;  %v4603_v0 = vmul.f32 0.5, %v4972_v15 }
 0xa77   :  { %v4608_v25 = vmul.f32 %v4605_v2, %v8285_v11  ;;  %v4606_v41 = vadd.f32 0.5, %v4603_v0 }
 0xa79   :  { %v4610_v30 = vadd.f32 %v4609_v14, %v4608_v25 }
 0xa7b   :  { %4973 = vtanh.f32 %v4610_v30 }
 0xa88   :  { %v4974_v53 = vpop.eup %4973 }
 0xa89   :  { %v4612_v18 = vmul.f32 %v4974_v53, %v4606_v41 }
 0xa8b   :  { %4808 = vmatmul.mubr.f32.vlgmr.msra.gmra.mxu0 %v4612_v18 }
 0xb4b   :  { %v4702_v58 = vpop.f32.mrf.mxu0 }
 0xb4c   :  { %v4703_v47 = vadd.f32 %v4755_v49, %v4702_v58 }
 0xb4d   :  { %v4809_v11 = vpop.f32.mrf.mxu0 }
 0xb4e   :  { %4707 = vst.msk [vmem:[#allocation7] sm:$0xff] %vm4706_vm3, %v4703_v47 }
 0xb4f   :  { %5026 = shalt.err (!%p5023_p0)
}
 0xb50   :  { %4717 = dma.vmem_to_hbm [thread:$0]  %s4715_s22, 128, %s8376_s8, [#allocation8]  }
 0xb51   :  { %5039 = dma.done.wait [#allocation8], 128  }
 0xb52   :  { %5040 = vsyncadd [#allocation8], 4294967168 }
 0xb53   :  { %4721 = vsyncpa [#allocation8], 1 }
 0xb54   :  { %4722 = vsyncmov [#allocation6] }
 0xb57   :  { %s4723_s7 = vpop.sfrf %4722 }
 0xb58   :  { %p4756_p1 = scmp.ne.s32.totalorder %s4723_s7, 0 }
 0xb5a   :  { %4727 = shalt.err (%p4756_p1)  }
 0xb5b   :  { %4729 = vsyncmov [#allocation6 + $0x1] }
 0xb5e   :  { %s4730_s26 = vpop.sfrf %4729 }
 0xb5f   :  { %p4757_p2 = scmp.ne.s32.totalorder %s4730_s26, 0 }
 0xb61   :  { %4734 = shalt.err (%p4757_p2)  }

</bundles_post_ra>
